<compile_context>
chip_gen: v7x
topology: tpu7x:2x2x1
jax: 0.10.0
libtpu: 0.0.40
codegen_flags: <defaults>
</compile_context>

<pallas_src>
import jax
import jax.numpy as jnp
import numpy as np
from jax import lax
from jax.experimental import pallas as pl
from jax.experimental.pallas import tpu as pltpu


# (in_c, out_c, pad, pooled_out_hw) per conv block; pooled_out_hw follows from the
# 48x48 input, the only spatial size compatible with the final .view(-1, 96*3*3).
_CONV_CFG = [(3, 32, 50, 24), (32, 48, 25, 12), (48, 64, 12, 6), (64, 96, 6, 3)]
_DENSE_CFG = [(96 * 3 * 3, 256), (256, 2)]


def _vmem_spec():
    return pl.BlockSpec(memory_space=pltpu.MemorySpace.VMEM)


# ----------------------------- Pallas kernels ------------------------------ #

def _conv_block_kernel(y_ref, w_ref, b_ref, o_ref):
    """Fused Conv(3x3, stride 3) + bias + ReLU + MaxPool(2x2) for one layer.

    y_ref: (G, 36*C)    bf16  superpixel-gathered input rows, G = N*hq*wq
    w_ref: (36*C, 4*OC) bf16  block-expanded weight (one column block per pool member)
    b_ref: (1, OC)      f32
    o_ref: (G, OC)      bf16  pooled NHWC rows in (n, ph, pw) order
    """
    oc = o_ref.shape[1]
    # Single MXU matmul covering all 4 pool members (matmul N-dim = 4*OC >= 128).
    acc = jnp.dot(y_ref[...], w_ref[...], preferred_element_type=jnp.float32)
    # 2x2 max-pool == max over the 4 member column blocks (cheap XLU/VPU work).
    m = jnp.maximum(jnp.maximum(acc[:, 0 * oc:1 * oc], acc[:, 1 * oc:2 * oc]),
                    jnp.maximum(acc[:, 2 * oc:3 * oc], acc[:, 3 * oc:4 * oc]))
    # relu(max_i(acc_i) + b) == max_i(relu(acc_i + b)); bias/ReLU stay in f32.
    o_ref[...] = jnp.maximum(m + b_ref[...], 0.0).astype(o_ref.dtype)


def _dense_head_kernel(x_ref, w1_ref, b1_ref, w2_ref, b2_ref, o_ref):
    """Fused Linear(864->256) + ReLU + Linear(256->2) + Softmax (all in VMEM)."""
    h = jnp.dot(x_ref[...], w1_ref[...], preferred_element_type=jnp.float32)
    h = jnp.maximum(h + b1_ref[...], 0.0)
    logits = jnp.dot(h.astype(w2_ref.dtype), w2_ref[...],
                     preferred_element_type=jnp.float32) + b2_ref[...]
    mx = jnp.max(logits, axis=-1, keepdims=True)
    e = jnp.exp(logits - mx)
    o_ref[...] = (e / jnp.sum(e, axis=-1, keepdims=True)).astype(o_ref.dtype)


# ----------------------------- Pallas wrappers ----------------------------- #

def _conv_block_call(y, wbig, b):
    g = y.shape[0]
    oc = b.shape[1]
    return pl.pallas_call(
        _conv_block_kernel,
        out_shape=jax.ShapeDtypeStruct((g, oc), jnp.bfloat16),
        in_specs=[_vmem_spec()] * 3,
        out_specs=_vmem_spec(),
    )(y, wbig, b)


def _superpixel_cols(x_nhwc, pad, hq, wq):
    """(N, H, W, C) -> (N*hq*wq, 36*C).

    Row (n, ph, pw); column (a*6 + b)*C + c reads the zero-padded input at
    (6*ph + a, 6*pw + b).  One fused XLA pad+transpose copy per layer; the right /
    bottom padding that only feeds the conv position dropped by floor-mode pooling
    is never materialized.
    """
    n, h, w, c = x_nhwc.shape
    hi_h, hi_w = 6 * hq - h - pad, 6 * wq - w - pad
    xp = jnp.pad(x_nhwc, ((0, 0), (pad, hi_h), (pad, hi_w), (0, 0)))
    y = xp.reshape(n, hq, 6, wq, 6, c).transpose(0, 1, 3, 2, 4, 5)
    return y.reshape(n * hq * wq, 36 * c)


def conv_block(x_nhwc, wbig, b, pad, hq):
    # TODO(synk): with pad = 50/25/12/6 most superpixels see only zero padding (and the
    # previous layer's constant border); an exact border-skip would shrink G ~4-8x but
    # this path is already sub-microsecond, so it is left out for simplicity.
    n = x_nhwc.shape[0]
    oc = b.shape[1]
    y = _superpixel_cols(x_nhwc, pad, hq, hq).astype(jnp.bfloat16)
    out = _conv_block_call(y, wbig, b)               # (n*hq*hq, oc) bf16, NHWC row order
    return out.reshape(n, hq, hq, oc)


def dense_head(x, w1, b1, w2, b2):
    m = x.shape[0]
    return pl.pallas_call(
        _dense_head_kernel,
        out_shape=jax.ShapeDtypeStruct((m, w2.shape[1]), jnp.float32),
        in_specs=[_vmem_spec()] * 5,
        out_specs=_vmem_spec(),
    )(x, w1, b1, w2, b2)


# ------------------------------- parameters -------------------------------- #

def init_params(key):
    """Raw parameters in PyTorch layouts (f32): conv (OC, C, 3, 3), linear (out, in)."""
    raw = {"conv": [], "dense": []}
    keys = jax.random.split(key, 2 * (len(_CONV_CFG) + len(_DENSE_CFG)))
    ki = 0
    for (ic, oc, _, _) in _CONV_CFG:
        w = 0.05 * jax.random.normal(keys[ki], (oc, ic, 3, 3), jnp.float32)
        b = 0.05 * jax.random.normal(keys[ki + 1], (oc,), jnp.float32)
        raw["conv"].append((w, b))
        ki += 2
    for (fi, fo) in _DENSE_CFG:
        w = 0.05 * jax.random.normal(keys[ki], (fo, fi), jnp.float32)
        b = 0.05 * jax.random.normal(keys[ki + 1], (fo,), jnp.float32)
        raw["dense"].append((w, b))
        ki += 2
    return raw


def _expand_conv_weight(w):
    """(OC, C, 3, 3) torch weight -> (36*C, 4*OC) bf16 block weight.

    Column block m = di*2 + dj is pool member (di, dj); row block (a, b) is the
    superpixel offset.  Only rows with (a//3, b//3) == (di, dj) are non-zero and carry
    conv tap (kh, kw) = (a%3, b%3).  The 4x zero-padding of K is negligible MXU work
    at this size and buys a single weight push plus a >=128-lane matmul output.
    """
    w = np.asarray(w, np.float32)
    oc, c = w.shape[0], w.shape[1]
    big = np.zeros((36 * c, 4 * oc), np.float32)
    for di in range(2):
        for dj in range(2):
            m = di * 2 + dj
            for kh in range(3):
                for kw in range(3):
                    a, b = 3 * di + kh, 3 * dj + kw
                    r0 = (a * 6 + b) * c
                    big[r0:r0 + c, m * oc:(m + 1) * oc] = w[:, :, kh, kw].T
    return jnp.asarray(big, jnp.bfloat16)


def pack_params(raw):
    """One-time repack: block-expanded bf16 conv weights, (1, OC) f32 biases, dense
    weights transposed to (in, out) bf16, with w1's rows permuted so the head consumes
    the NHWC (h, w, c) flatten directly (no runtime NHWC->NCHW transpose)."""
    packed = {"conv": [], "dense": []}
    for (w, b) in raw["conv"]:
        packed["conv"].append((_expand_conv_weight(w), jnp.reshape(b, (1, -1))))
    (w1, b1), (w2, b2) = raw["dense"]
    w1p = (jnp.reshape(w1, (256, 96, 3, 3)).transpose(2, 3, 1, 0)
           .reshape(96 * 3 * 3, 256).astype(jnp.bfloat16))
    w2p = w2.T.astype(jnp.bfloat16)
    packed["dense"] = [(w1p, jnp.reshape(b1, (1, -1))), (w2p, jnp.reshape(b2, (1, -1)))]
    return packed


# ------------------------------- CNN forward -------------------------------- #

def cnn_forward(params, x):
    """x: (N, 3, 48, 48) f32 NCHW (PyTorch layout) -> (N, 2) f32 softmax probs."""
    x = x.transpose(0, 2, 3, 1).astype(jnp.bfloat16)            # NCHW -> NHWC once
    n = x.shape[0]
    for (wbig, b), (_, _, pad, hq) in zip(params["conv"], _CONV_CFG):
        x = conv_block(x, wbig, b, pad, hq)
        # TODO(synk): Dropout2d(0.25) is a train-mode RNG op; identity here (eval).
    xf = x.reshape(n, 96 * 3 * 3)      # free bitcast; (h, w, c) order matches packed w1
    (w1, b1), (w2, b2) = params["dense"]
    # TODO(synk): Dropout(0.5) after the dense layers is identity here (eval).
    return dense_head(xf, w1, b1, w2, b2)


def reference_forward(raw, x):
    """Pure-XLA f32 reference of the PyTorch forward (eval mode) for a tolerance check."""
    act = x
    for (w, b), (_, oc, pad, hq) in zip(raw["conv"], _CONV_CFG):
        act = lax.conv_general_dilated(act, w, (3, 3), [(pad, pad), (pad, pad)],
                                       dimension_numbers=("NCHW", "OIHW", "NCHW"))
        act = jnp.maximum(act + b.reshape(1, oc, 1, 1), 0.0)
        act = act[:, :, :2 * hq, :2 * hq]                       # floor-mode MaxPool2d(2)
        act = act.reshape(act.shape[0], oc, hq, 2, hq, 2).max(axis=(3, 5))
    xf = act.reshape(act.shape[0], 96 * 3 * 3)
    (w1, b1), (w2, b2) = raw["dense"]
    h = jnp.maximum(xf @ w1.T + b1, 0.0)
    return jax.nn.softmax(h @ w2.T + b2, axis=-1)


if __name__ == "__main__":
    key = jax.random.PRNGKey(0)
    pkey, xkey = jax.random.split(key)
    raw = init_params(pkey)
    params = pack_params(raw)
    # 48x48 input is required so the final feature map is (96, 3, 3) -> flatten 864.
    x = jax.random.normal(xkey, (2, 3, 48, 48), jnp.float32)
    out = jax.block_until_ready(jax.jit(cnn_forward)(params, x))
    assert out.shape == (2, 2), out.shape
    assert jnp.allclose(jnp.sum(out, axis=-1), 1.0, atol=1e-4)
    # bf16-tolerance check of the Pallas pipeline against the f32 XLA reference.
    ref = jax.block_until_ready(jax.jit(reference_forward)(raw, x))
    assert jnp.allclose(out, ref, atol=3e-2), (out, ref)
    print("KERNEL_OK")
</pallas_src>

<mosaic_0001>
module attributes {stable_mosaic.version = 11 : i64} {
  func.func @_conv_block_kernel(%arg0: memref<1152x108xbf16, #tpu.memory_space<vmem>>, %arg1: memref<108x128xbf16, #tpu.memory_space<vmem>>, %arg2: memref<1x32xf32, #tpu.memory_space<vmem>>, %arg3: memref<1152x32xbf16, #tpu.memory_space<vmem>>) attributes {dimension_semantics = [], scalar_prefetch = 0 : i64, scratch_operands = 0 : i64, tpu.core_type = #tpu.core_type<tc>} {
    %c0 = arith.constant 0 : index
    %c0_0 = arith.constant 0 : index
    %0 = vector.load %arg0[%c0, %c0_0] : memref<1152x108xbf16, #tpu.memory_space<vmem>>, vector<1152x108xbf16>
    %c0_1 = arith.constant 0 : index
    %c0_2 = arith.constant 0 : index
    %1 = vector.load %arg1[%c0_1, %c0_2] : memref<108x128xbf16, #tpu.memory_space<vmem>>, vector<108x128xbf16>
    %cst = arith.constant dense<0.000000e+00> : vector<1152x128xf32>
    %2 = tpu.matmul %0, %1, %cst {dimension_numbers = #tpu.dot_dimension_numbers<[1], [0], [0], [1], [0, 0, 1, 1], [], []>} : vector<1152x108xbf16>, vector<108x128xbf16>, vector<1152x128xf32> -> vector<1152x128xf32>
    %3 = vector.extract_strided_slice %2 {offsets = [0, 0], sizes = [1152, 32], strides = [1, 1]} : vector<1152x128xf32> to vector<1152x32xf32>
    %4 = vector.extract_strided_slice %2 {offsets = [0, 32], sizes = [1152, 32], strides = [1, 1]} : vector<1152x128xf32> to vector<1152x32xf32>
    %5 = arith.maximumf %3, %4 : vector<1152x32xf32>
    %6 = vector.extract_strided_slice %2 {offsets = [0, 64], sizes = [1152, 32], strides = [1, 1]} : vector<1152x128xf32> to vector<1152x32xf32>
    %7 = vector.extract_strided_slice %2 {offsets = [0, 96], sizes = [1152, 32], strides = [1, 1]} : vector<1152x128xf32> to vector<1152x32xf32>
    %8 = arith.maximumf %6, %7 : vector<1152x32xf32>
    %9 = arith.maximumf %5, %8 : vector<1152x32xf32>
    %c0_3 = arith.constant 0 : index
    %c0_4 = arith.constant 0 : index
    %10 = vector.load %arg2[%c0_3, %c0_4] : memref<1x32xf32, #tpu.memory_space<vmem>>, vector<1x32xf32>
    %11 = vector.broadcast %10 : vector<1x32xf32> to vector<1152x32xf32>
    %12 = arith.addf %9, %11 : vector<1152x32xf32>
    %cst_5 = arith.constant 0.000000e+00 : f32
    %13 = vector.broadcast %cst_5 : f32 to vector<1152x32xf32>
    %14 = arith.maximumf %12, %13 : vector<1152x32xf32>
    %15 = arith.truncf %14 : vector<1152x32xf32> to vector<1152x32xbf16>
    %c0_6 = arith.constant 0 : index
    %c0_7 = arith.constant 0 : index
    %16 = vector.load %arg3[%c0_6, %c0_7] : memref<1152x32xbf16, #tpu.memory_space<vmem>>, vector<1152x32xbf16>
    tpu.vector_store %arg3[%c0_6, %c0_7], %15 {strides = array<i32>} : memref<1152x32xbf16, #tpu.memory_space<vmem>>, vector<1152x32xbf16>,
    return
  }
}

module attributes {stable_mosaic.version = 11 : i64} {
  func.func @_conv_block_kernel(%arg0: memref<288x1152xbf16, #tpu.memory_space<vmem>>, %arg1: memref<1152x192xbf16, #tpu.memory_space<vmem>>, %arg2: memref<1x48xf32, #tpu.memory_space<vmem>>, %arg3: memref<288x48xbf16, #tpu.memory_space<vmem>>) attributes {dimension_semantics = [], scalar_prefetch = 0 : i64, scratch_operands = 0 : i64, tpu.core_type = #tpu.core_type<tc>} {
    %c0 = arith.constant 0 : index
    %c0_0 = arith.constant 0 : index
    %0 = vector.load %arg0[%c0, %c0_0] : memref<288x1152xbf16, #tpu.memory_space<vmem>>, vector<288x1152xbf16>
    %c0_1 = arith.constant 0 : index
    %c0_2 = arith.constant 0 : index
    %1 = vector.load %arg1[%c0_1, %c0_2] : memref<1152x192xbf16, #tpu.memory_space<vmem>>, vector<1152x192xbf16>
    %cst = arith.constant dense<0.000000e+00> : vector<288x192xf32>
    %2 = tpu.matmul %0, %1, %cst {dimension_numbers = #tpu.dot_dimension_numbers<[1], [0], [0], [1], [0, 0, 1, 1], [], []>} : vector<288x1152xbf16>, vector<1152x192xbf16>, vector<288x192xf32> -> vector<288x192xf32>
    %3 = vector.extract_strided_slice %2 {offsets = [0, 0], sizes = [288, 48], strides = [1, 1]} : vector<288x192xf32> to vector<288x48xf32>
    %4 = vector.extract_strided_slice %2 {offsets = [0, 48], sizes = [288, 48], strides = [1, 1]} : vector<288x192xf32> to vector<288x48xf32>
    %5 = arith.maximumf %3, %4 : vector<288x48xf32>
    %6 = vector.extract_strided_slice %2 {offsets = [0, 96], sizes = [288, 48], strides = [1, 1]} : vector<288x192xf32> to vector<288x48xf32>
    %7 = vector.extract_strided_slice %2 {offsets = [0, 144], sizes = [288, 48], strides = [1, 1]} : vector<288x192xf32> to vector<288x48xf32>
    %8 = arith.maximumf %6, %7 : vector<288x48xf32>
    %9 = arith.maximumf %5, %8 : vector<288x48xf32>
    %c0_3 = arith.constant 0 : index
    %c0_4 = arith.constant 0 : index
    %10 = vector.load %arg2[%c0_3, %c0_4] : memref<1x48xf32, #tpu.memory_space<vmem>>, vector<1x48xf32>
    %11 = vector.broadcast %10 : vector<1x48xf32> to vector<288x48xf32>
    %12 = arith.addf %9, %11 : vector<288x48xf32>
    %cst_5 = arith.constant 0.000000e+00 : f32
    %13 = vector.broadcast %cst_5 : f32 to vector<288x48xf32>
    %14 = arith.maximumf %12, %13 : vector<288x48xf32>
    %15 = arith.truncf %14 : vector<288x48xf32> to vector<288x48xbf16>
    %c0_6 = arith.constant 0 : index
    %c0_7 = arith.constant 0 : index
    %16 = vector.load %arg3[%c0_6, %c0_7] : memref<288x48xbf16, #tpu.memory_space<vmem>>, vector<288x48xbf16>
    tpu.vector_store %arg3[%c0_6, %c0_7], %15 {strides = array<i32>} : memref<288x48xbf16, #tpu.memory_space<vmem>>, vector<288x48xbf16>,
    return
  }
}

module attributes {stable_mosaic.version = 11 : i64} {
  func.func @_conv_block_kernel(%arg0: memref<72x1728xbf16, #tpu.memory_space<vmem>>, %arg1: memref<1728x256xbf16, #tpu.memory_space<vmem>>, %arg2: memref<1x64xf32, #tpu.memory_space<vmem>>, %arg3: memref<72x64xbf16, #tpu.memory_space<vmem>>) attributes {dimension_semantics = [], scalar_prefetch = 0 : i64, scratch_operands = 0 : i64, tpu.core_type = #tpu.core_type<tc>} {
    %c0 = arith.constant 0 : index
    %c0_0 = arith.constant 0 : index
    %0 = vector.load %arg0[%c0, %c0_0] : memref<72x1728xbf16, #tpu.memory_space<vmem>>, vector<72x1728xbf16>
    %c0_1 = arith.constant 0 : index
    %c0_2 = arith.constant 0 : index
    %1 = vector.load %arg1[%c0_1, %c0_2] : memref<1728x256xbf16, #tpu.memory_space<vmem>>, vector<1728x256xbf16>
    %cst = arith.constant dense<0.000000e+00> : vector<72x256xf32>
    %2 = tpu.matmul %0, %1, %cst {dimension_numbers = #tpu.dot_dimension_numbers<[1], [0], [0], [1], [0, 0, 1, 1], [], []>} : vector<72x1728xbf16>, vector<1728x256xbf16>, vector<72x256xf32> -> vector<72x256xf32>
    %3 = vector.extract_strided_slice %2 {offsets = [0, 0], sizes = [72, 64], strides = [1, 1]} : vector<72x256xf32> to vector<72x64xf32>
    %4 = vector.extract_strided_slice %2 {offsets = [0, 64], sizes = [72, 64], strides = [1, 1]} : vector<72x256xf32> to vector<72x64xf32>
    %5 = arith.maximumf %3, %4 : vector<72x64xf32>
    %6 = vector.extract_strided_slice %2 {offsets = [0, 128], sizes = [72, 64], strides = [1, 1]} : vector<72x256xf32> to vector<72x64xf32>
    %7 = vector.extract_strided_slice %2 {offsets = [0, 192], sizes = [72, 64], strides = [1, 1]} : vector<72x256xf32> to vector<72x64xf32>
    %8 = arith.maximumf %6, %7 : vector<72x64xf32>
    %9 = arith.maximumf %5, %8 : vector<72x64xf32>
    %c0_3 = arith.constant 0 : index
    %c0_4 = arith.constant 0 : index
    %10 = vector.load %arg2[%c0_3, %c0_4] : memref<1x64xf32, #tpu.memory_space<vmem>>, vector<1x64xf32>
    %11 = vector.broadcast %10 : vector<1x64xf32> to vector<72x64xf32>
    %12 = arith.addf %9, %11 : vector<72x64xf32>
    %cst_5 = arith.constant 0.000000e+00 : f32
    %13 = vector.broadcast %cst_5 : f32 to vector<72x64xf32>
    %14 = arith.maximumf %12, %13 : vector<72x64xf32>
    %15 = arith.truncf %14 : vector<72x64xf32> to vector<72x64xbf16>
    %c0_6 = arith.constant 0 : index
    %c0_7 = arith.constant 0 : index
    %16 = vector.load %arg3[%c0_6, %c0_7] : memref<72x64xbf16, #tpu.memory_space<vmem>>, vector<72x64xbf16>
    tpu.vector_store %arg3[%c0_6, %c0_7], %15 {strides = array<i32>} : memref<72x64xbf16, #tpu.memory_space<vmem>>, vector<72x64xbf16>,
    return
  }
}

module attributes {stable_mosaic.version = 11 : i64} {
  func.func @_conv_block_kernel(%arg0: memref<18x2304xbf16, #tpu.memory_space<vmem>>, %arg1: memref<2304x384xbf16, #tpu.memory_space<vmem>>, %arg2: memref<1x96xf32, #tpu.memory_space<vmem>>, %arg3: memref<18x96xbf16, #tpu.memory_space<vmem>>) attributes {dimension_semantics = [], scalar_prefetch = 0 : i64, scratch_operands = 0 : i64, tpu.core_type = #tpu.core_type<tc>} {
    %c0 = arith.constant 0 : index
    %c0_0 = arith.constant 0 : index
    %0 = vector.load %arg0[%c0, %c0_0] : memref<18x2304xbf16, #tpu.memory_space<vmem>>, vector<18x2304xbf16>
    %c0_1 = arith.constant 0 : index
    %c0_2 = arith.constant 0 : index
    %1 = vector.load %arg1[%c0_1, %c0_2] : memref<2304x384xbf16, #tpu.memory_space<vmem>>, vector<2304x384xbf16>
    %cst = arith.constant dense<0.000000e+00> : vector<18x384xf32>
    %2 = tpu.matmul %0, %1, %cst {dimension_numbers = #tpu.dot_dimension_numbers<[1], [0], [0], [1], [0, 0, 1, 1], [], []>} : vector<18x2304xbf16>, vector<2304x384xbf16>, vector<18x384xf32> -> vector<18x384xf32>
    %3 = vector.extract_strided_slice %2 {offsets = [0, 0], sizes = [18, 96], strides = [1, 1]} : vector<18x384xf32> to vector<18x96xf32>
    %4 = vector.extract_strided_slice %2 {offsets = [0, 96], sizes = [18, 96], strides = [1, 1]} : vector<18x384xf32> to vector<18x96xf32>
    %5 = arith.maximumf %3, %4 : vector<18x96xf32>
    %6 = vector.extract_strided_slice %2 {offsets = [0, 192], sizes = [18, 96], strides = [1, 1]} : vector<18x384xf32> to vector<18x96xf32>
    %7 = vector.extract_strided_slice %2 {offsets = [0, 288], sizes = [18, 96], strides = [1, 1]} : vector<18x384xf32> to vector<18x96xf32>
    %8 = arith.maximumf %6, %7 : vector<18x96xf32>
    %9 = arith.maximumf %5, %8 : vector<18x96xf32>
    %c0_3 = arith.constant 0 : index
    %c0_4 = arith.constant 0 : index
    %10 = vector.load %arg2[%c0_3, %c0_4] : memref<1x96xf32, #tpu.memory_space<vmem>>, vector<1x96xf32>
    %11 = vector.broadcast %10 : vector<1x96xf32> to vector<18x96xf32>
    %12 = arith.addf %9, %11 : vector<18x96xf32>
    %cst_5 = arith.constant 0.000000e+00 : f32
    %13 = vector.broadcast %cst_5 : f32 to vector<18x96xf32>
    %14 = arith.maximumf %12, %13 : vector<18x96xf32>
    %15 = arith.truncf %14 : vector<18x96xf32> to vector<18x96xbf16>
    %c0_6 = arith.constant 0 : index
    %c0_7 = arith.constant 0 : index
    %16 = vector.load %arg3[%c0_6, %c0_7] : memref<18x96xbf16, #tpu.memory_space<vmem>>, vector<18x96xbf16>
    tpu.vector_store %arg3[%c0_6, %c0_7], %15 {strides = array<i32>} : memref<18x96xbf16, #tpu.memory_space<vmem>>, vector<18x96xbf16>,
    return
  }
}

module attributes {stable_mosaic.version = 11 : i64} {
  func.func @_dense_head_kernel(%arg0: memref<2x864xbf16, #tpu.memory_space<vmem>>, %arg1: memref<864x256xbf16, #tpu.memory_space<vmem>>, %arg2: memref<1x256xf32, #tpu.memory_space<vmem>>, %arg3: memref<256x2xbf16, #tpu.memory_space<vmem>>, %arg4: memref<1x2xf32, #tpu.memory_space<vmem>>, %arg5: memref<2x2xf32, #tpu.memory_space<vmem>>) attributes {dimension_semantics = [], scalar_prefetch = 0 : i64, scratch_operands = 0 : i64, tpu.core_type = #tpu.core_type<tc>} {
    %c0 = arith.constant 0 : index
    %c0_0 = arith.constant 0 : index
    %0 = vector.load %arg0[%c0, %c0_0] : memref<2x864xbf16, #tpu.memory_space<vmem>>, vector<2x864xbf16>
    %c0_1 = arith.constant 0 : index
    %c0_2 = arith.constant 0 : index
    %1 = vector.load %arg1[%c0_1, %c0_2] : memref<864x256xbf16, #tpu.memory_space<vmem>>, vector<864x256xbf16>
    %cst = arith.constant dense<0.000000e+00> : vector<2x256xf32>
    %2 = tpu.matmul %0, %1, %cst {dimension_numbers = #tpu.dot_dimension_numbers<[1], [0], [0], [1], [0, 0, 1, 1], [], []>} : vector<2x864xbf16>, vector<864x256xbf16>, vector<2x256xf32> -> vector<2x256xf32>
    %c0_3 = arith.constant 0 : index
    %c0_4 = arith.constant 0 : index
    %3 = vector.load %arg2[%c0_3, %c0_4] : memref<1x256xf32, #tpu.memory_space<vmem>>, vector<1x256xf32>
    %4 = vector.broadcast %3 : vector<1x256xf32> to vector<2x256xf32>
    %5 = arith.addf %2, %4 : vector<2x256xf32>
    %cst_5 = arith.constant 0.000000e+00 : f32
    %6 = vector.broadcast %cst_5 : f32 to vector<2x256xf32>
    %7 = arith.maximumf %5, %6 : vector<2x256xf32>
    %8 = arith.truncf %7 : vector<2x256xf32> to vector<2x256xbf16>
    %c0_6 = arith.constant 0 : index
    %c0_7 = arith.constant 0 : index
    %9 = vector.load %arg3[%c0_6, %c0_7] : memref<256x2xbf16, #tpu.memory_space<vmem>>, vector<256x2xbf16>
    %cst_8 = arith.constant dense<0.000000e+00> : vector<2x2xf32>
    %10 = tpu.matmul %8, %9, %cst_8 {dimension_numbers = #tpu.dot_dimension_numbers<[1], [0], [0], [1], [0, 0, 1, 1], [], []>} : vector<2x256xbf16>, vector<256x2xbf16>, vector<2x2xf32> -> vector<2x2xf32>
    %c0_9 = arith.constant 0 : index
    %c0_10 = arith.constant 0 : index
    %11 = vector.load %arg4[%c0_9, %c0_10] : memref<1x2xf32, #tpu.memory_space<vmem>>, vector<1x2xf32>
    %12 = vector.broadcast %11 : vector<1x2xf32> to vector<2x2xf32>
    %13 = arith.addf %10, %12 : vector<2x2xf32>
    %cst_11 = arith.constant dense<0xFF800000> : vector<2xf32>
    %14 = vector.multi_reduction <maximumf>, %13, %cst_11 [1] : vector<2x2xf32> to vector<2xf32>
    %15 = vector.shape_cast %14 : vector<2xf32> to vector<2x1xf32>
    %16 = vector.broadcast %15 : vector<2x1xf32> to vector<2x2xf32>
    %17 = arith.subf %13, %16 : vector<2x2xf32>
    %18 = math.exp %17 : vector<2x2xf32>
    %cst_12 = arith.constant dense<0.000000e+00> : vector<2xf32>
    %19 = vector.multi_reduction <add>, %18, %cst_12 [1] : vector<2x2xf32> to vector<2xf32>
    %20 = vector.shape_cast %19 : vector<2xf32> to vector<2x1xf32>
    %21 = vector.broadcast %20 : vector<2x1xf32> to vector<2x2xf32>
    %22 = arith.divf %18, %21 : vector<2x2xf32>
    %c0_13 = arith.constant 0 : index
    %c0_14 = arith.constant 0 : index
    %23 = vector.load %arg5[%c0_13, %c0_14] : memref<2x2xf32, #tpu.memory_space<vmem>>, vector<2x2xf32>
    tpu.vector_store %arg5[%c0_13, %c0_14], %22 {strides = array<i32>} : memref<2x2xf32, #tpu.memory_space<vmem>>, vector<2x2xf32>,
    return
  }
}

</mosaic_0001>

<bundles_post_ra>
// kernel: cnn_forward.5
= control target key start
LH: loop header
LB: loop body
LE: loop exit
PB: predicated region body
PF: predicated region fallthrough
CT: control target
= control target key end

     0   :  { %vm574_vm0 = vcmask 883712   ;;  %vm791_vm1 = vcmask 1045504   ;;  %s4640_s30 = smov 96   ;;  %vm3715_vm2 = vcmask 257024   ;;  %s7578_s1 = inlined_call_operand.vmem [shape: bf16[108,128], index: 1, kind: input, shape index: {}]   ;;  %s7579_s0 = inlined_call_operand.vmem [shape: bf16[1152,108], index: 0, kind: input, shape index: {}]   ;;  %s7580_s2 = inlined_call_operand.vmem [shape: f32[1,32], index: 2, kind: input, shape index: {}]   ;;  %s7581_s3 = inlined_call_operand.vmem [shape: bf16[1152,32], index: 3, kind: output, shape index: {}]  }
   0x1   :  { %v4559_v0 = vld [vmem:[%s7578_s1] sm:$0xff]   ;;  %v4560_v1 = vld [vmem:[%s7578_s1 + $0x8] sm:$0xff]   ;;  %v4561_v2 = vld [vmem:[%s7578_s1 + $0x10] sm:$0xff]  }
   0x2   :  { %4383 = vmatprep.subr.bf16.mxu0 %v4559_v0  ;;  %4541 = vmatprep.subr.bf16.mxu1 %v4559_v0  ;;  %v4562_v3 = vld [vmem:[%s7578_s1 + $0x18] sm:$0xff]   ;;  %v4566_v4 = vld [vmem:[%s7579_s0] sm:$0xff]   ;;  %v4564_v7 = vld [vmem:[%s7578_s1 + $0x28] sm:$0xff]  }
   0x3   :  { %4384 = vmatpush3.bf16.msra.mxu0 %v4559_v0  ;;  %4548 = vmatpush3.bf16.msra.mxu1 %v4559_v0  ;;  %v4567_v5 = vld [vmem:[%s7579_s0 + $0x120] sm:$0xff]   ;;  %v4565_v8 = vld [vmem:[%s7578_s1 + $0x30] sm:$0x3f]   ;;  %v4568_v10 = vld [vmem:[%s7579_s0 + $0x8] sm:$0xff]  }
   0x4   :  { %4385 = vmatprep.subr.bf16.mxu0 %v4560_v1  ;;  %4542 = vmatprep.subr.bf16.mxu1 %v4560_v1  ;;  %v4563_v6 = vld [vmem:[%s7578_s1 + $0x20] sm:$0xff]   ;;  %v793_v9 = vsel %vm791_vm1, %v4565_v8, 0  ;;  %v4569_v11 = vld [vmem:[%s7579_s0 + $0x128] sm:$0xff]   ;;  %v4570_v12 = vld [vmem:[%s7579_s0 + $0x10] sm:$0xff]  }
   0x5   :  { %4397 = vmatprep.mubr.msk.bf16.mxu0 %vm574_vm0, %v4566_v4  ;;  %4469 = vmatprep.mubr.msk.bf16.mxu1 %vm574_vm0, %v4567_v5  ;;  %v4572_v13 = vld [vmem:[%s7579_s0 + $0x130] sm:$0xff]   ;;  %v4571_v14 = vld [vmem:[%s7579_s0 + $0x18] sm:$0xff]   ;;  %v4574_v16 = vld [vmem:[%s7579_s0 + $0x20] sm:$0xff]  }
   0x6   :  { %v4573_v15 = vld [vmem:[%s7579_s0 + $0x138] sm:$0xff]   ;;  %v4576_v17 = vld [vmem:[%s7579_s0 + $0x140] sm:$0xff]   ;;  %v4575_v18 = vld [vmem:[%s7579_s0 + $0x28] sm:$0xff]  }
   0x7   :  { %4386 = vmatpush3.bf16.msra.mxu0 %v4560_v1  ;;  %4549 = vmatpush3.bf16.msra.mxu1 %v4560_v1  ;;  %v4577_v19 = vld [vmem:[%s7579_s0 + $0x148] sm:$0xff]   ;;  %v4578_v20 = vld [vmem:[%s7579_s0 + $0x30] sm:$0xff]   ;;  %v4579_v22 = vld [vmem:[%s7579_s0 + $0x38] sm:$0xff]  }
   0x8   :  { %4387 = vmatprep.subr.bf16.mxu0 %v4561_v2  ;;  %4543 = vmatprep.subr.bf16.mxu1 %v4561_v2  ;;  %v4580_v21 = vld [vmem:[%s7579_s0 + $0x150] sm:$0xff]   ;;  %v4581_v23 = vld [vmem:[%s7579_s0 + $0x158] sm:$0xff]   ;;  %v4582_v24 = vld [vmem:[%s7579_s0 + $0x40] sm:$0xff]  }
   0x9   :  { %v4584_v25 = vld [vmem:[%s7579_s0 + $0x160] sm:$0xff]   ;;  %v4583_v26 = vld [vmem:[%s7579_s0 + $0x48] sm:$0xff]   ;;  %v4586_v28 = vld [vmem:[%s7579_s0 + $0x50] sm:$0xff]  }
   0xa   :  { %v4585_v27 = vld [vmem:[%s7579_s0 + $0x168] sm:$0xff]   ;;  %v4588_v29 = vld [vmem:[%s7579_s0 + $0x170] sm:$0xff]   ;;  %v4587_v30 = vld [vmem:[%s7579_s0 + $0x58] sm:$0xff]  }
   0xb   :  { %4388 = vmatpush3.bf16.msra.mxu0 %v4561_v2  ;;  %4550 = vmatpush3.bf16.msra.mxu1 %v4561_v2  ;;  %v4589_v31 = vld [vmem:[%s7579_s0 + $0x178] sm:$0xff]   ;;  %v4590_v32 = vld [vmem:[%s7579_s0 + $0x60] sm:$0xff]   ;;  %v4591_v34 = vld [vmem:[%s7579_s0 + $0x68] sm:$0xff]  }
   0xc   :  { %4389 = vmatprep.subr.bf16.mxu0 %v4562_v3  ;;  %4544 = vmatprep.subr.bf16.mxu1 %v4562_v3  ;;  %v4592_v33 = vld [vmem:[%s7579_s0 + $0x180] sm:$0xff]   ;;  %v4593_v35 = vld [vmem:[%s7579_s0 + $0x188] sm:$0xff]   ;;  %v4594_v36 = vld [vmem:[%s7579_s0 + $0x70] sm:$0xff]  }
   0xd   :  { %v4596_v37 = vld [vmem:[%s7579_s0 + $0x190] sm:$0xff]   ;;  %v4595_v38 = vld [vmem:[%s7579_s0 + $0x78] sm:$0xff]   ;;  %v4598_v40 = vld [vmem:[%s7579_s0 + $0x80] sm:$0xff]  }
   0xe   :  { %v4597_v39 = vld [vmem:[%s7579_s0 + $0x198] sm:$0xff]   ;;  %v4600_v41 = vld [vmem:[%s7579_s0 + $0x1a0] sm:$0xff]   ;;  %v4599_v42 = vld [vmem:[%s7579_s0 + $0x88] sm:$0xff]  }
   0xf   :  { %4390 = vmatpush3.bf16.msra.mxu0 %v4562_v3  ;;  %4551 = vmatpush3.bf16.msra.mxu1 %v4562_v3  ;;  %v4601_v43 = vld [vmem:[%s7579_s0 + $0x1a8] sm:$0xff]   ;;  %v4602_v44 = vld [vmem:[%s7579_s0 + $0x90] sm:$0xff]   ;;  %v4603_v46 = vld [vmem:[%s7579_s0 + $0x98] sm:$0xff]  }
  0x10   :  { %4391 = vmatprep.subr.bf16.mxu0 %v4563_v6  ;;  %4545 = vmatprep.subr.bf16.mxu1 %v4563_v6  ;;  %v4604_v45 = vld [vmem:[%s7579_s0 + $0x1b0] sm:$0xff]   ;;  %v4605_v47 = vld [vmem:[%s7579_s0 + $0x1b8] sm:$0xff]   ;;  %v4606_v48 = vld [vmem:[%s7579_s0 + $0xa0] sm:$0xff]  }
  0x11   :  { %v4608_v49 = vld [vmem:[%s7579_s0 + $0x1c0] sm:$0xff]   ;;  %v4607_v50 = vld [vmem:[%s7579_s0 + $0xa8] sm:$0xff]   ;;  %v4610_v52 = vld [vmem:[%s7579_s0 + $0xb0] sm:$0xff]  }
  0x12   :  { %v4609_v51 = vld [vmem:[%s7579_s0 + $0x1c8] sm:$0xff]   ;;  %v4612_v53 = vld [vmem:[%s7579_s0 + $0x1d0] sm:$0xff]   ;;  %v4611_v54 = vld [vmem:[%s7579_s0 + $0xb8] sm:$0xff]  }
  0x13   :  { %4392 = vmatpush3.bf16.msra.mxu0 %v4563_v6  ;;  %4552 = vmatpush3.bf16.msra.mxu1 %v4563_v6  ;;  %v4613_v55 = vld [vmem:[%s7579_s0 + $0x1d8] sm:$0xff]   ;;  %v4614_v56 = vld [vmem:[%s7579_s0 + $0xc0] sm:$0xff]   ;;  %v4615_v58 = vld [vmem:[%s7579_s0 + $0xc8] sm:$0xff]  }
  0x14   :  { %4393 = vmatprep.subr.bf16.mxu0 %v4564_v7  ;;  %4546 = vmatprep.subr.bf16.mxu1 %v4564_v7  ;;  %v4616_v57 = vld [vmem:[%s7579_s0 + $0x1e0] sm:$0xff]   ;;  %v4617_v59 = vld [vmem:[%s7579_s0 + $0x1e8] sm:$0xff]   ;;  %v4618_v60 = vld [vmem:[%s7579_s0 + $0xd0] sm:$0xff]  }
  0x15   :  { %v4620_v61 = vld [vmem:[%s7579_s0 + $0x1f0] sm:$0xff]   ;;  %v4619_v62 = vld [vmem:[%s7579_s0 + $0xd8] sm:$0xff]   ;;  %v4622_v0 = vld [vmem:[%s7579_s0 + $0xe0] sm:$0xff]  }
  0x16   :  { %v4621_v63 = vld [vmem:[%s7579_s0 + $0x1f8] sm:$0xff]   ;;  %v4624_v1 = vld [vmem:[%s7579_s0 + $0x200] sm:$0xff]   ;;  %v4623_v2 = vld [vmem:[%s7579_s0 + $0xe8] sm:$0xff]  }
  0x17   :  { %4394 = vmatpush3.bf16.msra.mxu0 %v4564_v7  ;;  %4553 = vmatpush3.bf16.msra.mxu1 %v4564_v7  ;;  %v4625_v3 = vld [vmem:[%s7579_s0 + $0x208] sm:$0xff]   ;;  %v4626_v4 = vld [vmem:[%s7579_s0 + $0xf0] sm:$0xff]   ;;  %v4627_v5 = vld [vmem:[%s7579_s0 + $0xf8] sm:$0xff]  }
  0x18   :  { %4555 = vmatprep.subr.msk.bf16.mxu0 %vm791_vm1, %v4565_v8  ;;  %4556 = vmatprep.subr.msk.bf16.mxu1 %vm791_vm1, %v4565_v8  ;;  %v4628_v6 = vld [vmem:[%s7579_s0 + $0x210] sm:$0xff]   ;;  %v4629_v7 = vld [vmem:[%s7579_s0 + $0x218] sm:$0xff]   ;;  %v4630_v8 = vld [vmem:[%s7579_s0 + $0x100] sm:$0xff]  }
  0x1b   :  { %4396 = vmatpush3.bf16.msra.mxu0 %v793_v9  ;;  %4554 = vmatpush3.bf16.msra.mxu1 %v793_v9  ;;  %v4631_v9 = vld [vmem:[%s7579_s0 + $0x108] sm:$0xff]  }
  0x1e   :  { %4398 = vmatmul.mubr.msk.bf16.vlgmr.msra.gmra.mrb[0].mxu0 %vm574_vm0, %v4568_v10  ;;  %4470 = vmatmul.mubr.msk.bf16.vlgmr.msra.gmra.mrb[0].mxu1 %vm574_vm0, %v4569_v11  ;;  %v4632_v10 = vld [vmem:[%s7579_s0 + $0x220] sm:$0xff]   ;;  %v4633_v11 = vld [vmem:[%s7579_s0 + $0x228] sm:$0xff]  }
  0x1f   :  { %4401 = vmatprep.mubr.msk.bf16.mxu0 %vm574_vm0, %v4570_v12  ;;  %4473 = vmatprep.mubr.msk.bf16.mxu1 %vm574_vm0, %v4572_v13  ;;  %v4634_v12 = vld [vmem:[%s7579_s0 + $0x110] sm:$0xff]   ;;  %v4635_v13 = vld [vmem:[%s7579_s0 + $0x118] sm:$0xff]  }
  0x26   :  { %4402 = vmatmul.mubr.msk.bf16.gmra.mrb[4].mxu0 %vm574_vm0, %v4571_v14  ;;  %4474 = vmatmul.mubr.msk.bf16.gmra.mrb[4].mxu1 %vm574_vm0, %v4573_v15  ;;  %v4636_v14 = vld [vmem:[%s7579_s0 + $0x230] sm:$0xff]   ;;  %v4637_v15 = vld [vmem:[%s7579_s0 + $0x238] sm:$0xff]   ;;  %s4641_s0 = smov 64  }
  0x27   :  { %4405 = vmatprep.mubr.msk.bf16.mxu0 %vm574_vm0, %v4574_v16  ;;  %4477 = vmatprep.mubr.msk.bf16.mxu1 %vm574_vm0, %v4576_v17 }
  0x2e   :  { %4406 = vmatmul.mubr.msk.bf16.gmra.mrb[8].mxu0 %vm574_vm0, %v4575_v18  ;;  %4478 = vmatmul.mubr.msk.bf16.gmra.mrb[8].mxu1 %vm574_vm0, %v4577_v19 }
  0x2f   :  { %4409 = vmatprep.mubr.msk.bf16.mxu0 %vm574_vm0, %v4578_v20  ;;  %4481 = vmatprep.mubr.msk.bf16.mxu1 %vm574_vm0, %v4580_v21 }
  0x36   :  { %4410 = vmatmul.mubr.msk.bf16.gmra.mrb[12].mxu0 %vm574_vm0, %v4579_v22  ;;  %4482 = vmatmul.mubr.msk.bf16.gmra.mrb[12].mxu1 %vm574_vm0, %v4581_v23 }
  0x37   :  { %4413 = vmatprep.mubr.msk.bf16.mxu0 %vm574_vm0, %v4582_v24  ;;  %4485 = vmatprep.mubr.msk.bf16.mxu1 %vm574_vm0, %v4584_v25 }
  0x3e   :  { %4414 = vmatmul.mubr.msk.bf16.gmra.mrb[16].mxu0 %vm574_vm0, %v4583_v26  ;;  %4486 = vmatmul.mubr.msk.bf16.gmra.mrb[16].mxu1 %vm574_vm0, %v4585_v27 }
  0x3f   :  { %4417 = vmatprep.mubr.msk.bf16.mxu0 %vm574_vm0, %v4586_v28  ;;  %4489 = vmatprep.mubr.msk.bf16.mxu1 %vm574_vm0, %v4588_v29 }
  0x46   :  { %4418 = vmatmul.mubr.msk.bf16.gmra.mrb[20].mxu0 %vm574_vm0, %v4587_v30  ;;  %4490 = vmatmul.mubr.msk.bf16.gmra.mrb[20].mxu1 %vm574_vm0, %v4589_v31 }
  0x47   :  { %4421 = vmatprep.mubr.msk.bf16.mxu0 %vm574_vm0, %v4590_v32  ;;  %4493 = vmatprep.mubr.msk.bf16.mxu1 %vm574_vm0, %v4592_v33 }
  0x4e   :  { %4422 = vmatmul.mubr.msk.bf16.gmra.mrb[24].mxu0 %vm574_vm0, %v4591_v34  ;;  %4494 = vmatmul.mubr.msk.bf16.gmra.mrb[24].mxu1 %vm574_vm0, %v4593_v35 }
  0x4f   :  { %4425 = vmatprep.mubr.msk.bf16.mxu0 %vm574_vm0, %v4594_v36  ;;  %4497 = vmatprep.mubr.msk.bf16.mxu1 %vm574_vm0, %v4596_v37 }
  0x56   :  { %4426 = vmatmul.mubr.msk.bf16.gmra.mrb[28].mxu0 %vm574_vm0, %v4595_v38  ;;  %4498 = vmatmul.mubr.msk.bf16.gmra.mrb[28].mxu1 %vm574_vm0, %v4597_v39 }
  0x57   :  { %4429 = vmatprep.mubr.msk.bf16.mxu0 %vm574_vm0, %v4598_v40  ;;  %4501 = vmatprep.mubr.msk.bf16.mxu1 %vm574_vm0, %v4600_v41 }
  0x5e   :  { %4430 = vmatmul.mubr.msk.bf16.gmra.mrb[32].mxu0 %vm574_vm0, %v4599_v42  ;;  %4502 = vmatmul.mubr.msk.bf16.gmra.mrb[32].mxu1 %vm574_vm0, %v4601_v43 }
  0x5f   :  { %4433 = vmatprep.mubr.msk.bf16.mxu0 %vm574_vm0, %v4602_v44  ;;  %4505 = vmatprep.mubr.msk.bf16.mxu1 %vm574_vm0, %v4604_v45 }
  0x66   :  { %4434 = vmatmul.mubr.msk.bf16.gmra.mrb[36].mxu0 %vm574_vm0, %v4603_v46  ;;  %4506 = vmatmul.mubr.msk.bf16.gmra.mrb[36].mxu1 %vm574_vm0, %v4605_v47 }
  0x67   :  { %4437 = vmatprep.mubr.msk.bf16.mxu0 %vm574_vm0, %v4606_v48  ;;  %4509 = vmatprep.mubr.msk.bf16.mxu1 %vm574_vm0, %v4608_v49 }
  0x6e   :  { %4438 = vmatmul.mubr.msk.bf16.gmra.mrb[40].mxu0 %vm574_vm0, %v4607_v50  ;;  %4510 = vmatmul.mubr.msk.bf16.gmra.mrb[40].mxu1 %vm574_vm0, %v4609_v51 }
  0x6f   :  { %4441 = vmatprep.mubr.msk.bf16.mxu0 %vm574_vm0, %v4610_v52  ;;  %4513 = vmatprep.mubr.msk.bf16.mxu1 %vm574_vm0, %v4612_v53 }
  0x76   :  { %4442 = vmatmul.mubr.msk.bf16.gmra.mrb[44].mxu0 %vm574_vm0, %v4611_v54  ;;  %4514 = vmatmul.mubr.msk.bf16.gmra.mrb[44].mxu1 %vm574_vm0, %v4613_v55 }
  0x77   :  { %4445 = vmatprep.mubr.msk.bf16.mxu0 %vm574_vm0, %v4614_v56  ;;  %4517 = vmatprep.mubr.msk.bf16.mxu1 %vm574_vm0, %v4616_v57 }
  0x7e   :  { %4446 = vmatmul.mubr.msk.bf16.gmra.mrb[48].mxu0 %vm574_vm0, %v4615_v58  ;;  %4518 = vmatmul.mubr.msk.bf16.gmra.mrb[48].mxu1 %vm574_vm0, %v4617_v59 }
  0x7f   :  { %4449 = vmatprep.mubr.msk.bf16.mxu0 %vm574_vm0, %v4618_v60  ;;  %4521 = vmatprep.mubr.msk.bf16.mxu1 %vm574_vm0, %v4620_v61 }
  0x86   :  { %4450 = vmatmul.mubr.msk.bf16.gmra.mrb[52].mxu0 %vm574_vm0, %v4619_v62  ;;  %4522 = vmatmul.mubr.msk.bf16.gmra.mrb[52].mxu1 %vm574_vm0, %v4621_v63 }
  0x87   :  { %4453 = vmatprep.mubr.msk.bf16.mxu0 %vm574_vm0, %v4622_v0  ;;  %4525 = vmatprep.mubr.msk.bf16.mxu1 %vm574_vm0, %v4624_v1 }
  0x8e   :  { %4454 = vmatmul.mubr.msk.bf16.gmra.mrb[56].mxu0 %vm574_vm0, %v4623_v2  ;;  %4526 = vmatmul.mubr.msk.bf16.gmra.mrb[56].mxu1 %vm574_vm0, %v4625_v3 }
  0x8f   :  { %4457 = vmatprep.mubr.msk.bf16.mxu0 %vm574_vm0, %v4626_v4  ;;  %4529 = vmatprep.mubr.msk.bf16.mxu1 %vm574_vm0, %v4628_v6 }
  0x96   :  { %4458 = vmatmul.mubr.msk.bf16.gmra.mrb[60].mxu0 %vm574_vm0, %v4627_v5  ;;  %4530 = vmatmul.mubr.msk.bf16.gmra.mrb[60].mxu1 %vm574_vm0, %v4629_v7 }
  0x97   :  { %4461 = vmatprep.mubr.msk.bf16.mxu0 %vm574_vm0, %v4630_v8  ;;  %4533 = vmatprep.mubr.msk.bf16.mxu1 %vm574_vm0, %v4632_v10 }
  0x9e   :  { %4462 = vmatmul.mubr.msk.bf16.gmra.mrb[64].mxu0 %vm574_vm0, %v4631_v9  ;;  %4534 = vmatmul.mubr.msk.bf16.gmra.mrb[64].mxu1 %vm574_vm0, %v4633_v11 }
  0x9f   :  { %4465 = vmatprep.mubr.msk.bf16.mxu0 %vm574_vm0, %v4634_v12  ;;  %4537 = vmatprep.mubr.msk.bf16.mxu1 %vm574_vm0, %v4636_v14 }
  0xa6   :  { %4466 = vmatmul.mubr.msk.bf16.gmra.mrb[68].mxu0 %vm574_vm0, %v4635_v13  ;;  %4538 = vmatmul.mubr.msk.bf16.gmra.mrb[68].mxu1 %vm574_vm0, %v4637_v15 }
  0xf1   :  { %v4971_v16 = vpop.f32.mrb[0].mxu0  ;;  %v4973_v17 = vpop.f32.mrb[0].mxu1 }
  0xf2   :  { %7763 = vst [vmem:[#allocation2_spill] sm:$0xff] %v4971_v16  ;;  %7764 = vst [vmem:[#allocation3_spill] sm:$0xff] %v4973_v17  ;;  %1696 = vrot.lane.b32.xlu0 %v4973_v17, %s4640_s30  ;;  %v4977_v18 = vpop.f32.mrb[1].mxu1  ;;  %1552 = vrot.lane.b32.xlu1 %v4971_v16, %s4640_s30  ;;  %v4981_v19 = vpop.f32.mrb[1].mxu0 }
  0xf3   :  { %7765 = vst [vmem:[#allocation4_spill] sm:$0xff] %v4977_v18  ;;  %7766 = vst [vmem:[#allocation5_spill] sm:$0xff] %v4981_v19  ;;  %v4983_v20 = vpop.f32.mrb[2].mxu0  ;;  %v4985_v21 = vpop.f32.mrb[2].mxu1 }
  0xf4   :  { %7767 = vst [vmem:[#allocation6_spill] sm:$0xff] %v4983_v20  ;;  %7768 = vst [vmem:[#allocation7_spill] sm:$0xff] %v4985_v21  ;;  %v4987_v22 = vpop.f32.mrb[3].mxu0  ;;  %v4989_v23 = vpop.f32.mrb[3].mxu1 }
  0xf5   :  { %7769 = vst [vmem:[#allocation8_spill] sm:$0xff] %v4987_v22  ;;  %7770 = vst [vmem:[#allocation9_spill] sm:$0xff] %v4989_v23 }
  0xf6   :  { %1548 = vrot.lane.b32.xlu0 %v4981_v19, %s4640_s30  ;;  %1554 = vrot.lane.b32.xlu1 %v4983_v20, %s4640_s30 }
  0xf9   :  { %v4995_v24 = vpop.f32.mrb[4].mxu0  ;;  %v4997_v25 = vpop.f32.mrb[4].mxu1 }
  0xfa   :  { %7771 = vst [vmem:[#allocation10_spill] sm:$0xff] %v4995_v24  ;;  %7772 = vst [vmem:[#allocation11_spill] sm:$0xff] %v4997_v25  ;;  %1692 = vrot.lane.b32.xlu0 %v4977_v18, %s4640_s30  ;;  %1698 = vrot.lane.b32.xlu1 %v4985_v21, %s4640_s30  ;;  %v5003_v26 = vpop.f32.mrb[5].mxu0  ;;  %v5005_v27 = vpop.f32.mrb[5].mxu1 }
  0xfb   :  { %7773 = vst [vmem:[#allocation12_spill] sm:$0xff] %v5003_v26  ;;  %7774 = vst [vmem:[#allocation13_spill] sm:$0xff] %v5005_v27  ;;  %v5007_v28 = vpop.f32.mrb[6].mxu0  ;;  %v5009_v29 = vpop.f32.mrb[6].mxu1 }
  0xfc   :  { %7775 = vst [vmem:[#allocation14_spill] sm:$0xff] %v5007_v28  ;;  %7776 = vst [vmem:[#allocation15_spill] sm:$0xff] %v5009_v29  ;;  %v5011_v30 = vpop.f32.mrb[7].mxu0  ;;  %v5013_v31 = vpop.f32.mrb[7].mxu1 }
  0xfd   :  { %7777 = vst [vmem:[#allocation16_spill] sm:$0xff] %v5011_v30  ;;  %7778 = vst [vmem:[#allocation17_spill] sm:$0xff] %v5013_v31 }
  0xfe   :  { %1694 = vrot.lane.b32.xlu1 %v4989_v23, %s4640_s30  ;;  %1550 = vrot.lane.b32.xlu0 %v4987_v22, %s4640_s30 }
 0x101   :  { %v5019_v32 = vpop.f32.mrb[8].mxu0  ;;  %v5021_v33 = vpop.f32.mrb[8].mxu1 }
 0x102   :  { %7779 = vst [vmem:[#allocation18_spill] sm:$0xff] %v5019_v32  ;;  %7780 = vst [vmem:[#allocation19_spill] sm:$0xff] %v5021_v33  ;;  %1560 = vrot.lane.b32.xlu0 %v4995_v24, %s4640_s30  ;;  %1562 = vrot.lane.b32.xlu1 %v5007_v28, %s4640_s30  ;;  %v5027_v34 = vpop.f32.mrb[9].mxu0  ;;  %v5029_v35 = vpop.f32.mrb[9].mxu1 }
 0x103   :  { %7781 = vst [vmem:[#allocation20_spill] sm:$0xff] %v5027_v34  ;;  %7782 = vst [vmem:[#allocation21_spill] sm:$0xff] %v5029_v35  ;;  %v5031_v36 = vpop.f32.mrb[10].mxu0  ;;  %v5033_v37 = vpop.f32.mrb[10].mxu1 }
 0x104   :  { %7783 = vst [vmem:[#allocation22_spill] sm:$0xff] %v5031_v36  ;;  %7784 = vst [vmem:[#allocation23_spill] sm:$0xff] %v5033_v37  ;;  %v5035_v38 = vpop.f32.mrb[11].mxu0  ;;  %v5037_v39 = vpop.f32.mrb[11].mxu1 }
 0x105   :  { %7785 = vst [vmem:[#allocation24_spill] sm:$0xff] %v5035_v38  ;;  %7786 = vst [vmem:[#allocation25_spill] sm:$0xff] %v5037_v39 }
 0x106   :  { %1704 = vrot.lane.b32.xlu0 %v4997_v25, %s4640_s30  ;;  %1706 = vrot.lane.b32.xlu1 %v5009_v29, %s4640_s30 }
 0x109   :  { %v5043_v40 = vpop.f32.mrb[12].mxu0  ;;  %v5045_v41 = vpop.f32.mrb[12].mxu1 }
 0x10a   :  { %7787 = vst [vmem:[#allocation26_spill] sm:$0xff] %v5043_v40  ;;  %7788 = vst [vmem:[#allocation27_spill] sm:$0xff] %v5045_v41  ;;  %1556 = vrot.lane.b32.xlu0 %v5003_v26, %s4640_s30  ;;  %1558 = vrot.lane.b32.xlu1 %v5011_v30, %s4640_s30  ;;  %v5051_v42 = vpop.f32.mrb[13].mxu0  ;;  %v5053_v43 = vpop.f32.mrb[13].mxu1 }
 0x10b   :  { %7789 = vst [vmem:[#allocation28_spill] sm:$0xff] %v5051_v42  ;;  %7790 = vst [vmem:[#allocation29_spill] sm:$0xff] %v5053_v43  ;;  %v5055_v44 = vpop.f32.mrb[14].mxu0  ;;  %v5057_v45 = vpop.f32.mrb[14].mxu1 }
 0x10c   :  { %7791 = vst [vmem:[#allocation30_spill] sm:$0xff] %v5055_v44  ;;  %7792 = vst [vmem:[#allocation31_spill] sm:$0xff] %v5057_v45  ;;  %v5059_v46 = vpop.f32.mrb[15].mxu0  ;;  %v5061_v47 = vpop.f32.mrb[15].mxu1 }
 0x10d   :  { %7793 = vst [vmem:[#allocation32_spill] sm:$0xff] %v5059_v46  ;;  %7794 = vst [vmem:[#allocation33_spill] sm:$0xff] %v5061_v47 }
 0x10e   :  { %1700 = vrot.lane.b32.xlu0 %v5005_v27, %s4640_s30  ;;  %1702 = vrot.lane.b32.xlu1 %v5013_v31, %s4640_s30 }
 0x111   :  { %v5067_v48 = vpop.f32.mrb[16].mxu0  ;;  %v5069_v49 = vpop.f32.mrb[16].mxu1 }
 0x112   :  { %7795 = vst [vmem:[#allocation34_spill] sm:$0xff] %v5067_v48  ;;  %7796 = vst [vmem:[#allocation35_spill] sm:$0xff] %v5069_v49  ;;  %1568 = vrot.lane.b32.xlu0 %v5019_v32, %s4640_s30  ;;  %1570 = vrot.lane.b32.xlu1 %v5031_v36, %s4640_s30  ;;  %v5075_v50 = vpop.f32.mrb[17].mxu0  ;;  %v5077_v51 = vpop.f32.mrb[17].mxu1 }
 0x113   :  { %7797 = vst [vmem:[#allocation36_spill] sm:$0xff] %v5075_v50  ;;  %7798 = vst [vmem:[#allocation37_spill] sm:$0xff] %v5077_v51  ;;  %v5079_v52 = vpop.f32.mrb[18].mxu0  ;;  %v5081_v53 = vpop.f32.mrb[18].mxu1 }
 0x114   :  { %7799 = vst [vmem:[#allocation38_spill] sm:$0xff] %v5079_v52  ;;  %7800 = vst [vmem:[#allocation39_spill] sm:$0xff] %v5081_v53  ;;  %v5083_v54 = vpop.f32.mrb[19].mxu0  ;;  %v5085_v55 = vpop.f32.mrb[19].mxu1 }
 0x115   :  { %7801 = vst [vmem:[#allocation40_spill] sm:$0xff] %v5083_v54  ;;  %7802 = vst [vmem:[#allocation41_spill] sm:$0xff] %v5085_v55 }
 0x116   :  { %1712 = vrot.lane.b32.xlu0 %v5021_v33, %s4640_s30  ;;  %1714 = vrot.lane.b32.xlu1 %v5033_v37, %s4640_s30 }
 0x119   :  { %v5091_v56 = vpop.f32.mrb[20].mxu0  ;;  %v5093_v57 = vpop.f32.mrb[20].mxu1 }
 0x11a   :  { %7803 = vst [vmem:[#allocation42_spill] sm:$0xff] %v5091_v56  ;;  %7804 = vst [vmem:[#allocation43_spill] sm:$0xff] %v5093_v57  ;;  %1564 = vrot.lane.b32.xlu0 %v5027_v34, %s4640_s30  ;;  %1566 = vrot.lane.b32.xlu1 %v5035_v38, %s4640_s30  ;;  %v5099_v58 = vpop.f32.mrb[21].mxu0  ;;  %v5101_v59 = vpop.f32.mrb[21].mxu1 }
 0x11b   :  { %7805 = vst [vmem:[#allocation44_spill] sm:$0xff] %v5099_v58  ;;  %7806 = vst [vmem:[#allocation45_spill] sm:$0xff] %v5101_v59  ;;  %v5103_v60 = vpop.f32.mrb[22].mxu0  ;;  %v5105_v61 = vpop.f32.mrb[22].mxu1 }
 0x11c   :  { %7807 = vst [vmem:[#allocation46_spill] sm:$0xff] %v5103_v60  ;;  %7808 = vst [vmem:[#allocation47_spill] sm:$0xff] %v5105_v61  ;;  %v5107_v62 = vpop.f32.mrb[23].mxu0  ;;  %v5109_v63 = vpop.f32.mrb[23].mxu1 }
 0x11d   :  { %7809 = vst [vmem:[#allocation48_spill] sm:$0xff] %v5107_v62  ;;  %7810 = vst [vmem:[#allocation49_spill] sm:$0xff] %v5109_v63 }
 0x11e   :  { %1708 = vrot.lane.b32.xlu0 %v5029_v35, %s4640_s30  ;;  %1710 = vrot.lane.b32.xlu1 %v5037_v39, %s4640_s30 }
 0x121   :  { %v5115_v0 = vpop.f32.mrb[24].mxu0  ;;  %v5117_v1 = vpop.f32.mrb[24].mxu1 }
 0x122   :  { %7811 = vst [vmem:[#allocation50_spill] sm:$0xff] %v5115_v0  ;;  %7812 = vst [vmem:[#allocation51_spill] sm:$0xff] %v5117_v1  ;;  %1576 = vrot.lane.b32.xlu0 %v5043_v40, %s4640_s30  ;;  %1578 = vrot.lane.b32.xlu1 %v5055_v44, %s4640_s30  ;;  %v5123_v2 = vpop.f32.mrb[25].mxu0  ;;  %v5125_v3 = vpop.f32.mrb[25].mxu1 }
 0x123   :  { %7813 = vst [vmem:[#allocation52_spill] sm:$0xff] %v5123_v2  ;;  %7814 = vst [vmem:[#allocation53_spill] sm:$0xff] %v5125_v3  ;;  %v5127_v4 = vpop.f32.mrb[26].mxu0  ;;  %v5129_v5 = vpop.f32.mrb[26].mxu1 }
 0x124   :  { %7815 = vst [vmem:[#allocation54_spill] sm:$0xff] %v5127_v4  ;;  %7816 = vst [vmem:[#allocation55_spill] sm:$0xff] %v5129_v5  ;;  %v5131_v6 = vpop.f32.mrb[27].mxu0  ;;  %v5133_v7 = vpop.f32.mrb[27].mxu1 }
 0x125   :  { %7817 = vst [vmem:[#allocation56_spill] sm:$0xff] %v5131_v6  ;;  %7818 = vst [vmem:[#allocation57_spill] sm:$0xff] %v5133_v7 }
 0x126   :  { %1720 = vrot.lane.b32.xlu0 %v5045_v41, %s4640_s30  ;;  %1722 = vrot.lane.b32.xlu1 %v5057_v45, %s4640_s30 }
 0x129   :  { %v5139_v8 = vpop.f32.mrb[28].mxu0  ;;  %v5141_v9 = vpop.f32.mrb[28].mxu1 }
 0x12a   :  { %7819 = vst [vmem:[#allocation58_spill] sm:$0xff] %v5139_v8  ;;  %7820 = vst [vmem:[#allocation59_spill] sm:$0xff] %v5141_v9  ;;  %1572 = vrot.lane.b32.xlu0 %v5051_v42, %s4640_s30  ;;  %1574 = vrot.lane.b32.xlu1 %v5059_v46, %s4640_s30  ;;  %v5147_v10 = vpop.f32.mrb[29].mxu0  ;;  %v5149_v11 = vpop.f32.mrb[29].mxu1 }
 0x12b   :  { %7821 = vst [vmem:[#allocation60_spill] sm:$0xff] %v5147_v10  ;;  %7822 = vst [vmem:[#allocation61_spill] sm:$0xff] %v5149_v11  ;;  %v5151_v12 = vpop.f32.mrb[30].mxu0  ;;  %v5153_v13 = vpop.f32.mrb[30].mxu1 }
 0x12c   :  { %7823 = vst [vmem:[#allocation62_spill] sm:$0xff] %v5151_v12  ;;  %7824 = vst [vmem:[#allocation63_spill] sm:$0xff] %v5153_v13  ;;  %v5155_v14 = vpop.f32.mrb[31].mxu0  ;;  %v5157_v15 = vpop.f32.mrb[31].mxu1 }
 0x12d   :  { %7825 = vst [vmem:[#allocation64_spill] sm:$0xff] %v5155_v14  ;;  %7826 = vst [vmem:[#allocation65_spill] sm:$0xff] %v5157_v15 }
 0x12e   :  { %1716 = vrot.lane.b32.xlu0 %v5053_v43, %s4640_s30  ;;  %1718 = vrot.lane.b32.xlu1 %v5061_v47, %s4640_s30 }
 0x131   :  { %v5163_v42 = vpop.f32.mrb[32].mxu0  ;;  %v5165_v46 = vpop.f32.mrb[32].mxu1 }
 0x132   :  { %7827 = vst [vmem:[#allocation66_spill] sm:$0xff] %v5163_v42  ;;  %7828 = vst [vmem:[#allocation67_spill] sm:$0xff] %v5165_v46  ;;  %1584 = vrot.lane.b32.xlu0 %v5067_v48, %s4640_s30  ;;  %1586 = vrot.lane.b32.xlu1 %v5079_v52, %s4640_s30  ;;  %v5171_v45 = vpop.f32.mrb[33].mxu0  ;;  %v5173_v41 = vpop.f32.mrb[33].mxu1 }
 0x133   :  { %7829 = vst [vmem:[#allocation68_spill] sm:$0xff] %v5171_v45  ;;  %7830 = vst [vmem:[#allocation69_spill] sm:$0xff] %v5173_v41  ;;  %v5175_v44 = vpop.f32.mrb[34].mxu0  ;;  %v5177_v43 = vpop.f32.mrb[34].mxu1 }
 0x134   :  { %7831 = vst [vmem:[#allocation70_spill] sm:$0xff] %v5175_v44  ;;  %7832 = vst [vmem:[#allocation71_spill] sm:$0xff] %v5177_v43  ;;  %v5179_v40 = vpop.f32.mrb[35].mxu0  ;;  %v5181_v47 = vpop.f32.mrb[35].mxu1 }
 0x135   :  { %7833 = vst [vmem:[#allocation72_spill] sm:$0xff] %v5179_v40  ;;  %7834 = vst [vmem:[#allocation73_spill] sm:$0xff] %v5181_v47 }
 0x136   :  { %1728 = vrot.lane.b32.xlu0 %v5069_v49, %s4640_s30  ;;  %1730 = vrot.lane.b32.xlu1 %v5081_v53, %s4640_s30 }
 0x139   :  { %v5187_v48 = vpop.f32.mrb[36].mxu0  ;;  %v5189_v52 = vpop.f32.mrb[36].mxu1 }
 0x13a   :  { %7835 = vst [vmem:[#allocation74_spill] sm:$0xff] %v5187_v48  ;;  %7836 = vst [vmem:[#allocation75_spill] sm:$0xff] %v5189_v52  ;;  %1580 = vrot.lane.b32.xlu0 %v5075_v50, %s4640_s30  ;;  %1582 = vrot.lane.b32.xlu1 %v5083_v54, %s4640_s30  ;;  %v5195_v39 = vpop.f32.mrb[37].mxu0  ;;  %v5197_v35 = vpop.f32.mrb[37].mxu1 }
 0x13b   :  { %7837 = vst [vmem:[#allocation76_spill] sm:$0xff] %v5195_v39  ;;  %7838 = vst [vmem:[#allocation77_spill] sm:$0xff] %v5197_v35  ;;  %v5199_v38 = vpop.f32.mrb[38].mxu0  ;;  %v5201_v49 = vpop.f32.mrb[38].mxu1 }
 0x13c   :  { %7839 = vst [vmem:[#allocation78_spill] sm:$0xff] %v5199_v38  ;;  %7840 = vst [vmem:[#allocation79_spill] sm:$0xff] %v5201_v49  ;;  %v5203_v34 = vpop.f32.mrb[39].mxu0  ;;  %v5205_v53 = vpop.f32.mrb[39].mxu1 }
 0x13d   :  { %7841 = vst [vmem:[#allocation80_spill] sm:$0xff] %v5203_v34  ;;  %7842 = vst [vmem:[#allocation81_spill] sm:$0xff] %v5205_v53 }
 0x13e   :  { %1724 = vrot.lane.b32.xlu0 %v5077_v51, %s4640_s30  ;;  %1726 = vrot.lane.b32.xlu1 %v5085_v55, %s4640_s30 }
 0x141   :  { %v5211_v50 = vpop.f32.mrb[40].mxu0  ;;  %v5213_v54 = vpop.f32.mrb[40].mxu1 }
 0x142   :  { %7843 = vst [vmem:[#allocation82_spill] sm:$0xff] %v5211_v50  ;;  %7844 = vst [vmem:[#allocation83_spill] sm:$0xff] %v5213_v54  ;;  %1592 = vrot.lane.b32.xlu0 %v5091_v56, %s4640_s30  ;;  %1594 = vrot.lane.b32.xlu1 %v5103_v60, %s4640_s30  ;;  %v5219_v37 = vpop.f32.mrb[41].mxu0  ;;  %v5221_v33 = vpop.f32.mrb[41].mxu1 }
 0x143   :  { %7845 = vst [vmem:[#allocation84_spill] sm:$0xff] %v5219_v37  ;;  %7846 = vst [vmem:[#allocation85_spill] sm:$0xff] %v5221_v33  ;;  %v5223_v36 = vpop.f32.mrb[42].mxu0  ;;  %v5225_v51 = vpop.f32.mrb[42].mxu1 }
 0x144   :  { %7847 = vst [vmem:[#allocation86_spill] sm:$0xff] %v5223_v36  ;;  %7848 = vst [vmem:[#allocation87_spill] sm:$0xff] %v5225_v51  ;;  %v5227_v32 = vpop.f32.mrb[43].mxu0  ;;  %v5229_v55 = vpop.f32.mrb[43].mxu1 }
 0x145   :  { %7849 = vst [vmem:[#allocation88_spill] sm:$0xff] %v5227_v32  ;;  %7850 = vst [vmem:[#allocation89_spill] sm:$0xff] %v5229_v55 }
 0x146   :  { %1736 = vrot.lane.b32.xlu0 %v5093_v57, %s4640_s30  ;;  %1738 = vrot.lane.b32.xlu1 %v5105_v61, %s4640_s30 }
 0x149   :  { %v5235_v56 = vpop.f32.mrb[44].mxu0  ;;  %v5237_v60 = vpop.f32.mrb[44].mxu1 }
 0x14a   :  { %7851 = vst [vmem:[#allocation90_spill] sm:$0xff] %v5235_v56  ;;  %7852 = vst [vmem:[#allocation91_spill] sm:$0xff] %v5237_v60  ;;  %1588 = vrot.lane.b32.xlu0 %v5099_v58, %s4640_s30  ;;  %1590 = vrot.lane.b32.xlu1 %v5107_v62, %s4640_s30  ;;  %v5243_v31 = vpop.f32.mrb[45].mxu0  ;;  %v5245_v27 = vpop.f32.mrb[45].mxu1 }
 0x14b   :  { %7853 = vst [vmem:[#allocation92_spill] sm:$0xff] %v5243_v31  ;;  %7854 = vst [vmem:[#allocation93_spill] sm:$0xff] %v5245_v27  ;;  %v5247_v30 = vpop.f32.mrb[46].mxu0  ;;  %v5249_v57 = vpop.f32.mrb[46].mxu1 }
 0x14c   :  { %7855 = vst [vmem:[#allocation94_spill] sm:$0xff] %v5247_v30  ;;  %7856 = vst [vmem:[#allocation95_spill] sm:$0xff] %v5249_v57  ;;  %v5251_v26 = vpop.f32.mrb[47].mxu0  ;;  %v5253_v61 = vpop.f32.mrb[47].mxu1 }
 0x14d   :  { %7857 = vst [vmem:[#allocation96_spill] sm:$0xff] %v5251_v26  ;;  %7858 = vst [vmem:[#allocation97_spill] sm:$0xff] %v5253_v61 }
 0x14e   :  { %1732 = vrot.lane.b32.xlu0 %v5101_v59, %s4640_s30  ;;  %1734 = vrot.lane.b32.xlu1 %v5109_v63, %s4640_s30 }
 0x151   :  { %v5259_v58 = vpop.f32.mrb[48].mxu0  ;;  %v5261_v62 = vpop.f32.mrb[48].mxu1 }
 0x152   :  { %7859 = vst [vmem:[#allocation98_spill] sm:$0xff] %v5259_v58  ;;  %7860 = vst [vmem:[#allocation99_spill] sm:$0xff] %v5261_v62  ;;  %1600 = vrot.lane.b32.xlu0 %v5115_v0, %s4640_s30  ;;  %1602 = vrot.lane.b32.xlu1 %v5127_v4, %s4640_s30  ;;  %v5267_v29 = vpop.f32.mrb[49].mxu0  ;;  %v5269_v25 = vpop.f32.mrb[49].mxu1 }
 0x153   :  { %7861 = vst [vmem:[#allocation100_spill] sm:$0xff] %v5267_v29  ;;  %7862 = vst [vmem:[#allocation101_spill] sm:$0xff] %v5269_v25  ;;  %v5271_v28 = vpop.f32.mrb[50].mxu0  ;;  %v5273_v59 = vpop.f32.mrb[50].mxu1 }
 0x154   :  { %7863 = vst [vmem:[#allocation102_spill] sm:$0xff] %v5271_v28  ;;  %7864 = vst [vmem:[#allocation103_spill] sm:$0xff] %v5273_v59  ;;  %v5275_v24 = vpop.f32.mrb[51].mxu0  ;;  %v5277_v63 = vpop.f32.mrb[51].mxu1 }
 0x155   :  { %7865 = vst [vmem:[#allocation104_spill] sm:$0xff] %v5275_v24  ;;  %7866 = vst [vmem:[#allocation105_spill] sm:$0xff] %v5277_v63 }
 0x156   :  { %1744 = vrot.lane.b32.xlu0 %v5117_v1, %s4640_s30  ;;  %1746 = vrot.lane.b32.xlu1 %v5129_v5, %s4640_s30 }
 0x159   :  { %v5283_v0 = vpop.f32.mrb[52].mxu0  ;;  %v5285_v4 = vpop.f32.mrb[52].mxu1 }
 0x15a   :  { %7867 = vst [vmem:[#allocation106_spill] sm:$0xff] %v5283_v0  ;;  %7868 = vst [vmem:[#allocation107_spill] sm:$0xff] %v5285_v4  ;;  %1596 = vrot.lane.b32.xlu0 %v5123_v2, %s4640_s30  ;;  %1598 = vrot.lane.b32.xlu1 %v5131_v6, %s4640_s30  ;;  %v5291_v23 = vpop.f32.mrb[53].mxu0  ;;  %v5293_v18 = vpop.f32.mrb[53].mxu1 }
 0x15b   :  { %7869 = vst [vmem:[#allocation108_spill] sm:$0xff] %v5291_v23  ;;  %7870 = vst [vmem:[#allocation109_spill] sm:$0xff] %v5293_v18  ;;  %v5295_v22 = vpop.f32.mrb[54].mxu0  ;;  %v5297_v1 = vpop.f32.mrb[54].mxu1 }
 0x15c   :  { %7871 = vst [vmem:[#allocation110_spill] sm:$0xff] %v5295_v22  ;;  %7872 = vst [vmem:[#allocation111_spill] sm:$0xff] %v5297_v1  ;;  %v5299_v19 = vpop.f32.mrb[55].mxu0  ;;  %v5301_v5 = vpop.f32.mrb[55].mxu1 }
 0x15d   :  { %7873 = vst [vmem:[#allocation112_spill] sm:$0xff] %v5299_v19  ;;  %7874 = vst [vmem:[#allocation113_spill] sm:$0xff] %v5301_v5 }
 0x15e   :  { %1740 = vrot.lane.b32.xlu0 %v5125_v3, %s4640_s30  ;;  %1742 = vrot.lane.b32.xlu1 %v5133_v7, %s4640_s30 }
 0x161   :  { %v5307_v2 = vpop.f32.mrb[56].mxu0  ;;  %v5309_v6 = vpop.f32.mrb[56].mxu1 }
 0x162   :  { %7875 = vst [vmem:[#allocation114_spill] sm:$0xff] %v5307_v2  ;;  %7876 = vst [vmem:[#allocation115_spill] sm:$0xff] %v5309_v6  ;;  %1608 = vrot.lane.b32.xlu0 %v5139_v8, %s4640_s30  ;;  %1610 = vrot.lane.b32.xlu1 %v5151_v12, %s4640_s30  ;;  %v5315_v21 = vpop.f32.mrb[57].mxu0  ;;  %v5317_v17 = vpop.f32.mrb[57].mxu1 }
 0x163   :  { %7877 = vst [vmem:[#allocation116_spill] sm:$0xff] %v5315_v21  ;;  %7878 = vst [vmem:[#allocation117_spill] sm:$0xff] %v5317_v17  ;;  %v5319_v20 = vpop.f32.mrb[58].mxu0  ;;  %v5321_v3 = vpop.f32.mrb[58].mxu1 }
 0x164   :  { %7879 = vst [vmem:[#allocation118_spill] sm:$0xff] %v5319_v20  ;;  %7880 = vst [vmem:[#allocation119_spill] sm:$0xff] %v5321_v3  ;;  %v5323_v16 = vpop.permute.xlu0 %1696  ;;  %v5325_v7 = vpop.permute.xlu1 %1552 }
 0x165   :  { %7881 = vst [vmem:[#allocation120_spill] sm:$0xff] %v5323_v16  ;;  %7882 = vst [vmem:[#allocation121_spill] sm:$0xff] %v5325_v7  ;;  %v5327_v2 = vpop.f32.mrb[59].mxu0  ;;  %v5329_v6 = vpop.f32.mrb[59].mxu1 }
 0x166   :  { %7883 = vst [vmem:[#allocation122_spill] sm:$0xff] %v5327_v2  ;;  %7884 = vst [vmem:[#allocation123_spill] sm:$0xff] %v5329_v6  ;;  %1752 = vrot.lane.b32.xlu0 %v5141_v9, %s4640_s30  ;;  %1754 = vrot.lane.b32.xlu1 %v5153_v13, %s4640_s30 }
 0x168   :  { %v5335_v12 = vpop.permute.xlu0 %1548  ;;  %v5337_v8 = vpop.permute.xlu1 %1554 }
 0x169   :  { %7885 = vst [vmem:[#allocation124_spill] sm:$0xff] %v5335_v12  ;;  %v5347_v6 = vpop.f32.mrb[60].mxu0 }
 0x16a   :  { %1604 = vrot.lane.b32.xlu0 %v5147_v10, %s4640_s30  ;;  %1606 = vrot.lane.b32.xlu1 %v5155_v14, %s4640_s30  ;;  %7887 = vst [vmem:[#allocation126_spill] sm:$0xff] %v5347_v6  ;;  %v5353_v13 = vpop.f32.mrb[61].mxu0 }
 0x16b   :  { %7888 = vst [vmem:[#allocation127_spill] sm:$0xff] %v5353_v13  ;;  %v5355_v9 = vpop.f32.mrb[62].mxu0 }
 0x16c   :  { %v5343_v16 = vpop.permute.xlu0 %1692  ;;  %v5345_v7 = vpop.permute.xlu1 %1698  ;;  %7889 = vst [vmem:[#allocation128_spill] sm:$0xff] %v5355_v9 }
 0x16d   :  { %7886 = vst [vmem:[#allocation125_spill] sm:$0xff] %v5343_v16  ;;  %v5361_v14 = vpop.f32.mrb[63].mxu0  ;;  %v5363_v16 = vpop.f32.mrb[60].mxu1 }
 0x16e   :  { %1748 = vrot.lane.b32.xlu0 %v5149_v11, %s4640_s30  ;;  %1750 = vrot.lane.b32.xlu1 %v5157_v15, %s4640_s30  ;;  %7890 = vst [vmem:[#allocation129_spill] sm:$0xff] %v5361_v14  ;;  %7891 = vst [vmem:[#allocation130_spill] sm:$0xff] %v5363_v16  ;;  %v5369_v11 = vpop.f32.mrb[61].mxu1 }
 0x16f   :  { %7892 = vst [vmem:[#allocation131_spill] sm:$0xff] %v5369_v11  ;;  %v5371_v15 = vpop.f32.mrb[62].mxu1 }
 0x170   :  { %v5357_v10 = vpop.permute.xlu1 %1694  ;;  %v5359_v12 = vpop.permute.xlu0 %1550  ;;  %7893 = vst [vmem:[#allocation132_spill] sm:$0xff] %v5371_v15 }
 0x171   :  { %v5377_v6 = vpop.f32.mrb[63].mxu1 }
 0x172   :  { %1616 = vrot.lane.b32.xlu0 %v5163_v42, %s4640_s30  ;;  %1618 = vrot.lane.b32.xlu1 %v5175_v44, %s4640_s30  ;;  %7895 = vst [vmem:[#allocation134_spill] sm:$0xff] %v5377_v6 }
 0x174   :  { %v5373_v13 = vpop.permute.xlu0 %1560  ;;  %v5375_v9 = vpop.permute.xlu1 %1562 }
 0x175   :  { %7894 = vst [vmem:[#allocation133_spill] sm:$0xff] %v5375_v9 }
 0x176   :  { %1760 = vrot.lane.b32.xlu0 %v5165_v46, %s4640_s30  ;;  %1762 = vrot.lane.b32.xlu1 %v5177_v43, %s4640_s30 }
 0x178   :  { %v5383_v42 = vpop.permute.xlu0 %1704  ;;  %v5385_v14 = vpop.permute.xlu1 %1706 }
 0x17a   :  { %1612 = vrot.lane.b32.xlu0 %v5171_v45, %s4640_s30  ;;  %1614 = vrot.lane.b32.xlu1 %v5179_v40, %s4640_s30 }
 0x17c   :  { %v5391_v44 = vpop.permute.xlu0 %1556  ;;  %v5393_v9 = vpop.permute.xlu1 %1558 }
 0x17e   :  { %1756 = vrot.lane.b32.xlu0 %v5173_v41, %s4640_s30  ;;  %1758 = vrot.lane.b32.xlu1 %v5181_v47, %s4640_s30 }
 0x180   :  { %v5399_v46 = vpop.permute.xlu0 %1700  ;;  %v5401_v43 = vpop.permute.xlu1 %1702 }
 0x182   :  { %1624 = vrot.lane.b32.xlu0 %v5187_v48, %s4640_s30  ;;  %1626 = vrot.lane.b32.xlu1 %v5199_v38, %s4640_s30 }
 0x184   :  { %v5407_v40 = vpop.permute.xlu0 %1568  ;;  %v5409_v45 = vpop.permute.xlu1 %1570 }
 0x185   :  { %7896 = vst [vmem:[#allocation135_spill] sm:$0xff] %v5409_v45  ;;  %v5427_v45 = vpop.f32.mrb[64].mxu0 }
 0x186   :  { %1768 = vrot.lane.b32.xlu0 %v5189_v52, %s4640_s30  ;;  %1770 = vrot.lane.b32.xlu1 %v5201_v49, %s4640_s30  ;;  %7901 = vst [vmem:[#allocation140_spill] sm:$0xff] %v5427_v45  ;;  %v5433_v49 = vpop.f32.mrb[65].mxu0 }
 0x187   :  { %7902 = vst [vmem:[#allocation141_spill] sm:$0xff] %v5433_v49  ;;  %v5435_v52 = vpop.f32.mrb[66].mxu0 }
 0x188   :  { %v5415_v47 = vpop.permute.xlu0 %1712  ;;  %v5417_v41 = vpop.permute.xlu1 %1714  ;;  %7903 = vst [vmem:[#allocation142_spill] sm:$0xff] %v5435_v52 }
 0x189   :  { %7897 = vst [vmem:[#allocation136_spill] sm:$0xff] %v5415_v47  ;;  %7898 = vst [vmem:[#allocation137_spill] sm:$0xff] %v5417_v41 }
 0x18a   :  { %1620 = vrot.lane.b32.xlu0 %v5195_v39, %s4640_s30  ;;  %1622 = vrot.lane.b32.xlu1 %v5203_v34, %s4640_s30  ;;  %v5441_v34 = vpop.f32.mrb[67].mxu0 }
 0x18b   :  { %7906 = vst [vmem:[#allocation145_spill] sm:$0xff] %v5441_v34 }
 0x18c   :  { %v5423_v38 = vpop.permute.xlu0 %1564  ;;  %v5425_v48 = vpop.permute.xlu1 %1566 }
 0x18d   :  { %7899 = vst [vmem:[#allocation138_spill] sm:$0xff] %v5423_v38  ;;  %7900 = vst [vmem:[#allocation139_spill] sm:$0xff] %v5425_v48  ;;  %v5443_v38 = vpop.f32.mrb[64].mxu1 }
 0x18e   :  { %1764 = vrot.lane.b32.xlu0 %v5197_v35, %s4640_s30  ;;  %1766 = vrot.lane.b32.xlu1 %v5205_v53, %s4640_s30  ;;  %7907 = vst [vmem:[#allocation146_spill] sm:$0xff] %v5443_v38  ;;  %v5449_v35 = vpop.f32.mrb[65].mxu1 }
 0x18f   :  { %7908 = vst [vmem:[#allocation147_spill] sm:$0xff] %v5449_v35  ;;  %v5451_v53 = vpop.f32.mrb[66].mxu1 }
 0x190   :  { %v5437_v39 = vpop.permute.xlu0 %1708  ;;  %v5439_v41 = vpop.permute.xlu1 %1710  ;;  %7909 = vst [vmem:[#allocation148_spill] sm:$0xff] %v5451_v53 }
 0x191   :  { %7904 = vst [vmem:[#allocation143_spill] sm:$0xff] %v5437_v39  ;;  %7905 = vst [vmem:[#allocation144_spill] sm:$0xff] %v5439_v41  ;;  %v5457_v39 = vpop.f32.mrb[67].mxu1 }
 0x192   :  { %1632 = vrot.lane.b32.xlu0 %v5211_v50, %s4640_s30  ;;  %1634 = vrot.lane.b32.xlu1 %v5223_v36, %s4640_s30  ;;  %7911 = vst [vmem:[#allocation150_spill] sm:$0xff] %v5457_v39 }
 0x194   :  { %v5453_v48 = vpop.permute.xlu0 %1576  ;;  %v5455_v47 = vpop.permute.xlu1 %1578 }
 0x195   :  { %7910 = vst [vmem:[#allocation149_spill] sm:$0xff] %v5455_v47 }
 0x196   :  { %1776 = vrot.lane.b32.xlu0 %v5213_v54, %s4640_s30  ;;  %1778 = vrot.lane.b32.xlu1 %v5225_v51, %s4640_s30 }
 0x198   :  { %v5463_v50 = vpop.permute.xlu0 %1720  ;;  %v5465_v41 = vpop.permute.xlu1 %1722 }
 0x19a   :  { %1628 = vrot.lane.b32.xlu0 %v5219_v37, %s4640_s30  ;;  %1630 = vrot.lane.b32.xlu1 %v5227_v32, %s4640_s30 }
 0x19c   :  { %v5471_v36 = vpop.permute.xlu0 %1572  ;;  %v5473_v47 = vpop.permute.xlu1 %1574 }
 0x19e   :  { %1772 = vrot.lane.b32.xlu0 %v5221_v33, %s4640_s30  ;;  %1774 = vrot.lane.b32.xlu1 %v5229_v55, %s4640_s30 }
 0x1a0   :  { %v5479_v51 = vpop.permute.xlu0 %1716  ;;  %v5481_v54 = vpop.permute.xlu1 %1718 }
 0x1a2   :  { %1640 = vrot.lane.b32.xlu0 %v5235_v56, %s4640_s30  ;;  %1642 = vrot.lane.b32.xlu1 %v5247_v30, %s4640_s30 }
 0x1a4   :  { %v5487_v32 = vpop.permute.xlu0 %1584  ;;  %v5489_v37 = vpop.permute.xlu1 %1586 }
 0x1a5   :  { %7912 = vst [vmem:[#allocation151_spill] sm:$0xff] %v5489_v37  ;;  %v5507_v37 = vpop.f32.mrb[68].mxu0 }
 0x1a6   :  { %1784 = vrot.lane.b32.xlu0 %v5237_v60, %s4640_s30  ;;  %1786 = vrot.lane.b32.xlu1 %v5249_v57, %s4640_s30  ;;  %7917 = vst [vmem:[#allocation156_spill] sm:$0xff] %v5507_v37  ;;  %v5513_v57 = vpop.f32.mrb[69].mxu0 }
 0x1a7   :  { %7918 = vst [vmem:[#allocation157_spill] sm:$0xff] %v5513_v57  ;;  %v5515_v60 = vpop.f32.mrb[70].mxu0 }
 0x1a8   :  { %v5495_v55 = vpop.permute.xlu0 %1728  ;;  %v5497_v33 = vpop.permute.xlu1 %1730  ;;  %7919 = vst [vmem:[#allocation158_spill] sm:$0xff] %v5515_v60 }
 0x1a9   :  { %7913 = vst [vmem:[#allocation152_spill] sm:$0xff] %v5495_v55  ;;  %7914 = vst [vmem:[#allocation153_spill] sm:$0xff] %v5497_v33 }
 0x1aa   :  { %1636 = vrot.lane.b32.xlu0 %v5243_v31, %s4640_s30  ;;  %1638 = vrot.lane.b32.xlu1 %v5251_v26, %s4640_s30  ;;  %v5521_v26 = vpop.f32.mrb[71].mxu0 }
 0x1ab   :  { %7922 = vst [vmem:[#allocation161_spill] sm:$0xff] %v5521_v26 }
 0x1ac   :  { %v5503_v30 = vpop.permute.xlu0 %1580  ;;  %v5505_v56 = vpop.permute.xlu1 %1582 }
 0x1ad   :  { %7915 = vst [vmem:[#allocation154_spill] sm:$0xff] %v5503_v30  ;;  %7916 = vst [vmem:[#allocation155_spill] sm:$0xff] %v5505_v56  ;;  %v5523_v30 = vpop.f32.mrb[68].mxu1 }
 0x1ae   :  { %1780 = vrot.lane.b32.xlu0 %v5245_v27, %s4640_s30  ;;  %1782 = vrot.lane.b32.xlu1 %v5253_v61, %s4640_s30  ;;  %7923 = vst [vmem:[#allocation162_spill] sm:$0xff] %v5523_v30  ;;  %v5529_v27 = vpop.f32.mrb[69].mxu1 }
 0x1af   :  { %7924 = vst [vmem:[#allocation163_spill] sm:$0xff] %v5529_v27  ;;  %v5531_v61 = vpop.f32.mrb[70].mxu1 }
 0x1b0   :  { %v5517_v31 = vpop.permute.xlu0 %1724  ;;  %v5519_v33 = vpop.permute.xlu1 %1726  ;;  %7925 = vst [vmem:[#allocation164_spill] sm:$0xff] %v5531_v61 }
 0x1b1   :  { %7920 = vst [vmem:[#allocation159_spill] sm:$0xff] %v5517_v31  ;;  %7921 = vst [vmem:[#allocation160_spill] sm:$0xff] %v5519_v33  ;;  %v5537_v31 = vpop.f32.mrb[71].mxu1 }
 0x1b2   :  { %1648 = vrot.lane.b32.xlu0 %v5259_v58, %s4640_s30  ;;  %1650 = vrot.lane.b32.xlu1 %v5271_v28, %s4640_s30  ;;  %7927 = vst [vmem:[#allocation166_spill] sm:$0xff] %v5537_v31 }
 0x1b4   :  { %v5533_v56 = vpop.permute.xlu0 %1592  ;;  %v5535_v55 = vpop.permute.xlu1 %1594 }
 0x1b5   :  { %7926 = vst [vmem:[#allocation165_spill] sm:$0xff] %v5535_v55 }
 0x1b6   :  { %1792 = vrot.lane.b32.xlu0 %v5261_v62, %s4640_s30  ;;  %1794 = vrot.lane.b32.xlu1 %v5273_v59, %s4640_s30 }
 0x1b8   :  { %v5543_v58 = vpop.permute.xlu0 %1736  ;;  %v5545_v33 = vpop.permute.xlu1 %1738 }
 0x1ba   :  { %1644 = vrot.lane.b32.xlu0 %v5267_v29, %s4640_s30  ;;  %1646 = vrot.lane.b32.xlu1 %v5275_v24, %s4640_s30 }
 0x1bc   :  { %v5551_v28 = vpop.permute.xlu0 %1588  ;;  %v5553_v55 = vpop.permute.xlu1 %1590 }
 0x1be   :  { %1788 = vrot.lane.b32.xlu0 %v5269_v25, %s4640_s30  ;;  %1790 = vrot.lane.b32.xlu1 %v5277_v63, %s4640_s30 }
 0x1c0   :  { %v5559_v59 = vpop.permute.xlu0 %1732  ;;  %v5561_v62 = vpop.permute.xlu1 %1734 }
 0x1c2   :  { %1656 = vrot.lane.b32.xlu0 %v5283_v0, %s4640_s30  ;;  %1658 = vrot.lane.b32.xlu1 %v5295_v22, %s4640_s30 }
 0x1c4   :  { %v5567_v24 = vpop.permute.xlu0 %1600  ;;  %v5569_v29 = vpop.permute.xlu1 %1602 }
 0x1c6   :  { %1800 = vrot.lane.b32.xlu0 %v5285_v4, %s4640_s30  ;;  %1802 = vrot.lane.b32.xlu1 %v5297_v1, %s4640_s30 }
 0x1c8   :  { %v5575_v63 = vpop.permute.xlu0 %1744  ;;  %v5577_v25 = vpop.permute.xlu1 %1746 }
 0x1c9   :  { %7928 = vst [vmem:[#allocation167_spill] sm:$0xff] %v5577_v25  ;;  %v7931_v25 = vld [vmem:[#allocation114_spill] sm:$0xff] }
 0x1ca   :  { %1652 = vrot.lane.b32.xlu0 %v5291_v23, %s4640_s30  ;;  %1654 = vrot.lane.b32.xlu1 %v5299_v19, %s4640_s30 }
 0x1cc   :  { %v5583_v22 = vpop.permute.xlu0 %1596  ;;  %v5585_v0 = vpop.permute.xlu1 %1598 }
 0x1cd   :  { %7929 = vst [vmem:[#allocation168_spill] sm:$0xff] %v5585_v0  ;;  %v7934_v0 = vld [vmem:[#allocation115_spill] sm:$0xff] }
 0x1ce   :  { %1796 = vrot.lane.b32.xlu0 %v5293_v18, %s4640_s30  ;;  %1798 = vrot.lane.b32.xlu1 %v5301_v5, %s4640_s30 }
 0x1d0   :  { %v5591_v1 = vpop.permute.xlu0 %1740  ;;  %v5593_v4 = vpop.permute.xlu1 %1742 }
 0x1d1   :  { %7930 = vst [vmem:[#allocation169_spill] sm:$0xff] %v5593_v4 }
 0x1d2   :  { %1664 = vrot.lane.b32.xlu0 %v7931_v25, %s4640_s30  ;;  %1666 = vrot.lane.b32.xlu1 %v5319_v20, %s4640_s30 }
 0x1d4   :  { %v5599_v19 = vpop.permute.xlu0 %1608  ;;  %v5601_v23 = vpop.permute.xlu1 %1610 }
 0x1d5   :  { %7932 = vst [vmem:[#allocation170_spill] sm:$0xff] %v5599_v19  ;;  %7933 = vst [vmem:[#allocation171_spill] sm:$0xff] %v5601_v23 }
 0x1d6   :  { %1808 = vrot.lane.b32.xlu0 %v7934_v0, %s4640_s30  ;;  %1810 = vrot.lane.b32.xlu1 %v5321_v3, %s4640_s30  ;;  %v7939_v0 = vld [vmem:[#allocation123_spill] sm:$0xff]  ;;  %v7940_v3 = vld [vmem:[#allocation121_spill] sm:$0xff] }
 0x1d8   :  { %v5607_v5 = vpop.permute.xlu0 %1752  ;;  %v5609_v18 = vpop.permute.xlu1 %1754 }
 0x1d9   :  { %7935 = vst [vmem:[#allocation172_spill] sm:$0xff] %v5607_v5  ;;  %7936 = vst [vmem:[#allocation173_spill] sm:$0xff] %v5609_v18  ;;  %v7941_v5 = vld [vmem:[#allocation2_spill] sm:$0xff] }
 0x1da   :  { %1660 = vrot.lane.b32.xlu0 %v5315_v21, %s4640_s30  ;;  %1662 = vrot.lane.b32.xlu1 %v5327_v2, %s4640_s30  ;;  %v5625_v23 = vmax.f32 %v7941_v5, %v7940_v3  ;;  %v7942_v18 = vld [vmem:[#allocation6_spill] sm:$0xff]  ;;  %v7947_v3 = vld [vmem:[#allocation7_spill] sm:$0xff] }
 0x1db   :  { %v5629_v21 = vmax.f32 %v7942_v18, %v5337_v8  ;;  %v5645_v5 = vmax.f32 %v7947_v3, %v5345_v7 }
 0x1dc   :  { %v5615_v20 = vpop.permute.xlu0 %1604  ;;  %v5617_v25 = vpop.permute.xlu1 %1606 }
 0x1dd   :  { %7937 = vst [vmem:[#allocation174_spill] sm:$0xff] %v5615_v20  ;;  %7938 = vst [vmem:[#allocation175_spill] sm:$0xff] %v5617_v25 }
 0x1de   :  { %1804 = vrot.lane.b32.xlu0 %v5317_v17, %s4640_s30  ;;  %1806 = vrot.lane.b32.xlu1 %v7939_v0, %s4640_s30  ;;  %v7945_v0 = vld [vmem:[#allocation120_spill] sm:$0xff]  ;;  %v7946_v17 = vld [vmem:[#allocation3_spill] sm:$0xff] }
 0x1df   :  { %v5641_v25 = vmax.f32 %v7946_v17, %v7945_v0  ;;  %v7952_v17 = vld [vmem:[#allocation8_spill] sm:$0xff] }
 0x1e0   :  { %v5631_v19 = vpop.permute.xlu0 %1748  ;;  %v5633_v2 = vpop.permute.xlu1 %1750  ;;  %v5661_v0 = vmax.f32 %v7952_v17, %v5359_v12 }
 0x1e1   :  { %7943 = vst [vmem:[#allocation121_spill] sm:$0xff] %v5631_v19  ;;  %7944 = vst [vmem:[#allocation2_spill] sm:$0xff] %v5633_v2  ;;  %v7950_v2 = vld [vmem:[#allocation124_spill] sm:$0xff]  ;;  %v7951_v19 = vld [vmem:[#allocation5_spill] sm:$0xff] }
 0x1e2   :  { %2272 = vrot.lane.b32.xlu0 %v5625_v23, %s4641_s0  ;;  %2274 = vrot.lane.b32.xlu1 %v5629_v21, %s4641_s0  ;;  %v5657_v20 = vmax.f32 %v7951_v19, %v7950_v2  ;;  %v7957_v19 = vld [vmem:[#allocation9_spill] sm:$0xff] }
 0x1e3   :  { %v5677_v2 = vmax.f32 %v7957_v19, %v5357_v10  ;;  %v7962_v10 = vld [vmem:[#allocation128_spill] sm:$0xff] }
 0x1e4   :  { %v5647_v18 = vpop.permute.xlu0 %1616  ;;  %v5649_v8 = vpop.permute.xlu1 %1618 }
 0x1e5   :  { %7948 = vst [vmem:[#allocation6_spill] sm:$0xff] %v5647_v18  ;;  %7949 = vst [vmem:[#allocation120_spill] sm:$0xff] %v5649_v8  ;;  %v7955_v8 = vld [vmem:[#allocation125_spill] sm:$0xff]  ;;  %v7956_v18 = vld [vmem:[#allocation4_spill] sm:$0xff] }
 0x1e6   :  { %2416 = vrot.lane.b32.xlu0 %v5641_v25, %s4641_s0  ;;  %2418 = vrot.lane.b32.xlu1 %v5645_v5, %s4641_s0  ;;  %v5673_v4 = vmax.f32 %v7956_v18, %v7955_v8  ;;  %v7961_v18 = vld [vmem:[#allocation126_spill] sm:$0xff] }
 0x1e8   :  { %v5663_v7 = vpop.permute.xlu0 %1760  ;;  %v5665_v3 = vpop.permute.xlu1 %1762 }
 0x1e9   :  { %7953 = vst [vmem:[#allocation3_spill] sm:$0xff] %v5663_v7  ;;  %7954 = vst [vmem:[#allocation7_spill] sm:$0xff] %v5665_v3 }
 0x1ea   :  { %2268 = vrot.lane.b32.xlu0 %v5657_v20, %s4641_s0  ;;  %2270 = vrot.lane.b32.xlu1 %v5661_v0, %s4641_s0 }
 0x1ec   :  { %v5679_v12 = vpop.permute.xlu0 %1612  ;;  %v5681_v17 = vpop.permute.xlu1 %1614 }
 0x1ed   :  { %7958 = vst [vmem:[#allocation124_spill] sm:$0xff] %v5681_v17 }
 0x1ee   :  { %2412 = vrot.lane.b32.xlu0 %v5673_v4, %s4641_s0  ;;  %2414 = vrot.lane.b32.xlu1 %v5677_v2, %s4641_s0 }
 0x1f0   :  { %v5687_v7 = vpop.permute.xlu0 %1756  ;;  %v5689_v3 = vpop.permute.xlu1 %1758 }
 0x1f1   :  { %7959 = vst [vmem:[#allocation5_spill] sm:$0xff] %v5687_v7  ;;  %7960 = vst [vmem:[#allocation8_spill] sm:$0xff] %v5689_v3  ;;  %v7967_v3 = vld [vmem:[#allocation127_spill] sm:$0xff] }
 0x1f2   :  { %1672 = vrot.lane.b32.xlu0 %v7961_v18, %s4640_s30  ;;  %1674 = vrot.lane.b32.xlu1 %v7962_v10, %s4640_s30  ;;  %v7968_v18 = vld [vmem:[#allocation129_spill] sm:$0xff] }
 0x1f4   :  { %v5695_v8 = vpop.permute.xlu0 %1624  ;;  %v5697_v19 = vpop.permute.xlu1 %1626 }
 0x1f5   :  { %7963 = vst [vmem:[#allocation125_spill] sm:$0xff] %v5695_v8  ;;  %7964 = vst [vmem:[#allocation4_spill] sm:$0xff] %v5697_v19 }
 0x1f6   :  { %1816 = vrot.lane.b32.xlu0 %v5363_v16, %s4640_s30  ;;  %1818 = vrot.lane.b32.xlu1 %v5371_v15, %s4640_s30  ;;  %v7969_v15 = vld [vmem:[#allocation10_spill] sm:$0xff] }
 0x1f7   :  { %v5721_v16 = vmax.f32 %v7969_v15, %v5373_v13  ;;  %v7975_v13 = vld [vmem:[#allocation15_spill] sm:$0xff] }
 0x1f8   :  { %v5703_v17 = vpop.permute.xlu0 %1768  ;;  %v5705_v7 = vpop.permute.xlu1 %1770  ;;  %v5741_v15 = vmax.f32 %v7975_v13, %v5385_v14 }
 0x1f9   :  { %7965 = vst [vmem:[#allocation9_spill] sm:$0xff] %v5703_v17  ;;  %7966 = vst [vmem:[#allocation176_spill] sm:$0xff] %v5705_v7  ;;  %v7970_v7 = vld [vmem:[#allocation133_spill] sm:$0xff]  ;;  %v7971_v17 = vld [vmem:[#allocation14_spill] sm:$0xff] }
 0x1fa   :  { %1668 = vrot.lane.b32.xlu0 %v7967_v3, %s4640_s30  ;;  %1670 = vrot.lane.b32.xlu1 %v7968_v18, %s4640_s30  ;;  %v5725_v3 = vmax.f32 %v7971_v17, %v7970_v7 }
 0x1fc   :  { %v5711_v10 = vpop.permute.xlu0 %1620  ;;  %v5713_v8 = vpop.permute.xlu1 %1622 }
 0x1fe   :  { %1812 = vrot.lane.b32.xlu0 %v5369_v11, %s4640_s30  ;;  %1814 = vrot.lane.b32.xlu1 %v5377_v6, %s4640_s30  ;;  %v7974_v6 = vld [vmem:[#allocation11_spill] sm:$0xff] }
 0x1ff   :  { %v5737_v11 = vmax.f32 %v7974_v6, %v5383_v42  ;;  %v7979_v42 = vld [vmem:[#allocation16_spill] sm:$0xff] }
 0x200   :  { %v5727_v19 = vpop.permute.xlu0 %1764  ;;  %v5729_v18 = vpop.permute.xlu1 %1766  ;;  %v5757_v6 = vmax.f32 %v7979_v42, %v5393_v9 }
 0x201   :  { %7972 = vst [vmem:[#allocation10_spill] sm:$0xff] %v5727_v19  ;;  %7973 = vst [vmem:[#allocation133_spill] sm:$0xff] %v5729_v18  ;;  %v7978_v18 = vld [vmem:[#allocation12_spill] sm:$0xff] }
 0x202   :  { %2280 = vrot.lane.b32.xlu0 %v5721_v16, %s4641_s0  ;;  %2282 = vrot.lane.b32.xlu1 %v5725_v3, %s4641_s0  ;;  %v5753_v19 = vmax.f32 %v7978_v18, %v5391_v44  ;;  %v7983_v44 = vld [vmem:[#allocation17_spill] sm:$0xff] }
 0x203   :  { %v5773_v18 = vmax.f32 %v7983_v44, %v5401_v43 }
 0x204   :  { %v5743_v7 = vpop.permute.xlu0 %1632  ;;  %v5745_v17 = vpop.permute.xlu1 %1634 }
 0x205   :  { %7976 = vst [vmem:[#allocation14_spill] sm:$0xff] %v5743_v7  ;;  %7977 = vst [vmem:[#allocation11_spill] sm:$0xff] %v5745_v17  ;;  %v7982_v17 = vld [vmem:[#allocation13_spill] sm:$0xff] }
 0x206   :  { %2424 = vrot.lane.b32.xlu0 %v5737_v11, %s4641_s0  ;;  %2426 = vrot.lane.b32.xlu1 %v5741_v15, %s4641_s0  ;;  %v5769_v7 = vmax.f32 %v7982_v17, %v5399_v46 }
 0x208   :  { %v5759_v14 = vpop.permute.xlu0 %1776  ;;  %v5761_v13 = vpop.permute.xlu1 %1778 }
 0x209   :  { %7980 = vst [vmem:[#allocation15_spill] sm:$0xff] %v5759_v14  ;;  %7981 = vst [vmem:[#allocation12_spill] sm:$0xff] %v5761_v13 }
 0x20a   :  { %2276 = vrot.lane.b32.xlu0 %v5753_v19, %s4641_s0  ;;  %2278 = vrot.lane.b32.xlu1 %v5757_v6, %s4641_s0 }
 0x20c   :  { %v5775_v9 = vpop.permute.xlu0 %1628  ;;  %v5777_v42 = vpop.permute.xlu1 %1630 }
 0x20d   :  { %7984 = vst [vmem:[#allocation16_spill] sm:$0xff] %v5777_v42 }
 0x20e   :  { %2420 = vrot.lane.b32.xlu0 %v5769_v7, %s4641_s0  ;;  %2422 = vrot.lane.b32.xlu1 %v5773_v18, %s4641_s0 }
 0x210   :  { %v5783_v13 = vpop.permute.xlu0 %1772  ;;  %v5785_v14 = vpop.permute.xlu1 %1774 }
 0x211   :  { %7985 = vst [vmem:[#allocation13_spill] sm:$0xff] %v5783_v13  ;;  %7986 = vst [vmem:[#allocation17_spill] sm:$0xff] %v5785_v14 }
 0x212   :  { %1680 = vrot.lane.b32.xlu0 %v5427_v45, %s4640_s30  ;;  %1682 = vrot.lane.b32.xlu1 %v5435_v52, %s4640_s30 }
 0x214   :  { %v5791_v43 = vpop.permute.xlu0 %1640  ;;  %v5793_v46 = vpop.permute.xlu1 %1642 }
 0x215   :  { %7987 = vst [vmem:[#allocation177_spill] sm:$0xff] %v5791_v43  ;;  %7988 = vst [vmem:[#allocation178_spill] sm:$0xff] %v5793_v46 }
 0x216   :  { %1824 = vrot.lane.b32.xlu0 %v5443_v38, %s4640_s30  ;;  %1826 = vrot.lane.b32.xlu1 %v5451_v53, %s4640_s30  ;;  %v7993_v53 = vld [vmem:[#allocation18_spill] sm:$0xff] }
 0x217   :  { %v5817_v38 = vmax.f32 %v7993_v53, %v5407_v40  ;;  %v8000_v40 = vld [vmem:[#allocation137_spill] sm:$0xff]  ;;  %v8001_v53 = vld [vmem:[#allocation23_spill] sm:$0xff] }
 0x218   :  { %v5799_v17 = vpop.permute.xlu0 %1784  ;;  %v5801_v44 = vpop.permute.xlu1 %1786 }
 0x219   :  { %7989 = vst [vmem:[#allocation179_spill] sm:$0xff] %v5799_v17  ;;  %7990 = vst [vmem:[#allocation180_spill] sm:$0xff] %v5801_v44  ;;  %v7994_v44 = vld [vmem:[#allocation135_spill] sm:$0xff]  ;;  %v7995_v17 = vld [vmem:[#allocation22_spill] sm:$0xff] }
 0x21a   :  { %1676 = vrot.lane.b32.xlu0 %v5433_v49, %s4640_s30  ;;  %1678 = vrot.lane.b32.xlu1 %v5441_v34, %s4640_s30  ;;  %v5821_v49 = vmax.f32 %v7995_v17, %v7994_v44 }
 0x21c   :  { %v5807_v14 = vpop.permute.xlu0 %1636  ;;  %v5809_v13 = vpop.permute.xlu1 %1638 }
 0x21d   :  { %7991 = vst [vmem:[#allocation181_spill] sm:$0xff] %v5807_v14  ;;  %7992 = vst [vmem:[#allocation182_spill] sm:$0xff] %v5809_v13  ;;  %v5837_v13 = vmax.f32 %v8001_v53, %v8000_v40 }
 0x21e   :  { %1820 = vrot.lane.b32.xlu0 %v5449_v35, %s4640_s30  ;;  %1822 = vrot.lane.b32.xlu1 %v5457_v39, %s4640_s30  ;;  %v7998_v35 = vld [vmem:[#allocation136_spill] sm:$0xff]  ;;  %v7999_v39 = vld [vmem:[#allocation19_spill] sm:$0xff] }
 0x21f   :  { %v5833_v45 = vmax.f32 %v7999_v39, %v7998_v35  ;;  %v8006_v35 = vld [vmem:[#allocation139_spill] sm:$0xff]  ;;  %v8007_v39 = vld [vmem:[#allocation24_spill] sm:$0xff] }
 0x220   :  { %v5823_v52 = vpop.permute.xlu0 %1780  ;;  %v5825_v34 = vpop.permute.xlu1 %1782  ;;  %v5853_v46 = vmax.f32 %v8007_v39, %v8006_v35 }
 0x221   :  { %7996 = vst [vmem:[#allocation18_spill] sm:$0xff] %v5823_v52  ;;  %7997 = vst [vmem:[#allocation135_spill] sm:$0xff] %v5825_v34  ;;  %v8004_v34 = vld [vmem:[#allocation138_spill] sm:$0xff]  ;;  %v8005_v52 = vld [vmem:[#allocation20_spill] sm:$0xff] }
 0x222   :  { %2288 = vrot.lane.b32.xlu0 %v5817_v38, %s4641_s0  ;;  %2290 = vrot.lane.b32.xlu1 %v5821_v49, %s4641_s0  ;;  %v5849_v14 = vmax.f32 %v8005_v52, %v8004_v34  ;;  %v8012_v34 = vld [vmem:[#allocation144_spill] sm:$0xff]  ;;  %v8013_v52 = vld [vmem:[#allocation25_spill] sm:$0xff] }
 0x223   :  { %v5869_v42 = vmax.f32 %v8013_v52, %v8012_v34 }
 0x224   :  { %v5839_v17 = vpop.permute.xlu0 %1648  ;;  %v5841_v44 = vpop.permute.xlu1 %1650 }
 0x225   :  { %8002 = vst [vmem:[#allocation22_spill] sm:$0xff] %v5839_v17  ;;  %8003 = vst [vmem:[#allocation136_spill] sm:$0xff] %v5841_v44  ;;  %v8010_v44 = vld [vmem:[#allocation143_spill] sm:$0xff]  ;;  %v8011_v17 = vld [vmem:[#allocation21_spill] sm:$0xff] }
 0x226   :  { %2432 = vrot.lane.b32.xlu0 %v5833_v45, %s4641_s0  ;;  %2434 = vrot.lane.b32.xlu1 %v5837_v13, %s4641_s0  ;;  %v5865_v43 = vmax.f32 %v8011_v17, %v8010_v44 }
 0x228   :  { %v5855_v40 = vpop.permute.xlu0 %1792  ;;  %v5857_v53 = vpop.permute.xlu1 %1794 }
 0x229   :  { %8008 = vst [vmem:[#allocation19_spill] sm:$0xff] %v5855_v40  ;;  %8009 = vst [vmem:[#allocation137_spill] sm:$0xff] %v5857_v53 }
 0x22a   :  { %2284 = vrot.lane.b32.xlu0 %v5849_v14, %s4641_s0  ;;  %2286 = vrot.lane.b32.xlu1 %v5853_v46, %s4641_s0 }
 0x22c   :  { %v5871_v35 = vpop.permute.xlu0 %1644  ;;  %v5873_v39 = vpop.permute.xlu1 %1646 }
 0x22e   :  { %2428 = vrot.lane.b32.xlu0 %v5865_v43, %s4641_s0  ;;  %2430 = vrot.lane.b32.xlu1 %v5869_v42, %s4641_s0 }
 0x230   :  { %v5879_v53 = vpop.permute.xlu0 %1788  ;;  %v5881_v40 = vpop.permute.xlu1 %1790 }
 0x231   :  { %8014 = vst [vmem:[#allocation23_spill] sm:$0xff] %v5879_v53  ;;  %8015 = vst [vmem:[#allocation138_spill] sm:$0xff] %v5881_v40 }
 0x232   :  { %1688 = vrot.lane.b32.xlu0 %v5507_v37, %s4640_s30  ;;  %1690 = vrot.lane.b32.xlu1 %v5515_v60, %s4640_s30  ;;  %v8034_v37 = vld [vmem:[#allocation29_spill] sm:$0xff] }
 0x234   :  { %v5887_v17 = vpop.permute.xlu0 %1656  ;;  %v5889_v44 = vpop.permute.xlu1 %1658 }
 0x236   :  { %1832 = vrot.lane.b32.xlu0 %v5523_v30, %s4640_s30  ;;  %1834 = vrot.lane.b32.xlu1 %v5531_v61, %s4640_s30  ;;  %v8020_v61 = vld [vmem:[#allocation26_spill] sm:$0xff] }
 0x237   :  { %v5913_v30 = vmax.f32 %v8020_v61, %v5453_v48  ;;  %v8026_v48 = vld [vmem:[#allocation31_spill] sm:$0xff] }
 0x238   :  { %v5895_v34 = vpop.permute.xlu0 %1800  ;;  %v5897_v52 = vpop.permute.xlu1 %1802  ;;  %v5933_v61 = vmax.f32 %v8026_v48, %v5465_v41 }
 0x239   :  { %8016 = vst [vmem:[#allocation20_spill] sm:$0xff] %v5895_v34  ;;  %8017 = vst [vmem:[#allocation139_spill] sm:$0xff] %v5897_v52  ;;  %v8021_v52 = vld [vmem:[#allocation149_spill] sm:$0xff]  ;;  %v8022_v34 = vld [vmem:[#allocation30_spill] sm:$0xff] }
 0x23a   :  { %1684 = vrot.lane.b32.xlu0 %v5513_v57, %s4640_s30  ;;  %1686 = vrot.lane.b32.xlu1 %v5521_v26, %s4640_s30  ;;  %v5917_v57 = vmax.f32 %v8022_v34, %v8021_v52 }
 0x23c   :  { %v5903_v40 = vpop.permute.xlu0 %1652  ;;  %v5905_v53 = vpop.permute.xlu1 %1654 }
 0x23d   :  { %8018 = vst [vmem:[#allocation24_spill] sm:$0xff] %v5903_v40  ;;  %8019 = vst [vmem:[#allocation143_spill] sm:$0xff] %v5905_v53  ;;  %v8055_v53 = vld [vmem:[#allocation155_spill] sm:$0xff]  ;;  %v8056_v40 = vld [vmem:[#allocation40_spill] sm:$0xff] }
 0x23e   :  { %1828 = vrot.lane.b32.xlu0 %v5529_v27, %s4640_s30  ;;  %1830 = vrot.lane.b32.xlu1 %v5537_v31, %s4640_s30  ;;  %v8025_v31 = vld [vmem:[#allocation27_spill] sm:$0xff] }
 0x23f   :  { %v5929_v27 = vmax.f32 %v8025_v31, %v5463_v50  ;;  %v8030_v31 = vld [vmem:[#allocation32_spill] sm:$0xff] }
 0x240   :  { %v5919_v60 = vpop.permute.xlu0 %1796  ;;  %v5921_v26 = vpop.permute.xlu1 %1798  ;;  %v5949_v50 = vmax.f32 %v8030_v31, %v5473_v47 }
 0x241   :  { %8023 = vst [vmem:[#allocation21_spill] sm:$0xff] %v5919_v60  ;;  %8024 = vst [vmem:[#allocation144_spill] sm:$0xff] %v5921_v26  ;;  %v8029_v26 = vld [vmem:[#allocation28_spill] sm:$0xff] }
 0x242   :  { %2296 = vrot.lane.b32.xlu0 %v5913_v30, %s4641_s0  ;;  %2298 = vrot.lane.b32.xlu1 %v5917_v57, %s4641_s0  ;;  %v5945_v60 = vmax.f32 %v8029_v26, %v5471_v36  ;;  %8031 = vst [vmem:[#allocation149_spill] sm:$0xff] %v5949_v50  ;;  %v8036_v26 = vld [vmem:[#allocation33_spill] sm:$0xff] }
 0x243   :  { %v5965_v36 = vmax.f32 %v8036_v26, %v5481_v54 }
 0x244   :  { %v5935_v34 = vpop.permute.xlu0 %1664  ;;  %v5937_v52 = vpop.permute.xlu1 %1666 }
 0x245   :  { %8027 = vst [vmem:[#allocation25_spill] sm:$0xff] %v5935_v34  ;;  %8028 = vst [vmem:[#allocation26_spill] sm:$0xff] %v5937_v52  ;;  %v5961_v52 = vmax.f32 %v8034_v37, %v5479_v51  ;;  %v8042_v37 = vld [vmem:[#allocation151_spill] sm:$0xff]  ;;  %v8043_v51 = vld [vmem:[#allocation38_spill] sm:$0xff] }
 0x246   :  { %2440 = vrot.lane.b32.xlu0 %v5929_v27, %s4641_s0  ;;  %2442 = vrot.lane.b32.xlu1 %v5933_v61, %s4641_s0  ;;  %8037 = vst [vmem:[#allocation28_spill] sm:$0xff] %v5965_v36  ;;  %v5981_v34 = vmax.f32 %v8043_v51, %v8042_v37  ;;  %v6002_v37 = vld [vmem:[%s7580_s2] ss:$0 sm:$0xff] }
 0x247   :  { %8035 = vst [vmem:[#allocation31_spill] sm:$0xff] %v5961_v52 }
 0x248   :  { %v5951_v41 = vpop.permute.xlu0 %1808  ;;  %v5953_v48 = vpop.permute.xlu1 %1810 }
 0x249   :  { %8032 = vst [vmem:[#allocation30_spill] sm:$0xff] %v5951_v41  ;;  %8033 = vst [vmem:[#allocation27_spill] sm:$0xff] %v5953_v48  ;;  %v8040_v48 = vld [vmem:[#allocation34_spill] sm:$0xff] }
 0x24a   :  { %2292 = vrot.lane.b32.xlu0 %v5945_v60, %s4641_s0  ;;  %2294 = vrot.lane.b32.xlu1 %v5949_v50, %s4641_s0  ;;  %v5977_v41 = vmax.f32 %v8040_v48, %v5487_v32  ;;  %8044 = vst [vmem:[#allocation34_spill] sm:$0xff] %v5981_v34  ;;  %v8050_v32 = vld [vmem:[#allocation153_spill] sm:$0xff]  ;;  %v8051_v48 = vld [vmem:[#allocation39_spill] sm:$0xff]  ;;  %v6018_v50 = vmax.f32 %v8056_v40, %v8055_v53 }
 0x24c   :  { %v5967_v47 = vpop.permute.xlu0 %1660  ;;  %v5969_v31 = vpop.permute.xlu1 %1662  ;;  %8041 = vst [vmem:[#allocation33_spill] sm:$0xff] %v5977_v41 }
 0x24d   :  { %8038 = vst [vmem:[#allocation32_spill] sm:$0xff] %v5967_v47  ;;  %8039 = vst [vmem:[#allocation29_spill] sm:$0xff] %v5969_v31  ;;  %v8047_v31 = vld [vmem:[#allocation152_spill] sm:$0xff]  ;;  %v8048_v47 = vld [vmem:[#allocation35_spill] sm:$0xff] }
 0x24e   :  { %2436 = vrot.lane.b32.xlu0 %v5961_v52, %s4641_s0  ;;  %2438 = vrot.lane.b32.xlu1 %v5965_v36, %s4641_s0  ;;  %v5993_v36 = vmax.f32 %v8048_v47, %v8047_v31  ;;  %v5997_v52 = vmax.f32 %v8051_v48, %v8050_v32  ;;  %v8053_v32 = vld [vmem:[#allocation154_spill] sm:$0xff]  ;;  %v8054_v48 = vld [vmem:[#allocation36_spill] sm:$0xff] }
 0x250   :  { %v5983_v54 = vpop.permute.xlu0 %1804  ;;  %v5985_v26 = vpop.permute.xlu1 %1806  ;;  %8049 = vst [vmem:[#allocation152_spill] sm:$0xff] %v5993_v36  ;;  %8052 = vst [vmem:[#allocation35_spill] sm:$0xff] %v5997_v52 }
 0x251   :  { %8045 = vst [vmem:[#allocation151_spill] sm:$0xff] %v5983_v54  ;;  %8046 = vst [vmem:[#allocation38_spill] sm:$0xff] %v5985_v26 }
 0x252   :  { %2304 = vrot.lane.b32.xlu0 %v5977_v41, %s4641_s0  ;;  %2306 = vrot.lane.b32.xlu1 %v5981_v34, %s4641_s0  ;;  %v6014_v34 = vmax.f32 %v8054_v48, %v8053_v32  ;;  %v8057_v32 = vld [vmem:[#allocation159_spill] sm:$0xff]  ;;  %v8060_v48 = vld [vmem:[#allocation41_spill] sm:$0xff] }
 0x254   :  { %v2273_v51 = vpop.permute.xlu0 %2272  ;;  %v2275_v26 = vpop.permute.xlu1 %2274 }
 0x255   :  { %v2702_v54 = vmax.f32 %v5625_v23, %v2273_v51  ;;  %v2703_v41 = vmax.f32 %v5629_v21, %v2275_v26 }
 0x256   :  { %2448 = vrot.lane.b32.xlu0 %v5993_v36, %s4641_s0  ;;  %2450 = vrot.lane.b32.xlu1 %v5997_v52, %s4641_s0 }
 0x257   :  { %v2853_v47 = vadd.f32 %v6002_v37, %v2702_v54  ;;  %v2854_v31 = vadd.f32 %v6002_v37, %v2703_v41 }
 0x258   :  { %v2417_v23 = vpop.permute.xlu0 %2416  ;;  %v2419_v21 = vpop.permute.xlu1 %2418 }
 0x259   :  { %v2997_v26 = vmax.f32 %v2853_v47, 0.0  ;;  %v2998_v51 = vmax.f32 %v2854_v31, 0.0  ;;  %v2774_v36 = vmax.f32 %v5641_v25, %v2417_v23  ;;  %v2775_v52 = vmax.f32 %v5645_v5, %v2419_v21  ;;  %v8058_v47 = vld [vmem:[#allocation37_spill] sm:$0xff]  ;;  %v8059_v25 = vld [vmem:[#allocation160_spill] sm:$0xff] }
 0x25a   :  { %2300 = vrot.lane.b32.xlu0 %v6014_v34, %s4641_s0  ;;  %2302 = vrot.lane.b32.xlu1 %v6018_v50, %s4641_s0  ;;  %v6030_v31 = vmax.f32 %v8058_v47, %v8057_v32  ;;  %v6034_v5 = vmax.f32 %v8060_v48, %v8059_v25 }
 0x25b   :  { %v4162_v41 = vpack.c.bf16 %v2997_v26, %v2997_v26  ;;  %v4163_v54 = vpack.c.bf16 %v2998_v51, %v2998_v51  ;;  %v2925_v40 = vadd.f32 %v6002_v37, %v2774_v36  ;;  %v2926_v53 = vadd.f32 %v6002_v37, %v2775_v52 }
 0x25c   :  { %v2269_v23 = vpop.permute.xlu0 %2268  ;;  %v2271_v21 = vpop.permute.xlu1 %2270 }
 0x25d   :  { %3718 = vst.msk [vmem:[%s7581_s3 + $0x8] sm:$0xf] %vm3715_vm2, %v4162_v41  ;;  %3719 = vst.msk [vmem:[%s7581_s3 + $0xc] sm:$0xf] %vm3715_vm2, %v4163_v54  ;;  %v3069_v52 = vmax.f32 %v2925_v40, 0.0  ;;  %v3070_v36 = vmax.f32 %v2926_v53, 0.0  ;;  %v2700_v26 = vmax.f32 %v5657_v20, %v2269_v23  ;;  %v2701_v51 = vmax.f32 %v5661_v0, %v2271_v21 }
 0x25e   :  { %2444 = vrot.lane.b32.xlu0 %v6030_v31, %s4641_s0  ;;  %2446 = vrot.lane.b32.xlu1 %v6034_v5, %s4641_s0  ;;  %v8061_v54 = vld [vmem:[#allocation42_spill] sm:$0xff]  ;;  %v8062_v53 = vld [vmem:[#allocation165_spill] sm:$0xff] }
 0x25f   :  { %v4234_v32 = vpack.c.bf16 %v3069_v52, %v3069_v52  ;;  %v4235_v47 = vpack.c.bf16 %v3070_v36, %v3070_v36  ;;  %v2851_v41 = vadd.f32 %v6002_v37, %v2700_v26  ;;  %v2852_v25 = vadd.f32 %v6002_v37, %v2701_v51  ;;  %v8063_v20 = vld [vmem:[#allocation46_spill] sm:$0xff] }
 0x260   :  { %v6054_v40 = vmax.f32 %v8061_v54, %v5533_v56  ;;  %v6058_v48 = vmax.f32 %v8063_v20, %v8062_v53  ;;  %v2413_v0 = vpop.permute.xlu0 %2412  ;;  %v2415_v23 = vpop.permute.xlu1 %2414 }
 0x261   :  { %3790 = vst.msk [vmem:[%s7581_s3 + $0x128] sm:$0xf] %vm3715_vm2, %v4234_v32  ;;  %3791 = vst.msk [vmem:[%s7581_s3 + $0x12c] sm:$0xf] %vm3715_vm2, %v4235_v47  ;;  %v2995_v21 = vmax.f32 %v2851_v41, 0.0  ;;  %v2996_v52 = vmax.f32 %v2852_v25, 0.0  ;;  %v2772_v56 = vmax.f32 %v5673_v4, %v2413_v0  ;;  %v2773_v36 = vmax.f32 %v5677_v2, %v2415_v23 }
 0x262   :  { %2312 = vrot.lane.b32.xlu0 %v6054_v40, %s4641_s0  ;;  %2314 = vrot.lane.b32.xlu1 %v6058_v48, %s4641_s0  ;;  %v8064_v47 = vld [vmem:[#allocation43_spill] sm:$0xff]  ;;  %v8066_v23 = vld [vmem:[#allocation44_spill] sm:$0xff] }
 0x263   :  { %v4160_v26 = vpack.c.bf16 %v2995_v21, %v2995_v21  ;;  %v4161_v51 = vpack.c.bf16 %v2996_v52, %v2996_v52  ;;  %v2923_v32 = vadd.f32 %v6002_v37, %v2772_v56  ;;  %v2924_v54 = vadd.f32 %v6002_v37, %v2773_v36  ;;  %v8065_v4 = vld [vmem:[#allocation47_spill] sm:$0xff]  ;;  %v8067_v52 = vld [vmem:[#allocation48_spill] sm:$0xff] }
 0x264   :  { %v6078_v41 = vmax.f32 %v8064_v47, %v5543_v58  ;;  %v6082_v25 = vmax.f32 %v8065_v4, %v5545_v33  ;;  %v6084_v2 = vpop.permute.xlu0 %1672  ;;  %v6086_v53 = vpop.permute.xlu1 %1674  ;;  %v6102_v21 = vmax.f32 %v8066_v23, %v5551_v28  ;;  %v6106_v56 = vmax.f32 %v8067_v52, %v5553_v55  ;;  %v8070_v28 = vld [vmem:[#allocation45_spill] sm:$0xff]  ;;  %v8072_v4 = vld [vmem:[#allocation50_spill] sm:$0xff]  ;;  %v8078_v52 = vld [vmem:[#allocation55_spill] sm:$0xff] }
 0x265   :  { %3716 = vst.msk [vmem:[%s7581_s3] sm:$0xf] %vm3715_vm2, %v4160_v26  ;;  %3717 = vst.msk [vmem:[%s7581_s3 + $0x4] sm:$0xf] %vm3715_vm2, %v4161_v51  ;;  %v3067_v58 = vmax.f32 %v2923_v32, 0.0  ;;  %v3068_v20 = vmax.f32 %v2924_v54, 0.0  ;;  %v6126_v55 = vmax.f32 %v8070_v28, %v5559_v59 }
 0x266   :  { %2456 = vrot.lane.b32.xlu0 %v6078_v41, %s4641_s0  ;;  %2458 = vrot.lane.b32.xlu1 %v6082_v25, %s4641_s0  ;;  %v8071_v51 = vld [vmem:[#allocation49_spill] sm:$0xff]  ;;  %v8073_v59 = vld [vmem:[#allocation54_spill] sm:$0xff] }
 0x267   :  { %v4232_v33 = vpack.c.bf16 %v3067_v58, %v3067_v58  ;;  %v4233_v0 = vpack.c.bf16 %v3068_v20, %v3068_v20  ;;  %v6130_v32 = vmax.f32 %v8071_v51, %v5561_v62  ;;  %v6142_v58 = vmax.f32 %v8072_v4, %v5567_v24  ;;  %v8077_v24 = vld [vmem:[#allocation167_spill] sm:$0xff] }
 0x268   :  { %v6108_v36 = vpop.permute.xlu0 %1816  ;;  %v6110_v26 = vpop.permute.xlu1 %1818  ;;  %v6146_v20 = vmax.f32 %v8073_v59, %v5569_v29  ;;  %v6162_v28 = vmax.f32 %v8078_v52, %v8077_v24  ;;  %v8081_v52 = vld [vmem:[#allocation168_spill] sm:$0xff] }
 0x269   :  { %8068 = vst [vmem:[#allocation153_spill] sm:$0xff] %v6108_v36  ;;  %8069 = vst [vmem:[#allocation39_spill] sm:$0xff] %v6110_v26  ;;  %v8082_v36 = vld [vmem:[#allocation56_spill] sm:$0xff] }
 0x26a   :  { %3788 = vst.msk [vmem:[%s7581_s3 + $0x120] sm:$0xf] %vm3715_vm2, %v4232_v33  ;;  %3789 = vst.msk [vmem:[%s7581_s3 + $0x124] sm:$0xf] %vm3715_vm2, %v4233_v0  ;;  %2308 = vrot.lane.b32.xlu0 %v6102_v21, %s4641_s0  ;;  %2310 = vrot.lane.b32.xlu1 %v6106_v56, %s4641_s0  ;;  %v8076_v0 = vld [vmem:[#allocation51_spill] sm:$0xff] }
 0x26b   :  { %v6158_v23 = vmax.f32 %v8076_v0, %v5575_v63  ;;  %8079 = vst [vmem:[#allocation155_spill] sm:$0xff] %v6162_v28  ;;  %v8080_v0 = vld [vmem:[#allocation52_spill] sm:$0xff] }
 0x26c   :  { %v6132_v54 = vpop.permute.xlu0 %1668  ;;  %v6134_v47 = vpop.permute.xlu1 %1670  ;;  %v6174_v24 = vmax.f32 %v8080_v0, %v5583_v22  ;;  %v8083_v0 = vld [vmem:[#allocation53_spill] sm:$0xff] }
 0x26e   :  { %2452 = vrot.lane.b32.xlu0 %v6126_v55, %s4641_s0  ;;  %2454 = vrot.lane.b32.xlu1 %v6130_v32, %s4641_s0 }
 0x270   :  { %v6148_v62 = vpop.permute.xlu0 %1812  ;;  %v6150_v33 = vpop.permute.xlu1 %1814 }
 0x271   :  { %8074 = vst [vmem:[#allocation154_spill] sm:$0xff] %v6148_v62  ;;  %8075 = vst [vmem:[#allocation36_spill] sm:$0xff] %v6150_v33  ;;  %v6178_v33 = vmax.f32 %v8082_v36, %v8081_v52 }
 0x272   :  { %2320 = vrot.lane.b32.xlu0 %v6142_v58, %s4641_s0  ;;  %2322 = vrot.lane.b32.xlu1 %v6146_v20, %s4641_s0 }
 0x274   :  { %v2281_v29 = vpop.permute.xlu0 %2280  ;;  %v2283_v51 = vpop.permute.xlu1 %2282 }
 0x275   :  { %v2706_v4 = vmax.f32 %v5721_v16, %v2281_v29  ;;  %v2707_v59 = vmax.f32 %v5725_v3, %v2283_v51 }
 0x276   :  { %2464 = vrot.lane.b32.xlu0 %v6158_v23, %s4641_s0  ;;  %2466 = vrot.lane.b32.xlu1 %v6162_v28, %s4641_s0 }
 0x277   :  { %v2857_v26 = vadd.f32 %v6002_v37, %v2706_v4  ;;  %v2858_v63 = vadd.f32 %v6002_v37, %v2707_v59 }
 0x278   :  { %v2425_v16 = vpop.permute.xlu0 %2424  ;;  %v2427_v3 = vpop.permute.xlu1 %2426 }
 0x279   :  { %v3001_v29 = vmax.f32 %v2857_v26, 0.0  ;;  %v3002_v51 = vmax.f32 %v2858_v63, 0.0  ;;  %v2778_v62 = vmax.f32 %v5737_v11, %v2425_v16  ;;  %v2779_v28 = vmax.f32 %v5741_v15, %v2427_v3  ;;  %v8084_v63 = vld [vmem:[#allocation169_spill] sm:$0xff] }
 0x27a   :  { %2316 = vrot.lane.b32.xlu0 %v6174_v24, %s4641_s0  ;;  %2318 = vrot.lane.b32.xlu1 %v6178_v33, %s4641_s0  ;;  %v6190_v26 = vmax.f32 %v8083_v0, %v5591_v1  ;;  %v8085_v11 = vld [vmem:[#allocation57_spill] sm:$0xff] }
 0x27b   :  { %v4166_v22 = vpack.c.bf16 %v3001_v29, %v3001_v29  ;;  %v4167_v4 = vpack.c.bf16 %v3002_v51, %v3002_v51  ;;  %v2929_v59 = vadd.f32 %v6002_v37, %v2778_v62  ;;  %v2930_v36 = vadd.f32 %v6002_v37, %v2779_v28 }
 0x27c   :  { %v6194_v52 = vmax.f32 %v8085_v11, %v8084_v63  ;;  %v2277_v15 = vpop.permute.xlu0 %2276  ;;  %v2279_v16 = vpop.permute.xlu1 %2278  ;;  %v8086_v63 = vld [vmem:[#allocation170_spill] sm:$0xff] }
 0x27d   :  { %3722 = vst.msk [vmem:[%s7581_s3 + $0x18] sm:$0xf] %vm3715_vm2, %v4166_v22  ;;  %3723 = vst.msk [vmem:[%s7581_s3 + $0x1c] sm:$0xf] %vm3715_vm2, %v4167_v4  ;;  %v3073_v62 = vmax.f32 %v2929_v59, 0.0  ;;  %v3074_v28 = vmax.f32 %v2930_v36, 0.0  ;;  %v2704_v1 = vmax.f32 %v5753_v19, %v2277_v15  ;;  %v2705_v3 = vmax.f32 %v5757_v6, %v2279_v16 }
 0x27e   :  { %2460 = vrot.lane.b32.xlu0 %v6190_v26, %s4641_s0  ;;  %2462 = vrot.lane.b32.xlu1 %v6194_v52, %s4641_s0  ;;  %v8087_v4 = vld [vmem:[#allocation58_spill] sm:$0xff]  ;;  %v8088_v36 = vld [vmem:[#allocation171_spill] sm:$0xff] }
 0x27f   :  { %v4238_v29 = vpack.c.bf16 %v3073_v62, %v3073_v62  ;;  %v4239_v51 = vpack.c.bf16 %v3074_v28, %v3074_v28  ;;  %v2855_v22 = vadd.f32 %v6002_v37, %v2704_v1  ;;  %v2856_v0 = vadd.f32 %v6002_v37, %v2705_v3  ;;  %v8089_v19 = vld [vmem:[#allocation62_spill] sm:$0xff] }
 0x280   :  { %v6214_v59 = vmax.f32 %v8087_v4, %v8086_v63  ;;  %v6218_v11 = vmax.f32 %v8089_v19, %v8088_v36  ;;  %v2421_v6 = vpop.permute.xlu0 %2420  ;;  %v2423_v15 = vpop.permute.xlu1 %2422  ;;  %v8091_v36 = vld [vmem:[#allocation172_spill] sm:$0xff] }
 0x281   :  { %3794 = vst.msk [vmem:[%s7581_s3 + $0x138] sm:$0xf] %vm3715_vm2, %v4238_v29  ;;  %3795 = vst.msk [vmem:[%s7581_s3 + $0x13c] sm:$0xf] %vm3715_vm2, %v4239_v51  ;;  %v2999_v16 = vmax.f32 %v2855_v22, 0.0  ;;  %v3000_v62 = vmax.f32 %v2856_v0, 0.0  ;;  %v2776_v28 = vmax.f32 %v5769_v7, %v2421_v6  ;;  %v2777_v1 = vmax.f32 %v5773_v18, %v2423_v15 }
 0x282   :  { %8090 = vst [vmem:[#allocation40_spill] sm:$0xff] %v6218_v11  ;;  %2328 = vrot.lane.b32.xlu0 %v6214_v59, %s4641_s0  ;;  %2330 = vrot.lane.b32.xlu1 %v6218_v11, %s4641_s0  ;;  %v8092_v51 = vld [vmem:[#allocation59_spill] sm:$0xff]  ;;  %v8093_v0 = vld [vmem:[#allocation173_spill] sm:$0xff] }
 0x283   :  { %v4164_v3 = vpack.c.bf16 %v2999_v16, %v2999_v16  ;;  %v4165_v63 = vpack.c.bf16 %v3000_v62, %v3000_v62  ;;  %v2927_v29 = vadd.f32 %v6002_v37, %v2776_v28  ;;  %v2928_v4 = vadd.f32 %v6002_v37, %v2777_v1  ;;  %v8094_v7 = vld [vmem:[#allocation63_spill] sm:$0xff]  ;;  %v8096_v1 = vld [vmem:[#allocation174_spill] sm:$0xff] }
 0x284   :  { %v6238_v22 = vmax.f32 %v8092_v51, %v8091_v36  ;;  %v6242_v19 = vmax.f32 %v8094_v7, %v8093_v0  ;;  %v6244_v18 = vpop.permute.xlu0 %1680  ;;  %v6246_v6 = vpop.permute.xlu1 %1682  ;;  %v8097_v36 = vld [vmem:[#allocation60_spill] sm:$0xff] }
 0x285   :  { %3720 = vst.msk [vmem:[%s7581_s3 + $0x10] sm:$0xf] %vm3715_vm2, %v4164_v3  ;;  %3721 = vst.msk [vmem:[%s7581_s3 + $0x14] sm:$0xf] %vm3715_vm2, %v4165_v63  ;;  %v3071_v15 = vmax.f32 %v2927_v29, 0.0  ;;  %v3072_v16 = vmax.f32 %v2928_v4, 0.0  ;;  %v6262_v51 = vmax.f32 %v8097_v36, %v8096_v1 }
 0x286   :  { %8095 = vst [vmem:[#allocation159_spill] sm:$0xff] %v6242_v19  ;;  %2472 = vrot.lane.b32.xlu0 %v6238_v22, %s4641_s0  ;;  %2474 = vrot.lane.b32.xlu1 %v6242_v19, %s4641_s0  ;;  %v8099_v3 = vld [vmem:[#allocation175_spill] sm:$0xff]  ;;  %v8100_v0 = vld [vmem:[#allocation64_spill] sm:$0xff]  ;;  %v8104_v29 = vld [vmem:[#allocation121_spill] sm:$0xff] }
 0x287   :  { %v4236_v62 = vpack.c.bf16 %v3071_v15, %v3071_v15  ;;  %v4237_v28 = vpack.c.bf16 %v3072_v16, %v3072_v16  ;;  %8098 = vst [vmem:[#allocation37_spill] sm:$0xff] %v6262_v51  ;;  %v6266_v7 = vmax.f32 %v8100_v0, %v8099_v3  ;;  %v8105_v4 = vld [vmem:[#allocation61_spill] sm:$0xff]  ;;  %v8107_v16 = vld [vmem:[#allocation2_spill] sm:$0xff] }
 0x288   :  { %v6268_v11 = vpop.permute.xlu0 %1824  ;;  %v6270_v63 = vpop.permute.xlu1 %1826  ;;  %v6286_v15 = vmax.f32 %v8105_v4, %v8104_v29  ;;  %v8108_v1 = vld [vmem:[#allocation65_spill] sm:$0xff]  ;;  %v8111_v0 = vld [vmem:[#allocation66_spill] sm:$0xff]  ;;  %v8113_v29 = vld [vmem:[#allocation120_spill] sm:$0xff] }
 0x289   :  { %8101 = vst [vmem:[#allocation160_spill] sm:$0xff] %v6266_v7  ;;  %8102 = vst [vmem:[#allocation41_spill] sm:$0xff] %v6268_v11  ;;  %v6290_v36 = vmax.f32 %v8108_v1, %v8107_v16  ;;  %v8114_v4 = vld [vmem:[#allocation70_spill] sm:$0xff] }
 0x28a   :  { %8103 = vst [vmem:[#allocation42_spill] sm:$0xff] %v6270_v63  ;;  %3792 = vst.msk [vmem:[%s7581_s3 + $0x130] sm:$0xf] %vm3715_vm2, %v4236_v62  ;;  %2324 = vrot.lane.b32.xlu0 %v6262_v51, %s4641_s0  ;;  %2326 = vrot.lane.b32.xlu1 %v6266_v7, %s4641_s0  ;;  %v6306_v11 = vmax.f32 %v8114_v4, %v8113_v29  ;;  %v8126_v51 = vld [vmem:[#allocation73_spill] sm:$0xff] }
 0x28b   :  { %3793 = vst.msk [vmem:[%s7581_s3 + $0x134] sm:$0xf] %vm3715_vm2, %v4237_v28  ;;  %8106 = vst [vmem:[#allocation165_spill] sm:$0xff] %v6286_v15  ;;  %v8110_v28 = vld [vmem:[#allocation6_spill] sm:$0xff] }
 0x28c   :  { %8109 = vst [vmem:[#allocation46_spill] sm:$0xff] %v6290_v36  ;;  %v6292_v62 = vpop.permute.xlu0 %1676  ;;  %v6294_v3 = vpop.permute.xlu1 %1678  ;;  %v6302_v63 = vmax.f32 %v8111_v0, %v8110_v28  ;;  %8115 = vst [vmem:[#allocation47_spill] sm:$0xff] %v6306_v11  ;;  %v8120_v28 = vld [vmem:[#allocation124_spill] sm:$0xff] }
 0x28d   :  { %v8121_v0 = vld [vmem:[#allocation72_spill] sm:$0xff] }
 0x28e   :  { %2468 = vrot.lane.b32.xlu0 %v6286_v15, %s4641_s0  ;;  %2470 = vrot.lane.b32.xlu1 %v6290_v36, %s4641_s0  ;;  %8112 = vst [vmem:[#allocation43_spill] sm:$0xff] %v6302_v63  ;;  %v8118_v36 = vld [vmem:[#allocation68_spill] sm:$0xff]  ;;  %v6322_v7 = vmax.f32 %v8121_v0, %v8120_v28 }
 0x28f   :  { %v6318_v15 = vmax.f32 %v8118_v36, %v5679_v12  ;;  %v8123_v36 = vld [vmem:[#allocation5_spill] sm:$0xff]  ;;  %v8125_v0 = vld [vmem:[#allocation8_spill] sm:$0xff] }
 0x290   :  { %v6308_v16 = vpop.permute.xlu0 %1820  ;;  %v6310_v1 = vpop.permute.xlu1 %1822  ;;  %8122 = vst [vmem:[#allocation49_spill] sm:$0xff] %v6322_v7  ;;  %v6338_v19 = vmax.f32 %v8126_v51, %v8125_v0  ;;  %v8128_v0 = vld [vmem:[#allocation74_spill] sm:$0xff] }
 0x291   :  { %8116 = vst [vmem:[#allocation44_spill] sm:$0xff] %v6308_v16  ;;  %8117 = vst [vmem:[#allocation48_spill] sm:$0xff] %v6310_v1 }
 0x292   :  { %2336 = vrot.lane.b32.xlu0 %v6302_v63, %s4641_s0  ;;  %2338 = vrot.lane.b32.xlu1 %v6306_v11, %s4641_s0  ;;  %8119 = vst [vmem:[#allocation45_spill] sm:$0xff] %v6318_v15  ;;  %v8124_v63 = vld [vmem:[#allocation69_spill] sm:$0xff] }
 0x293   :  { %v6334_v28 = vmax.f32 %v8124_v63, %v8123_v36  ;;  %v8127_v36 = vld [vmem:[#allocation125_spill] sm:$0xff] }
 0x294   :  { %v2289_v29 = vpop.permute.xlu0 %2288  ;;  %v2291_v4 = vpop.permute.xlu1 %2290 }
 0x295   :  { %v2710_v16 = vmax.f32 %v5817_v38, %v2289_v29  ;;  %v2711_v1 = vmax.f32 %v5821_v49, %v2291_v4 }
 0x296   :  { %2332 = vrot.lane.b32.xlu0 %v6318_v15, %s4641_s0  ;;  %2334 = vrot.lane.b32.xlu1 %v6322_v7, %s4641_s0 }
 0x297   :  { %v2861_v11 = vadd.f32 %v6002_v37, %v2710_v16  ;;  %v2862_v12 = vadd.f32 %v6002_v37, %v2711_v1 }
 0x298   :  { %v2433_v38 = vpop.permute.xlu0 %2432  ;;  %v2435_v49 = vpop.permute.xlu1 %2434 }
 0x299   :  { %v3005_v29 = vmax.f32 %v2861_v11, 0.0  ;;  %v3006_v4 = vmax.f32 %v2862_v12, 0.0  ;;  %v2782_v15 = vmax.f32 %v5833_v45, %v2433_v38  ;;  %v2783_v7 = vmax.f32 %v5837_v13, %v2435_v49  ;;  %v8129_v12 = vld [vmem:[#allocation4_spill] sm:$0xff]  ;;  %v8130_v45 = vld [vmem:[#allocation78_spill] sm:$0xff] }
 0x29a   :  { %2476 = vrot.lane.b32.xlu0 %v6334_v28, %s4641_s0  ;;  %2478 = vrot.lane.b32.xlu1 %v6338_v19, %s4641_s0  ;;  %v6350_v11 = vmax.f32 %v8128_v0, %v8127_v36  ;;  %v6354_v38 = vmax.f32 %v8130_v45, %v8129_v12 }
 0x29b   :  { %v4170_v63 = vpack.c.bf16 %v3005_v29, %v3005_v29  ;;  %v4171_v16 = vpack.c.bf16 %v3006_v4, %v3006_v4  ;;  %v2933_v1 = vadd.f32 %v6002_v37, %v2782_v15  ;;  %v2934_v51 = vadd.f32 %v6002_v37, %v2783_v7 }
 0x29c   :  { %v2285_v13 = vpop.permute.xlu0 %2284  ;;  %v2287_v49 = vpop.permute.xlu1 %2286 }
 0x29d   :  { %3726 = vst.msk [vmem:[%s7581_s3 + $0x28] sm:$0xf] %vm3715_vm2, %v4170_v63  ;;  %3727 = vst.msk [vmem:[%s7581_s3 + $0x2c] sm:$0xf] %vm3715_vm2, %v4171_v16  ;;  %v3077_v7 = vmax.f32 %v2933_v1, 0.0  ;;  %v3078_v15 = vmax.f32 %v2934_v51, 0.0  ;;  %v2708_v29 = vmax.f32 %v5849_v14, %v2285_v13  ;;  %v2709_v4 = vmax.f32 %v5853_v46, %v2287_v49 }
 0x29e   :  { %2344 = vrot.lane.b32.xlu0 %v6350_v11, %s4641_s0  ;;  %2346 = vrot.lane.b32.xlu1 %v6354_v38, %s4641_s0  ;;  %v8131_v16 = vld [vmem:[#allocation76_spill] sm:$0xff] }
 0x29f   :  { %v4242_v36 = vpack.c.bf16 %v3077_v7, %v3077_v7  ;;  %v4243_v0 = vpack.c.bf16 %v3078_v15, %v3078_v15  ;;  %v2859_v63 = vadd.f32 %v6002_v37, %v2708_v29  ;;  %v2860_v12 = vadd.f32 %v6002_v37, %v2709_v4  ;;  %v8132_v14 = vld [vmem:[#allocation80_spill] sm:$0xff] }
 0x2a0   :  { %v6374_v1 = vmax.f32 %v8131_v16, %v5711_v10  ;;  %v6378_v51 = vmax.f32 %v8132_v14, %v5713_v8  ;;  %v2429_v46 = vpop.permute.xlu0 %2428  ;;  %v2431_v45 = vpop.permute.xlu1 %2430 }
 0x2a1   :  { %3798 = vst.msk [vmem:[%s7581_s3 + $0x148] sm:$0xf] %vm3715_vm2, %v4242_v36  ;;  %3799 = vst.msk [vmem:[%s7581_s3 + $0x14c] sm:$0xf] %vm3715_vm2, %v4243_v0  ;;  %v3003_v13 = vmax.f32 %v2859_v63, 0.0  ;;  %v3004_v49 = vmax.f32 %v2860_v12, 0.0  ;;  %v2780_v10 = vmax.f32 %v5865_v43, %v2429_v46  ;;  %v2781_v7 = vmax.f32 %v5869_v42, %v2431_v45 }
 0x2a2   :  { %2340 = vrot.lane.b32.xlu0 %v6374_v1, %s4641_s0  ;;  %2342 = vrot.lane.b32.xlu1 %v6378_v51, %s4641_s0  ;;  %v8133_v36 = vld [vmem:[#allocation14_spill] sm:$0xff]  ;;  %v8135_v12 = vld [vmem:[#allocation11_spill] sm:$0xff] }
 0x2a3   :  { %v4168_v8 = vpack.c.bf16 %v3003_v13, %v3003_v13  ;;  %v4169_v15 = vpack.c.bf16 %v3004_v49, %v3004_v49  ;;  %v2931_v29 = vadd.f32 %v6002_v37, %v2780_v10  ;;  %v2932_v4 = vadd.f32 %v6002_v37, %v2781_v7  ;;  %v8134_v0 = vld [vmem:[#allocation82_spill] sm:$0xff]  ;;  %v8137_v10 = vld [vmem:[#allocation84_spill] sm:$0xff] }
 0x2a4   :  { %v6398_v63 = vmax.f32 %v8134_v0, %v8133_v36  ;;  %v8136_v43 = vld [vmem:[#allocation86_spill] sm:$0xff]  ;;  %v6404_v42 = vpop.permute.xlu0 %1688  ;;  %v6406_v14 = vpop.permute.xlu1 %1690  ;;  %v6422_v7 = vmax.f32 %v8137_v10, %v5775_v9  ;;  %v8139_v36 = vld [vmem:[#allocation88_spill] sm:$0xff]  ;;  %v8143_v9 = vld [vmem:[#allocation177_spill] sm:$0xff] }
 0x2a5   :  { %v6402_v16 = vmax.f32 %v8136_v43, %v8135_v12  ;;  %3724 = vst.msk [vmem:[%s7581_s3 + $0x20] sm:$0xf] %vm3715_vm2, %v4168_v8  ;;  %3725 = vst.msk [vmem:[%s7581_s3 + $0x24] sm:$0xf] %vm3715_vm2, %v4169_v15  ;;  %v3075_v46 = vmax.f32 %v2931_v29, 0.0  ;;  %v3076_v45 = vmax.f32 %v2932_v4, 0.0 }
 0x2a6   :  { %2352 = vrot.lane.b32.xlu0 %v6398_v63, %s4641_s0  ;;  %v8138_v8 = vld [vmem:[#allocation16_spill] sm:$0xff]  ;;  %v8144_v29 = vld [vmem:[#allocation90_spill] sm:$0xff] }
 0x2a7   :  { %2354 = vrot.lane.b32.xlu1 %v6402_v16, %s4641_s0  ;;  %v4240_v13 = vpack.c.bf16 %v3075_v46, %v3075_v46  ;;  %v4241_v49 = vpack.c.bf16 %v3076_v45, %v3076_v45  ;;  %v6426_v0 = vmax.f32 %v8139_v36, %v8138_v8  ;;  %v6446_v4 = vmax.f32 %v8144_v29, %v8143_v9  ;;  %v8146_v43 = vld [vmem:[#allocation178_spill] sm:$0xff]  ;;  %v8150_v8 = vld [vmem:[#allocation92_spill] sm:$0xff] }
 0x2a8   :  { %v6428_v12 = vpop.permute.xlu0 %1832  ;;  %v6430_v15 = vpop.permute.xlu1 %1834  ;;  %v8147_v46 = vld [vmem:[#allocation94_spill] sm:$0xff]  ;;  %v8153_v29 = vld [vmem:[#allocation96_spill] sm:$0xff] }
 0x2a9   :  { %8140 = vst [vmem:[#allocation50_spill] sm:$0xff] %v6426_v0  ;;  %8141 = vst [vmem:[#allocation54_spill] sm:$0xff] %v6428_v12  ;;  %v6450_v45 = vmax.f32 %v8147_v46, %v8146_v43  ;;  %v8152_v9 = vld [vmem:[#allocation182_spill] sm:$0xff] }
 0x2aa   :  { %8142 = vst [vmem:[#allocation51_spill] sm:$0xff] %v6430_v15  ;;  %3796 = vst.msk [vmem:[%s7581_s3 + $0x140] sm:$0xf] %vm3715_vm2, %v4240_v13  ;;  %2348 = vrot.lane.b32.xlu0 %v6422_v7, %s4641_s0  ;;  %v6466_v15 = vmax.f32 %v8153_v29, %v8152_v9  ;;  %v8157_v12 = vld [vmem:[#allocation22_spill] sm:$0xff] }
 0x2ab   :  { %3797 = vst.msk [vmem:[%s7581_s3 + $0x144] sm:$0xf] %vm3715_vm2, %v4241_v49  ;;  %2350 = vrot.lane.b32.xlu1 %v6426_v0, %s4641_s0  ;;  %8145 = vst [vmem:[#allocation167_spill] sm:$0xff] %v6446_v4  ;;  %v8149_v49 = vld [vmem:[#allocation181_spill] sm:$0xff] }
 0x2ac   :  { %8148 = vst [vmem:[#allocation55_spill] sm:$0xff] %v6450_v45  ;;  %v6452_v13 = vpop.permute.xlu0 %1684  ;;  %v6454_v10 = vpop.permute.xlu1 %1686  ;;  %v6462_v36 = vmax.f32 %v8150_v8, %v8149_v49  ;;  %8154 = vst [vmem:[#allocation168_spill] sm:$0xff] %v6466_v15  ;;  %v8160_v49 = vld [vmem:[#allocation136_spill] sm:$0xff]  ;;  %v8161_v8 = vld [vmem:[#allocation102_spill] sm:$0xff] }
 0x2ad   :  { %v6482_v0 = vmax.f32 %v8161_v8, %v8160_v49  ;;  %v8164_v8 = vld [vmem:[#allocation104_spill] sm:$0xff] }
 0x2ae   :  { %2360 = vrot.lane.b32.xlu0 %v6446_v4, %s4641_s0  ;;  %8151 = vst [vmem:[#allocation52_spill] sm:$0xff] %v6462_v36 }
 0x2af   :  { %2362 = vrot.lane.b32.xlu1 %v6450_v45, %s4641_s0  ;;  %v8158_v45 = vld [vmem:[#allocation98_spill] sm:$0xff]  ;;  %8162 = vst [vmem:[#allocation57_spill] sm:$0xff] %v6482_v0 }
 0x2b0   :  { %v6468_v43 = vpop.permute.xlu0 %1828  ;;  %v6470_v46 = vpop.permute.xlu1 %1830  ;;  %v6478_v4 = vmax.f32 %v8158_v45, %v8157_v12  ;;  %v8163_v45 = vld [vmem:[#allocation100_spill] sm:$0xff] }
 0x2b1   :  { %8155 = vst [vmem:[#allocation56_spill] sm:$0xff] %v6468_v43  ;;  %8156 = vst [vmem:[#allocation53_spill] sm:$0xff] %v6470_v46  ;;  %v6494_v49 = vmax.f32 %v8163_v45, %v5871_v35  ;;  %v8165_v45 = vld [vmem:[#allocation106_spill] sm:$0xff] }
 0x2b2   :  { %2356 = vrot.lane.b32.xlu0 %v6462_v36, %s4641_s0  ;;  %8159 = vst [vmem:[#allocation169_spill] sm:$0xff] %v6478_v4  ;;  %v6498_v36 = vmax.f32 %v8164_v8, %v5873_v39 }
 0x2b3   :  { %2358 = vrot.lane.b32.xlu1 %v6466_v15, %s4641_s0 }
 0x2b4   :  { %v2297_v9 = vpop.permute.xlu0 %2296  ;;  %v2299_v29 = vpop.permute.xlu1 %2298 }
 0x2b5   :  { %v2714_v43 = vmax.f32 %v5913_v30, %v2297_v9  ;;  %v2715_v46 = vmax.f32 %v5917_v57, %v2299_v29 }
 0x2b6   :  { %2368 = vrot.lane.b32.xlu0 %v6478_v4, %s4641_s0 }
 0x2b7   :  { %2370 = vrot.lane.b32.xlu1 %v6482_v0, %s4641_s0  ;;  %v2865_v15 = vadd.f32 %v6002_v37, %v2714_v43  ;;  %v2866_v12 = vadd.f32 %v6002_v37, %v2715_v46 }
 0x2b8   :  { %v2441_v30 = vpop.permute.xlu0 %2440  ;;  %v2443_v57 = vpop.permute.xlu1 %2442 }
 0x2b9   :  { %v3009_v9 = vmax.f32 %v2865_v15, 0.0  ;;  %v3010_v29 = vmax.f32 %v2866_v12, 0.0  ;;  %v2786_v4 = vmax.f32 %v5929_v27, %v2441_v30  ;;  %v2787_v0 = vmax.f32 %v5933_v61, %v2443_v57  ;;  %v8166_v27 = vld [vmem:[#allocation110_spill] sm:$0xff]  ;;  %v8168_v30 = vld [vmem:[#allocation149_spill] sm:$0xff] }
 0x2ba   :  { %2364 = vrot.lane.b32.xlu0 %v6494_v49, %s4641_s0  ;;  %v6510_v15 = vmax.f32 %v8165_v45, %v5887_v17  ;;  %v6514_v12 = vmax.f32 %v8166_v27, %v5889_v44  ;;  %v8169_v45 = vld [vmem:[#allocation24_spill] sm:$0xff] }
 0x2bb   :  { %2366 = vrot.lane.b32.xlu1 %v6498_v36, %s4641_s0  ;;  %v4174_v35 = vpack.c.bf16 %v3009_v9, %v3009_v9  ;;  %v4175_v43 = vpack.c.bf16 %v3010_v29, %v3010_v29  ;;  %v2937_v46 = vadd.f32 %v6002_v37, %v2786_v4  ;;  %v2938_v39 = vadd.f32 %v6002_v37, %v2787_v0 }
 0x2bc   :  { %8167 = vst [vmem:[#allocation170_spill] sm:$0xff] %v6514_v12  ;;  %v2293_v61 = vpop.permute.xlu0 %2292  ;;  %v2295_v8 = vpop.permute.xlu1 %2294 }
 0x2bd   :  { %3730 = vst.msk [vmem:[%s7581_s3 + $0x38] sm:$0xf] %vm3715_vm2, %v4174_v35  ;;  %3731 = vst.msk [vmem:[%s7581_s3 + $0x3c] sm:$0xf] %vm3715_vm2, %v4175_v43  ;;  %v3081_v0 = vmax.f32 %v2937_v46, 0.0  ;;  %v3082_v4 = vmax.f32 %v2938_v39, 0.0  ;;  %v2712_v17 = vmax.f32 %v5945_v60, %v2293_v61  ;;  %v2713_v57 = vmax.f32 %v8168_v30, %v2295_v8 }
 0x2be   :  { %2376 = vrot.lane.b32.xlu0 %v6510_v15, %s4641_s0  ;;  %v8170_v43 = vld [vmem:[#allocation108_spill] sm:$0xff]  ;;  %v8172_v39 = vld [vmem:[#allocation143_spill] sm:$0xff] }
 0x2bf   :  { %2378 = vrot.lane.b32.xlu1 %v6514_v12, %s4641_s0  ;;  %v4246_v44 = vpack.c.bf16 %v3081_v0, %v3081_v0  ;;  %v4247_v9 = vpack.c.bf16 %v3082_v4, %v3082_v4  ;;  %v2863_v29 = vadd.f32 %v6002_v37, %v2712_v17  ;;  %v2864_v35 = vadd.f32 %v6002_v37, %v2713_v57  ;;  %v8173_v60 = vld [vmem:[#allocation112_spill] sm:$0xff]  ;;  %v8175_v17 = vld [vmem:[#allocation31_spill] sm:$0xff]  ;;  %v8177_v12 = vld [vmem:[#allocation25_spill] sm:$0xff] }
 0x2c0   :  { %v6534_v46 = vmax.f32 %v8170_v43, %v8169_v45  ;;  %v6538_v27 = vmax.f32 %v8173_v60, %v8172_v39  ;;  %v2437_v61 = vpop.permute.xlu0 %2436  ;;  %v2439_v8 = vpop.permute.xlu1 %2438  ;;  %v8176_v57 = vld [vmem:[#allocation28_spill] sm:$0xff] }
 0x2c1   :  { %3802 = vst.msk [vmem:[%s7581_s3 + $0x158] sm:$0xf] %vm3715_vm2, %v4246_v44  ;;  %3803 = vst.msk [vmem:[%s7581_s3 + $0x15c] sm:$0xf] %vm3715_vm2, %v4247_v9  ;;  %v3007_v0 = vmax.f32 %v2863_v29, 0.0  ;;  %v3008_v4 = vmax.f32 %v2864_v35, 0.0  ;;  %v2784_v30 = vmax.f32 %v8175_v17, %v2437_v61  ;;  %v2785_v45 = vmax.f32 %v8176_v57, %v2439_v8 }
 0x2c2   :  { %8171 = vst [vmem:[#allocation58_spill] sm:$0xff] %v6534_v46  ;;  %8174 = vst [vmem:[#allocation171_spill] sm:$0xff] %v6538_v27  ;;  %2372 = vrot.lane.b32.xlu0 %v6534_v46, %s4641_s0  ;;  %v8178_v9 = vld [vmem:[#allocation114_spill] sm:$0xff]  ;;  %v8184_v46 = vld [vmem:[#allocation32_spill] sm:$0xff] }
 0x2c3   :  { %2374 = vrot.lane.b32.xlu1 %v6538_v27, %s4641_s0  ;;  %v4172_v43 = vpack.c.bf16 %v3007_v0, %v3007_v0  ;;  %v4173_v39 = vpack.c.bf16 %v3008_v4, %v3008_v4  ;;  %v2935_v44 = vadd.f32 %v6002_v37, %v2784_v30  ;;  %v2936_v60 = vadd.f32 %v6002_v37, %v2785_v45  ;;  %v8179_v35 = vld [vmem:[#allocation26_spill] sm:$0xff] }
 0x2c4   :  { %v6558_v29 = vmax.f32 %v8178_v9, %v8177_v12  ;;  %v8180_v61 = vld [vmem:[#allocation118_spill] sm:$0xff]  ;;  %v2305_v8 = vpop.permute.xlu0 %2304  ;;  %v2307_v57 = vpop.permute.xlu1 %2306  ;;  %v8182_v12 = vld [vmem:[#allocation33_spill] sm:$0xff] }
 0x2c5   :  { %v6562_v17 = vmax.f32 %v8180_v61, %v8179_v35  ;;  %3728 = vst.msk [vmem:[%s7581_s3 + $0x30] sm:$0xf] %vm3715_vm2, %v4172_v43  ;;  %3729 = vst.msk [vmem:[%s7581_s3 + $0x34] sm:$0xf] %vm3715_vm2, %v4173_v39  ;;  %v3079_v0 = vmax.f32 %v2935_v44, 0.0  ;;  %v3080_v4 = vmax.f32 %v2936_v60, 0.0  ;;  %v2718_v30 = vmax.f32 %v8182_v12, %v2305_v8 }
 0x2c6   :  { %v8183_v45 = vld [vmem:[#allocation34_spill] sm:$0xff]  ;;  %2384 = vrot.lane.b32.xlu0 %v6558_v29, %s4641_s0  ;;  %v8185_v39 = vld [vmem:[#allocation116_spill] sm:$0xff]  ;;  %v8186_v60 = vld [vmem:[#allocation29_spill] sm:$0xff] }
 0x2c7   :  { %8181 = vst [vmem:[#allocation62_spill] sm:$0xff] %v6562_v17  ;;  %v2719_v9 = vmax.f32 %v8183_v45, %v2307_v57  ;;  %2386 = vrot.lane.b32.xlu1 %v6562_v17, %s4641_s0  ;;  %v4244_v35 = vpack.c.bf16 %v3079_v0, %v3079_v0  ;;  %v4245_v61 = vpack.c.bf16 %v3080_v4, %v3080_v4  ;;  %v8187_v8 = vld [vmem:[#allocation122_spill] sm:$0xff] }
 0x2c8   :  { %v2869_v43 = vadd.f32 %v6002_v37, %v2718_v30  ;;  %v6582_v44 = vmax.f32 %v8185_v39, %v8184_v46  ;;  %v6586_v12 = vmax.f32 %v8187_v8, %v8186_v60  ;;  %v2449_v57 = vpop.permute.xlu0 %2448  ;;  %v2451_v45 = vpop.permute.xlu1 %2450  ;;  %v8188_v46 = vld [vmem:[#allocation152_spill] sm:$0xff] }
 0x2c9   :  { %v2870_v27 = vadd.f32 %v6002_v37, %v2719_v9  ;;  %3800 = vst.msk [vmem:[%s7581_s3 + $0x150] sm:$0xf] %vm3715_vm2, %v4244_v35  ;;  %3801 = vst.msk [vmem:[%s7581_s3 + $0x154] sm:$0xf] %vm3715_vm2, %v4245_v61  ;;  %v2790_v30 = vmax.f32 %v8188_v46, %v2449_v57  ;;  %v8189_v9 = vld [vmem:[#allocation35_spill] sm:$0xff]  ;;  %v8190_v61 = vld [vmem:[#allocation126_spill] sm:$0xff] }
 0x2ca   :  { %v3013_v0 = vmax.f32 %v2869_v43, 0.0  ;;  %v2791_v39 = vmax.f32 %v8189_v9, %v2451_v45  ;;  %2380 = vrot.lane.b32.xlu0 %v6582_v44, %s4641_s0  ;;  %v6606_v43 = vmax.f32 %v8190_v61, %v6084_v2 }
 0x2cb   :  { %v3014_v4 = vmax.f32 %v2870_v27, 0.0  ;;  %2382 = vrot.lane.b32.xlu1 %v6586_v12, %s4641_s0  ;;  %v2941_v35 = vadd.f32 %v6002_v37, %v2790_v30  ;;  %v8191_v27 = vld [vmem:[#allocation128_spill] sm:$0xff] }
 0x2cc   :  { %v4178_v60 = vpack.c.bf16 %v3013_v0, %v3013_v0  ;;  %v2942_v17 = vadd.f32 %v6002_v37, %v2791_v39  ;;  %v6610_v57 = vmax.f32 %v8191_v27, %v6086_v53  ;;  %v2301_v45 = vpop.permute.xlu0 %2300  ;;  %v2303_v46 = vpop.permute.xlu1 %2302 }
 0x2cd   :  { %v4179_v8 = vpack.c.bf16 %v3014_v4, %v3014_v4  ;;  %v3085_v0 = vmax.f32 %v2941_v35, 0.0  ;;  %v2716_v2 = vmax.f32 %v6014_v34, %v2301_v45  ;;  %v2717_v30 = vmax.f32 %v6018_v50, %v2303_v46  ;;  %v8193_v34 = vld [vmem:[#allocation129_spill] sm:$0xff] }
 0x2ce   :  { %3734 = vst.msk [vmem:[%s7581_s3 + $0x48] sm:$0xf] %vm3715_vm2, %v4178_v60  ;;  %v3086_v4 = vmax.f32 %v2942_v17, 0.0  ;;  %2392 = vrot.lane.b32.xlu0 %v6606_v43, %s4641_s0  ;;  %v6634_v17 = vmax.f32 %v8193_v34, %v6134_v47 }
 0x2cf   :  { %3735 = vst.msk [vmem:[%s7581_s3 + $0x4c] sm:$0xf] %vm3715_vm2, %v4179_v8  ;;  %2394 = vrot.lane.b32.xlu1 %v6610_v57, %s4641_s0  ;;  %v4250_v53 = vpack.c.bf16 %v3085_v0, %v3085_v0  ;;  %v2867_v39 = vadd.f32 %v6002_v37, %v2716_v2  ;;  %v2868_v60 = vadd.f32 %v6002_v37, %v2717_v30  ;;  %v8192_v8 = vld [vmem:[#allocation127_spill] sm:$0xff]  ;;  %v8194_v30 = vld [vmem:[#allocation140_spill] sm:$0xff] }
 0x2d0   :  { %v4251_v9 = vpack.c.bf16 %v3086_v4, %v3086_v4  ;;  %v6630_v35 = vmax.f32 %v8192_v8, %v6132_v54  ;;  %v2445_v50 = vpop.permute.xlu0 %2444  ;;  %v2447_v61 = vpop.permute.xlu1 %2446 }
 0x2d1   :  { %3806 = vst.msk [vmem:[%s7581_s3 + $0x168] sm:$0xf] %vm3715_vm2, %v4250_v53  ;;  %v3011_v27 = vmax.f32 %v2867_v39, 0.0  ;;  %v3012_v45 = vmax.f32 %v2868_v60, 0.0  ;;  %v2788_v54 = vmax.f32 %v6030_v31, %v2445_v50  ;;  %v2789_v46 = vmax.f32 %v6034_v5, %v2447_v61  ;;  %v8195_v31 = vld [vmem:[#allocation142_spill] sm:$0xff] }
 0x2d2   :  { %3807 = vst.msk [vmem:[%s7581_s3 + $0x16c] sm:$0xf] %vm3715_vm2, %v4251_v9  ;;  %2388 = vrot.lane.b32.xlu0 %v6630_v35, %s4641_s0  ;;  %v6654_v53 = vmax.f32 %v8194_v30, %v6244_v18  ;;  %v6658_v9 = vmax.f32 %v8195_v31, %v6246_v6 }
 0x2d3   :  { %2390 = vrot.lane.b32.xlu1 %v6634_v17, %s4641_s0  ;;  %v4176_v47 = vpack.c.bf16 %v3011_v27, %v3011_v27  ;;  %v4177_v0 = vpack.c.bf16 %v3012_v45, %v3012_v45  ;;  %v2939_v4 = vadd.f32 %v6002_v37, %v2788_v54  ;;  %v2940_v2 = vadd.f32 %v6002_v37, %v2789_v46  ;;  %v8196_v45 = vld [vmem:[#allocation141_spill] sm:$0xff] }
 0x2d4   :  { %v2313_v5 = vpop.permute.xlu0 %2312  ;;  %v2315_v39 = vpop.permute.xlu1 %2314  ;;  %v6678_v54 = vmax.f32 %v8196_v45, %v6292_v62 }
 0x2d5   :  { %3732 = vst.msk [vmem:[%s7581_s3 + $0x40] sm:$0xf] %vm3715_vm2, %v4176_v47  ;;  %3733 = vst.msk [vmem:[%s7581_s3 + $0x44] sm:$0xf] %vm3715_vm2, %v4177_v0  ;;  %v3083_v60 = vmax.f32 %v2939_v4, 0.0  ;;  %v3084_v8 = vmax.f32 %v2940_v2, 0.0  ;;  %v2722_v18 = vmax.f32 %v6054_v40, %v2313_v5  ;;  %v2723_v34 = vmax.f32 %v6058_v48, %v2315_v39 }
 0x2d6   :  { %2400 = vrot.lane.b32.xlu0 %v6654_v53, %s4641_s0  ;;  %v8197_v40 = vld [vmem:[#allocation145_spill] sm:$0xff]  ;;  %v8198_v39 = vld [vmem:[#allocation7_spill] sm:$0xff] }
 0x2d7   :  { %2402 = vrot.lane.b32.xlu1 %v6658_v9, %s4641_s0  ;;  %v4248_v6 = vpack.c.bf16 %v3083_v60, %v3083_v60  ;;  %v4249_v50 = vpack.c.bf16 %v3084_v8, %v3084_v8  ;;  %v2873_v61 = vadd.f32 %v6002_v37, %v2722_v18  ;;  %v2874_v27 = vadd.f32 %v6002_v37, %v2723_v34  ;;  %v8199_v60 = vld [vmem:[#allocation71_spill] sm:$0xff] }
 0x2d8   :  { %v6682_v46 = vmax.f32 %v8197_v40, %v6294_v3  ;;  %v2457_v48 = vpop.permute.xlu0 %2456  ;;  %v2459_v47 = vpop.permute.xlu1 %2458  ;;  %v6702_v8 = vmax.f32 %v8199_v60, %v8198_v39  ;;  %v8203_v60 = vld [vmem:[#allocation3_spill] sm:$0xff] }
 0x2d9   :  { %3804 = vst.msk [vmem:[%s7581_s3 + $0x160] sm:$0xf] %vm3715_vm2, %v4248_v6  ;;  %3805 = vst.msk [vmem:[%s7581_s3 + $0x164] sm:$0xf] %vm3715_vm2, %v4249_v50  ;;  %v3017_v0 = vmax.f32 %v2873_v61, 0.0  ;;  %v3018_v4 = vmax.f32 %v2874_v27, 0.0  ;;  %v2794_v62 = vmax.f32 %v6078_v41, %v2457_v48  ;;  %v2795_v2 = vmax.f32 %v6082_v25, %v2459_v47 }
 0x2da   :  { %2396 = vrot.lane.b32.xlu0 %v6678_v54, %s4641_s0  ;;  %v8200_v41 = vld [vmem:[#allocation156_spill] sm:$0xff]  ;;  %v8201_v47 = vld [vmem:[#allocation158_spill] sm:$0xff] }
 0x2db   :  { %2398 = vrot.lane.b32.xlu1 %v6682_v46, %s4641_s0  ;;  %v4182_v3 = vpack.c.bf16 %v3017_v0, %v3017_v0  ;;  %v4183_v30 = vpack.c.bf16 %v3018_v4, %v3018_v4  ;;  %v2945_v31 = vadd.f32 %v6002_v37, %v2794_v62  ;;  %v2946_v5 = vadd.f32 %v6002_v37, %v2795_v2 }
 0x2dc   :  { %v6706_v18 = vmax.f32 %v8200_v41, %v6404_v42  ;;  %v2309_v25 = vpop.permute.xlu0 %2308  ;;  %v2311_v34 = vpop.permute.xlu1 %2310  ;;  %v6726_v0 = vmax.f32 %v8201_v47, %v6406_v14  ;;  %v8204_v41 = vld [vmem:[#allocation67_spill] sm:$0xff]  ;;  %v8206_v47 = vld [vmem:[#allocation10_spill] sm:$0xff] }
 0x2dd   :  { %3738 = vst.msk [vmem:[%s7581_s3 + $0x58] sm:$0xf] %vm3715_vm2, %v4182_v3  ;;  %3739 = vst.msk [vmem:[%s7581_s3 + $0x5c] sm:$0xf] %vm3715_vm2, %v4183_v30  ;;  %v3089_v6 = vmax.f32 %v2945_v31, 0.0  ;;  %v3090_v50 = vmax.f32 %v2946_v5, 0.0  ;;  %v2720_v61 = vmax.f32 %v6102_v21, %v2309_v25  ;;  %v2721_v27 = vmax.f32 %v6106_v56, %v2311_v34 }
 0x2de   :  { %2408 = vrot.lane.b32.xlu0 %v6706_v18, %s4641_s0  ;;  %v8202_v21 = vld [vmem:[#allocation157_spill] sm:$0xff]  ;;  %v6750_v25 = vmax.f32 %v8204_v41, %v8203_v60 }
 0x2df   :  { %2482 = vrot.lane.b32.xlu1 %v6702_v8, %s4641_s0  ;;  %v4254_v42 = vpack.c.bf16 %v3089_v6, %v3089_v6  ;;  %v4255_v45 = vpack.c.bf16 %v3090_v50, %v3090_v50  ;;  %v2871_v40 = vadd.f32 %v6002_v37, %v2720_v61  ;;  %v2872_v48 = vadd.f32 %v6002_v37, %v2721_v27 }
 0x2e0   :  { %v6730_v4 = vmax.f32 %v8202_v21, %v6452_v13  ;;  %v2453_v56 = vpop.permute.xlu0 %2452  ;;  %v2455_v62 = vpop.permute.xlu1 %2454  ;;  %v8207_v21 = vld [vmem:[#allocation77_spill] sm:$0xff] }
 0x2e1   :  { %3810 = vst.msk [vmem:[%s7581_s3 + $0x178] sm:$0xf] %vm3715_vm2, %v4254_v42  ;;  %3811 = vst.msk [vmem:[%s7581_s3 + $0x17c] sm:$0xf] %vm3715_vm2, %v4255_v45  ;;  %v3015_v2 = vmax.f32 %v2871_v40, 0.0  ;;  %v3016_v3 = vmax.f32 %v2872_v48, 0.0  ;;  %v2792_v14 = vmax.f32 %v6126_v55, %v2453_v56  ;;  %v2793_v30 = vmax.f32 %v6130_v32, %v2455_v62 }
 0x2e2   :  { %2404 = vrot.lane.b32.xlu0 %v6730_v4, %s4641_s0  ;;  %v8205_v55 = vld [vmem:[#allocation161_spill] sm:$0xff]  ;;  %v6774_v56 = vmax.f32 %v8207_v21, %v8206_v47 }
 0x2e3   :  { %2410 = vrot.lane.b32.xlu1 %v6726_v0, %s4641_s0  ;;  %v4180_v13 = vpack.c.bf16 %v3015_v2, %v3015_v2  ;;  %v4181_v31 = vpack.c.bf16 %v3016_v3, %v3016_v3  ;;  %v2943_v5 = vadd.f32 %v6002_v37, %v2792_v14  ;;  %v2944_v39 = vadd.f32 %v6002_v37, %v2793_v30  ;;  %v8208_v62 = vld [vmem:[#allocation133_spill] sm:$0xff] }
 0x2e4   :  { %v6754_v34 = vmax.f32 %v8205_v55, %v6454_v10  ;;  %v2321_v32 = vpop.permute.xlu0 %2320  ;;  %v2323_v6 = vpop.permute.xlu1 %2322 }
 0x2e5   :  { %3736 = vst.msk [vmem:[%s7581_s3 + $0x50] sm:$0xf] %vm3715_vm2, %v4180_v13  ;;  %3737 = vst.msk [vmem:[%s7581_s3 + $0x54] sm:$0xf] %vm3715_vm2, %v4181_v31  ;;  %v3087_v50 = vmax.f32 %v2943_v5, 0.0  ;;  %v3088_v61 = vmax.f32 %v2944_v39, 0.0  ;;  %v2726_v27 = vmax.f32 %v6142_v58, %v2321_v32  ;;  %v2727_v42 = vmax.f32 %v6146_v20, %v2323_v6 }
 0x2e6   :  { %2480 = vrot.lane.b32.xlu0 %v6750_v25, %s4641_s0  ;;  %v8209_v58 = vld [vmem:[#allocation81_spill] sm:$0xff]  ;;  %v8210_v31 = vld [vmem:[#allocation155_spill] sm:$0xff] }
 0x2e7   :  { %2406 = vrot.lane.b32.xlu1 %v6754_v34, %s4641_s0  ;;  %v4252_v10 = vpack.c.bf16 %v3087_v50, %v3087_v50  ;;  %v4253_v45 = vpack.c.bf16 %v3088_v61, %v3088_v61  ;;  %v2877_v40 = vadd.f32 %v6002_v37, %v2726_v27  ;;  %v2878_v48 = vadd.f32 %v6002_v37, %v2727_v42  ;;  %v8211_v32 = vld [vmem:[#allocation9_spill] sm:$0xff]  ;;  %v8212_v6 = vld [vmem:[#allocation75_spill] sm:$0xff]  ;;  %v8213_v61 = vld [vmem:[#allocation176_spill] sm:$0xff] }
 0x2e8   :  { %v6778_v2 = vmax.f32 %v8209_v58, %v8208_v62  ;;  %v2465_v20 = vpop.permute.xlu0 %2464  ;;  %v2467_v3 = vpop.permute.xlu1 %2466  ;;  %v6798_v50 = vmax.f32 %v8212_v6, %v8211_v32 }
 0x2e9   :  { %3808 = vst.msk [vmem:[%s7581_s3 + $0x170] sm:$0xf] %vm3715_vm2, %v4252_v10  ;;  %3809 = vst.msk [vmem:[%s7581_s3 + $0x174] sm:$0xf] %vm3715_vm2, %v4253_v45  ;;  %v3021_v14 = vmax.f32 %v2877_v40, 0.0  ;;  %v3022_v30 = vmax.f32 %v2878_v48, 0.0  ;;  %v2798_v13 = vmax.f32 %v6158_v23, %v2465_v20  ;;  %v2799_v5 = vmax.f32 %v8210_v31, %v2467_v3 }
 0x2ea   :  { %2484 = vrot.lane.b32.xlu0 %v6774_v56, %s4641_s0  ;;  %v8214_v23 = vld [vmem:[#allocation79_spill] sm:$0xff]  ;;  %v8215_v3 = vld [vmem:[#allocation13_spill] sm:$0xff] }
 0x2eb   :  { %2486 = vrot.lane.b32.xlu1 %v6778_v2, %s4641_s0  ;;  %v4186_v39 = vpack.c.bf16 %v3021_v14, %v3021_v14  ;;  %v4187_v60 = vpack.c.bf16 %v3022_v30, %v3022_v30  ;;  %v2949_v41 = vadd.f32 %v6002_v37, %v2798_v13  ;;  %v2950_v55 = vadd.f32 %v6002_v37, %v2799_v5  ;;  %v8216_v14 = vld [vmem:[#allocation85_spill] sm:$0xff] }
 0x2ec   :  { %v6802_v27 = vmax.f32 %v8214_v23, %v8213_v61  ;;  %v2317_v42 = vpop.permute.xlu0 %2316  ;;  %v2319_v10 = vpop.permute.xlu1 %2318  ;;  %v6822_v30 = vmax.f32 %v8216_v14, %v8215_v3  ;;  %v8217_v13 = vld [vmem:[#allocation17_spill] sm:$0xff]  ;;  %v6846_v23 = vld [vmem:[%s7580_s2] ss:$0 sm:$0xff] }
 0x2ed   :  { %3742 = vst.msk [vmem:[%s7581_s3 + $0x68] sm:$0xf] %vm3715_vm2, %v4186_v39  ;;  %3743 = vst.msk [vmem:[%s7581_s3 + $0x6c] sm:$0xf] %vm3715_vm2, %v4187_v60  ;;  %v3093_v45 = vmax.f32 %v2949_v41, 0.0  ;;  %v3094_v40 = vmax.f32 %v2950_v55, 0.0  ;;  %v2724_v48 = vmax.f32 %v6174_v24, %v2317_v42  ;;  %v2725_v47 = vmax.f32 %v6178_v33, %v2319_v10 }
 0x2ee   :  { %2488 = vrot.lane.b32.xlu0 %v6798_v50, %s4641_s0  ;;  %v8218_v24 = vld [vmem:[#allocation89_spill] sm:$0xff]  ;;  %v8220_v10 = vld [vmem:[#allocation83_spill] sm:$0xff] }
 0x2ef   :  { %2490 = vrot.lane.b32.xlu1 %v6802_v27, %s4641_s0  ;;  %v4258_v21 = vpack.c.bf16 %v3093_v45, %v3093_v45  ;;  %v4259_v62 = vpack.c.bf16 %v3094_v40, %v3094_v40  ;;  %v2875_v58 = vadd.f32 %v6002_v37, %v2724_v48  ;;  %v2876_v20 = vadd.f32 %v6002_v37, %v2725_v47  ;;  %v8221_v45 = vld [vmem:[#allocation12_spill] sm:$0xff]  ;;  %v8222_v40 = vld [vmem:[#allocation87_spill] sm:$0xff] }
 0x2f0   :  { %v6826_v31 = vmax.f32 %v8218_v24, %v8217_v13  ;;  %v2461_v33 = vpop.permute.xlu0 %2460  ;;  %v2463_v5 = vpop.permute.xlu1 %2462  ;;  %v6855_v48 = vmax.f32 %v8222_v40, %v8221_v45 }
 0x2f1   :  { %3814 = vst.msk [vmem:[%s7581_s3 + $0x188] sm:$0xf] %vm3715_vm2, %v4258_v21  ;;  %3815 = vst.msk [vmem:[%s7581_s3 + $0x18c] sm:$0xf] %vm3715_vm2, %v4259_v62  ;;  %v3019_v39 = vmax.f32 %v2875_v58, 0.0  ;;  %v3020_v60 = vmax.f32 %v2876_v20, 0.0  ;;  %v2796_v41 = vmax.f32 %v6190_v26, %v2461_v33  ;;  %v2797_v55 = vmax.f32 %v6194_v52, %v2463_v5 }
 0x2f2   :  { %2492 = vrot.lane.b32.xlu0 %v6822_v30, %s4641_s0  ;;  %v8219_v26 = vld [vmem:[#allocation15_spill] sm:$0xff]  ;;  %v8223_v20 = vld [vmem:[#allocation40_spill] sm:$0xff]  ;;  %v8224_v5 = vld [vmem:[#allocation18_spill] sm:$0xff] }
 0x2f3   :  { %2494 = vrot.lane.b32.xlu1 %v6826_v31, %s4641_s0  ;;  %v4184_v32 = vpack.c.bf16 %v3019_v39, %v3019_v39  ;;  %v4185_v6 = vpack.c.bf16 %v3020_v60, %v3020_v60  ;;  %v2947_v61 = vadd.f32 %v6002_v37, %v2796_v41  ;;  %v2948_v42 = vadd.f32 %v6846_v23, %v2797_v55  ;;  %v8225_v39 = vld [vmem:[#allocation93_spill] sm:$0xff]  ;;  %v8226_v41 = vld [vmem:[#allocation135_spill] sm:$0xff] }
 0x2f4   :  { %v6851_v52 = vmax.f32 %v8220_v10, %v8219_v26  ;;  %v2329_v47 = vpop.permute.xlu0 %2328  ;;  %v2331_v21 = vpop.permute.xlu1 %2330  ;;  %v6875_v60 = vmax.f32 %v8225_v39, %v8224_v5  ;;  %v8228_v10 = vld [vmem:[#allocation159_spill] sm:$0xff]  ;;  %v8233_v39 = vld [vmem:[#allocation37_spill] sm:$0xff] }
 0x2f5   :  { %3740 = vst.msk [vmem:[%s7581_s3 + $0x60] sm:$0xf] %vm3715_vm2, %v4184_v32  ;;  %3741 = vst.msk [vmem:[%s7581_s3 + $0x64] sm:$0xf] %vm3715_vm2, %v4185_v6  ;;  %v3091_v37 = vmax.f32 %v2947_v61, 0.0  ;;  %v3092_v62 = vmax.f32 %v2948_v42, 0.0  ;;  %v2730_v58 = vmax.f32 %v6214_v59, %v2329_v47  ;;  %v2731_v3 = vmax.f32 %v8223_v20, %v2331_v21 }
 0x2f6   :  { %2496 = vrot.lane.b32.xlu0 %v6851_v52, %s4641_s0  ;;  %v8227_v59 = vld [vmem:[#allocation97_spill] sm:$0xff] }
 0x2f7   :  { %2498 = vrot.lane.b32.xlu1 %v6855_v48, %s4641_s0  ;;  %v4256_v14 = vpack.c.bf16 %v3091_v37, %v3091_v37  ;;  %v4257_v13 = vpack.c.bf16 %v3092_v62, %v3092_v62  ;;  %v2881_v24 = vadd.f32 %v6846_v23, %v2730_v58  ;;  %v2882_v33 = vadd.f32 %v6846_v23, %v2731_v3  ;;  %v8229_v62 = vld [vmem:[#allocation179_spill] sm:$0xff]  ;;  %v8231_v3 = vld [vmem:[#allocation180_spill] sm:$0xff] }
 0x2f8   :  { %v6879_v55 = vmax.f32 %v8227_v59, %v8226_v41  ;;  %v2473_v32 = vpop.permute.xlu0 %2472  ;;  %v2475_v6 = vpop.permute.xlu1 %2474  ;;  %v8230_v58 = vld [vmem:[#allocation91_spill] sm:$0xff]  ;;  %v8234_v59 = vld [vmem:[#allocation160_spill] sm:$0xff] }
 0x2f9   :  { %3812 = vst.msk [vmem:[%s7581_s3 + $0x180] sm:$0xf] %vm3715_vm2, %v4256_v14  ;;  %3813 = vst.msk [vmem:[%s7581_s3 + $0x184] sm:$0xf] %vm3715_vm2, %v4257_v13  ;;  %v3025_v61 = vmax.f32 %v2881_v24, 0.0  ;;  %v3026_v42 = vmax.f32 %v2882_v33, 0.0  ;;  %v2802_v26 = vmax.f32 %v6238_v22, %v2473_v32  ;;  %v2803_v45 = vmax.f32 %v8228_v10, %v2475_v6 }
 0x2fa   :  { %2500 = vrot.lane.b32.xlu0 %v6875_v60, %s4641_s0  ;;  %v6899_v20 = vmax.f32 %v8230_v58, %v8229_v62  ;;  %v8232_v22 = vld [vmem:[#allocation95_spill] sm:$0xff] }
 0x2fb   :  { %2502 = vrot.lane.b32.xlu1 %v6879_v55, %s4641_s0  ;;  %v4190_v40 = vpack.c.bf16 %v3025_v61, %v3025_v61  ;;  %v4191_v47 = vpack.c.bf16 %v3026_v42, %v3026_v42  ;;  %v2953_v21 = vadd.f32 %v6846_v23, %v2802_v26  ;;  %v2954_v37 = vadd.f32 %v6846_v23, %v2803_v45  ;;  %v8235_v10 = vld [vmem:[#allocation23_spill] sm:$0xff]  ;;  %v8236_v45 = vld [vmem:[#allocation101_spill] sm:$0xff] }
 0x2fc   :  { %v6903_v14 = vmax.f32 %v8232_v22, %v8231_v3  ;;  %v2325_v13 = vpop.permute.xlu0 %2324  ;;  %v2327_v24 = vpop.permute.xlu1 %2326 }
 0x2fd   :  { %3746 = vst.msk [vmem:[%s7581_s3 + $0x78] sm:$0xf] %vm3715_vm2, %v4190_v40  ;;  %3747 = vst.msk [vmem:[%s7581_s3 + $0x7c] sm:$0xf] %vm3715_vm2, %v4191_v47  ;;  %v3097_v33 = vmax.f32 %v2953_v21, 0.0  ;;  %v3098_v5 = vmax.f32 %v2954_v37, 0.0  ;;  %v2728_v41 = vmax.f32 %v8233_v39, %v2325_v13  ;;  %v2729_v32 = vmax.f32 %v8234_v59, %v2327_v24 }
 0x2fe   :  { %2504 = vrot.lane.b32.xlu0 %v6899_v20, %s4641_s0  ;;  %v6923_v40 = vmax.f32 %v8236_v45, %v8235_v10  ;;  %v8237_v47 = vld [vmem:[#allocation138_spill] sm:$0xff]  ;;  %v8238_v21 = vld [vmem:[#allocation105_spill] sm:$0xff]  ;;  %v8244_v10 = vld [vmem:[#allocation103_spill] sm:$0xff] }
 0x2ff   :  { %2506 = vrot.lane.b32.xlu1 %v6903_v14, %s4641_s0  ;;  %v4262_v6 = vpack.c.bf16 %v3097_v33, %v3097_v33  ;;  %v4263_v61 = vpack.c.bf16 %v3098_v5, %v3098_v5  ;;  %v2879_v42 = vadd.f32 %v6846_v23, %v2728_v41  ;;  %v2880_v26 = vadd.f32 %v6846_v23, %v2729_v32  ;;  %v8239_v13 = vld [vmem:[#allocation165_spill] sm:$0xff]  ;;  %v8240_v33 = vld [vmem:[#allocation46_spill] sm:$0xff] }
 0x300   :  { %v6927_v37 = vmax.f32 %v8238_v21, %v8237_v47  ;;  %v2469_v62 = vpop.permute.xlu0 %2468  ;;  %v2471_v58 = vpop.permute.xlu1 %2470 }
 0x301   :  { %3818 = vst.msk [vmem:[%s7581_s3 + $0x198] sm:$0xf] %vm3715_vm2, %v4262_v6  ;;  %3819 = vst.msk [vmem:[%s7581_s3 + $0x19c] sm:$0xf] %vm3715_vm2, %v4263_v61  ;;  %v3023_v3 = vmax.f32 %v2879_v42, 0.0  ;;  %v3024_v22 = vmax.f32 %v2880_v26, 0.0  ;;  %v2800_v24 = vmax.f32 %v8239_v13, %v2469_v62  ;;  %v2801_v5 = vmax.f32 %v8240_v33, %v2471_v58 }
 0x302   :  { %2508 = vrot.lane.b32.xlu0 %v6923_v40, %s4641_s0  ;;  %v8241_v6 = vld [vmem:[#allocation19_spill] sm:$0xff]  ;;  %v8243_v26 = vld [vmem:[#allocation137_spill] sm:$0xff] }
 0x303   :  { %2510 = vrot.lane.b32.xlu1 %v6927_v37, %s4641_s0  ;;  %v4188_v39 = vpack.c.bf16 %v3023_v3, %v3023_v3  ;;  %v4189_v41 = vpack.c.bf16 %v3024_v22, %v3024_v22  ;;  %v2951_v59 = vadd.f32 %v6846_v23, %v2800_v24  ;;  %v2952_v32 = vadd.f32 %v6846_v23, %v2801_v5  ;;  %v8242_v61 = vld [vmem:[#allocation99_spill] sm:$0xff] }
 0x304   :  { %v6947_v42 = vmax.f32 %v8242_v61, %v8241_v6  ;;  %v6951_v45 = vmax.f32 %v8244_v10, %v8243_v26  ;;  %v2337_v47 = vpop.permute.xlu0 %2336  ;;  %v2339_v21 = vpop.permute.xlu1 %2338  ;;  %v8245_v3 = vld [vmem:[#allocation43_spill] sm:$0xff]  ;;  %v8247_v61 = vld [vmem:[#allocation21_spill] sm:$0xff] }
 0x305   :  { %3744 = vst.msk [vmem:[%s7581_s3 + $0x70] sm:$0xf] %vm3715_vm2, %v4188_v39  ;;  %3745 = vst.msk [vmem:[%s7581_s3 + $0x74] sm:$0xf] %vm3715_vm2, %v4189_v41  ;;  %v3095_v62 = vmax.f32 %v2951_v59, 0.0  ;;  %v3096_v58 = vmax.f32 %v2952_v32, 0.0  ;;  %v2734_v22 = vmax.f32 %v8245_v3, %v2337_v47 }
 0x306   :  { %v8246_v13 = vld [vmem:[#allocation47_spill] sm:$0xff]  ;;  %2512 = vrot.lane.b32.xlu0 %v6947_v42, %s4641_s0  ;;  %v8248_v41 = vld [vmem:[#allocation109_spill] sm:$0xff]  ;;  %v8249_v32 = vld [vmem:[#allocation144_spill] sm:$0xff] }
 0x307   :  { %v2735_v24 = vmax.f32 %v8246_v13, %v2339_v21  ;;  %2514 = vrot.lane.b32.xlu1 %v6951_v45, %s4641_s0  ;;  %v4260_v33 = vpack.c.bf16 %v3095_v62, %v3095_v62  ;;  %v4261_v5 = vpack.c.bf16 %v3096_v58, %v3096_v58  ;;  %v2885_v39 = vadd.f32 %v6846_v23, %v2734_v22  ;;  %v8250_v26 = vld [vmem:[#allocation113_spill] sm:$0xff] }
 0x308   :  { %v6971_v59 = vmax.f32 %v8248_v41, %v8247_v61  ;;  %v6975_v10 = vmax.f32 %v8250_v26, %v8249_v32  ;;  %v2333_v47 = vpop.permute.xlu0 %2332  ;;  %v2335_v21 = vpop.permute.xlu1 %2334  ;;  %v8251_v3 = vld [vmem:[#allocation45_spill] sm:$0xff]  ;;  %v8253_v26 = vld [vmem:[#allocation20_spill] sm:$0xff] }
 0x309   :  { %v2886_v6 = vadd.f32 %v6846_v23, %v2735_v24  ;;  %3816 = vst.msk [vmem:[%s7581_s3 + $0x190] sm:$0xf] %vm3715_vm2, %v4260_v33  ;;  %3817 = vst.msk [vmem:[%s7581_s3 + $0x194] sm:$0xf] %vm3715_vm2, %v4261_v5  ;;  %v3029_v62 = vmax.f32 %v2885_v39, 0.0  ;;  %v2732_v22 = vmax.f32 %v8251_v3, %v2333_v47  ;;  %v8252_v13 = vld [vmem:[#allocation49_spill] sm:$0xff] }
 0x30a   :  { %v2733_v24 = vmax.f32 %v8252_v13, %v2335_v21  ;;  %2516 = vrot.lane.b32.xlu0 %v6971_v59, %s4641_s0  ;;  %v8254_v5 = vld [vmem:[#allocation107_spill] sm:$0xff] }
 0x30b   :  { %v3030_v58 = vmax.f32 %v2886_v6, 0.0  ;;  %2518 = vrot.lane.b32.xlu1 %v6975_v10, %s4641_s0  ;;  %v4194_v61 = vpack.c.bf16 %v3029_v62, %v3029_v62  ;;  %v2883_v33 = vadd.f32 %v6846_v23, %v2732_v22  ;;  %v6995_v39 = vmax.f32 %v8254_v5, %v8253_v26  ;;  %v8255_v6 = vld [vmem:[#allocation139_spill] sm:$0xff] }
 0x30c   :  { %v2884_v32 = vadd.f32 %v6846_v23, %v2733_v24  ;;  %v8256_v47 = vld [vmem:[#allocation111_spill] sm:$0xff]  ;;  %v2477_v21 = vpop.permute.xlu0 %2476  ;;  %v2479_v13 = vpop.permute.xlu1 %2478 }
 0x30d   :  { %v4195_v41 = vpack.c.bf16 %v3030_v58, %v3030_v58  ;;  %v6999_v3 = vmax.f32 %v8256_v47, %v8255_v6  ;;  %3750 = vst.msk [vmem:[%s7581_s3 + $0x88] sm:$0xf] %vm3715_vm2, %v4194_v61  ;;  %v3027_v62 = vmax.f32 %v2883_v33, 0.0  ;;  %v2804_v22 = vmax.f32 %v6334_v28, %v2477_v21  ;;  %v8257_v47 = vld [vmem:[#allocation151_spill] sm:$0xff] }
 0x30e   :  { %v3028_v58 = vmax.f32 %v2884_v32, 0.0  ;;  %v2805_v24 = vmax.f32 %v6338_v19, %v2479_v13  ;;  %2520 = vrot.lane.b32.xlu0 %v6995_v39, %s4641_s0  ;;  %v8259_v32 = vld [vmem:[#allocation38_spill] sm:$0xff]  ;;  %v8260_v28 = vld [vmem:[#allocation123_spill] sm:$0xff] }
 0x30f   :  { %3751 = vst.msk [vmem:[%s7581_s3 + $0x8c] sm:$0xf] %vm3715_vm2, %v4195_v41  ;;  %2522 = vrot.lane.b32.xlu1 %v6999_v3, %s4641_s0  ;;  %v4192_v26 = vpack.c.bf16 %v3027_v62, %v3027_v62  ;;  %v2955_v61 = vadd.f32 %v6846_v23, %v2804_v22  ;;  %v8258_v41 = vld [vmem:[#allocation117_spill] sm:$0xff]  ;;  %v7023_v21 = vmax.f32 %v8260_v28, %v8259_v32  ;;  %v8261_v28 = vld [vmem:[#allocation30_spill] sm:$0xff] }
 0x310   :  { %v4193_v5 = vpack.c.bf16 %v3028_v58, %v3028_v58  ;;  %v2956_v6 = vadd.f32 %v6846_v23, %v2805_v24  ;;  %v7019_v33 = vmax.f32 %v8258_v41, %v8257_v47  ;;  %v2345_v19 = vpop.permute.xlu0 %2344  ;;  %v2347_v13 = vpop.permute.xlu1 %2346 }
 0x311   :  { %3748 = vst.msk [vmem:[%s7581_s3 + $0x80] sm:$0xf] %vm3715_vm2, %v4192_v26  ;;  %v3099_v62 = vmax.f32 %v2955_v61, 0.0  ;;  %v2738_v22 = vmax.f32 %v6350_v11, %v2345_v19  ;;  %v2739_v24 = vmax.f32 %v6354_v38, %v2347_v13  ;;  %v8264_v11 = vld [vmem:[#allocation119_spill] sm:$0xff] }
 0x312   :  { %3749 = vst.msk [vmem:[%s7581_s3 + $0x84] sm:$0xf] %vm3715_vm2, %v4193_v5  ;;  %v3100_v58 = vmax.f32 %v2956_v6, 0.0  ;;  %2524 = vrot.lane.b32.xlu0 %v7019_v33, %s4641_s0  ;;  %v8262_v5 = vld [vmem:[#allocation115_spill] sm:$0xff] }
 0x313   :  { %2526 = vrot.lane.b32.xlu1 %v7023_v21, %s4641_s0  ;;  %v4264_v47 = vpack.c.bf16 %v3099_v62, %v3099_v62  ;;  %v2889_v26 = vadd.f32 %v6846_v23, %v2738_v22  ;;  %v2890_v32 = vadd.f32 %v6846_v23, %v2739_v24  ;;  %v7043_v61 = vmax.f32 %v8262_v5, %v8261_v28  ;;  %v8263_v6 = vld [vmem:[#allocation27_spill] sm:$0xff] }
 0x314   :  { %v4265_v41 = vpack.c.bf16 %v3100_v58, %v3100_v58  ;;  %v7047_v19 = vmax.f32 %v8264_v11, %v8263_v6  ;;  %v2341_v38 = vpop.permute.xlu0 %2340  ;;  %v2343_v13 = vpop.permute.xlu1 %2342  ;;  %v8265_v11 = vld [vmem:[#allocation154_spill] sm:$0xff] }
 0x315   :  { %3820 = vst.msk [vmem:[%s7581_s3 + $0x1a0] sm:$0xf] %vm3715_vm2, %v4264_v47  ;;  %v3033_v62 = vmax.f32 %v2889_v26, 0.0  ;;  %v3034_v58 = vmax.f32 %v2890_v32, 0.0  ;;  %v2736_v22 = vmax.f32 %v6374_v1, %v2341_v38  ;;  %v2737_v24 = vmax.f32 %v6378_v51, %v2343_v13  ;;  %v8267_v32 = vld [vmem:[#allocation36_spill] sm:$0xff]  ;;  %v8268_v1 = vld [vmem:[#allocation134_spill] sm:$0xff] }
 0x316   :  { %3821 = vst.msk [vmem:[%s7581_s3 + $0x1a4] sm:$0xf] %vm3715_vm2, %v4265_v41  ;;  %2528 = vrot.lane.b32.xlu0 %v7043_v61, %s4641_s0  ;;  %v8266_v41 = vld [vmem:[#allocation131_spill] sm:$0xff]  ;;  %v7071_v38 = vmax.f32 %v8268_v1, %v8267_v32  ;;  %v8270_v1 = vld [vmem:[#allocation153_spill] sm:$0xff] }
 0x317   :  { %2530 = vrot.lane.b32.xlu1 %v7047_v19, %s4641_s0  ;;  %v4198_v28 = vpack.c.bf16 %v3033_v62, %v3033_v62  ;;  %v4199_v5 = vpack.c.bf16 %v3034_v58, %v3034_v58  ;;  %v2887_v47 = vadd.f32 %v6846_v23, %v2736_v22  ;;  %v2888_v6 = vadd.f32 %v6846_v23, %v2737_v24 }
 0x318   :  { %v7067_v26 = vmax.f32 %v8266_v41, %v8265_v11  ;;  %8269 = vst [vmem:[#allocation172_spill] sm:$0xff] %v7071_v38  ;;  %v2353_v51 = vpop.permute.xlu0 %2352 }
 0x319   :  { %v2355_v13 = vpop.permute.xlu1 %2354  ;;  %3754 = vst.msk [vmem:[%s7581_s3 + $0x98] sm:$0xf] %vm3715_vm2, %v4198_v28  ;;  %3755 = vst.msk [vmem:[%s7581_s3 + $0x9c] sm:$0xf] %vm3715_vm2, %v4199_v5  ;;  %v3031_v62 = vmax.f32 %v2887_v47, 0.0  ;;  %v3032_v58 = vmax.f32 %v2888_v6, 0.0  ;;  %v2742_v22 = vmax.f32 %v6398_v63, %v2353_v51 }
 0x31a   :  { %v2743_v24 = vmax.f32 %v6402_v16, %v2355_v13  ;;  %2532 = vrot.lane.b32.xlu0 %v7067_v26, %s4641_s0  ;;  %v8271_v5 = vld [vmem:[#allocation130_spill] sm:$0xff]  ;;  %v8273_v6 = vld [vmem:[#allocation39_spill] sm:$0xff]  ;;  %v8274_v63 = vld [vmem:[#allocation132_spill] sm:$0xff] }
 0x31b   :  { %2534 = vrot.lane.b32.xlu1 %v7071_v38, %s4641_s0  ;;  %v4196_v11 = vpack.c.bf16 %v3031_v62, %v3031_v62  ;;  %v4197_v41 = vpack.c.bf16 %v3032_v58, %v3032_v58  ;;  %v2893_v28 = vadd.f32 %v6846_v23, %v2742_v22  ;;  %v7091_v47 = vmax.f32 %v8271_v5, %v8270_v1  ;;  %v8277_v38 = vld [vmem:[#allocation44_spill] sm:$0xff] }
 0x31c   :  { %v2894_v32 = vadd.f32 %v6846_v23, %v2743_v24  ;;  %v7095_v51 = vmax.f32 %v8274_v63, %v8273_v6  ;;  %v2349_v16 = vpop.permute.xlu0 %2348  ;;  %v8276_v24 = vld [vmem:[#allocation50_spill] sm:$0xff] }
 0x31d   :  { %8272 = vst [vmem:[#allocation59_spill] sm:$0xff] %v7091_v47  ;;  %v2351_v13 = vpop.permute.xlu1 %2350  ;;  %3752 = vst.msk [vmem:[%s7581_s3 + $0x90] sm:$0xf] %vm3715_vm2, %v4196_v11  ;;  %v3037_v62 = vmax.f32 %v2893_v28, 0.0  ;;  %v2740_v22 = vmax.f32 %v6422_v7, %v2349_v16  ;;  %v8281_v7 = vld [vmem:[#allocation150_spill] sm:$0xff] }
 0x31e   :  { %8275 = vst [vmem:[#allocation173_spill] sm:$0xff] %v7095_v51  ;;  %3753 = vst.msk [vmem:[%s7581_s3 + $0x94] sm:$0xf] %vm3715_vm2, %v4197_v41  ;;  %v3038_v58 = vmax.f32 %v2894_v32, 0.0  ;;  %v2741_v1 = vmax.f32 %v8276_v24, %v2351_v13  ;;  %2536 = vrot.lane.b32.xlu0 %v7091_v47, %s4641_s0  ;;  %v8278_v41 = vld [vmem:[#allocation147_spill] sm:$0xff]  ;;  %v8280_v32 = vld [vmem:[#allocation48_spill] sm:$0xff] }
 0x31f   :  { %2538 = vrot.lane.b32.xlu1 %v7095_v51, %s4641_s0  ;;  %v4202_v5 = vpack.c.bf16 %v3037_v62, %v3037_v62  ;;  %v2891_v11 = vadd.f32 %v6846_v23, %v2740_v22  ;;  %v7115_v28 = vmax.f32 %v8278_v41, %v8277_v38  ;;  %v7119_v16 = vmax.f32 %v8281_v7, %v8280_v32  ;;  %v8283_v38 = vld [vmem:[#allocation167_spill] sm:$0xff]  ;;  %v8285_v47 = vld [vmem:[#allocation41_spill] sm:$0xff] }
 0x320   :  { %v4203_v6 = vpack.c.bf16 %v3038_v58, %v3038_v58  ;;  %v2892_v63 = vadd.f32 %v6846_v23, %v2741_v1  ;;  %v2361_v13 = vpop.permute.xlu0 %2360  ;;  %v8284_v1 = vld [vmem:[#allocation55_spill] sm:$0xff] }
 0x321   :  { %8279 = vst [vmem:[#allocation63_spill] sm:$0xff] %v7115_v28  ;;  %8282 = vst [vmem:[#allocation174_spill] sm:$0xff] %v7119_v16  ;;  %v2363_v24 = vpop.permute.xlu1 %2362  ;;  %v3035_v62 = vmax.f32 %v2891_v11, 0.0  ;;  %v2746_v22 = vmax.f32 %v8283_v38, %v2361_v13  ;;  %v8289_v13 = vld [vmem:[#allocation148_spill] sm:$0xff] }
 0x322   :  { %3758 = vst.msk [vmem:[%s7581_s3 + $0xa8] sm:$0xf] %vm3715_vm2, %v4202_v5  ;;  %3759 = vst.msk [vmem:[%s7581_s3 + $0xac] sm:$0xf] %vm3715_vm2, %v4203_v6  ;;  %v3036_v58 = vmax.f32 %v2892_v63, 0.0  ;;  %v2747_v41 = vmax.f32 %v8284_v1, %v2363_v24  ;;  %2540 = vrot.lane.b32.xlu0 %v7115_v28, %s4641_s0  ;;  %v8286_v6 = vld [vmem:[#allocation146_spill] sm:$0xff] }
 0x323   :  { %2542 = vrot.lane.b32.xlu1 %v7119_v16, %s4641_s0  ;;  %v4200_v32 = vpack.c.bf16 %v3035_v62, %v3035_v62  ;;  %v2897_v5 = vadd.f32 %v6846_v23, %v2746_v22  ;;  %v7139_v11 = vmax.f32 %v8286_v6, %v8285_v47  ;;  %v8288_v63 = vld [vmem:[#allocation42_spill] sm:$0xff]  ;;  %v8291_v47 = vld [vmem:[#allocation52_spill] sm:$0xff] }
 0x324   :  { %v4201_v7 = vpack.c.bf16 %v3036_v58, %v3036_v58  ;;  %v2898_v51 = vadd.f32 %v6846_v23, %v2747_v41  ;;  %v7143_v38 = vmax.f32 %v8289_v13, %v8288_v63  ;;  %v2357_v24 = vpop.permute.xlu0 %2356  ;;  %v8292_v41 = vld [vmem:[#allocation168_spill] sm:$0xff] }
 0x325   :  { %8287 = vst [vmem:[#allocation60_spill] sm:$0xff] %v7139_v11  ;;  %v2359_v1 = vpop.permute.xlu1 %2358  ;;  %3756 = vst.msk [vmem:[%s7581_s3 + $0xa0] sm:$0xf] %vm3715_vm2, %v4200_v32  ;;  %v3041_v62 = vmax.f32 %v2897_v5, 0.0  ;;  %v2744_v22 = vmax.f32 %v8291_v47, %v2357_v24  ;;  %v8293_v28 = vld [vmem:[#allocation56_spill] sm:$0xff]  ;;  %v8296_v24 = vld [vmem:[#allocation166_spill] sm:$0xff] }
 0x326   :  { %8290 = vst [vmem:[#allocation175_spill] sm:$0xff] %v7143_v38  ;;  %3757 = vst.msk [vmem:[%s7581_s3 + $0xa4] sm:$0xf] %vm3715_vm2, %v4201_v7  ;;  %v3042_v58 = vmax.f32 %v2898_v51, 0.0  ;;  %v2745_v6 = vmax.f32 %v8292_v41, %v2359_v1  ;;  %2544 = vrot.lane.b32.xlu0 %v7139_v11, %s4641_s0  ;;  %v8294_v7 = vld [vmem:[#allocation163_spill] sm:$0xff]  ;;  %v8295_v51 = vld [vmem:[#allocation53_spill] sm:$0xff] }
 0x327   :  { %2546 = vrot.lane.b32.xlu1 %v7143_v38, %s4641_s0  ;;  %v4206_v63 = vpack.c.bf16 %v3041_v62, %v3041_v62  ;;  %v2895_v32 = vadd.f32 %v6846_v23, %v2744_v22  ;;  %v7163_v5 = vmax.f32 %v8294_v7, %v8293_v28  ;;  %v7167_v47 = vmax.f32 %v8296_v24, %v8295_v51  ;;  %v8297_v28 = vld [vmem:[#allocation169_spill] sm:$0xff]  ;;  %v8299_v11 = vld [vmem:[#allocation54_spill] sm:$0xff] }
 0x328   :  { %v4207_v13 = vpack.c.bf16 %v3042_v58, %v3042_v58  ;;  %v2896_v16 = vadd.f32 %v6846_v23, %v2745_v6  ;;  %v2369_v1 = vpop.permute.xlu0 %2368  ;;  %v8298_v6 = vld [vmem:[#allocation57_spill] sm:$0xff] }
 0x329   :  { %v2371_v41 = vpop.permute.xlu1 %2370  ;;  %3762 = vst.msk [vmem:[%s7581_s3 + $0xb8] sm:$0xf] %vm3715_vm2, %v4206_v63  ;;  %v3039_v62 = vmax.f32 %v2895_v32, 0.0  ;;  %v2750_v22 = vmax.f32 %v8297_v28, %v2369_v1  ;;  %v8302_v1 = vld [vmem:[#allocation164_spill] sm:$0xff] }
 0x32a   :  { %3763 = vst.msk [vmem:[%s7581_s3 + $0xbc] sm:$0xf] %vm3715_vm2, %v4207_v13  ;;  %v3040_v58 = vmax.f32 %v2896_v16, 0.0  ;;  %v2751_v7 = vmax.f32 %v8298_v6, %v2371_v41  ;;  %2548 = vrot.lane.b32.xlu0 %v7163_v5, %s4641_s0  ;;  %v8300_v13 = vld [vmem:[#allocation162_spill] sm:$0xff]  ;;  %v8301_v16 = vld [vmem:[#allocation51_spill] sm:$0xff] }
 0x32b   :  { %2550 = vrot.lane.b32.xlu1 %v7167_v47, %s4641_s0  ;;  %v4204_v51 = vpack.c.bf16 %v3039_v62, %v3039_v62  ;;  %v2901_v63 = vadd.f32 %v6846_v23, %v2750_v22  ;;  %v7187_v32 = vmax.f32 %v8300_v13, %v8299_v11  ;;  %v7191_v28 = vmax.f32 %v8302_v1, %v8301_v16 }
 0x32c   :  { %v4205_v24 = vpack.c.bf16 %v3040_v58, %v3040_v58  ;;  %v2902_v38 = vadd.f32 %v6846_v23, %v2751_v7  ;;  %v2365_v41 = vpop.permute.xlu0 %2364 }
 0x32d   :  { %8303 = vst [vmem:[#allocation64_spill] sm:$0xff] %v7191_v28  ;;  %v2367_v6 = vpop.permute.xlu1 %2366  ;;  %3760 = vst.msk [vmem:[%s7581_s3 + $0xb0] sm:$0xf] %vm3715_vm2, %v4204_v51  ;;  %v3045_v62 = vmax.f32 %v2901_v63, 0.0  ;;  %v2748_v11 = vmax.f32 %v6494_v49, %v2365_v41  ;;  %v8304_v63 = vld [vmem:[#allocation170_spill] sm:$0xff] }
 0x32e   :  { %3761 = vst.msk [vmem:[%s7581_s3 + $0xb4] sm:$0xf] %vm3715_vm2, %v4205_v24  ;;  %v3046_v58 = vmax.f32 %v2902_v38, 0.0  ;;  %v2749_v22 = vmax.f32 %v6498_v36, %v2367_v6  ;;  %2552 = vrot.lane.b32.xlu0 %v7187_v32, %s4641_s0 }
 0x32f   :  { %2554 = vrot.lane.b32.xlu1 %v7191_v28, %s4641_s0  ;;  %v4210_v7 = vpack.c.bf16 %v3045_v62, %v3045_v62  ;;  %v2899_v51 = vadd.f32 %v6846_v23, %v2748_v11 }
 0x330   :  { %v4211_v13 = vpack.c.bf16 %v3046_v58, %v3046_v58  ;;  %v2900_v16 = vadd.f32 %v6846_v23, %v2749_v22  ;;  %v2377_v1 = vpop.permute.xlu0 %2376 }
 0x331   :  { %v2379_v24 = vpop.permute.xlu1 %2378  ;;  %3766 = vst.msk [vmem:[%s7581_s3 + $0xc8] sm:$0xf] %vm3715_vm2, %v4210_v7  ;;  %v3043_v36 = vmax.f32 %v2899_v51, 0.0  ;;  %v2754_v38 = vmax.f32 %v6510_v15, %v2377_v1 }
 0x332   :  { %3767 = vst.msk [vmem:[%s7581_s3 + $0xcc] sm:$0xf] %vm3715_vm2, %v4211_v13  ;;  %v3044_v49 = vmax.f32 %v2900_v16, 0.0  ;;  %v2755_v41 = vmax.f32 %v8304_v63, %v2379_v24  ;;  %v8305_v13 = vld [vmem:[#allocation58_spill] sm:$0xff]  ;;  %v8306_v16 = vld [vmem:[#allocation171_spill] sm:$0xff] }
 0x333   :  { %v4208_v6 = vpack.c.bf16 %v3043_v36, %v3043_v36  ;;  %v2905_v58 = vadd.f32 %v6846_v23, %v2754_v38 }
 0x334   :  { %v4209_v62 = vpack.c.bf16 %v3044_v49, %v3044_v49  ;;  %v2906_v11 = vadd.f32 %v6846_v23, %v2755_v41  ;;  %v2373_v22 = vpop.permute.xlu0 %2372 }
 0x335   :  { %v2375_v28 = vpop.permute.xlu1 %2374  ;;  %3764 = vst.msk [vmem:[%s7581_s3 + $0xc0] sm:$0xf] %vm3715_vm2, %v4208_v6  ;;  %v3049_v15 = vmax.f32 %v2905_v58, 0.0  ;;  %v2752_v51 = vmax.f32 %v8305_v13, %v2373_v22  ;;  %v8307_v58 = vld [vmem:[#allocation62_spill] sm:$0xff] }
 0x336   :  { %3765 = vst.msk [vmem:[%s7581_s3 + $0xc4] sm:$0xf] %vm3715_vm2, %v4209_v62  ;;  %v3050_v7 = vmax.f32 %v2906_v11, 0.0  ;;  %v2753_v1 = vmax.f32 %v8306_v16, %v2375_v28 }
 0x337   :  { %v4214_v24 = vpack.c.bf16 %v3049_v15, %v3049_v15  ;;  %v2903_v49 = vadd.f32 %v6846_v23, %v2752_v51 }
 0x338   :  { %v4215_v36 = vpack.c.bf16 %v3050_v7, %v3050_v7  ;;  %v2904_v38 = vadd.f32 %v6846_v23, %v2753_v1  ;;  %v2385_v63 = vpop.permute.xlu0 %2384 }
 0x339   :  { %v2387_v41 = vpop.permute.xlu1 %2386  ;;  %3770 = vst.msk [vmem:[%s7581_s3 + $0xd8] sm:$0xf] %vm3715_vm2, %v4214_v24  ;;  %v3047_v6 = vmax.f32 %v2903_v49, 0.0  ;;  %v2758_v62 = vmax.f32 %v6558_v29, %v2385_v63 }
 0x33a   :  { %3771 = vst.msk [vmem:[%s7581_s3 + $0xdc] sm:$0xf] %vm3715_vm2, %v4215_v36  ;;  %v3048_v28 = vmax.f32 %v2904_v38, 0.0  ;;  %v2759_v11 = vmax.f32 %v8307_v58, %v2387_v41 }
 0x33b   :  { %v4212_v22 = vpack.c.bf16 %v3047_v6, %v3047_v6  ;;  %v2909_v7 = vadd.f32 %v6846_v23, %v2758_v62 }
 0x33c   :  { %v4213_v15 = vpack.c.bf16 %v3048_v28, %v3048_v28  ;;  %v2910_v13 = vadd.f32 %v6846_v23, %v2759_v11  ;;  %v2381_v51 = vpop.permute.xlu0 %2380 }
 0x33d   :  { %v2383_v16 = vpop.permute.xlu1 %2382  ;;  %3768 = vst.msk [vmem:[%s7581_s3 + $0xd0] sm:$0xf] %vm3715_vm2, %v4212_v22  ;;  %v3053_v29 = vmax.f32 %v2909_v7, 0.0  ;;  %v2756_v24 = vmax.f32 %v6582_v44, %v2381_v51 }
 0x33e   :  { %3769 = vst.msk [vmem:[%s7581_s3 + $0xd4] sm:$0xf] %vm3715_vm2, %v4213_v15  ;;  %v3054_v1 = vmax.f32 %v2910_v13, 0.0  ;;  %v2757_v36 = vmax.f32 %v6586_v12, %v2383_v16 }
 0x33f   :  { %v4218_v49 = vpack.c.bf16 %v3053_v29, %v3053_v29  ;;  %v2907_v63 = vadd.f32 %v6846_v23, %v2756_v24 }
 0x340   :  { %v4219_v38 = vpack.c.bf16 %v3054_v1, %v3054_v1  ;;  %v2908_v41 = vadd.f32 %v6846_v23, %v2757_v36  ;;  %v2393_v6 = vpop.permute.xlu0 %2392 }
 0x341   :  { %v2395_v28 = vpop.permute.xlu1 %2394  ;;  %3774 = vst.msk [vmem:[%s7581_s3 + $0xe8] sm:$0xf] %vm3715_vm2, %v4218_v49  ;;  %v3051_v44 = vmax.f32 %v2907_v63, 0.0  ;;  %v2762_v62 = vmax.f32 %v6606_v43, %v2393_v6 }
 0x342   :  { %3775 = vst.msk [vmem:[%s7581_s3 + $0xec] sm:$0xf] %vm3715_vm2, %v4219_v38  ;;  %v3052_v12 = vmax.f32 %v2908_v41, 0.0  ;;  %v2763_v58 = vmax.f32 %v6610_v57, %v2395_v28 }
 0x343   :  { %v4216_v11 = vpack.c.bf16 %v3051_v44, %v3051_v44  ;;  %v2913_v15 = vadd.f32 %v6846_v23, %v2762_v62 }
 0x344   :  { %v4217_v22 = vpack.c.bf16 %v3052_v12, %v3052_v12  ;;  %v2914_v7 = vadd.f32 %v6846_v23, %v2763_v58  ;;  %v2389_v13 = vpop.permute.xlu0 %2388 }
 0x345   :  { %v2391_v51 = vpop.permute.xlu1 %2390  ;;  %3772 = vst.msk [vmem:[%s7581_s3 + $0xe0] sm:$0xf] %vm3715_vm2, %v4216_v11  ;;  %v3057_v43 = vmax.f32 %v2913_v15, 0.0  ;;  %v2760_v16 = vmax.f32 %v6630_v35, %v2389_v13 }
 0x346   :  { %3773 = vst.msk [vmem:[%s7581_s3 + $0xe4] sm:$0xf] %vm3715_vm2, %v4217_v22  ;;  %v3058_v57 = vmax.f32 %v2914_v7, 0.0  ;;  %v2761_v29 = vmax.f32 %v6634_v17, %v2391_v51 }
 0x347   :  { %v4222_v1 = vpack.c.bf16 %v3057_v43, %v3057_v43  ;;  %v2911_v36 = vadd.f32 %v6846_v23, %v2760_v16 }
 0x348   :  { %v4223_v24 = vpack.c.bf16 %v3058_v57, %v3058_v57  ;;  %v2912_v49 = vadd.f32 %v6846_v23, %v2761_v29  ;;  %v2401_v38 = vpop.permute.xlu0 %2400 }
 0x349   :  { %v2403_v63 = vpop.permute.xlu1 %2402  ;;  %3778 = vst.msk [vmem:[%s7581_s3 + $0xf8] sm:$0xf] %vm3715_vm2, %v4222_v1  ;;  %v3055_v35 = vmax.f32 %v2911_v36, 0.0  ;;  %v2766_v41 = vmax.f32 %v6654_v53, %v2401_v38 }
 0x34a   :  { %3779 = vst.msk [vmem:[%s7581_s3 + $0xfc] sm:$0xf] %vm3715_vm2, %v4223_v24  ;;  %v3056_v17 = vmax.f32 %v2912_v49, 0.0  ;;  %v2767_v6 = vmax.f32 %v6658_v9, %v2403_v63 }
 0x34b   :  { %v4220_v28 = vpack.c.bf16 %v3055_v35, %v3055_v35  ;;  %v2917_v12 = vadd.f32 %v6846_v23, %v2766_v41 }
 0x34c   :  { %v4221_v44 = vpack.c.bf16 %v3056_v17, %v3056_v17  ;;  %v2918_v62 = vadd.f32 %v6846_v23, %v2767_v6  ;;  %v2397_v58 = vpop.permute.xlu0 %2396 }
 0x34d   :  { %v2399_v11 = vpop.permute.xlu1 %2398  ;;  %3776 = vst.msk [vmem:[%s7581_s3 + $0xf0] sm:$0xf] %vm3715_vm2, %v4220_v28  ;;  %v3061_v53 = vmax.f32 %v2917_v12, 0.0  ;;  %v2764_v22 = vmax.f32 %v6678_v54, %v2397_v58 }
 0x34e   :  { %3777 = vst.msk [vmem:[%s7581_s3 + $0xf4] sm:$0xf] %vm3715_vm2, %v4221_v44  ;;  %v3062_v9 = vmax.f32 %v2918_v62, 0.0  ;;  %v2765_v15 = vmax.f32 %v6682_v46, %v2399_v11 }
 0x34f   :  { %v4226_v7 = vpack.c.bf16 %v3061_v53, %v3061_v53  ;;  %v2915_v51 = vadd.f32 %v6846_v23, %v2764_v22 }
 0x350   :  { %v4227_v13 = vpack.c.bf16 %v3062_v9, %v3062_v9  ;;  %v2916_v43 = vadd.f32 %v6846_v23, %v2765_v15  ;;  %v2409_v57 = vpop.permute.xlu0 %2408 }
 0x351   :  { %v2483_v16 = vpop.permute.xlu1 %2482  ;;  %3782 = vst.msk [vmem:[%s7581_s3 + $0x108] sm:$0xf] %vm3715_vm2, %v4226_v7  ;;  %v3059_v54 = vmax.f32 %v2915_v51, 0.0  ;;  %v2770_v29 = vmax.f32 %v6706_v18, %v2409_v57 }
 0x352   :  { %3783 = vst.msk [vmem:[%s7581_s3 + $0x10c] sm:$0xf] %vm3715_vm2, %v4227_v13  ;;  %v3060_v46 = vmax.f32 %v2916_v43, 0.0  ;;  %v2807_v1 = vmax.f32 %v6702_v8, %v2483_v16 }
 0x353   :  { %v4224_v24 = vpack.c.bf16 %v3059_v54, %v3059_v54  ;;  %v2921_v49 = vadd.f32 %v6846_v23, %v2770_v29 }
 0x354   :  { %v4225_v36 = vpack.c.bf16 %v3060_v46, %v3060_v46  ;;  %v2958_v38 = vadd.f32 %v6846_v23, %v2807_v1  ;;  %v2405_v63 = vpop.permute.xlu0 %2404 }
 0x355   :  { %v2411_v35 = vpop.permute.xlu1 %2410  ;;  %3780 = vst.msk [vmem:[%s7581_s3 + $0x100] sm:$0xf] %vm3715_vm2, %v4224_v24  ;;  %v3065_v18 = vmax.f32 %v2921_v49, 0.0  ;;  %v2768_v17 = vmax.f32 %v6730_v4, %v2405_v63 }
 0x356   :  { %3781 = vst.msk [vmem:[%s7581_s3 + $0x104] sm:$0xf] %vm3715_vm2, %v4225_v36  ;;  %v3102_v8 = vmax.f32 %v2958_v38, 0.0  ;;  %v2771_v41 = vmax.f32 %v6726_v0, %v2411_v35 }
 0x357   :  { %v4230_v6 = vpack.c.bf16 %v3065_v18, %v3065_v18  ;;  %v2919_v44 = vadd.f32 %v6846_v23, %v2768_v17 }
 0x358   :  { %v4267_v28 = vpack.c.bf16 %v3102_v8, %v3102_v8  ;;  %v2922_v12 = vadd.f32 %v6846_v23, %v2771_v41  ;;  %v2481_v62 = vpop.permute.xlu0 %2480 }
 0x359   :  { %v2407_v58 = vpop.permute.xlu1 %2406  ;;  %3786 = vst.msk [vmem:[%s7581_s3 + $0x118] sm:$0xf] %vm3715_vm2, %v4230_v6  ;;  %v3063_v4 = vmax.f32 %v2919_v44, 0.0  ;;  %v2806_v11 = vmax.f32 %v6750_v25, %v2481_v62 }
 0x35a   :  { %3823 = vst.msk [vmem:[%s7581_s3 + $0x1ac] sm:$0xf] %vm3715_vm2, %v4267_v28  ;;  %v3066_v0 = vmax.f32 %v2922_v12, 0.0  ;;  %v2769_v53 = vmax.f32 %v6754_v34, %v2407_v58 }
 0x35b   :  { %v4228_v9 = vpack.c.bf16 %v3063_v4, %v3063_v4  ;;  %v2957_v15 = vadd.f32 %v6846_v23, %v2806_v11 }
 0x35c   :  { %v4231_v22 = vpack.c.bf16 %v3066_v0, %v3066_v0  ;;  %v2920_v7 = vadd.f32 %v6846_v23, %v2769_v53  ;;  %v2485_v13 = vpop.permute.xlu0 %2484 }
 0x35d   :  { %v2487_v51 = vpop.permute.xlu1 %2486  ;;  %3784 = vst.msk [vmem:[%s7581_s3 + $0x110] sm:$0xf] %vm3715_vm2, %v4228_v9  ;;  %v3101_v25 = vmax.f32 %v2957_v15, 0.0  ;;  %v2808_v43 = vmax.f32 %v6774_v56, %v2485_v13 }
 0x35e   :  { %3787 = vst.msk [vmem:[%s7581_s3 + $0x11c] sm:$0xf] %vm3715_vm2, %v4231_v22  ;;  %v3064_v34 = vmax.f32 %v2920_v7, 0.0  ;;  %v2809_v57 = vmax.f32 %v6778_v2, %v2487_v51 }
 0x35f   :  { %v4266_v16 = vpack.c.bf16 %v3101_v25, %v3101_v25  ;;  %v2959_v46 = vadd.f32 %v6846_v23, %v2808_v43 }
 0x360   :  { %v4229_v54 = vpack.c.bf16 %v3064_v34, %v3064_v34  ;;  %v2960_v29 = vadd.f32 %v6846_v23, %v2809_v57  ;;  %v2489_v1 = vpop.permute.xlu0 %2488 }
 0x361   :  { %v2491_v24 = vpop.permute.xlu1 %2490  ;;  %3822 = vst.msk [vmem:[%s7581_s3 + $0x1a8] sm:$0xf] %vm3715_vm2, %v4266_v16  ;;  %v3103_v56 = vmax.f32 %v2959_v46, 0.0  ;;  %v2810_v36 = vmax.f32 %v6798_v50, %v2489_v1 }
 0x362   :  { %3785 = vst.msk [vmem:[%s7581_s3 + $0x114] sm:$0xf] %vm3715_vm2, %v4229_v54  ;;  %v3104_v2 = vmax.f32 %v2960_v29, 0.0  ;;  %v2811_v49 = vmax.f32 %v6802_v27, %v2491_v24 }
 0x363   :  { %v4268_v38 = vpack.c.bf16 %v3103_v56, %v3103_v56  ;;  %v2961_v35 = vadd.f32 %v6846_v23, %v2810_v36 }
 0x364   :  { %v4269_v63 = vpack.c.bf16 %v3104_v2, %v3104_v2  ;;  %v2962_v18 = vadd.f32 %v6846_v23, %v2811_v49  ;;  %v2493_v8 = vpop.permute.xlu0 %2492 }
 0x365   :  { %v2495_v17 = vpop.permute.xlu1 %2494  ;;  %3824 = vst.msk [vmem:[%s7581_s3 + $0x1b0] sm:$0xf] %vm3715_vm2, %v4268_v38  ;;  %v3105_v50 = vmax.f32 %v2961_v35, 0.0  ;;  %v2812_v41 = vmax.f32 %v6822_v30, %v2493_v8 }
 0x366   :  { %3825 = vst.msk [vmem:[%s7581_s3 + $0x1b4] sm:$0xf] %vm3715_vm2, %v4269_v63  ;;  %v3106_v27 = vmax.f32 %v2962_v18, 0.0  ;;  %v2813_v6 = vmax.f32 %v6826_v31, %v2495_v17 }
 0x367   :  { %v4270_v28 = vpack.c.bf16 %v3105_v50, %v3105_v50  ;;  %v2963_v12 = vadd.f32 %v6846_v23, %v2812_v41 }
 0x368   :  { %v4271_v44 = vpack.c.bf16 %v3106_v27, %v3106_v27  ;;  %v2964_v62 = vadd.f32 %v6846_v23, %v2813_v6  ;;  %v2497_v58 = vpop.permute.xlu0 %2496 }
 0x369   :  { %v2499_v4 = vpop.permute.xlu1 %2498  ;;  %3826 = vst.msk [vmem:[%s7581_s3 + $0x1b8] sm:$0xf] %vm3715_vm2, %v4270_v28  ;;  %v3107_v30 = vmax.f32 %v2963_v12, 0.0  ;;  %v2814_v0 = vmax.f32 %v6851_v52, %v2497_v58 }
 0x36a   :  { %3827 = vst.msk [vmem:[%s7581_s3 + $0x1bc] sm:$0xf] %vm3715_vm2, %v4271_v44  ;;  %v3108_v31 = vmax.f32 %v2964_v62, 0.0  ;;  %v2815_v11 = vmax.f32 %v6855_v48, %v2499_v4 }
 0x36b   :  { %v4272_v53 = vpack.c.bf16 %v3107_v30, %v3107_v30  ;;  %v2965_v22 = vadd.f32 %v6846_v23, %v2814_v0 }
 0x36c   :  { %v4273_v9 = vpack.c.bf16 %v3108_v31, %v3108_v31  ;;  %v2966_v15 = vadd.f32 %v6846_v23, %v2815_v11  ;;  %v2501_v7 = vpop.permute.xlu0 %2500 }
 0x36d   :  { %v2503_v13 = vpop.permute.xlu1 %2502  ;;  %3828 = vst.msk [vmem:[%s7581_s3 + $0x1c0] sm:$0xf] %vm3715_vm2, %v4272_v53  ;;  %v3109_v52 = vmax.f32 %v2965_v22, 0.0  ;;  %v2816_v51 = vmax.f32 %v6875_v60, %v2501_v7 }
 0x36e   :  { %3829 = vst.msk [vmem:[%s7581_s3 + $0x1c4] sm:$0xf] %vm3715_vm2, %v4273_v9  ;;  %v3110_v48 = vmax.f32 %v2966_v15, 0.0  ;;  %v2817_v25 = vmax.f32 %v6879_v55, %v2503_v13 }
 0x36f   :  { %v4274_v34 = vpack.c.bf16 %v3109_v52, %v3109_v52  ;;  %v2967_v57 = vadd.f32 %v6846_v23, %v2816_v51 }
 0x370   :  { %v4275_v43 = vpack.c.bf16 %v3110_v48, %v3110_v48  ;;  %v2968_v16 = vadd.f32 %v6846_v23, %v2817_v25  ;;  %v2505_v54 = vpop.permute.xlu0 %2504 }
 0x371   :  { %v2507_v46 = vpop.permute.xlu1 %2506  ;;  %3830 = vst.msk [vmem:[%s7581_s3 + $0x1c8] sm:$0xf] %vm3715_vm2, %v4274_v34  ;;  %v3111_v60 = vmax.f32 %v2967_v57, 0.0  ;;  %v2818_v29 = vmax.f32 %v6899_v20, %v2505_v54 }
 0x372   :  { %3831 = vst.msk [vmem:[%s7581_s3 + $0x1cc] sm:$0xf] %vm3715_vm2, %v4275_v43  ;;  %v3112_v55 = vmax.f32 %v2968_v16, 0.0  ;;  %v2819_v1 = vmax.f32 %v6903_v14, %v2507_v46 }
 0x373   :  { %v4276_v24 = vpack.c.bf16 %v3111_v60, %v3111_v60  ;;  %v2969_v2 = vadd.f32 %v6846_v23, %v2818_v29 }
 0x374   :  { %v4277_v56 = vpack.c.bf16 %v3112_v55, %v3112_v55  ;;  %v2970_v36 = vadd.f32 %v6846_v23, %v2819_v1  ;;  %v2509_v49 = vpop.permute.xlu0 %2508 }
 0x375   :  { %v2511_v38 = vpop.permute.xlu1 %2510  ;;  %3832 = vst.msk [vmem:[%s7581_s3 + $0x1d0] sm:$0xf] %vm3715_vm2, %v4276_v24  ;;  %v3113_v20 = vmax.f32 %v2969_v2, 0.0  ;;  %v2820_v63 = vmax.f32 %v6923_v40, %v2509_v49  ;;  %v7486_v49 = vld [vmem:[%s7580_s2] ss:$0 sm:$0xff] }
 0x376   :  { %3833 = vst.msk [vmem:[%s7581_s3 + $0x1d4] sm:$0xf] %vm3715_vm2, %v4277_v56  ;;  %v3114_v14 = vmax.f32 %v2970_v36, 0.0  ;;  %v2821_v35 = vmax.f32 %v6927_v37, %v2511_v38 }
 0x377   :  { %v4278_v18 = vpack.c.bf16 %v3113_v20, %v3113_v20  ;;  %v2971_v17 = vadd.f32 %v6846_v23, %v2820_v63 }
 0x378   :  { %v4279_v8 = vpack.c.bf16 %v3114_v14, %v3114_v14  ;;  %v2972_v50 = vadd.f32 %v6846_v23, %v2821_v35  ;;  %v2513_v27 = vpop.permute.xlu0 %2512 }
 0x379   :  { %v2515_v41 = vpop.permute.xlu1 %2514  ;;  %3834 = vst.msk [vmem:[%s7581_s3 + $0x1d8] sm:$0xf] %vm3715_vm2, %v4278_v18  ;;  %v3115_v40 = vmax.f32 %v2971_v17, 0.0  ;;  %v2822_v6 = vmax.f32 %v6947_v42, %v2513_v27  ;;  %v8308_v18 = vld [vmem:[#allocation172_spill] sm:$0xff] }
 0x37a   :  { %3835 = vst.msk [vmem:[%s7581_s3 + $0x1dc] sm:$0xf] %vm3715_vm2, %v4279_v8  ;;  %v3116_v37 = vmax.f32 %v2972_v50, 0.0  ;;  %v2823_v28 = vmax.f32 %v6951_v45, %v2515_v41 }
 0x37b   :  { %v4280_v44 = vpack.c.bf16 %v3115_v40, %v3115_v40  ;;  %v2973_v62 = vadd.f32 %v6846_v23, %v2822_v6 }
 0x37c   :  { %v4281_v12 = vpack.c.bf16 %v3116_v37, %v3116_v37  ;;  %v2974_v58 = vadd.f32 %v6846_v23, %v2823_v28  ;;  %v2517_v4 = vpop.permute.xlu0 %2516  ;;  %v8309_v28 = vld [vmem:[#allocation59_spill] sm:$0xff] }
 0x37d   :  { %v2519_v30 = vpop.permute.xlu1 %2518  ;;  %3836 = vst.msk [vmem:[%s7581_s3 + $0x1e0] sm:$0xf] %vm3715_vm2, %v4280_v44  ;;  %v3117_v42 = vmax.f32 %v2973_v62, 0.0  ;;  %v2824_v31 = vmax.f32 %v6971_v59, %v2517_v4 }
 0x37e   :  { %3837 = vst.msk [vmem:[%s7581_s3 + $0x1e4] sm:$0xf] %vm3715_vm2, %v4281_v12  ;;  %v3118_v45 = vmax.f32 %v2974_v58, 0.0  ;;  %v2825_v0 = vmax.f32 %v6975_v10, %v2519_v30  ;;  %v8310_v12 = vld [vmem:[#allocation173_spill] sm:$0xff] }
 0x37f   :  { %v4282_v11 = vpack.c.bf16 %v3117_v42, %v3117_v42  ;;  %v2975_v9 = vadd.f32 %v6846_v23, %v2824_v31 }
 0x380   :  { %v4283_v53 = vpack.c.bf16 %v3118_v45, %v3118_v45  ;;  %v2976_v22 = vadd.f32 %v6846_v23, %v2825_v0  ;;  %v2521_v15 = vpop.permute.xlu0 %2520 }
 0x381   :  { %v2523_v7 = vpop.permute.xlu1 %2522  ;;  %3838 = vst.msk [vmem:[%s7581_s3 + $0x1e8] sm:$0xf] %vm3715_vm2, %v4282_v11  ;;  %v3119_v59 = vmax.f32 %v2975_v9, 0.0  ;;  %v2826_v13 = vmax.f32 %v6995_v39, %v2521_v15 }
 0x382   :  { %3839 = vst.msk [vmem:[%s7581_s3 + $0x1ec] sm:$0xf] %vm3715_vm2, %v4283_v53  ;;  %v3120_v10 = vmax.f32 %v2976_v22, 0.0  ;;  %v2827_v52 = vmax.f32 %v6999_v3, %v2523_v7  ;;  %v8311_v53 = vld [vmem:[#allocation63_spill] sm:$0xff]  ;;  %v8312_v22 = vld [vmem:[#allocation174_spill] sm:$0xff] }
 0x383   :  { %v4284_v48 = vpack.c.bf16 %v3119_v59, %v3119_v59  ;;  %v2977_v25 = vadd.f32 %v6846_v23, %v2826_v13 }
 0x384   :  { %v4285_v51 = vpack.c.bf16 %v3120_v10, %v3120_v10  ;;  %v2978_v34 = vadd.f32 %v6846_v23, %v2827_v52  ;;  %v2525_v43 = vpop.permute.xlu0 %2524 }
 0x385   :  { %v2527_v57 = vpop.permute.xlu1 %2526  ;;  %3840 = vst.msk [vmem:[%s7581_s3 + $0x1f0] sm:$0xf] %vm3715_vm2, %v4284_v48  ;;  %v3121_v39 = vmax.f32 %v2977_v25, 0.0  ;;  %v2828_v16 = vmax.f32 %v7019_v33, %v2525_v43 }
 0x386   :  { %3841 = vst.msk [vmem:[%s7581_s3 + $0x1f4] sm:$0xf] %vm3715_vm2, %v4285_v51  ;;  %v3122_v3 = vmax.f32 %v2978_v34, 0.0  ;;  %v2829_v54 = vmax.f32 %v7023_v21, %v2527_v57  ;;  %v8313_v34 = vld [vmem:[#allocation60_spill] sm:$0xff]  ;;  %v8314_v57 = vld [vmem:[#allocation175_spill] sm:$0xff] }
 0x387   :  { %v4286_v46 = vpack.c.bf16 %v3121_v39, %v3121_v39  ;;  %v2979_v55 = vadd.f32 %v6846_v23, %v2828_v16 }
 0x388   :  { %v4287_v60 = vpack.c.bf16 %v3122_v3, %v3122_v3  ;;  %v2980_v29 = vadd.f32 %v6846_v23, %v2829_v54  ;;  %v2529_v1 = vpop.permute.xlu0 %2528 }
 0x389   :  { %v2531_v24 = vpop.permute.xlu1 %2530  ;;  %3842 = vst.msk [vmem:[%s7581_s3 + $0x1f8] sm:$0xf] %vm3715_vm2, %v4286_v46  ;;  %v3123_v33 = vmax.f32 %v2979_v55, 0.0  ;;  %v2830_v56 = vmax.f32 %v7043_v61, %v2529_v1 }
 0x38a   :  { %3843 = vst.msk [vmem:[%s7581_s3 + $0x1fc] sm:$0xf] %vm3715_vm2, %v4287_v60  ;;  %v3124_v21 = vmax.f32 %v2980_v29, 0.0  ;;  %v2831_v2 = vmax.f32 %v7047_v19, %v2531_v24 }
 0x38b   :  { %v4288_v36 = vpack.c.bf16 %v3123_v33, %v3123_v33  ;;  %v2981_v38 = vadd.f32 %v7486_v49, %v2830_v56 }
 0x38c   :  { %v4289_v23 = vpack.c.bf16 %v3124_v21, %v3124_v21  ;;  %v2982_v20 = vadd.f32 %v7486_v49, %v2831_v2  ;;  %v2533_v14 = vpop.permute.xlu0 %2532 }
 0x38d   :  { %v2535_v63 = vpop.permute.xlu1 %2534  ;;  %3844 = vst.msk [vmem:[%s7581_s3 + $0x200] sm:$0xf] %vm3715_vm2, %v4288_v36  ;;  %v3125_v61 = vmax.f32 %v2981_v38, 0.0  ;;  %v2832_v35 = vmax.f32 %v7067_v26, %v2533_v14  ;;  %v8315_v14 = vld [vmem:[#allocation64_spill] sm:$0xff] }
 0x38e   :  { %3845 = vst.msk [vmem:[%s7581_s3 + $0x204] sm:$0xf] %vm3715_vm2, %v4289_v23  ;;  %v3126_v19 = vmax.f32 %v2982_v20, 0.0  ;;  %v2833_v8 = vmax.f32 %v8308_v18, %v2535_v63 }
 0x38f   :  { %v4290_v17 = vpack.c.bf16 %v3125_v61, %v3125_v61  ;;  %v2983_v27 = vadd.f32 %v7486_v49, %v2832_v35 }
 0x390   :  { %v4291_v50 = vpack.c.bf16 %v3126_v19, %v3126_v19  ;;  %v2984_v41 = vadd.f32 %v7486_v49, %v2833_v8  ;;  %v2537_v40 = vpop.permute.xlu0 %2536 }
 0x391   :  { %v2539_v37 = vpop.permute.xlu1 %2538  ;;  %3846 = vst.msk [vmem:[%s7581_s3 + $0x208] sm:$0xf] %vm3715_vm2, %v4290_v17  ;;  %v3127_v26 = vmax.f32 %v2983_v27, 0.0  ;;  %v2834_v44 = vmax.f32 %v8309_v28, %v2537_v40 }
 0x392   :  { %3847 = vst.msk [vmem:[%s7581_s3 + $0x20c] sm:$0xf] %vm3715_vm2, %v4291_v50  ;;  %v3128_v6 = vmax.f32 %v2984_v41, 0.0  ;;  %v2835_v62 = vmax.f32 %v8310_v12, %v2539_v37 }
 0x393   :  { %v4292_v58 = vpack.c.bf16 %v3127_v26, %v3127_v26  ;;  %v2985_v30 = vadd.f32 %v7486_v49, %v2834_v44 }
 0x394   :  { %v4293_v4 = vpack.c.bf16 %v3128_v6, %v3128_v6  ;;  %v2986_v42 = vadd.f32 %v7486_v49, %v2835_v62  ;;  %v2541_v45 = vpop.permute.xlu0 %2540 }
 0x395   :  { %v2543_v31 = vpop.permute.xlu1 %2542  ;;  %3848 = vst.msk [vmem:[%s7581_s3 + $0x210] sm:$0xf] %vm3715_vm2, %v4292_v58  ;;  %v3129_v0 = vmax.f32 %v2985_v30, 0.0  ;;  %v2836_v9 = vmax.f32 %v8311_v53, %v2541_v45 }
 0x396   :  { %3849 = vst.msk [vmem:[%s7581_s3 + $0x214] sm:$0xf] %vm3715_vm2, %v4293_v4  ;;  %v3130_v11 = vmax.f32 %v2986_v42, 0.0  ;;  %v2837_v15 = vmax.f32 %v8312_v22, %v2543_v31 }
 0x397   :  { %v4294_v7 = vpack.c.bf16 %v3129_v0, %v3129_v0  ;;  %v2987_v10 = vadd.f32 %v7486_v49, %v2836_v9 }
 0x398   :  { %v4295_v59 = vpack.c.bf16 %v3130_v11, %v3130_v11  ;;  %v2988_v13 = vadd.f32 %v7486_v49, %v2837_v15  ;;  %v2545_v52 = vpop.permute.xlu0 %2544 }
 0x399   :  { %v2547_v48 = vpop.permute.xlu1 %2546  ;;  %3850 = vst.msk [vmem:[%s7581_s3 + $0x218] sm:$0xf] %vm3715_vm2, %v4294_v7  ;;  %v3131_v51 = vmax.f32 %v2987_v10, 0.0  ;;  %v2838_v43 = vmax.f32 %v8313_v34, %v2545_v52 }
 0x39a   :  { %3851 = vst.msk [vmem:[%s7581_s3 + $0x21c] sm:$0xf] %vm3715_vm2, %v4295_v59  ;;  %v3132_v25 = vmax.f32 %v2988_v13, 0.0  ;;  %v2839_v39 = vmax.f32 %v8314_v57, %v2547_v48 }
 0x39b   :  { %v4296_v3 = vpack.c.bf16 %v3131_v51, %v3131_v51  ;;  %v2989_v54 = vadd.f32 %v7486_v49, %v2838_v43 }
 0x39c   :  { %v4297_v16 = vpack.c.bf16 %v3132_v25, %v3132_v25  ;;  %v2990_v46 = vadd.f32 %v7486_v49, %v2839_v39  ;;  %v2549_v60 = vpop.permute.xlu0 %2548 }
 0x39d   :  { %v2551_v55 = vpop.permute.xlu1 %2550  ;;  %3852 = vst.msk [vmem:[%s7581_s3 + $0x220] sm:$0xf] %vm3715_vm2, %v4296_v3  ;;  %v3133_v29 = vmax.f32 %v2989_v54, 0.0  ;;  %v2840_v24 = vmax.f32 %v7163_v5, %v2549_v60 }
 0x39e   :  { %3853 = vst.msk [vmem:[%s7581_s3 + $0x224] sm:$0xf] %vm3715_vm2, %v4297_v16  ;;  %v3134_v1 = vmax.f32 %v2990_v46, 0.0  ;;  %v2841_v33 = vmax.f32 %v7167_v47, %v2551_v55 }
 0x39f   :  { %v4298_v21 = vpack.c.bf16 %v3133_v29, %v3133_v29  ;;  %v2991_v2 = vadd.f32 %v7486_v49, %v2840_v24 }
 0x3a0   :  { %v4299_v56 = vpack.c.bf16 %v3134_v1, %v3134_v1  ;;  %v2992_v36 = vadd.f32 %v7486_v49, %v2841_v33  ;;  %v2553_v23 = vpop.permute.xlu0 %2552 }
 0x3a1   :  { %v2555_v38 = vpop.permute.xlu1 %2554  ;;  %3854 = vst.msk [vmem:[%s7581_s3 + $0x228] sm:$0xf] %vm3715_vm2, %v4298_v21  ;;  %v3135_v5 = vmax.f32 %v2991_v2, 0.0  ;;  %v2842_v20 = vmax.f32 %v7187_v32, %v2553_v23 }
 0x3a2   :  { %3855 = vst.msk [vmem:[%s7581_s3 + $0x22c] sm:$0xf] %vm3715_vm2, %v4299_v56  ;;  %v3136_v47 = vmax.f32 %v2992_v36, 0.0  ;;  %v2843_v63 = vmax.f32 %v8315_v14, %v2555_v38 }
 0x3a3   :  { %v4300_v61 = vpack.c.bf16 %v3135_v5, %v3135_v5  ;;  %v2993_v35 = vadd.f32 %v7486_v49, %v2842_v20 }
 0x3a4   :  { %v4301_v19 = vpack.c.bf16 %v3136_v47, %v3136_v47  ;;  %v2994_v18 = vadd.f32 %v7486_v49, %v2843_v63 }
 0x3a5   :  { %3856 = vst.msk [vmem:[%s7581_s3 + $0x230] sm:$0xf] %vm3715_vm2, %v4300_v61  ;;  %v3137_v8 = vmax.f32 %v2993_v35, 0.0 }
 0x3a6   :  { %3857 = vst.msk [vmem:[%s7581_s3 + $0x234] sm:$0xf] %vm3715_vm2, %v4301_v19  ;;  %v3138_v32 = vmax.f32 %v2994_v18, 0.0 }
 0x3a7   :  { %v4302_v17 = vpack.c.bf16 %v3137_v8, %v3137_v8 }
 0x3a8   :  { %v4303_v50 = vpack.c.bf16 %v3138_v32, %v3138_v32 }
 0x3a9   :  { %3858 = vst.msk [vmem:[%s7581_s3 + $0x238] sm:$0xf] %vm3715_vm2, %v4302_v17 }
 0x3aa   :  { %3859 = vst.msk [vmem:[%s7581_s3 + $0x23c] sm:$0xf] %vm3715_vm2, %v4303_v50 }

// kernel: cnn_forward.6
= control target key start
LH: loop header
LB: loop body
LE: loop exit
PB: predicated region body
PF: predicated region fallthrough
CT: control target
= control target key end

     0   :  { %s5123_s9 = smov 32   ;;  %vm3564_vm0 = vcmask 261120   ;;  %vm3896_vm1 = vcmask 388096   ;;  %s7051_s1 = inlined_call_operand.vmem [shape: bf16[1152,192], index: 1, kind: input, shape index: {}]   ;;  %s7052_s0 = inlined_call_operand.vmem [shape: bf16[288,1152], index: 0, kind: input, shape index: {}]   ;;  %s7053_s2 = inlined_call_operand.vmem [shape: f32[1,48], index: 2, kind: input, shape index: {}]   ;;  %s7054_s3 = inlined_call_operand.vmem [shape: bf16[288,48], index: 3, kind: output, shape index: {}]  }
   0x1   :  { %v4639_v0 = vld [vmem:[%s7051_s1 + $0x4] ss:$8 sps:$4 sm:$0xff]   ;;  %v4643_v2 = vld [vmem:[%s7051_s1] ss:$8 sps:$4 sm:$0xff]   ;;  %v4645_v4 = vld [vmem:[%s7051_s1 + $0x14] ss:$8 sps:$4 sm:$0xff]  }
   0x2   :  { %v4641_v1 = vld [vmem:[%s7051_s1 + $0x204] ss:$8 sps:$4 sm:$0xff]   ;;  %1887 = vmatprep.subr.bf16.mxu1 %v4639_v0  ;;  %v4644_v3 = vld [vmem:[%s7051_s1 + $0x200] ss:$8 sps:$4 sm:$0xff]   ;;  %v4647_v5 = vld [vmem:[%s7051_s1 + $0x214] ss:$8 sps:$4 sm:$0xff]  }
   0x3   :  { %2313 = vmatprep.subr.bf16.mxu0 %v4641_v1  ;;  %1888 = vmatpush1.bf16.msra.mxu1 %v4643_v2  ;;  %v4649_v6 = vld [vmem:[%s7051_s1 + $0x10] ss:$8 sps:$4 sm:$0xff]   ;;  %v4651_v8 = vld [vmem:[%s7051_s1 + $0x24] ss:$8 sps:$4 sm:$0xff]   ;;  %v4655_v10 = vld [vmem:[%s7051_s1 + $0x20] ss:$8 sps:$4 sm:$0xff]  }
   0x4   :  { %2314 = vmatpush1.bf16.msra.mxu0 %v4644_v3  ;;  %1889 = vmatprep.subr.bf16.mxu1 %v4645_v4  ;;  %v4650_v7 = vld [vmem:[%s7051_s1 + $0x210] ss:$8 sps:$4 sm:$0xff]   ;;  %v4653_v9 = vld [vmem:[%s7051_s1 + $0x224] ss:$8 sps:$4 sm:$0xff]   ;;  %v4656_v11 = vld [vmem:[%s7051_s1 + $0x220] ss:$8 sps:$4 sm:$0xff]  }
   0x5   :  { %2315 = vmatprep.subr.bf16.mxu0 %v4647_v5  ;;  %v4657_v12 = vld [vmem:[%s7051_s1 + $0x34] ss:$8 sps:$4 sm:$0xff]   ;;  %v4661_v14 = vld [vmem:[%s7051_s1 + $0x30] ss:$8 sps:$4 sm:$0xff]   ;;  %v4663_v16 = vld [vmem:[%s7051_s1 + $0x44] ss:$8 sps:$4 sm:$0xff]  }
   0x6   :  { %v4659_v13 = vld [vmem:[%s7051_s1 + $0x234] ss:$8 sps:$4 sm:$0xff]   ;;  %v4662_v15 = vld [vmem:[%s7051_s1 + $0x230] ss:$8 sps:$4 sm:$0xff]   ;;  %v4665_v17 = vld [vmem:[%s7051_s1 + $0x244] ss:$8 sps:$4 sm:$0xff]  }
   0x7   :  { %1890 = vmatpush1.bf16.msra.mxu1 %v4649_v6  ;;  %v4667_v18 = vld [vmem:[%s7051_s1 + $0x40] ss:$8 sps:$4 sm:$0xff]   ;;  %v4669_v20 = vld [vmem:[%s7051_s1 + $0x54] ss:$8 sps:$4 sm:$0xff]   ;;  %v4673_v22 = vld [vmem:[%s7051_s1 + $0x50] ss:$8 sps:$4 sm:$0xff]  }
   0x8   :  { %2316 = vmatpush1.bf16.msra.mxu0 %v4650_v7  ;;  %1891 = vmatprep.subr.bf16.mxu1 %v4651_v8  ;;  %v4668_v19 = vld [vmem:[%s7051_s1 + $0x240] ss:$8 sps:$4 sm:$0xff]   ;;  %v4671_v21 = vld [vmem:[%s7051_s1 + $0x254] ss:$8 sps:$4 sm:$0xff]   ;;  %v4674_v23 = vld [vmem:[%s7051_s1 + $0x250] ss:$8 sps:$4 sm:$0xff]  }
   0x9   :  { %2317 = vmatprep.subr.bf16.mxu0 %v4653_v9  ;;  %v4675_v24 = vld [vmem:[%s7051_s1 + $0x64] ss:$8 sps:$4 sm:$0xff]   ;;  %v4679_v26 = vld [vmem:[%s7051_s1 + $0x60] ss:$8 sps:$4 sm:$0xff]   ;;  %v4681_v28 = vld [vmem:[%s7051_s1 + $0x74] ss:$8 sps:$4 sm:$0xff]  }
   0xa   :  { %v4677_v25 = vld [vmem:[%s7051_s1 + $0x264] ss:$8 sps:$4 sm:$0xff]   ;;  %v4680_v27 = vld [vmem:[%s7051_s1 + $0x260] ss:$8 sps:$4 sm:$0xff]   ;;  %v4683_v29 = vld [vmem:[%s7051_s1 + $0x274] ss:$8 sps:$4 sm:$0xff]  }
   0xb   :  { %1892 = vmatpush1.bf16.msra.mxu1 %v4655_v10  ;;  %v4685_v30 = vld [vmem:[%s7051_s1 + $0x70] ss:$8 sps:$4 sm:$0xff]   ;;  %v4687_v32 = vld [vmem:[%s7051_s1 + $0x84] ss:$8 sps:$4 sm:$0xff]   ;;  %v4691_v34 = vld [vmem:[%s7051_s1 + $0x80] ss:$8 sps:$4 sm:$0xff]  }
   0xc   :  { %2318 = vmatpush1.bf16.msra.mxu0 %v4656_v11  ;;  %1893 = vmatprep.subr.bf16.mxu1 %v4657_v12  ;;  %v4686_v31 = vld [vmem:[%s7051_s1 + $0x270] ss:$8 sps:$4 sm:$0xff]   ;;  %v4689_v33 = vld [vmem:[%s7051_s1 + $0x284] ss:$8 sps:$4 sm:$0xff]   ;;  %v4692_v35 = vld [vmem:[%s7051_s1 + $0x280] ss:$8 sps:$4 sm:$0xff]  }
   0xd   :  { %2319 = vmatprep.subr.bf16.mxu0 %v4659_v13  ;;  %v4693_v36 = vld [vmem:[%s7051_s1 + $0x94] ss:$8 sps:$4 sm:$0xff]   ;;  %v4697_v38 = vld [vmem:[%s7051_s1 + $0x90] ss:$8 sps:$4 sm:$0xff]   ;;  %v4699_v40 = vld [vmem:[%s7051_s1 + $0xa4] ss:$8 sps:$4 sm:$0xff]  }
   0xe   :  { %v4695_v37 = vld [vmem:[%s7051_s1 + $0x294] ss:$8 sps:$4 sm:$0xff]   ;;  %v4698_v39 = vld [vmem:[%s7051_s1 + $0x290] ss:$8 sps:$4 sm:$0xff]   ;;  %v4701_v41 = vld [vmem:[%s7051_s1 + $0x2a4] ss:$8 sps:$4 sm:$0xff]  }
   0xf   :  { %1894 = vmatpush1.bf16.msra.mxu1 %v4661_v14  ;;  %v4703_v42 = vld [vmem:[%s7051_s1 + $0xa0] ss:$8 sps:$4 sm:$0xff]   ;;  %v4705_v44 = vld [vmem:[%s7051_s1 + $0xb4] ss:$8 sps:$4 sm:$0xff]   ;;  %v4709_v46 = vld [vmem:[%s7051_s1 + $0xb0] ss:$8 sps:$4 sm:$0xff]  }
  0x10   :  { %2320 = vmatpush1.bf16.msra.mxu0 %v4662_v15  ;;  %1895 = vmatprep.subr.bf16.mxu1 %v4663_v16  ;;  %v4704_v43 = vld [vmem:[%s7051_s1 + $0x2a0] ss:$8 sps:$4 sm:$0xff]   ;;  %v4707_v45 = vld [vmem:[%s7051_s1 + $0x2b4] ss:$8 sps:$4 sm:$0xff]   ;;  %v4710_v47 = vld [vmem:[%s7051_s1 + $0x2b0] ss:$8 sps:$4 sm:$0xff]  }
  0x11   :  { %2321 = vmatprep.subr.bf16.mxu0 %v4665_v17  ;;  %v4711_v48 = vld [vmem:[%s7051_s1 + $0xc4] ss:$8 sps:$4 sm:$0xff]   ;;  %v4740_v51 = vld [vmem:[%s7052_s0 + $0x14] ss:$36 sps:$4 sm:$0xff]   ;;  %v4715_v52 = vld [vmem:[%s7051_s1 + $0xc0] ss:$8 sps:$4 sm:$0xff]  }
  0x12   :  { %v4737_v49 = vld [vmem:[%s7052_s0 + $0x4] ss:$36 sps:$4 sm:$0xff]   ;;  %2345 = vmatprep.mubr.bf16.mxu0 %v4740_v51  ;;  %v4717_v54 = vld [vmem:[%s7051_s1 + $0xd4] ss:$8 sps:$4 sm:$0xff]   ;;  %v4721_v56 = vld [vmem:[%s7051_s1 + $0xd0] ss:$8 sps:$4 sm:$0xff]  }
  0x13   :  { %1896 = vmatpush1.bf16.msra.mxu1 %v4667_v18  ;;  %v4713_v50 = vld [vmem:[%s7051_s1 + $0x2c4] ss:$8 sps:$4 sm:$0xff]   ;;  %1919 = vmatprep.mubr.bf16.mxu1 %v4737_v49  ;;  %v4716_v53 = vld [vmem:[%s7051_s1 + $0x2c0] ss:$8 sps:$4 sm:$0xff]   ;;  %v4719_v55 = vld [vmem:[%s7051_s1 + $0x2d4] ss:$8 sps:$4 sm:$0xff]  }
  0x14   :  { %2322 = vmatpush1.bf16.msra.mxu0 %v4668_v19  ;;  %1897 = vmatprep.subr.bf16.mxu1 %v4669_v20  ;;  %v4722_v57 = vld [vmem:[%s7051_s1 + $0x2d0] ss:$8 sps:$4 sm:$0xff]   ;;  %v4723_v58 = vld [vmem:[%s7051_s1 + $0xe4] ss:$8 sps:$4 sm:$0xff]   ;;  %v4727_v60 = vld [vmem:[%s7051_s1 + $0xe0] ss:$8 sps:$4 sm:$0xff]  }
  0x15   :  { %2323 = vmatprep.subr.bf16.mxu0 %v4671_v21  ;;  %v4725_v59 = vld [vmem:[%s7051_s1 + $0x2e4] ss:$8 sps:$4 sm:$0xff]   ;;  %v4728_v61 = vld [vmem:[%s7051_s1 + $0x2e0] ss:$8 sps:$4 sm:$0xff]   ;;  %v4729_v62 = vld [vmem:[%s7051_s1 + $0xf4] ss:$8 sps:$4 sm:$0xff]  }
  0x16   :  { %v4731_v63 = vld [vmem:[%s7051_s1 + $0x2f4] ss:$8 sps:$4 sm:$0xff]   ;;  %v4733_v0 = vld [vmem:[%s7051_s1 + $0xf0] ss:$8 sps:$4 sm:$0xff]   ;;  %v4743_v2 = vld [vmem:[%s7051_s1 + $0x304] ss:$8 sps:$4 sm:$0xff]  }
  0x17   :  { %1898 = vmatpush1.bf16.msra.mxu1 %v4673_v22  ;;  %v4734_v1 = vld [vmem:[%s7051_s1 + $0x2f0] ss:$8 sps:$4 sm:$0xff]   ;;  %v4746_v3 = vld [vmem:[%s7051_s1 + $0x104] ss:$8 sps:$4 sm:$0xff]   ;;  %v4741_v6 = vld [vmem:[%s7051_s1 + $0x300] ss:$8 sps:$4 sm:$0xff]  }
  0x18   :  { %2324 = vmatpush1.bf16.msra.mxu0 %v4674_v23  ;;  %1899 = vmatprep.subr.bf16.mxu1 %v4675_v24  ;;  %v4735_v4 = vld [vmem:[%s7052_s0] ss:$36 sps:$4 sm:$0xff]   ;;  %v4738_v5 = vld [vmem:[%s7052_s0 + $0x10] ss:$36 sps:$4 sm:$0xff]   ;;  %v4754_v16 = vld [vmem:[%s7052_s0 + $0x48] ss:$36 sps:$4 sm:$0xff]  }
  0x19   :  { %2325 = vmatprep.subr.bf16.mxu0 %v4677_v25  ;;  %v4744_v7 = vld [vmem:[%s7051_s1 + $0x100] ss:$8 sps:$4 sm:$0xff]   ;;  %v4749_v8 = vld [vmem:[%s7051_s1 + $0x314] ss:$8 sps:$4 sm:$0xff]   ;;  %v4750_v9 = vld [vmem:[%s7052_s0 + $0x4c] ss:$36 sps:$4 sm:$0xff]  }
  0x1a   :  { %v4752_v10 = vld [vmem:[%s7052_s0 + $0x5c] ss:$36 sps:$4 sm:$0xff]   ;;  %v4747_v12 = vld [vmem:[%s7051_s1 + $0x310] ss:$8 sps:$4 sm:$0xff]   ;;  %v4758_v13 = vld [vmem:[%s7051_s1 + $0x324] ss:$8 sps:$4 sm:$0xff]  }
  0x1b   :  { %1900 = vmatpush1.bf16.msra.mxu1 %v4679_v26  ;;  %v4761_v11 = vld [vmem:[%s7051_s1 + $0x114] ss:$8 sps:$4 sm:$0xff]   ;;  %v4759_v14 = vld [vmem:[%s7051_s1 + $0x110] ss:$8 sps:$4 sm:$0xff]   ;;  %v4776_v15 = vld [vmem:[%s7051_s1 + $0x124] ss:$8 sps:$4 sm:$0xff]  }
  0x1c   :  { %2326 = vmatpush1.bf16.msra.mxu0 %v4680_v27  ;;  %1901 = vmatprep.subr.bf16.mxu1 %v4681_v28  ;;  %v4755_v17 = vld [vmem:[%s7052_s0 + $0x58] ss:$36 sps:$4 sm:$0xff]   ;;  %v4756_v18 = vld [vmem:[%s7051_s1 + $0x320] ss:$8 sps:$4 sm:$0xff]   ;;  %v4769_v25 = vld [vmem:[%s7052_s0 + $0x90] ss:$36 sps:$4 sm:$0xff]  }
  0x1d   :  { %2327 = vmatprep.subr.bf16.mxu0 %v4683_v29  ;;  %v4764_v19 = vld [vmem:[%s7051_s1 + $0x334] ss:$8 sps:$4 sm:$0xff]   ;;  %v4767_v21 = vld [vmem:[%s7052_s0 + $0xa4] ss:$36 sps:$4 sm:$0xff]   ;;  %v4762_v24 = vld [vmem:[%s7051_s1 + $0x330] ss:$8 sps:$4 sm:$0xff]  }
  0x1e   :  { %v4765_v20 = vld [vmem:[%s7052_s0 + $0x94] ss:$36 sps:$4 sm:$0xff]   ;;  %v4774_v22 = vld [vmem:[%s7051_s1 + $0x120] ss:$8 sps:$4 sm:$0xff]   ;;  %v4773_v26 = vld [vmem:[%s7051_s1 + $0x344] ss:$8 sps:$4 sm:$0xff]  }
  0x1f   :  { %1902 = vmatpush1.bf16.msra.mxu1 %v4685_v30  ;;  %v4791_v23 = vld [vmem:[%s7051_s1 + $0x134] ss:$8 sps:$4 sm:$0xff]   ;;  %v4770_v27 = vld [vmem:[%s7052_s0 + $0xa0] ss:$36 sps:$4 sm:$0xff]   ;;  %v4789_v28 = vld [vmem:[%s7051_s1 + $0x130] ss:$8 sps:$4 sm:$0xff]  }
  0x20   :  { %2328 = vmatpush1.bf16.msra.mxu0 %v4686_v31  ;;  %1903 = vmatprep.subr.bf16.mxu1 %v4687_v32  ;;  %v4771_v29 = vld [vmem:[%s7051_s1 + $0x340] ss:$8 sps:$4 sm:$0xff]   ;;  %v4779_v31 = vld [vmem:[%s7052_s0 + $0xec] ss:$36 sps:$4 sm:$0xff]   ;;  %v4783_v32 = vld [vmem:[%s7051_s1 + $0x354] ss:$8 sps:$4 sm:$0xff]  }
  0x21   :  { %2329 = vmatprep.subr.bf16.mxu0 %v4689_v33  ;;  %v4777_v30 = vld [vmem:[%s7052_s0 + $0xdc] ss:$36 sps:$4 sm:$0xff]   ;;  %v4806_v33 = vld [vmem:[%s7051_s1 + $0x144] ss:$8 sps:$4 sm:$0xff]  }
  0x22   :  { %v4839_v49 = vld [vmem:[%s7051_s1 + $0x160] ss:$8 sps:$4 sm:$0xff]  }
  0x23   :  { %1904 = vmatpush1.bf16.msra.mxu1 %v4691_v34  ;;  %v4781_v34 = vld [vmem:[%s7051_s1 + $0x350] ss:$8 sps:$4 sm:$0xff]   ;;  %v4801_v51 = vld [vmem:[%s7051_s1 + $0x380] ss:$8 sps:$4 sm:$0xff]  }
  0x24   :  { %2330 = vmatpush1.bf16.msra.mxu0 %v4692_v35  ;;  %1905 = vmatprep.subr.bf16.mxu1 %v4693_v36  ;;  %v4804_v35 = vld [vmem:[%s7051_s1 + $0x140] ss:$8 sps:$4 sm:$0xff]   ;;  %v4823_v36 = vld [vmem:[%s7051_s1 + $0x154] ss:$8 sps:$4 sm:$0xff]  }
  0x25   :  { %2331 = vmatprep.subr.bf16.mxu0 %v4695_v37  ;;  %v4788_v37 = vld [vmem:[%s7051_s1 + $0x364] ss:$8 sps:$4 sm:$0xff]  }
  0x27   :  { %1906 = vmatpush1.bf16.msra.mxu1 %v4697_v38  ;;  %v4784_v38 = vld [vmem:[%s7052_s0 + $0xd8] ss:$36 sps:$4 sm:$0xff]  }
  0x28   :  { %2332 = vmatpush1.bf16.msra.mxu0 %v4698_v39  ;;  %1907 = vmatprep.subr.bf16.mxu1 %v4699_v40  ;;  %v4785_v39 = vld [vmem:[%s7052_s0 + $0xe8] ss:$36 sps:$4 sm:$0xff]  }
  0x29   :  { %2333 = vmatprep.subr.bf16.mxu0 %v4701_v41  ;;  %v4786_v40 = vld [vmem:[%s7051_s1 + $0x360] ss:$8 sps:$4 sm:$0xff]  }
  0x2a   :  { %v4792_v41 = vld [vmem:[%s7052_s0 + $0x124] ss:$36 sps:$4 sm:$0xff]  }
  0x2b   :  { %1908 = vmatpush1.bf16.msra.mxu1 %v4703_v42  ;;  %v4794_v42 = vld [vmem:[%s7052_s0 + $0x134] ss:$36 sps:$4 sm:$0xff]  }
  0x2c   :  { %2334 = vmatpush1.bf16.msra.mxu0 %v4704_v43  ;;  %1909 = vmatprep.subr.bf16.mxu1 %v4705_v44  ;;  %v4800_v43 = vld [vmem:[%s7051_s1 + $0x374] ss:$8 sps:$4 sm:$0xff]   ;;  %v4821_v44 = vld [vmem:[%s7051_s1 + $0x150] ss:$8 sps:$4 sm:$0xff]  }
  0x2d   :  { %2335 = vmatprep.subr.bf16.mxu0 %v4707_v45  ;;  %v4841_v45 = vld [vmem:[%s7051_s1 + $0x164] ss:$8 sps:$4 sm:$0xff]  }
  0x2f   :  { %1910 = vmatpush1.bf16.msra.mxu1 %v4709_v46  ;;  %v4798_v46 = vld [vmem:[%s7051_s1 + $0x370] ss:$8 sps:$4 sm:$0xff]  }
  0x30   :  { %2336 = vmatpush1.bf16.msra.mxu0 %v4710_v47  ;;  %1911 = vmatprep.subr.bf16.mxu1 %v4711_v48  ;;  %v4796_v47 = vld [vmem:[%s7052_s0 + $0x120] ss:$36 sps:$4 sm:$0xff]  }
  0x31   :  { %2337 = vmatprep.subr.bf16.mxu0 %v4713_v50  ;;  %v4803_v48 = vld [vmem:[%s7051_s1 + $0x384] ss:$8 sps:$4 sm:$0xff]   ;;  %v4797_v50 = vld [vmem:[%s7052_s0 + $0x130] ss:$36 sps:$4 sm:$0xff]  }
  0x33   :  { %1912 = vmatpush1.bf16.msra.mxu1 %v4715_v52  ;;  %v4807_v52 = vld [vmem:[%s7052_s0 + $0x16c] ss:$36 sps:$4 sm:$0xff]  }
  0x34   :  { %2338 = vmatpush1.bf16.msra.mxu0 %v4716_v53  ;;  %1913 = vmatprep.subr.bf16.mxu1 %v4717_v54  ;;  %v4809_v53 = vld [vmem:[%s7052_s0 + $0x17c] ss:$36 sps:$4 sm:$0xff]  }
  0x35   :  { %2339 = vmatprep.subr.bf16.mxu0 %v4719_v55  ;;  %v4815_v54 = vld [vmem:[%s7051_s1 + $0x394] ss:$8 sps:$4 sm:$0xff]  }
  0x36   :  { %v4857_v55 = vld [vmem:[%s7051_s1 + $0x174] ss:$8 sps:$4 sm:$0xff]  }
  0x37   :  { %1914 = vmatpush1.bf16.msra.mxu1 %v4721_v56  ;;  %v4855_v56 = vld [vmem:[%s7051_s1 + $0x170] ss:$8 sps:$4 sm:$0xff]  }
  0x38   :  { %2340 = vmatpush1.bf16.msra.mxu0 %v4722_v57  ;;  %1915 = vmatprep.subr.bf16.mxu1 %v4723_v58  ;;  %v4813_v57 = vld [vmem:[%s7051_s1 + $0x390] ss:$8 sps:$4 sm:$0xff]   ;;  %v4811_v58 = vld [vmem:[%s7052_s0 + $0x168] ss:$36 sps:$4 sm:$0xff]  }
  0x39   :  { %2341 = vmatprep.subr.bf16.mxu0 %v4725_v59  ;;  %v4818_v59 = vld [vmem:[%s7051_s1 + $0x3a4] ss:$8 sps:$4 sm:$0xff]  }
  0x3b   :  { %1916 = vmatpush1.bf16.msra.mxu1 %v4727_v60  ;;  %v4812_v60 = vld [vmem:[%s7052_s0 + $0x178] ss:$36 sps:$4 sm:$0xff]  }
  0x3c   :  { %2342 = vmatpush1.bf16.msra.mxu0 %v4728_v61  ;;  %1917 = vmatprep.subr.bf16.mxu1 %v4729_v62  ;;  %v4816_v61 = vld [vmem:[%s7051_s1 + $0x3a0] ss:$8 sps:$4 sm:$0xff]   ;;  %v4819_v62 = vld [vmem:[%s7052_s0 + $0x1b4] ss:$36 sps:$4 sm:$0xff]  }
  0x3d   :  { %2343 = vmatprep.subr.bf16.mxu0 %v4731_v63  ;;  %v4872_v63 = vld [vmem:[%s7051_s1 + $0x184] ss:$8 sps:$4 sm:$0xff]  }
  0x3f   :  { %1918 = vmatpush1.bf16.msra.mxu1 %v4733_v0  ;;  %v4824_v0 = vld [vmem:[%s7052_s0 + $0x1c4] ss:$36 sps:$4 sm:$0xff]  }
  0x40   :  { %2344 = vmatpush1.bf16.msra.mxu0 %v4734_v1  ;;  %2100 = vmatprep.subr.bf16.mxu1 %v4746_v3  ;;  %v4830_v1 = vld [vmem:[%s7051_s1 + $0x3b4] ss:$8 sps:$4 sm:$0xff]  }
  0x41   :  { %2526 = vmatprep.subr.bf16.mxu0 %v4743_v2  ;;  %v4870_v2 = vld [vmem:[%s7051_s1 + $0x180] ss:$8 sps:$4 sm:$0xff]   ;;  %v4881_v3 = vld [vmem:[%s7051_s1 + $0x194] ss:$8 sps:$4 sm:$0xff]  }
  0x42   :  { %1920 = vmatmul.mubr.bf16.vlgmr.msra.gmra.mrb[0].mxu1 %v4735_v4  ;;  %v4828_v4 = vld [vmem:[%s7051_s1 + $0x3b0] ss:$8 sps:$4 sm:$0xff]  }
  0x43   :  { %2346 = vmatmul.mubr.bf16.vlgmr.msra.gmra.mrb[0].mxu0 %v4738_v5  ;;  %2101 = vmatpush1.bf16.msra.mxu1 %v4744_v7  ;;  %v4826_v5 = vld [vmem:[%s7052_s0 + $0x1b0] ss:$36 sps:$4 sm:$0xff]   ;;  %v4827_v7 = vld [vmem:[%s7052_s0 + $0x1c0] ss:$36 sps:$4 sm:$0xff]  }
  0x44   :  { %2527 = vmatpush1.bf16.msra.mxu0 %v4741_v6  ;;  %1929 = vmatprep.mubr.bf16.mxu1 %v4750_v9  ;;  %v4833_v6 = vld [vmem:[%s7051_s1 + $0x3c4] ss:$8 sps:$4 sm:$0xff]   ;;  %v4831_v9 = vld [vmem:[%s7051_s1 + $0x3c0] ss:$8 sps:$4 sm:$0xff]  }
  0x45   :  { %2528 = vmatprep.subr.bf16.mxu0 %v4749_v8  ;;  %2355 = vmatprep.mubr.bf16.mxu0 %v4752_v10  ;;  %v4879_v8 = vld [vmem:[%s7051_s1 + $0x190] ss:$8 sps:$4 sm:$0xff]   ;;  %v4834_v10 = vld [vmem:[%s7052_s0 + $0x1fc] ss:$36 sps:$4 sm:$0xff]  }
  0x46   :  { %2102 = vmatprep.subr.bf16.mxu1 %v4761_v11  ;;  %v4836_v11 = vld [vmem:[%s7052_s0 + $0x20c] ss:$36 sps:$4 sm:$0xff]  }
  0x47   :  { %2103 = vmatpush1.bf16.msra.mxu1 %v4759_v14  ;;  %v4891_v14 = vld [vmem:[%s7051_s1 + $0x1a0] ss:$8 sps:$4 sm:$0xff]  }
  0x48   :  { %2529 = vmatpush1.bf16.msra.mxu0 %v4747_v12  ;;  %2104 = vmatprep.subr.bf16.mxu1 %v4776_v15  ;;  %v4845_v12 = vld [vmem:[%s7051_s1 + $0x3d4] ss:$8 sps:$4 sm:$0xff]   ;;  %v4843_v15 = vld [vmem:[%s7051_s1 + $0x3d0] ss:$8 sps:$4 sm:$0xff]  }
  0x49   :  { %2530 = vmatprep.subr.bf16.mxu0 %v4758_v13  ;;  %v4893_v13 = vld [vmem:[%s7051_s1 + $0x1a4] ss:$8 sps:$4 sm:$0xff]  }
  0x4a   :  { %1930 = vmatmul.mubr.bf16.gmra.mrb[4].mxu1 %v4754_v16  ;;  %v4852_v16 = vld [vmem:[%s7051_s1 + $0x3e4] ss:$8 sps:$4 sm:$0xff]  }
  0x4b   :  { %2356 = vmatmul.mubr.bf16.gmra.mrb[4].mxu0 %v4755_v17  ;;  %1939 = vmatprep.mubr.bf16.mxu1 %v4765_v20  ;;  %v4838_v17 = vld [vmem:[%s7052_s0 + $0x1f8] ss:$36 sps:$4 sm:$0xff]   ;;  %v4842_v20 = vld [vmem:[%s7052_s0 + $0x208] ss:$36 sps:$4 sm:$0xff]  }
  0x4c   :  { %2531 = vmatpush1.bf16.msra.mxu0 %v4756_v18  ;;  %2365 = vmatprep.mubr.bf16.mxu0 %v4767_v21  ;;  %v4902_v18 = vld [vmem:[%s7051_s1 + $0x1b4] ss:$8 sps:$4 sm:$0xff]   ;;  %v4846_v21 = vld [vmem:[%s7052_s0 + $0x244] ss:$36 sps:$4 sm:$0xff]  }
  0x4d   :  { %2532 = vmatprep.subr.bf16.mxu0 %v4764_v19  ;;  %2105 = vmatpush1.bf16.msra.mxu1 %v4774_v22  ;;  %v4900_v19 = vld [vmem:[%s7051_s1 + $0x1b0] ss:$8 sps:$4 sm:$0xff]  }
  0x4e   :  { %2106 = vmatprep.subr.bf16.mxu1 %v4791_v23  ;;  %v4848_v22 = vld [vmem:[%s7052_s0 + $0x254] ss:$36 sps:$4 sm:$0xff]   ;;  %v4850_v23 = vld [vmem:[%s7051_s1 + $0x3e0] ss:$8 sps:$4 sm:$0xff]  }
  0x50   :  { %2533 = vmatpush1.bf16.msra.mxu0 %v4762_v24  ;;  %v4860_v24 = vld [vmem:[%s7051_s1 + $0x3f4] ss:$8 sps:$4 sm:$0xff]  }
  0x51   :  { %2534 = vmatprep.subr.bf16.mxu0 %v4773_v26  ;;  %2107 = vmatpush1.bf16.msra.mxu1 %v4789_v28  ;;  %v4914_v26 = vld [vmem:[%s7051_s1 + $0x1c4] ss:$8 sps:$4 sm:$0xff]   ;;  %v4854_v28 = vld [vmem:[%s7052_s0 + $0x250] ss:$36 sps:$4 sm:$0xff]  }
  0x52   :  { %1940 = vmatmul.mubr.bf16.gmra.mrb[8].mxu1 %v4769_v25  ;;  %2108 = vmatprep.subr.bf16.mxu1 %v4806_v33  ;;  %v4912_v25 = vld [vmem:[%s7051_s1 + $0x1c0] ss:$8 sps:$4 sm:$0xff]   ;;  %v4861_v33 = vld [vmem:[%s7052_s0 + $0x28c] ss:$36 sps:$4 sm:$0xff]  }
  0x53   :  { %2366 = vmatmul.mubr.bf16.gmra.mrb[8].mxu0 %v4770_v27  ;;  %1949 = vmatprep.mubr.bf16.mxu1 %v4777_v30  ;;  %v4853_v27 = vld [vmem:[%s7052_s0 + $0x240] ss:$36 sps:$4 sm:$0xff]  }
  0x54   :  { %2535 = vmatpush1.bf16.msra.mxu0 %v4771_v29  ;;  %2375 = vmatprep.mubr.bf16.mxu0 %v4779_v31  ;;  %v4858_v29 = vld [vmem:[%s7051_s1 + $0x3f0] ss:$8 sps:$4 sm:$0xff]   ;;  %v4869_v30 = vld [vmem:[%s7051_s1 + $0x404] ss:$8 sps:$4 sm:$0xff]  }
  0x55   :  { %2536 = vmatprep.subr.bf16.mxu0 %v4783_v32  ;;  %2109 = vmatpush1.bf16.msra.mxu1 %v4804_v35  ;;  %v4923_v31 = vld [vmem:[%s7051_s1 + $0x1d0] ss:$8 sps:$4 sm:$0xff]   ;;  %v4925_v32 = vld [vmem:[%s7051_s1 + $0x1d4] ss:$8 sps:$4 sm:$0xff]  }
  0x56   :  { %2110 = vmatprep.subr.bf16.mxu1 %v4823_v36  ;;  %v4863_v35 = vld [vmem:[%s7052_s0 + $0x18] ss:$36 sps:$4 sm:$0xff]   ;;  %v4938_v36 = vld [vmem:[%s7051_s1 + $0x1e0] ss:$8 sps:$4 sm:$0xff]  }
  0x58   :  { %2537 = vmatpush1.bf16.msra.mxu0 %v4781_v34  ;;  %v4865_v34 = vld [vmem:[%s7052_s0 + $0x1c] ss:$36 sps:$4 sm:$0xff]  }
  0x59   :  { %2538 = vmatprep.subr.bf16.mxu0 %v4788_v37  ;;  %2111 = vmatpush1.bf16.msra.mxu1 %v4821_v44  ;;  %v4866_v37 = vld [vmem:[%s7052_s0 + $0x288] ss:$36 sps:$4 sm:$0xff]   ;;  %v4948_v44 = vld [vmem:[%s7051_s1 + $0x1f0] ss:$8 sps:$4 sm:$0xff]  }
  0x5a   :  { %1950 = vmatmul.mubr.bf16.gmra.mrb[12].mxu1 %v4784_v38  ;;  %2112 = vmatprep.subr.bf16.mxu1 %v4841_v45  ;;  %v4940_v38 = vld [vmem:[%s7051_s1 + $0x1e4] ss:$8 sps:$4 sm:$0xff]   ;;  %v4888_v45 = vld [vmem:[%s7051_s1 + $0x410] ss:$8 sps:$4 sm:$0xff]  }
  0x5b   :  { %2376 = vmatmul.mubr.bf16.gmra.mrb[12].mxu0 %v4785_v39  ;;  %1959 = vmatprep.mubr.bf16.mxu1 %v4792_v41  ;;  %v4867_v39 = vld [vmem:[%s7051_s1 + $0x400] ss:$8 sps:$4 sm:$0xff]  }
  0x5c   :  { %2539 = vmatpush1.bf16.msra.mxu0 %v4786_v40  ;;  %2385 = vmatprep.mubr.bf16.mxu0 %v4794_v42  ;;  %v4873_v40 = vld [vmem:[%s7052_s0 + $0x2d4] ss:$36 sps:$4 sm:$0xff]   ;;  %v4875_v41 = vld [vmem:[%s7052_s0 + $0x64] ss:$36 sps:$4 sm:$0xff]  }
  0x5d   :  { %2540 = vmatprep.subr.bf16.mxu0 %v4800_v43  ;;  %2113 = vmatpush1.bf16.msra.mxu1 %v4839_v49  ;;  %v4890_v42 = vld [vmem:[%s7051_s1 + $0x414] ss:$8 sps:$4 sm:$0xff]  }
  0x5e   :  { %2114 = vmatprep.subr.bf16.mxu1 %v4857_v55  ;;  %v4950_v43 = vld [vmem:[%s7051_s1 + $0x1f4] ss:$8 sps:$4 sm:$0xff]   ;;  %v4959_v55 = vld [vmem:[%s7051_s1 + $0x444] ss:$8 sps:$4 sm:$0xff]  }
  0x5f   :  { %v4882_v49 = vld [vmem:[%s7052_s0 + $0x31c] ss:$36 sps:$4 sm:$0xff]  }
  0x60   :  { %2541 = vmatpush1.bf16.msra.mxu0 %v4798_v46  ;;  %v4911_v46 = vld [vmem:[%s7051_s1 + $0x424] ss:$8 sps:$4 sm:$0xff]  }
  0x61   :  { %2542 = vmatprep.subr.bf16.mxu0 %v4803_v48  ;;  %2115 = vmatpush1.bf16.msra.mxu1 %v4855_v56  ;;  %v4878_v48 = vld [vmem:[%s7052_s0 + $0x60] ss:$36 sps:$4 sm:$0xff]   ;;  %v4886_v56 = vld [vmem:[%s7052_s0 + $0x318] ss:$36 sps:$4 sm:$0xff]  }
  0x62   :  { %1960 = vmatmul.mubr.bf16.gmra.mrb[16].mxu1 %v4796_v47  ;;  %2116 = vmatprep.subr.bf16.mxu1 %v4872_v63  ;;  %v4877_v47 = vld [vmem:[%s7052_s0 + $0x2d0] ss:$36 sps:$4 sm:$0xff]   ;;  %v4898_v63 = vld [vmem:[%s7052_s0 + $0x360] ss:$36 sps:$4 sm:$0xff]  }
  0x63   :  { %2386 = vmatmul.mubr.bf16.gmra.mrb[16].mxu0 %v4797_v50  ;;  %1969 = vmatprep.mubr.bf16.mxu1 %v4807_v52  ;;  %v4884_v50 = vld [vmem:[%s7052_s0 + $0xac] ss:$36 sps:$4 sm:$0xff]   ;;  %v4909_v52 = vld [vmem:[%s7051_s1 + $0x420] ss:$8 sps:$4 sm:$0xff]  }
  0x64   :  { %2543 = vmatpush1.bf16.msra.mxu0 %v4801_v51  ;;  %2395 = vmatprep.mubr.bf16.mxu0 %v4809_v53  ;;  %v5089_v51 = vld [vmem:[%s7051_s1 + $0x204] ss:$8 sps:$4 sm:$0xff]   ;;  %v4932_v53 = vld [vmem:[%s7051_s1 + $0x434] ss:$8 sps:$4 sm:$0xff]  }
  0x65   :  { %2544 = vmatprep.subr.bf16.mxu0 %v4815_v54  ;;  %2117 = vmatpush1.bf16.msra.mxu1 %v4870_v2  ;;  %v4930_v54 = vld [vmem:[%s7051_s1 + $0x430] ss:$8 sps:$4 sm:$0xff]  }
  0x66   :  { %2118 = vmatprep.subr.bf16.mxu1 %v4881_v3  ;;  %v4903_v2 = vld [vmem:[%s7052_s0 + $0x3ac] ss:$36 sps:$4 sm:$0xff]   ;;  %v4905_v3 = vld [vmem:[%s7052_s0 + $0x13c] ss:$36 sps:$4 sm:$0xff]  }
  0x68   :  { %2545 = vmatpush1.bf16.msra.mxu0 %v4813_v57  ;;  %v4887_v57 = vld [vmem:[%s7052_s0 + $0xa8] ss:$36 sps:$4 sm:$0xff]  }
  0x69   :  { %2546 = vmatprep.subr.bf16.mxu0 %v4818_v59  ;;  %2119 = vmatpush1.bf16.msra.mxu1 %v4879_v8  ;;  %v4896_v59 = vld [vmem:[%s7052_s0 + $0xf4] ss:$36 sps:$4 sm:$0xff]  }
  0x6a   :  { %1970 = vmatmul.mubr.bf16.gmra.mrb[20].mxu1 %v4811_v58  ;;  %2120 = vmatprep.subr.bf16.mxu1 %v4893_v13  ;;  %v4894_v58 = vld [vmem:[%s7052_s0 + $0x364] ss:$36 sps:$4 sm:$0xff]   ;;  %v4908_v8 = vld [vmem:[%s7052_s0 + $0x138] ss:$36 sps:$4 sm:$0xff]  }
  0x6b   :  { %2396 = vmatmul.mubr.bf16.gmra.mrb[20].mxu0 %v4812_v60  ;;  %1979 = vmatprep.mubr.bf16.mxu1 %v4819_v62  ;;  %v4957_v60 = vld [vmem:[%s7051_s1 + $0x440] ss:$8 sps:$4 sm:$0xff]   ;;  %v4972_v62 = vld [vmem:[%s7051_s1 + $0x450] ss:$8 sps:$4 sm:$0xff]  }
  0x6c   :  { %2547 = vmatpush1.bf16.msra.mxu0 %v4816_v61  ;;  %2405 = vmatprep.mubr.bf16.mxu0 %v4824_v0  ;;  %v4974_v61 = vld [vmem:[%s7051_s1 + $0x454] ss:$8 sps:$4 sm:$0xff]   ;;  %v4989_v0 = vld [vmem:[%s7051_s1 + $0x464] ss:$8 sps:$4 sm:$0xff]  }
  0x6d   :  { %2548 = vmatprep.subr.bf16.mxu0 %v4830_v1  ;;  %2121 = vmatpush1.bf16.msra.mxu1 %v4891_v14  ;;  %v4899_v1 = vld [vmem:[%s7052_s0 + $0xf0] ss:$36 sps:$4 sm:$0xff]   ;;  %v4921_v13 = vld [vmem:[%s7052_s0 + $0x43c] ss:$36 sps:$4 sm:$0xff]  }
  0x6e   :  { %2122 = vmatprep.subr.bf16.mxu1 %v4902_v18  ;;  %v4926_v14 = vld [vmem:[%s7052_s0 + $0x1cc] ss:$36 sps:$4 sm:$0xff]   ;;  %v4935_v18 = vld [vmem:[%s7052_s0 + $0x214] ss:$36 sps:$4 sm:$0xff]  }
  0x70   :  { %2549 = vmatpush1.bf16.msra.mxu0 %v4828_v4  ;;  %v4987_v4 = vld [vmem:[%s7051_s1 + $0x460] ss:$8 sps:$4 sm:$0xff]  }
  0x71   :  { %2550 = vmatprep.subr.bf16.mxu0 %v4833_v6  ;;  %2123 = vmatpush1.bf16.msra.mxu1 %v4900_v19  ;;  %v5002_v6 = vld [vmem:[%s7051_s1 + $0x470] ss:$8 sps:$4 sm:$0xff]   ;;  %v4937_v19 = vld [vmem:[%s7052_s0 + $0x480] ss:$36 sps:$4 sm:$0xff]  }
  0x72   :  { %1980 = vmatmul.mubr.bf16.gmra.mrb[24].mxu1 %v4826_v5  ;;  %2124 = vmatprep.subr.bf16.mxu1 %v4914_v26  ;;  %v5004_v5 = vld [vmem:[%s7051_s1 + $0x474] ss:$8 sps:$4 sm:$0xff]   ;;  %v4954_v26 = vld [vmem:[%s7052_s0 + $0x2a4] ss:$36 sps:$4 sm:$0xff]  }
  0x73   :  { %2406 = vmatmul.mubr.bf16.gmra.mrb[24].mxu0 %v4827_v7  ;;  %1989 = vmatprep.mubr.bf16.mxu1 %v4834_v10  ;;  %v4907_v7 = vld [vmem:[%s7052_s0 + $0x3a8] ss:$36 sps:$4 sm:$0xff]  }
  0x74   :  { %2415 = vmatprep.mubr.bf16.mxu0 %v4836_v11  ;;  %2551 = vmatpush1.bf16.msra.mxu0 %v4831_v9  ;;  %v4915_v9 = vld [vmem:[%s7052_s0 + $0x3f4] ss:$36 sps:$4 sm:$0xff]   ;;  %v4917_v10 = vld [vmem:[%s7052_s0 + $0x184] ss:$36 sps:$4 sm:$0xff]  }
  0x75   :  { %2552 = vmatprep.subr.bf16.mxu0 %v4845_v12  ;;  %2125 = vmatpush1.bf16.msra.mxu1 %v4912_v25  ;;  %v4919_v11 = vld [vmem:[%s7052_s0 + $0x3f0] ss:$36 sps:$4 sm:$0xff]   ;;  %v4920_v12 = vld [vmem:[%s7052_s0 + $0x180] ss:$36 sps:$4 sm:$0xff]  }
  0x76   :  { %2126 = vmatprep.subr.bf16.mxu1 %v4925_v32  ;;  %v4953_v25 = vld [vmem:[%s7052_s0 + $0xc] ss:$36 sps:$4 sm:$0xff]   ;;  %v5091_v32 = vld [vmem:[%s7051_s1 + $0x214] ss:$8 sps:$4 sm:$0xff]  }
  0x78   :  { %2553 = vmatpush1.bf16.msra.mxu0 %v4843_v15  ;;  %v4928_v15 = vld [vmem:[%s7052_s0 + $0x438] ss:$36 sps:$4 sm:$0xff]  }
  0x79   :  { %2554 = vmatprep.subr.bf16.mxu0 %v4852_v16  ;;  %2127 = vmatpush1.bf16.msra.mxu1 %v4923_v31  ;;  %v4929_v16 = vld [vmem:[%s7052_s0 + $0x1c8] ss:$36 sps:$4 sm:$0xff]  }
  0x7a   :  { %1990 = vmatmul.mubr.bf16.gmra.mrb[28].mxu1 %v4838_v17  ;;  %2128 = vmatprep.subr.bf16.mxu1 %v4940_v38  ;;  %v4933_v17 = vld [vmem:[%s7052_s0 + $0x484] ss:$36 sps:$4 sm:$0xff]  }
  0x7b   :  { %2416 = vmatmul.mubr.bf16.gmra.mrb[28].mxu0 %v4842_v20  ;;  %1999 = vmatprep.mubr.bf16.mxu1 %v4846_v21  ;;  %v4941_v20 = vld [vmem:[%s7052_s0 + $0x210] ss:$36 sps:$4 sm:$0xff]   ;;  %v5090_v31 = vld [vmem:[%s7051_s1 + $0x200] ss:$8 sps:$4 sm:$0xff]   ;;  %v5093_v38 = vld [vmem:[%s7051_s1 + $0x224] ss:$8 sps:$4 sm:$0xff]  }
  0x7c   :  { %2425 = vmatprep.mubr.bf16.mxu0 %v4848_v22  ;;  %2555 = vmatpush1.bf16.msra.mxu0 %v4850_v23  ;;  %v4942_v21 = vld [vmem:[%s7052_s0 + $0x4cc] ss:$36 sps:$4 sm:$0xff]   ;;  %v4944_v22 = vld [vmem:[%s7052_s0 + $0x25c] ss:$36 sps:$4 sm:$0xff]  }
  0x7d   :  { %2556 = vmatprep.subr.bf16.mxu0 %v4860_v24  ;;  %2129 = vmatpush1.bf16.msra.mxu1 %v4938_v36  ;;  %v4946_v23 = vld [vmem:[%s7052_s0 + $0x4c8] ss:$36 sps:$4 sm:$0xff]   ;;  %v4947_v24 = vld [vmem:[%s7052_s0 + $0x258] ss:$36 sps:$4 sm:$0xff]  }
  0x7e   :  { %2130 = vmatprep.subr.bf16.mxu1 %v4950_v43  ;;  %v4966_v36 = vld [vmem:[%s7052_s0 + $0x9c] ss:$36 sps:$4 sm:$0xff]   ;;  %v4975_v43 = vld [vmem:[%s7052_s0 + $0xe4] ss:$36 sps:$4 sm:$0xff]  }
  0x80   :  { %2557 = vmatpush1.bf16.msra.mxu0 %v4858_v29  ;;  %v4960_v29 = vld [vmem:[%s7052_s0 + $0x54] ss:$36 sps:$4 sm:$0xff]  }
  0x81   :  { %2739 = vmatprep.subr.bf16.mxu0 %v4869_v30  ;;  %2131 = vmatpush1.bf16.msra.mxu1 %v4948_v44  ;;  %v4962_v30 = vld [vmem:[%s7052_s0 + $0x2ec] ss:$36 sps:$4 sm:$0xff]   ;;  %v4977_v44 = vld [vmem:[%s7052_s0 + $0x37c] ss:$36 sps:$4 sm:$0xff]  }
  0x82   :  { %2000 = vmatmul.mubr.bf16.gmra.mrb[32].mxu1 %v4853_v27  ;;  %4316 = vmatprep.subr.bf16.mxu1 %v5089_v51  ;;  %v4951_v27 = vld [vmem:[%s7052_s0 + $0x8] ss:$36 sps:$4 sm:$0xff]  }
  0x83   :  { %2426 = vmatmul.mubr.bf16.gmra.mrb[32].mxu0 %v4854_v28  ;;  %2009 = vmatprep.mubr.bf16.mxu1 %v4861_v33  ;;  %v4956_v28 = vld [vmem:[%s7052_s0 + $0x2a0] ss:$36 sps:$4 sm:$0xff]   ;;  %v4964_v33 = vld [vmem:[%s7052_s0 + $0x50] ss:$36 sps:$4 sm:$0xff]  }
  0x84   :  { %2558 = vmatprep.mubr.bf16.mxu0 %v4865_v34  ;;  %v4965_v34 = vld [vmem:[%s7052_s0 + $0x2e8] ss:$36 sps:$4 sm:$0xff]  }
  0x85   :  { %v4981_v51 = vld [vmem:[%s7052_s0 + $0x12c] ss:$36 sps:$4 sm:$0xff]  }
  0x8a   :  { %2010 = vmatmul.mubr.bf16.gmra.mrb[36].mxu1 %v4866_v37  ;;  %v4968_v37 = vld [vmem:[%s7052_s0 + $0x334] ss:$36 sps:$4 sm:$0xff]  }
  0x8b   :  { %2559 = vmatmul.mubr.bf16.vlgmr.msra.gmra.mrb[0].mxu0 %v4863_v35  ;;  %2019 = vmatprep.mubr.bf16.mxu1 %v4873_v40  ;;  %v5092_v35 = vld [vmem:[%s7051_s1 + $0x210] ss:$8 sps:$4 sm:$0xff]   ;;  %v5095_v40 = vld [vmem:[%s7051_s1 + $0x234] ss:$8 sps:$4 sm:$0xff]  }
  0x8c   :  { %2740 = vmatpush1.bf16.msra.mxu0 %v4867_v39  ;;  %2568 = vmatprep.mubr.bf16.mxu0 %v4875_v41  ;;  %v5094_v39 = vld [vmem:[%s7051_s1 + $0x220] ss:$8 sps:$4 sm:$0xff]   ;;  %v4970_v41 = vld [vmem:[%s7052_s0 + $0x98] ss:$36 sps:$4 sm:$0xff]  }
  0x8d   :  { %2741 = vmatprep.subr.bf16.mxu0 %v4890_v42  ;;  %v4971_v42 = vld [vmem:[%s7052_s0 + $0x330] ss:$36 sps:$4 sm:$0xff]  }
  0x90   :  { %2742 = vmatpush1.bf16.msra.mxu0 %v4888_v45  ;;  %v5096_v45 = vld [vmem:[%s7051_s1 + $0x230] ss:$8 sps:$4 sm:$0xff]  }
  0x91   :  { %2743 = vmatprep.subr.bf16.mxu0 %v4911_v46  ;;  %v5097_v46 = vld [vmem:[%s7051_s1 + $0x244] ss:$8 sps:$4 sm:$0xff]  }
  0x92   :  { %2020 = vmatmul.mubr.bf16.gmra.mrb[40].mxu1 %v4877_v47  ;;  %v5098_v47 = vld [vmem:[%s7051_s1 + $0x240] ss:$8 sps:$4 sm:$0xff]  }
  0x93   :  { %2569 = vmatmul.mubr.bf16.gmra.mrb[4].mxu0 %v4878_v48  ;;  %2029 = vmatprep.mubr.bf16.mxu1 %v4882_v49  ;;  %v5099_v48 = vld [vmem:[%s7051_s1 + $0x254] ss:$8 sps:$4 sm:$0xff]   ;;  %v4979_v49 = vld [vmem:[%s7052_s0 + $0xe0] ss:$36 sps:$4 sm:$0xff]  }
  0x94   :  { %2578 = vmatprep.mubr.bf16.mxu0 %v4884_v50  ;;  %2744 = vmatpush1.bf16.msra.mxu0 %v4909_v52  ;;  %v4980_v50 = vld [vmem:[%s7052_s0 + $0x378] ss:$36 sps:$4 sm:$0xff]   ;;  %v4983_v52 = vld [vmem:[%s7052_s0 + $0x3c4] ss:$36 sps:$4 sm:$0xff]  }
  0x95   :  { %2745 = vmatprep.subr.bf16.mxu0 %v4932_v53  ;;  %v5100_v53 = vld [vmem:[%s7051_s1 + $0x250] ss:$8 sps:$4 sm:$0xff]  }
  0x98   :  { %2746 = vmatpush1.bf16.msra.mxu0 %v4930_v54  ;;  %v5101_v54 = vld [vmem:[%s7051_s1 + $0x264] ss:$8 sps:$4 sm:$0xff]  }
  0x99   :  { %2747 = vmatprep.subr.bf16.mxu0 %v4959_v55  ;;  %v5102_v55 = vld [vmem:[%s7051_s1 + $0x260] ss:$8 sps:$4 sm:$0xff]  }
  0x9a   :  { %2030 = vmatmul.mubr.bf16.gmra.mrb[44].mxu1 %v4886_v56  ;;  %v5103_v56 = vld [vmem:[%s7051_s1 + $0x274] ss:$8 sps:$4 sm:$0xff]  }
  0x9b   :  { %2579 = vmatmul.mubr.bf16.gmra.mrb[8].mxu0 %v4887_v57  ;;  %2039 = vmatprep.mubr.bf16.mxu1 %v4894_v58  ;;  %v4985_v57 = vld [vmem:[%s7052_s0 + $0x128] ss:$36 sps:$4 sm:$0xff]   ;;  %v4986_v58 = vld [vmem:[%s7052_s0 + $0x3c0] ss:$36 sps:$4 sm:$0xff]  }
  0x9c   :  { %2588 = vmatprep.mubr.bf16.mxu0 %v4896_v59  ;;  %2748 = vmatpush1.bf16.msra.mxu0 %v4957_v60  ;;  %v4990_v59 = vld [vmem:[%s7052_s0 + $0x174] ss:$36 sps:$4 sm:$0xff]   ;;  %v4992_v60 = vld [vmem:[%s7052_s0 + $0x40c] ss:$36 sps:$4 sm:$0xff]  }
  0x9d   :  { %2749 = vmatprep.subr.bf16.mxu0 %v4974_v61  ;;  %v5104_v61 = vld [vmem:[%s7051_s1 + $0x270] ss:$8 sps:$4 sm:$0xff]  }
  0xa0   :  { %2750 = vmatpush1.bf16.msra.mxu0 %v4972_v62  ;;  %v5105_v62 = vld [vmem:[%s7051_s1 + $0x284] ss:$8 sps:$4 sm:$0xff]  }
  0xa1   :  { %2751 = vmatprep.subr.bf16.mxu0 %v4989_v0  ;;  %v5107_v0 = vld [vmem:[%s7051_s1 + $0x294] ss:$8 sps:$4 sm:$0xff]  }
  0xa2   :  { %2040 = vmatmul.mubr.bf16.gmra.mrb[48].mxu1 %v4898_v63  ;;  %v5106_v63 = vld [vmem:[%s7051_s1 + $0x280] ss:$8 sps:$4 sm:$0xff]  }
  0xa3   :  { %2589 = vmatmul.mubr.bf16.gmra.mrb[12].mxu0 %v4899_v1  ;;  %2049 = vmatprep.mubr.bf16.mxu1 %v4903_v2  ;;  %v4994_v1 = vld [vmem:[%s7052_s0 + $0x170] ss:$36 sps:$4 sm:$0xff]   ;;  %v4995_v2 = vld [vmem:[%s7052_s0 + $0x408] ss:$36 sps:$4 sm:$0xff]  }
  0xa4   :  { %2598 = vmatprep.mubr.bf16.mxu0 %v4905_v3  ;;  %2752 = vmatpush1.bf16.msra.mxu0 %v4987_v4  ;;  %v4996_v3 = vld [vmem:[%s7052_s0 + $0x1bc] ss:$36 sps:$4 sm:$0xff]   ;;  %v4998_v4 = vld [vmem:[%s7052_s0 + $0x454] ss:$36 sps:$4 sm:$0xff]  }
  0xa5   :  { %2753 = vmatprep.subr.bf16.mxu0 %v5004_v5  ;;  %v5108_v5 = vld [vmem:[%s7051_s1 + $0x290] ss:$8 sps:$4 sm:$0xff]  }
  0xa8   :  { %2754 = vmatpush1.bf16.msra.mxu0 %v5002_v6  ;;  %v5109_v6 = vld [vmem:[%s7051_s1 + $0x2a4] ss:$8 sps:$4 sm:$0xff]  }
  0xaa   :  { %2050 = vmatmul.mubr.bf16.gmra.mrb[52].mxu1 %v4907_v7  ;;  %v5110_v7 = vld [vmem:[%s7051_s1 + $0x2a0] ss:$8 sps:$4 sm:$0xff]  }
  0xab   :  { %2599 = vmatmul.mubr.bf16.gmra.mrb[16].mxu0 %v4908_v8  ;;  %2059 = vmatprep.mubr.bf16.mxu1 %v4915_v9  ;;  %v5111_v8 = vld [vmem:[%s7051_s1 + $0x2b4] ss:$8 sps:$4 sm:$0xff]  }
  0xac   :  { %2608 = vmatprep.mubr.bf16.mxu0 %v4917_v10  ;;  %v5000_v9 = vld [vmem:[%s7052_s0 + $0x1b8] ss:$36 sps:$4 sm:$0xff]   ;;  %v5001_v10 = vld [vmem:[%s7052_s0 + $0x450] ss:$36 sps:$4 sm:$0xff]  }
  0xb2   :  { %2060 = vmatmul.mubr.bf16.gmra.mrb[56].mxu1 %v4919_v11  ;;  %v5005_v11 = vld [vmem:[%s7052_s0 + $0x204] ss:$36 sps:$4 sm:$0xff]  }
  0xb3   :  { %2609 = vmatmul.mubr.bf16.gmra.mrb[20].mxu0 %v4920_v12  ;;  %2069 = vmatprep.mubr.bf16.mxu1 %v4921_v13  ;;  %v5007_v12 = vld [vmem:[%s7052_s0 + $0x49c] ss:$36 sps:$4 sm:$0xff]   ;;  %v5112_v13 = vld [vmem:[%s7051_s1 + $0x2b0] ss:$8 sps:$4 sm:$0xff]  }
  0xb4   :  { %2618 = vmatprep.mubr.bf16.mxu0 %v4926_v14  ;;  %v5113_v14 = vld [vmem:[%s7051_s1 + $0x2c4] ss:$8 sps:$4 sm:$0xff]  }
  0xba   :  { %2070 = vmatmul.mubr.bf16.gmra.mrb[60].mxu1 %v4928_v15  ;;  %v5114_v15 = vld [vmem:[%s7051_s1 + $0x2c0] ss:$8 sps:$4 sm:$0xff]  }
  0xbb   :  { %2619 = vmatmul.mubr.bf16.gmra.mrb[24].mxu0 %v4929_v16  ;;  %2079 = vmatprep.mubr.bf16.mxu1 %v4933_v17  ;;  %v5115_v16 = vld [vmem:[%s7051_s1 + $0x2d4] ss:$8 sps:$4 sm:$0xff]   ;;  %v5009_v17 = vld [vmem:[%s7052_s0 + $0x200] ss:$36 sps:$4 sm:$0xff]  }
  0xbc   :  { %2628 = vmatprep.mubr.bf16.mxu0 %v4935_v18  ;;  %v5010_v18 = vld [vmem:[%s7052_s0 + $0x498] ss:$36 sps:$4 sm:$0xff]  }
  0xc2   :  { %2080 = vmatmul.mubr.bf16.gmra.mrb[64].mxu1 %v4937_v19  ;;  %v5011_v19 = vld [vmem:[%s7052_s0 + $0x24c] ss:$36 sps:$4 sm:$0xff]  }
  0xc3   :  { %2629 = vmatmul.mubr.bf16.gmra.mrb[28].mxu0 %v4941_v20  ;;  %2089 = vmatprep.mubr.bf16.mxu1 %v4942_v21  ;;  %v5013_v20 = vld [vmem:[%s7052_s0 + $0x4e4] ss:$36 sps:$4 sm:$0xff]   ;;  %v5116_v21 = vld [vmem:[%s7051_s1 + $0x2d0] ss:$8 sps:$4 sm:$0xff]  }
  0xc4   :  { %2638 = vmatprep.mubr.bf16.mxu0 %v4944_v22  ;;  %v5117_v22 = vld [vmem:[%s7051_s1 + $0x2e4] ss:$8 sps:$4 sm:$0xff]  }
  0xca   :  { %2090 = vmatmul.mubr.bf16.gmra.mrb[68].mxu1 %v4946_v23  ;;  %v5118_v23 = vld [vmem:[%s7051_s1 + $0x2e0] ss:$8 sps:$4 sm:$0xff]  }
  0xcb   :  { %2639 = vmatmul.mubr.bf16.gmra.mrb[32].mxu0 %v4947_v24  ;;  %2132 = vmatprep.mubr.bf16.mxu1 %v4953_v25  ;;  %v5119_v24 = vld [vmem:[%s7051_s1 + $0x2f4] ss:$8 sps:$4 sm:$0xff]   ;;  %v5015_v25 = vld [vmem:[%s7052_s0 + $0x248] ss:$36 sps:$4 sm:$0xff]  }
  0xcc   :  { %2648 = vmatprep.mubr.bf16.mxu0 %v4954_v26  ;;  %v5016_v26 = vld [vmem:[%s7052_s0 + $0x4e0] ss:$36 sps:$4 sm:$0xff]  }
  0xd2   :  { %2133 = vmatmul.mubr.bf16.vlgmr.msra.gmra.mrb[0].mxu1 %v4951_v27  ;;  %v5017_v27 = vld [vmem:[%s7052_s0 + $0x294] ss:$36 sps:$4 sm:$0xff]  }
  0xd3   :  { %2649 = vmatmul.mubr.bf16.gmra.mrb[36].mxu0 %v4956_v28  ;;  %4332 = vmatpush1.bf16.msra.mxu1 %v5090_v31  ;;  %v5120_v28 = vld [vmem:[%s7051_s1 + $0x2f0] ss:$8 sps:$4 sm:$0xff]   ;;  %v5020_v31 = vld [vmem:[%s7052_s0 + $0x20] ss:$36 sps:$4 sm:$0xff]  }
  0xd4   :  { %2142 = vmatprep.mubr.bf16.mxu1 %v4960_v29  ;;  %2658 = vmatprep.mubr.bf16.mxu0 %v4962_v30  ;;  %v5121_v29 = vmov 0   ;;  %v5019_v30 = vld [vmem:[%s7052_s0 + $0x290] ss:$36 sps:$4 sm:$0xff]  }
  0xd5   :  { %4317 = vmatprep.subr.bf16.mxu1 %v5091_v32  ;;  %v5021_v32 = vld [vmem:[%s7052_s0 + $0x2dc] ss:$36 sps:$4 sm:$0xff]  }
  0xd7   :  { %4333 = vmatpush1.bf16.msra.mxu1 %v5092_v35  ;;  %v5025_v35 = vld [vmem:[%s7052_s0 + $0x324] ss:$36 sps:$4 sm:$0xff]  }
  0xd8   :  { %4318 = vmatprep.subr.bf16.mxu1 %v5093_v38  ;;  %v5029_v38 = vld [vmem:[%s7052_s0 + $0x36c] ss:$36 sps:$4 sm:$0xff]  }
  0xda   :  { %2143 = vmatmul.mubr.bf16.gmra.mrb[4].mxu1 %v4964_v33  ;;  %v5023_v33 = vld [vmem:[%s7052_s0 + $0x2d8] ss:$36 sps:$4 sm:$0xff]  }
  0xdb   :  { %2659 = vmatmul.mubr.bf16.gmra.mrb[40].mxu0 %v4965_v34  ;;  %2152 = vmatprep.mubr.bf16.mxu1 %v4966_v36  ;;  %v5024_v34 = vld [vmem:[%s7052_s0 + $0x68] ss:$36 sps:$4 sm:$0xff]   ;;  %v5027_v36 = vld [vmem:[%s7052_s0 + $0x320] ss:$36 sps:$4 sm:$0xff]  }
  0xdc   :  { %2668 = vmatprep.mubr.bf16.mxu0 %v4968_v37  ;;  %4334 = vmatpush1.bf16.msra.mxu1 %v5094_v39  ;;  %v5028_v37 = vld [vmem:[%s7052_s0 + $0xb0] ss:$36 sps:$4 sm:$0xff]   ;;  %v5031_v39 = vld [vmem:[%s7052_s0 + $0x368] ss:$36 sps:$4 sm:$0xff]  }
  0xdd   :  { %4319 = vmatprep.subr.bf16.mxu1 %v5095_v40  ;;  %v5032_v40 = vld [vmem:[%s7052_s0 + $0xf8] ss:$36 sps:$4 sm:$0xff]  }
  0xe0   :  { %4335 = vmatpush1.bf16.msra.mxu1 %v5096_v45  ;;  %v5039_v45 = vld [vmem:[%s7052_s0 + $0x3f8] ss:$36 sps:$4 sm:$0xff]  }
  0xe1   :  { %4320 = vmatprep.subr.bf16.mxu1 %v5097_v46  ;;  %v5040_v46 = vld [vmem:[%s7052_s0 + $0x188] ss:$36 sps:$4 sm:$0xff]  }
  0xe2   :  { %2153 = vmatmul.mubr.bf16.gmra.mrb[8].mxu1 %v4970_v41  ;;  %v5033_v41 = vld [vmem:[%s7052_s0 + $0x3b4] ss:$36 sps:$4 sm:$0xff]  }
  0xe3   :  { %2669 = vmatmul.mubr.bf16.gmra.mrb[44].mxu0 %v4971_v42  ;;  %2162 = vmatprep.mubr.bf16.mxu1 %v4975_v43  ;;  %v5035_v42 = vld [vmem:[%s7052_s0 + $0x3b0] ss:$36 sps:$4 sm:$0xff]   ;;  %v5036_v43 = vld [vmem:[%s7052_s0 + $0x140] ss:$36 sps:$4 sm:$0xff]  }
  0xe4   :  { %2678 = vmatprep.mubr.bf16.mxu0 %v4977_v44  ;;  %4336 = vmatpush1.bf16.msra.mxu1 %v5098_v47  ;;  %v5037_v44 = vld [vmem:[%s7052_s0 + $0x3fc] ss:$36 sps:$4 sm:$0xff]   ;;  %v5041_v47 = vld [vmem:[%s7052_s0 + $0x444] ss:$36 sps:$4 sm:$0xff]  }
  0xe5   :  { %4321 = vmatprep.subr.bf16.mxu1 %v5099_v48  ;;  %v5043_v48 = vld [vmem:[%s7052_s0 + $0x440] ss:$36 sps:$4 sm:$0xff]  }
  0xe8   :  { %4337 = vmatpush1.bf16.msra.mxu1 %v5100_v53  ;;  %v5049_v53 = vld [vmem:[%s7052_s0 + $0x4d4] ss:$36 sps:$4 sm:$0xff]  }
  0xe9   :  { %4322 = vmatprep.subr.bf16.mxu1 %v5101_v54  ;;  %v5051_v54 = vld [vmem:[%s7052_s0 + $0x4d0] ss:$36 sps:$4 sm:$0xff]  }
  0xea   :  { %2163 = vmatmul.mubr.bf16.gmra.mrb[12].mxu1 %v4979_v49  ;;  %v5044_v49 = vld [vmem:[%s7052_s0 + $0x1d0] ss:$36 sps:$4 sm:$0xff]  }
  0xeb   :  { %2679 = vmatmul.mubr.bf16.gmra.mrb[48].mxu0 %v4980_v50  ;;  %2172 = vmatprep.mubr.bf16.mxu1 %v4981_v51  ;;  %v5045_v50 = vld [vmem:[%s7052_s0 + $0x48c] ss:$36 sps:$4 sm:$0xff]  }
  0xec   :  { %2688 = vmatprep.mubr.bf16.mxu0 %v4983_v52  ;;  %4338 = vmatpush1.bf16.msra.mxu1 %v5102_v55  ;;  %v5047_v51 = vld [vmem:[%s7052_s0 + $0x488] ss:$36 sps:$4 sm:$0xff]   ;;  %v5048_v52 = vld [vmem:[%s7052_s0 + $0x218] ss:$36 sps:$4 sm:$0xff]   ;;  %v5052_v55 = vld [vmem:[%s7052_s0 + $0x260] ss:$36 sps:$4 sm:$0xff]  }
  0xed   :  { %4323 = vmatprep.subr.bf16.mxu1 %v5103_v56  ;;  %v5055_v56 = vld [vmem:[%s7052_s0 + $0x29c] ss:$36 sps:$4 sm:$0xff]  }
  0xf0   :  { %4339 = vmatpush1.bf16.msra.mxu1 %v5104_v61  ;;  %v5060_v61 = vld [vmem:[%s7052_s0 + $0x2f0] ss:$36 sps:$4 sm:$0xff]  }
  0xf1   :  { %4324 = vmatprep.subr.bf16.mxu1 %v5105_v62  ;;  %v5061_v62 = vld [vmem:[%s7052_s0 + $0x32c] ss:$36 sps:$4 sm:$0xff]  }
  0xf2   :  { %2173 = vmatmul.mubr.bf16.gmra.mrb[16].mxu1 %v4985_v57  ;;  %v5053_v57 = vld [vmem:[%s7052_s0 + $0x298] ss:$36 sps:$4 sm:$0xff]  }
  0xf3   :  { %2689 = vmatmul.mubr.bf16.gmra.mrb[52].mxu0 %v4986_v58  ;;  %2182 = vmatprep.mubr.bf16.mxu1 %v4990_v59  ;;  %v5056_v58 = vld [vmem:[%s7052_s0 + $0x2a8] ss:$36 sps:$4 sm:$0xff]  }
  0xf4   :  { %2698 = vmatprep.mubr.bf16.mxu0 %v4992_v60  ;;  %4340 = vmatpush1.bf16.msra.mxu1 %v5106_v63  ;;  %v5057_v59 = vld [vmem:[%s7052_s0 + $0x2e4] ss:$36 sps:$4 sm:$0xff]  }
  0xf5   :  { %4325 = vmatprep.subr.bf16.mxu1 %v5107_v0  ;;  %v5059_v60 = vld [vmem:[%s7052_s0 + $0x2e0] ss:$36 sps:$4 sm:$0xff]   ;;  %v5063_v63 = vld [vmem:[%s7052_s0 + $0x328] ss:$36 sps:$4 sm:$0xff]   ;;  %v5064_v0 = vld [vmem:[%s7052_s0 + $0x338] ss:$36 sps:$4 sm:$0xff]  }
  0xf8   :  { %4341 = vmatpush1.bf16.msra.mxu1 %v5108_v5  ;;  %v5071_v5 = vld [vmem:[%s7052_s0 + $0x3b8] ss:$36 sps:$4 sm:$0xff]  }
  0xf9   :  { %4326 = vmatprep.subr.bf16.mxu1 %v5109_v6  ;;  %v5072_v6 = vld [vmem:[%s7052_s0 + $0x3c8] ss:$36 sps:$4 sm:$0xff]  }
  0xfa   :  { %2183 = vmatmul.mubr.bf16.gmra.mrb[20].mxu1 %v4994_v1  ;;  %v5065_v1 = vld [vmem:[%s7052_s0 + $0x374] ss:$36 sps:$4 sm:$0xff]  }
  0xfb   :  { %2699 = vmatmul.mubr.bf16.gmra.mrb[56].mxu0 %v4995_v2  ;;  %2192 = vmatprep.mubr.bf16.mxu1 %v4996_v3  ;;  %v5067_v2 = vld [vmem:[%s7052_s0 + $0x370] ss:$36 sps:$4 sm:$0xff]   ;;  %v5068_v3 = vld [vmem:[%s7052_s0 + $0x380] ss:$36 sps:$4 sm:$0xff]  }
  0xfc   :  { %2708 = vmatprep.mubr.bf16.mxu0 %v4998_v4  ;;  %4342 = vmatpush1.bf16.msra.mxu1 %v5110_v7  ;;  %v5069_v4 = vld [vmem:[%s7052_s0 + $0x3bc] ss:$36 sps:$4 sm:$0xff]   ;;  %v5073_v7 = vld [vmem:[%s7052_s0 + $0x404] ss:$36 sps:$4 sm:$0xff]  }
  0xfd   :  { %4327 = vmatprep.subr.bf16.mxu1 %v5111_v8  ;;  %v5075_v8 = vld [vmem:[%s7052_s0 + $0x400] ss:$36 sps:$4 sm:$0xff]  }
 0x100   :  { %4343 = vmatpush1.bf16.msra.mxu1 %v5112_v13  ;;  %v5081_v13 = vld [vmem:[%s7052_s0 + $0x494] ss:$36 sps:$4 sm:$0xff]  }
 0x101   :  { %4328 = vmatprep.subr.bf16.mxu1 %v5113_v14  ;;  %v5083_v14 = vld [vmem:[%s7052_s0 + $0x490] ss:$36 sps:$4 sm:$0xff]  }
 0x102   :  { %2193 = vmatmul.mubr.bf16.gmra.mrb[24].mxu1 %v5000_v9  ;;  %v5076_v9 = vld [vmem:[%s7052_s0 + $0x410] ss:$36 sps:$4 sm:$0xff]  }
 0x103   :  { %2709 = vmatmul.mubr.bf16.gmra.mrb[60].mxu0 %v5001_v10  ;;  %2202 = vmatprep.mubr.bf16.mxu1 %v5005_v11  ;;  %v5077_v10 = vld [vmem:[%s7052_s0 + $0x44c] ss:$36 sps:$4 sm:$0xff]  }
 0x104   :  { %2718 = vmatprep.mubr.bf16.mxu0 %v5007_v12  ;;  %4344 = vmatpush1.bf16.msra.mxu1 %v5114_v15  ;;  %v5079_v11 = vld [vmem:[%s7052_s0 + $0x448] ss:$36 sps:$4 sm:$0xff]   ;;  %v5080_v12 = vld [vmem:[%s7052_s0 + $0x458] ss:$36 sps:$4 sm:$0xff]   ;;  %v5084_v15 = vld [vmem:[%s7052_s0 + $0x4a0] ss:$36 sps:$4 sm:$0xff]  }
 0x105   :  { %4329 = vmatprep.subr.bf16.mxu1 %v5115_v16  ;;  %v5085_v16 = vld [vmem:[%s7052_s0 + $0x4dc] ss:$36 sps:$4 sm:$0xff]  }
 0x108   :  { %4345 = vmatpush1.bf16.msra.mxu1 %v5116_v21 }
 0x109   :  { %4330 = vmatprep.subr.bf16.mxu1 %v5117_v22 }
 0x10a   :  { %2203 = vmatmul.mubr.bf16.gmra.mrb[28].mxu1 %v5009_v17  ;;  %v5087_v17 = vld [vmem:[%s7052_s0 + $0x4d8] ss:$36 sps:$4 sm:$0xff]  }
 0x10b   :  { %2719 = vmatmul.mubr.bf16.gmra.mrb[64].mxu0 %v5010_v18  ;;  %2212 = vmatprep.mubr.bf16.mxu1 %v5011_v19  ;;  %v5088_v18 = vld [vmem:[%s7052_s0 + $0x4e8] ss:$36 sps:$4 sm:$0xff]   ;;  %s5122_s0 = smov 80  }
 0x10c   :  { %2728 = vmatprep.mubr.bf16.mxu0 %v5013_v20  ;;  %4346 = vmatpush1.bf16.msra.mxu1 %v5118_v23 }
 0x10d   :  { %4331 = vmatprep.subr.bf16.mxu1 %v5119_v24 }
 0x110   :  { %4347 = vmatpush1.bf16.msra.mxu1 %v5120_v28 }
 0x112   :  { %2213 = vmatmul.mubr.bf16.gmra.mrb[32].mxu1 %v5015_v25 }
 0x113   :  { %2729 = vmatmul.mubr.bf16.gmra.mrb[68].mxu0 %v5016_v26  ;;  %2222 = vmatprep.mubr.bf16.mxu1 %v5017_v27 }
 0x114   :  { %2771 = vmatprep.mubr.bf16.mxu0 %v5121_v29 }
 0x11a   :  { %2223 = vmatmul.mubr.bf16.gmra.mrb[36].mxu1 %v5019_v30 }
 0x11b   :  { %2772 = vmatmul.mubr.bf16.vlgmr.msra.gmra.mrb[0].mxu0 %v5020_v31  ;;  %2232 = vmatprep.mubr.bf16.mxu1 %v5021_v32 }
 0x11c   :  { %2781 = vmatprep.mubr.bf16.mxu0 %v5121_v29 }
 0x122   :  { %2233 = vmatmul.mubr.bf16.gmra.mrb[40].mxu1 %v5023_v33 }
 0x123   :  { %2782 = vmatmul.mubr.bf16.gmra.mrb[4].mxu0 %v5024_v34  ;;  %2242 = vmatprep.mubr.bf16.mxu1 %v5025_v35 }
 0x124   :  { %2791 = vmatprep.mubr.bf16.mxu0 %v5121_v29 }
 0x12a   :  { %2243 = vmatmul.mubr.bf16.gmra.mrb[44].mxu1 %v5027_v36 }
 0x12b   :  { %2792 = vmatmul.mubr.bf16.gmra.mrb[8].mxu0 %v5028_v37  ;;  %2252 = vmatprep.mubr.bf16.mxu1 %v5029_v38 }
 0x12c   :  { %2801 = vmatprep.mubr.bf16.mxu0 %v5121_v29 }
 0x132   :  { %2253 = vmatmul.mubr.bf16.gmra.mrb[48].mxu1 %v5031_v39 }
 0x133   :  { %2802 = vmatmul.mubr.bf16.gmra.mrb[12].mxu0 %v5032_v40  ;;  %2262 = vmatprep.mubr.bf16.mxu1 %v5033_v41 }
 0x134   :  { %2811 = vmatprep.mubr.bf16.mxu0 %v5121_v29 }
 0x13a   :  { %2263 = vmatmul.mubr.bf16.gmra.mrb[52].mxu1 %v5035_v42 }
 0x13b   :  { %2812 = vmatmul.mubr.bf16.gmra.mrb[16].mxu0 %v5036_v43  ;;  %2272 = vmatprep.mubr.bf16.mxu1 %v5037_v44 }
 0x13c   :  { %2821 = vmatprep.mubr.bf16.mxu0 %v5121_v29 }
 0x142   :  { %2273 = vmatmul.mubr.bf16.gmra.mrb[56].mxu1 %v5039_v45 }
 0x143   :  { %2822 = vmatmul.mubr.bf16.gmra.mrb[20].mxu0 %v5040_v46  ;;  %2282 = vmatprep.mubr.bf16.mxu1 %v5041_v47 }
 0x144   :  { %2831 = vmatprep.mubr.bf16.mxu0 %v5121_v29 }
 0x14a   :  { %2283 = vmatmul.mubr.bf16.gmra.mrb[60].mxu1 %v5043_v48 }
 0x14b   :  { %2832 = vmatmul.mubr.bf16.gmra.mrb[24].mxu0 %v5044_v49  ;;  %2292 = vmatprep.mubr.bf16.mxu1 %v5045_v50 }
 0x14c   :  { %2841 = vmatprep.mubr.bf16.mxu0 %v5121_v29 }
 0x152   :  { %2293 = vmatmul.mubr.bf16.gmra.mrb[64].mxu1 %v5047_v51 }
 0x153   :  { %2842 = vmatmul.mubr.bf16.gmra.mrb[28].mxu0 %v5048_v52  ;;  %2302 = vmatprep.mubr.bf16.mxu1 %v5049_v53 }
 0x154   :  { %2851 = vmatprep.mubr.bf16.mxu0 %v5121_v29 }
 0x15a   :  { %2303 = vmatmul.mubr.bf16.gmra.mrb[68].mxu1 %v5051_v54 }
 0x15b   :  { %2852 = vmatmul.mubr.bf16.gmra.mrb[32].mxu0 %v5052_v55  ;;  %2435 = vmatprep.mubr.bf16.mxu1 %v5055_v56 }
 0x15c   :  { %2861 = vmatprep.mubr.bf16.mxu0 %v5121_v29 }
 0x162   :  { %2436 = vmatmul.mubr.bf16.vlgmr.msra.gmra.mrb[36].mxu1 %v5053_v57 }
 0x163   :  { %2862 = vmatmul.mubr.bf16.gmra.mrb[36].mxu0 %v5056_v58  ;;  %2445 = vmatprep.mubr.bf16.mxu1 %v5057_v59 }
 0x164   :  { %2871 = vmatprep.mubr.bf16.mxu0 %v5121_v29 }
 0x16a   :  { %2446 = vmatmul.mubr.bf16.gmra.mrb[40].mxu1 %v5059_v60 }
 0x16b   :  { %2872 = vmatmul.mubr.bf16.gmra.mrb[40].mxu0 %v5060_v61  ;;  %2455 = vmatprep.mubr.bf16.mxu1 %v5061_v62 }
 0x16c   :  { %2881 = vmatprep.mubr.bf16.mxu0 %v5121_v29 }
 0x172   :  { %2456 = vmatmul.mubr.bf16.gmra.mrb[44].mxu1 %v5063_v63 }
 0x173   :  { %2882 = vmatmul.mubr.bf16.gmra.mrb[44].mxu0 %v5064_v0  ;;  %2465 = vmatprep.mubr.bf16.mxu1 %v5065_v1 }
 0x174   :  { %2891 = vmatprep.mubr.bf16.mxu0 %v5121_v29 }
 0x17a   :  { %2466 = vmatmul.mubr.bf16.gmra.mrb[48].mxu1 %v5067_v2 }
 0x17b   :  { %2892 = vmatmul.mubr.bf16.gmra.mrb[48].mxu0 %v5068_v3  ;;  %2475 = vmatprep.mubr.bf16.mxu1 %v5069_v4 }
 0x17c   :  { %2901 = vmatprep.mubr.bf16.mxu0 %v5121_v29 }
 0x182   :  { %2476 = vmatmul.mubr.bf16.gmra.mrb[52].mxu1 %v5071_v5 }
 0x183   :  { %2902 = vmatmul.mubr.bf16.gmra.mrb[52].mxu0 %v5072_v6  ;;  %2485 = vmatprep.mubr.bf16.mxu1 %v5073_v7 }
 0x184   :  { %2911 = vmatprep.mubr.bf16.mxu0 %v5121_v29 }
 0x18a   :  { %2486 = vmatmul.mubr.bf16.gmra.mrb[56].mxu1 %v5075_v8 }
 0x18b   :  { %2912 = vmatmul.mubr.bf16.gmra.mrb[56].mxu0 %v5076_v9  ;;  %2495 = vmatprep.mubr.bf16.mxu1 %v5077_v10 }
 0x18c   :  { %2921 = vmatprep.mubr.bf16.mxu0 %v5121_v29 }
 0x192   :  { %2496 = vmatmul.mubr.bf16.gmra.mrb[60].mxu1 %v5079_v11 }
 0x193   :  { %2922 = vmatmul.mubr.bf16.gmra.mrb[60].mxu0 %v5080_v12  ;;  %2505 = vmatprep.mubr.bf16.mxu1 %v5081_v13 }
 0x194   :  { %2931 = vmatprep.mubr.bf16.mxu0 %v5121_v29 }
 0x19a   :  { %2506 = vmatmul.mubr.bf16.gmra.mrb[64].mxu1 %v5083_v14 }
 0x19b   :  { %2932 = vmatmul.mubr.bf16.gmra.mrb[64].mxu0 %v5084_v15  ;;  %2515 = vmatprep.mubr.bf16.mxu1 %v5085_v16 }
 0x19c   :  { %2941 = vmatprep.mubr.bf16.mxu0 %v5121_v29 }
 0x1a2   :  { %2516 = vmatmul.mubr.bf16.gmra.mrb[68].mxu1 %v5087_v17 }
 0x1a3   :  { %2942 = vmatmul.mubr.bf16.gmra.mrb[68].mxu0 %v5088_v18 }
 0x1a5   :  { %v2134_v19 = vpop.f32.mrb[0].mxu1 }
 0x1a6   :  { %v2136_v20 = vpop.f32.mrb[1].mxu1 }
 0x1a7   :  { %v2138_v21 = vpop.f32.mrb[2].mxu1 }
 0x1a8   :  { %v2140_v22 = vpop.f32.mrb[3].mxu1 }
 0x1ad   :  { %v2144_v23 = vpop.f32.mrb[4].mxu1 }
 0x1ae   :  { %v2146_v24 = vpop.f32.mrb[5].mxu1 }
 0x1af   :  { %v2148_v25 = vpop.f32.mrb[6].mxu1 }
 0x1b0   :  { %v2150_v26 = vpop.f32.mrb[7].mxu1 }
 0x1b5   :  { %v2154_v27 = vpop.f32.mrb[8].mxu1 }
 0x1b6   :  { %v2156_v28 = vpop.f32.mrb[9].mxu1 }
 0x1b7   :  { %v2158_v29 = vpop.f32.mrb[10].mxu1 }
 0x1b8   :  { %v2160_v30 = vpop.f32.mrb[11].mxu1 }
 0x1bd   :  { %v2164_v31 = vpop.f32.mrb[12].mxu1 }
 0x1be   :  { %v2166_v32 = vpop.f32.mrb[13].mxu1 }
 0x1bf   :  { %v6176_v33 = vpop.f32.mrb[14].mxu1 }
 0x1c0   :  { %v6178_v34 = vpop.f32.mrb[15].mxu1 }
 0x1c5   :  { %v6180_v35 = vpop.f32.mrb[16].mxu1 }
 0x1c6   :  { %v6182_v36 = vpop.f32.mrb[17].mxu1 }
 0x1c7   :  { %v6184_v37 = vpop.f32.mrb[18].mxu1 }
 0x1c8   :  { %v6186_v38 = vpop.f32.mrb[19].mxu1 }
 0x1cd   :  { %v6188_v39 = vpop.f32.mrb[20].mxu1 }
 0x1ce   :  { %v6190_v40 = vpop.f32.mrb[21].mxu1 }
 0x1cf   :  { %v6192_v41 = vpop.f32.mrb[22].mxu1 }
 0x1d0   :  { %v6194_v42 = vpop.f32.mrb[23].mxu1 }
 0x1d5   :  { %v6196_v43 = vpop.f32.mrb[24].mxu1 }
 0x1d6   :  { %v6198_v44 = vpop.f32.mrb[25].mxu1 }
 0x1d7   :  { %v6200_v45 = vpop.f32.mrb[26].mxu1 }
 0x1d8   :  { %v6202_v46 = vpop.f32.mrb[27].mxu1 }
 0x1dd   :  { %v6204_v47 = vpop.f32.mrb[28].mxu1 }
 0x1de   :  { %v6206_v48 = vpop.f32.mrb[29].mxu1 }
 0x1df   :  { %v6208_v49 = vpop.f32.mrb[30].mxu1 }
 0x1e0   :  { %v6210_v50 = vpop.f32.mrb[31].mxu1 }
 0x1e5   :  { %v6212_v51 = vpop.f32.mrb[32].mxu1 }
 0x1e6   :  { %v6214_v52 = vpop.f32.mrb[33].mxu1 }
 0x1e7   :  { %v6216_v53 = vpop.f32.mrb[34].mxu1 }
 0x1e8   :  { %v6218_v54 = vpop.f32.mrb[35].mxu1 }
 0x1ee   :  { %v2773_v55 = vpop.f32.mrb[0].mxu0 }
 0x1ef   :  { %v6220_v56 = vadd.f32 %v2773_v55, %v2134_v19  ;;  %v2775_v57 = vpop.f32.mrb[1].mxu0 }
 0x1f0   :  { %v6222_v58 = vadd.f32 %v2775_v57, %v2136_v20  ;;  %v2777_v59 = vpop.f32.mrb[2].mxu0 }
 0x1f1   :  { %7084 = vst [vmem:[#allocation2_spill] sm:$0xff] %v6220_v56  ;;  %v6224_v60 = vadd.f32 %v2777_v59, %v2138_v21  ;;  %v2779_v61 = vpop.f32.mrb[3].mxu0  ;;  %2988 = vrot.lane.b32.xlu0 %v6220_v56, %s5122_s0 }
 0x1f2   :  { %v6228_v62 = vadd.f32 %v2779_v61, %v2140_v22 }
 0x1f3   :  { %7085 = vst [vmem:[#allocation3_spill] sm:$0xff] %v6224_v60 }
 0x1f4   :  { %3170 = vrot.lane.b32.xlu1 %v6228_v62, %s5122_s0 }
 0x1f5   :  { %3168 = vrot.lane.b32.xlu0 %v6222_v58, %s5122_s0 }
 0x1f6   :  { %v2783_v63 = vpop.f32.mrb[4].mxu0 }
 0x1f7   :  { %v6234_v0 = vadd.f32 %v2783_v63, %v2144_v23  ;;  %v2785_v1 = vpop.f32.mrb[5].mxu0 }
 0x1f8   :  { %v6236_v2 = vadd.f32 %v2785_v1, %v2146_v24  ;;  %v2787_v3 = vpop.f32.mrb[6].mxu0 }
 0x1f9   :  { %v6238_v4 = vadd.f32 %v2787_v3, %v2148_v25  ;;  %v2789_v5 = vpop.f32.mrb[7].mxu0  ;;  %2990 = vrot.lane.b32.xlu0 %v6224_v60, %s5122_s0  ;;  %2992 = vrot.lane.b32.xlu1 %v6234_v0, %s5122_s0 }
 0x1fa   :  { %v6244_v6 = vadd.f32 %v2789_v5, %v2150_v26 }
 0x1fd   :  { %3172 = vrot.lane.b32.xlu0 %v6236_v2, %s5122_s0  ;;  %2994 = vrot.lane.b32.xlu1 %v6238_v4, %s5122_s0 }
 0x1fe   :  { %v2793_v7 = vpop.f32.mrb[8].mxu0 }
 0x1ff   :  { %v6250_v8 = vadd.f32 %v2793_v7, %v2154_v27  ;;  %v2795_v9 = vpop.f32.mrb[9].mxu0 }
 0x200   :  { %v6252_v10 = vadd.f32 %v2795_v9, %v2156_v28  ;;  %v2797_v11 = vpop.f32.mrb[10].mxu0 }
 0x201   :  { %v6254_v12 = vadd.f32 %v2797_v11, %v2158_v29  ;;  %v2799_v13 = vpop.f32.mrb[11].mxu0  ;;  %3174 = vrot.lane.b32.xlu1 %v6244_v6, %s5122_s0  ;;  %2996 = vrot.lane.b32.xlu0 %v6250_v8, %s5122_s0 }
 0x202   :  { %v6260_v14 = vadd.f32 %v2799_v13, %v2160_v30 }
 0x205   :  { %3176 = vrot.lane.b32.xlu0 %v6252_v10, %s5122_s0  ;;  %2998 = vrot.lane.b32.xlu1 %v6254_v12, %s5122_s0 }
 0x206   :  { %v2803_v15 = vpop.f32.mrb[12].mxu0 }
 0x207   :  { %v6266_v16 = vadd.f32 %v2803_v15, %v2164_v31  ;;  %v2805_v17 = vpop.f32.mrb[13].mxu0 }
 0x208   :  { %v6268_v18 = vadd.f32 %v2805_v17, %v2166_v32  ;;  %v2807_v19 = vpop.f32.mrb[14].mxu0 }
 0x209   :  { %v6271_v20 = vadd.f32 %v2807_v19, %v6176_v33  ;;  %v2809_v21 = vpop.f32.mrb[15].mxu0  ;;  %3178 = vrot.lane.b32.xlu1 %v6260_v14, %s5122_s0  ;;  %3000 = vrot.lane.b32.xlu0 %v6266_v16, %s5122_s0 }
 0x20a   :  { %v6278_v22 = vadd.f32 %v2809_v21, %v6178_v34 }
 0x20d   :  { %3180 = vrot.lane.b32.xlu0 %v6268_v18, %s5122_s0  ;;  %3002 = vrot.lane.b32.xlu1 %v6271_v20, %s5122_s0 }
 0x20e   :  { %v2813_v23 = vpop.f32.mrb[16].mxu0 }
 0x20f   :  { %v6285_v24 = vadd.f32 %v2813_v23, %v6180_v35  ;;  %v2815_v25 = vpop.f32.mrb[17].mxu0 }
 0x210   :  { %v6288_v26 = vadd.f32 %v2815_v25, %v6182_v36  ;;  %v2817_v27 = vpop.f32.mrb[18].mxu0 }
 0x211   :  { %v6291_v28 = vadd.f32 %v2817_v27, %v6184_v37  ;;  %v2819_v29 = vpop.f32.mrb[19].mxu0  ;;  %3182 = vrot.lane.b32.xlu1 %v6278_v22, %s5122_s0  ;;  %3004 = vrot.lane.b32.xlu0 %v6285_v24, %s5122_s0 }
 0x212   :  { %v6298_v30 = vadd.f32 %v2819_v29, %v6186_v38 }
 0x215   :  { %3184 = vrot.lane.b32.xlu0 %v6288_v26, %s5122_s0  ;;  %3006 = vrot.lane.b32.xlu1 %v6291_v28, %s5122_s0 }
 0x216   :  { %v2823_v31 = vpop.f32.mrb[20].mxu0 }
 0x217   :  { %v6305_v32 = vadd.f32 %v2823_v31, %v6188_v39  ;;  %v2825_v33 = vpop.f32.mrb[21].mxu0 }
 0x218   :  { %v6308_v34 = vadd.f32 %v2825_v33, %v6190_v40  ;;  %v2827_v35 = vpop.f32.mrb[22].mxu0 }
 0x219   :  { %v6311_v36 = vadd.f32 %v2827_v35, %v6192_v41  ;;  %v2829_v37 = vpop.f32.mrb[23].mxu0  ;;  %3186 = vrot.lane.b32.xlu1 %v6298_v30, %s5122_s0  ;;  %3008 = vrot.lane.b32.xlu0 %v6305_v32, %s5122_s0 }
 0x21a   :  { %v6318_v38 = vadd.f32 %v2829_v37, %v6194_v42 }
 0x21d   :  { %3188 = vrot.lane.b32.xlu0 %v6308_v34, %s5122_s0  ;;  %3010 = vrot.lane.b32.xlu1 %v6311_v36, %s5122_s0 }
 0x21e   :  { %v2833_v39 = vpop.f32.mrb[24].mxu0 }
 0x21f   :  { %v6325_v40 = vadd.f32 %v2833_v39, %v6196_v43  ;;  %v2835_v41 = vpop.f32.mrb[25].mxu0 }
 0x220   :  { %v6328_v55 = vadd.f32 %v2835_v41, %v6198_v44  ;;  %v2837_v57 = vpop.f32.mrb[26].mxu0 }
 0x221   :  { %v6331_v59 = vadd.f32 %v2837_v57, %v6200_v45  ;;  %v2839_v42 = vpop.f32.mrb[27].mxu0  ;;  %3190 = vrot.lane.b32.xlu1 %v6318_v38, %s5122_s0  ;;  %3012 = vrot.lane.b32.xlu0 %v6325_v40, %s5122_s0 }
 0x222   :  { %v6338_v61 = vadd.f32 %v2839_v42, %v6202_v46 }
 0x225   :  { %3192 = vrot.lane.b32.xlu0 %v6328_v55, %s5122_s0  ;;  %3014 = vrot.lane.b32.xlu1 %v6331_v59, %s5122_s0 }
 0x226   :  { %v2843_v43 = vpop.f32.mrb[28].mxu0 }
 0x227   :  { %v6345_v44 = vadd.f32 %v2843_v43, %v6204_v47  ;;  %v2845_v45 = vpop.f32.mrb[29].mxu0 }
 0x228   :  { %v6348_v63 = vadd.f32 %v2845_v45, %v6206_v48  ;;  %v2847_v1 = vpop.f32.mrb[30].mxu0 }
 0x229   :  { %v6351_v3 = vadd.f32 %v2847_v1, %v6208_v49  ;;  %v2849_v46 = vpop.f32.mrb[31].mxu0  ;;  %3194 = vrot.lane.b32.xlu1 %v6338_v61, %s5122_s0  ;;  %3016 = vrot.lane.b32.xlu0 %v6345_v44, %s5122_s0 }
 0x22a   :  { %v6358_v5 = vadd.f32 %v2849_v46, %v6210_v50 }
 0x22d   :  { %3196 = vrot.lane.b32.xlu0 %v6348_v63, %s5122_s0  ;;  %3018 = vrot.lane.b32.xlu1 %v6351_v3, %s5122_s0 }
 0x22e   :  { %v2853_v47 = vpop.f32.mrb[32].mxu0 }
 0x22f   :  { %v6365_v48 = vadd.f32 %v2853_v47, %v6212_v51  ;;  %v2855_v49 = vpop.f32.mrb[33].mxu0 }
 0x230   :  { %v6368_v7 = vadd.f32 %v2855_v49, %v6214_v52  ;;  %v2857_v9 = vpop.f32.mrb[34].mxu0 }
 0x231   :  { %v6371_v11 = vadd.f32 %v2857_v9, %v6216_v53  ;;  %v2859_v50 = vpop.f32.mrb[35].mxu0  ;;  %3198 = vrot.lane.b32.xlu1 %v6358_v5, %s5122_s0  ;;  %3020 = vrot.lane.b32.xlu0 %v6365_v48, %s5122_s0 }
 0x232   :  { %v6378_v13 = vadd.f32 %v2859_v50, %v6218_v54 }
 0x235   :  { %3200 = vrot.lane.b32.xlu0 %v6368_v7, %s5122_s0  ;;  %3022 = vrot.lane.b32.xlu1 %v6371_v11, %s5122_s0  ;;  %v2437_v51 = vpop.f32.mrb[36].mxu1 }
 0x236   :  { %v2863_v52 = vpop.f32.mrb[36].mxu0  ;;  %v2439_v15 = vpop.f32.mrb[37].mxu1 }
 0x237   :  { %v6384_v53 = vadd.f32 %v2863_v52, %v2437_v51  ;;  %v2865_v17 = vpop.f32.mrb[37].mxu0  ;;  %v2441_v21 = vpop.f32.mrb[38].mxu1 }
 0x238   :  { %v6386_v19 = vadd.f32 %v2865_v17, %v2439_v15  ;;  %v2867_v23 = vpop.f32.mrb[38].mxu0  ;;  %v2443_v27 = vpop.f32.mrb[39].mxu1 }
 0x239   :  { %v6388_v25 = vadd.f32 %v2867_v23, %v2441_v21  ;;  %v2869_v54 = vpop.f32.mrb[39].mxu0  ;;  %3202 = vrot.lane.b32.xlu1 %v6378_v13, %s5122_s0  ;;  %3024 = vrot.lane.b32.xlu0 %v6384_v53, %s5122_s0 }
 0x23a   :  { %v6394_v29 = vadd.f32 %v2869_v54, %v2443_v27 }
 0x23d   :  { %3204 = vrot.lane.b32.xlu0 %v6386_v19, %s5122_s0  ;;  %3026 = vrot.lane.b32.xlu1 %v6388_v25, %s5122_s0  ;;  %v2447_v31 = vpop.f32.mrb[40].mxu1 }
 0x23e   :  { %v2873_v33 = vpop.f32.mrb[40].mxu0  ;;  %v2449_v37 = vpop.f32.mrb[41].mxu1 }
 0x23f   :  { %v6400_v35 = vadd.f32 %v2873_v33, %v2447_v31  ;;  %v2875_v39 = vpop.f32.mrb[41].mxu0  ;;  %v2451_v57 = vpop.f32.mrb[42].mxu1 }
 0x240   :  { %v6402_v41 = vadd.f32 %v2875_v39, %v2449_v37  ;;  %v2877_v42 = vpop.f32.mrb[42].mxu0  ;;  %v2453_v1 = vpop.f32.mrb[43].mxu1 }
 0x241   :  { %v6404_v43 = vadd.f32 %v2877_v42, %v2451_v57  ;;  %v2879_v45 = vpop.f32.mrb[43].mxu0  ;;  %3206 = vrot.lane.b32.xlu1 %v6394_v29, %s5122_s0  ;;  %3028 = vrot.lane.b32.xlu0 %v6400_v35, %s5122_s0 }
 0x242   :  { %v6410_v46 = vadd.f32 %v2879_v45, %v2453_v1 }
 0x245   :  { %3208 = vrot.lane.b32.xlu0 %v6402_v41, %s5122_s0  ;;  %3030 = vrot.lane.b32.xlu1 %v6404_v43, %s5122_s0  ;;  %v2457_v47 = vpop.f32.mrb[44].mxu1 }
 0x246   :  { %v2883_v49 = vpop.f32.mrb[44].mxu0  ;;  %v2459_v50 = vpop.f32.mrb[45].mxu1 }
 0x247   :  { %v6416_v9 = vadd.f32 %v2883_v49, %v2457_v47  ;;  %v2885_v51 = vpop.f32.mrb[45].mxu0  ;;  %v2461_v15 = vpop.f32.mrb[46].mxu1 }
 0x248   :  { %v6418_v52 = vadd.f32 %v2885_v51, %v2459_v50  ;;  %v2887_v17 = vpop.f32.mrb[46].mxu0  ;;  %v2463_v54 = vpop.f32.mrb[47].mxu1 }
 0x249   :  { %7086 = vst [vmem:[#allocation4_spill] sm:$0xff] %v6416_v9  ;;  %v6420_v21 = vadd.f32 %v2887_v17, %v2461_v15  ;;  %v2889_v23 = vpop.f32.mrb[47].mxu0  ;;  %3210 = vrot.lane.b32.xlu1 %v6410_v46, %s5122_s0  ;;  %3032 = vrot.lane.b32.xlu0 %v6416_v9, %s5122_s0 }
 0x24a   :  { %v6426_v27 = vadd.f32 %v2889_v23, %v2463_v54 }
 0x24b   :  { %7087 = vst [vmem:[#allocation5_spill] sm:$0xff] %v6420_v21 }
 0x24c   :  { %7088 = vst [vmem:[#allocation6_spill] sm:$0xff] %v6426_v27 }
 0x24d   :  { %3212 = vrot.lane.b32.xlu0 %v6418_v52, %s5122_s0  ;;  %3034 = vrot.lane.b32.xlu1 %v6420_v21, %s5122_s0  ;;  %v2467_v31 = vpop.f32.mrb[48].mxu1 }
 0x24e   :  { %v2893_v33 = vpop.f32.mrb[48].mxu0  ;;  %v2469_v39 = vpop.f32.mrb[49].mxu1 }
 0x24f   :  { %v6432_v37 = vadd.f32 %v2893_v33, %v2467_v31  ;;  %v2895_v57 = vpop.f32.mrb[49].mxu0  ;;  %v2471_v45 = vpop.f32.mrb[50].mxu1 }
 0x250   :  { %v6434_v42 = vadd.f32 %v2895_v57, %v2469_v39  ;;  %v2897_v1 = vpop.f32.mrb[50].mxu0  ;;  %v2473_v50 = vpop.f32.mrb[51].mxu1 }
 0x251   :  { %7089 = vst [vmem:[#allocation7_spill] sm:$0xff] %v6432_v37  ;;  %v6436_v47 = vadd.f32 %v2897_v1, %v2471_v45  ;;  %v2899_v49 = vpop.f32.mrb[51].mxu0  ;;  %3214 = vrot.lane.b32.xlu1 %v6426_v27, %s5122_s0  ;;  %3036 = vrot.lane.b32.xlu0 %v6432_v37, %s5122_s0 }
 0x252   :  { %7090 = vst [vmem:[#allocation8_spill] sm:$0xff] %v6434_v42  ;;  %v6442_v51 = vadd.f32 %v2899_v49, %v2473_v50 }
 0x253   :  { %7091 = vst [vmem:[#allocation9_spill] sm:$0xff] %v6436_v47 }
 0x254   :  { %7092 = vst [vmem:[#allocation10_spill] sm:$0xff] %v6442_v51 }
 0x255   :  { %3216 = vrot.lane.b32.xlu0 %v6434_v42, %s5122_s0  ;;  %3038 = vrot.lane.b32.xlu1 %v6436_v47, %s5122_s0  ;;  %v2477_v15 = vpop.f32.mrb[52].mxu1 }
 0x256   :  { %v2903_v17 = vpop.f32.mrb[52].mxu0  ;;  %v2479_v54 = vpop.f32.mrb[53].mxu1 }
 0x257   :  { %v6448_v23 = vadd.f32 %v2903_v17, %v2477_v15  ;;  %v2905_v31 = vpop.f32.mrb[53].mxu0  ;;  %v2481_v39 = vpop.f32.mrb[54].mxu1 }
 0x258   :  { %v6450_v33 = vadd.f32 %v2905_v31, %v2479_v54  ;;  %v2907_v57 = vpop.f32.mrb[54].mxu0  ;;  %v2483_v49 = vpop.f32.mrb[55].mxu1 }
 0x259   :  { %7093 = vst [vmem:[#allocation11_spill] sm:$0xff] %v6448_v23  ;;  %v6452_v45 = vadd.f32 %v2907_v57, %v2481_v39  ;;  %v2909_v1 = vpop.f32.mrb[55].mxu0  ;;  %3218 = vrot.lane.b32.xlu1 %v6442_v51, %s5122_s0  ;;  %3040 = vrot.lane.b32.xlu0 %v6448_v23, %s5122_s0 }
 0x25a   :  { %7094 = vst [vmem:[#allocation12_spill] sm:$0xff] %v6450_v33  ;;  %v6458_v50 = vadd.f32 %v2909_v1, %v2483_v49 }
 0x25b   :  { %7095 = vst [vmem:[#allocation13_spill] sm:$0xff] %v6452_v45 }
 0x25c   :  { %7096 = vst [vmem:[#allocation14_spill] sm:$0xff] %v6458_v50 }
 0x25d   :  { %3220 = vrot.lane.b32.xlu0 %v6450_v33, %s5122_s0  ;;  %3042 = vrot.lane.b32.xlu1 %v6452_v45, %s5122_s0  ;;  %v2487_v15 = vpop.f32.mrb[56].mxu1 }
 0x25e   :  { %v2913_v17 = vpop.f32.mrb[56].mxu0  ;;  %v2489_v31 = vpop.f32.mrb[57].mxu1 }
 0x25f   :  { %v6464_v54 = vadd.f32 %v2913_v17, %v2487_v15  ;;  %v2915_v39 = vpop.f32.mrb[57].mxu0  ;;  %v2491_v51 = vpop.f32.mrb[58].mxu1 }
 0x260   :  { %v6466_v57 = vadd.f32 %v2915_v39, %v2489_v31  ;;  %v2917_v47 = vpop.f32.mrb[58].mxu0  ;;  %v2493_v49 = vpop.f32.mrb[59].mxu1 }
 0x261   :  { %7097 = vst [vmem:[#allocation15_spill] sm:$0xff] %v6464_v54  ;;  %v6468_v23 = vadd.f32 %v2917_v47, %v2491_v51  ;;  %v2919_v1 = vpop.f32.mrb[59].mxu0  ;;  %3222 = vrot.lane.b32.xlu1 %v6458_v50, %s5122_s0  ;;  %3044 = vrot.lane.b32.xlu0 %v6464_v54, %s5122_s0 }
 0x262   :  { %7098 = vst [vmem:[#allocation16_spill] sm:$0xff] %v6466_v57  ;;  %v6474_v45 = vadd.f32 %v2919_v1, %v2493_v49 }
 0x263   :  { %7099 = vst [vmem:[#allocation17_spill] sm:$0xff] %v6468_v23  ;;  %v6476_v15 = vpop.permute.xlu0 %2988 }
 0x264   :  { %7100 = vst [vmem:[#allocation18_spill] sm:$0xff] %v6474_v45  ;;  %7101 = vst [vmem:[#allocation19_spill] sm:$0xff] %v6476_v15 }
 0x265   :  { %3224 = vrot.lane.b32.xlu0 %v6466_v57, %s5122_s0  ;;  %3046 = vrot.lane.b32.xlu1 %v6468_v23, %s5122_s0  ;;  %v2497_v17 = vpop.f32.mrb[60].mxu1 }
 0x266   :  { %v2923_v47 = vpop.f32.mrb[60].mxu0  ;;  %v3171_v51 = vpop.permute.xlu1 %3170 }
 0x267   :  { %v2925_v31 = vpop.f32.mrb[61].mxu0  ;;  %v6482_v39 = vadd.f32 %v2923_v47, %v2497_v17  ;;  %v3169_v50 = vpop.permute.xlu0 %3168 }
 0x268   :  { %v2499_v33 = vpop.f32.mrb[61].mxu1  ;;  %v3276_v54 = vmax.f32 %v6220_v56, %v3169_v50  ;;  %v2927_v42 = vpop.f32.mrb[62].mxu0  ;;  %v3277_v27 = vmax.f32 %v6222_v58, %v3169_v50 }
 0x269   :  { %7102 = vst [vmem:[#allocation20_spill] sm:$0xff] %v6482_v39  ;;  %v6485_v1 = vadd.f32 %v2925_v31, %v2499_v33  ;;  %v2501_v49 = vpop.f32.mrb[62].mxu1  ;;  %3226 = vrot.lane.b32.xlu1 %v6474_v45, %s5122_s0  ;;  %v2929_v23 = vpop.f32.mrb[63].mxu0 }
 0x26a   :  { %v6489_v57 = vadd.f32 %v2927_v42, %v2501_v49  ;;  %v2503_v37 = vpop.f32.mrb[63].mxu1  ;;  %3420 = vrot.lane.b32.xlu0 %v3276_v54, %s5123_s9  ;;  %v3279_v42 = vmax.f32 %v6228_v62, %v3171_v51  ;;  %v3278_v54 = vmax.f32 %v6224_v60, %v3171_v51 }
 0x26b   :  { %7103 = vst [vmem:[#allocation21_spill] sm:$0xff] %v6485_v1  ;;  %v6492_v15 = vadd.f32 %v2929_v23, %v2503_v37  ;;  %v6495_v47 = vpop.permute.xlu1 %2992  ;;  %v6497_v33 = vpop.permute.xlu0 %2990 }
 0x26c   :  { %7104 = vst [vmem:[#allocation22_spill] sm:$0xff] %v6489_v57  ;;  %7105 = vst [vmem:[#allocation23_spill] sm:$0xff] %v6495_v47 }
 0x26d   :  { %7106 = vst [vmem:[#allocation24_spill] sm:$0xff] %v6497_v33  ;;  %3422 = vrot.lane.b32.xlu1 %v3277_v27, %s5123_s9  ;;  %v2507_v31 = vpop.f32.mrb[64].mxu1 }
 0x26e   :  { %v2933_v17 = vpop.f32.mrb[64].mxu0  ;;  %3048 = vrot.lane.b32.xlu0 %v6482_v39, %s5122_s0  ;;  %v2509_v50 = vpop.f32.mrb[65].mxu1 }
 0x26f   :  { %v6503_v49 = vadd.f32 %v2933_v17, %v2507_v31  ;;  %v2935_v58 = vpop.f32.mrb[65].mxu0  ;;  %v6505_v37 = vpop.permute.xlu1 %2994 }
 0x270   :  { %7107 = vst [vmem:[#allocation25_spill] sm:$0xff] %v6505_v37  ;;  %v3173_v23 = vpop.permute.xlu0 %3172  ;;  %v6508_v45 = vadd.f32 %v2935_v58, %v2509_v50  ;;  %v2511_v47 = vpop.f32.mrb[66].mxu1 }
 0x271   :  { %v2937_v27 = vpop.f32.mrb[66].mxu0  ;;  %3426 = vrot.lane.b32.xlu1 %v3279_v42, %s5123_s9  ;;  %v2513_v56 = vpop.f32.mrb[67].mxu1 }
 0x272   :  { %v6511_v33 = vadd.f32 %v2937_v27, %v2511_v47  ;;  %v2939_v62 = vpop.f32.mrb[67].mxu0  ;;  %3424 = vrot.lane.b32.xlu0 %v3278_v54, %s5123_s9  ;;  %v3280_v54 = vmax.f32 %v6234_v0, %v3173_v23 }
 0x273   :  { %v6513_v39 = vadd.f32 %v2939_v62, %v2513_v56  ;;  %v3175_v17 = vpop.permute.xlu1 %3174 }
 0x274   :  { %v6516_v31 = vpop.permute.xlu0 %2996 }
 0x275   :  { %7108 = vst [vmem:[#allocation26_spill] sm:$0xff] %v6516_v31  ;;  %3050 = vrot.lane.b32.xlu1 %v6489_v57, %s5122_s0  ;;  %v2517_v58 = vpop.f32.mrb[68].mxu1 }
 0x276   :  { %v2943_v51 = vpop.f32.mrb[68].mxu0  ;;  %3228 = vrot.lane.b32.xlu0 %v6485_v1, %s5122_s0  ;;  %v2519_v27 = vpop.f32.mrb[69].mxu1 }
 0x277   :  { %v6522_v42 = vadd.f32 %v2943_v51, %v2517_v58  ;;  %v2945_v47 = vpop.f32.mrb[69].mxu0  ;;  %v6524_v50 = vpop.permute.xlu1 %2998  ;;  %v3281_v51 = vmax.f32 %v6236_v2, %v3173_v23 }
 0x278   :  { %7109 = vst [vmem:[#allocation27_spill] sm:$0xff] %v6524_v50  ;;  %v3177_v56 = vpop.permute.xlu0 %3176  ;;  %v6527_v62 = vadd.f32 %v2945_v47, %v2519_v27  ;;  %v2521_v31 = vpop.f32.mrb[70].mxu1  ;;  %v3283_v47 = vmax.f32 %v6244_v6, %v3175_v17  ;;  %v3282_v27 = vmax.f32 %v6238_v4, %v3175_v17 }
 0x279   :  { %v2947_v37 = vpop.f32.mrb[70].mxu0  ;;  %3230 = vrot.lane.b32.xlu1 %v6492_v15, %s5122_s0  ;;  %v2523_v1 = vpop.f32.mrb[71].mxu1  ;;  %v3284_v23 = vmax.f32 %v6250_v8, %v3177_v56  ;;  %v3285_v17 = vmax.f32 %v6252_v10, %v3177_v56 }
 0x27a   :  { %v6531_v57 = vadd.f32 %v2947_v37, %v2521_v31  ;;  %v2949_v60 = vpop.f32.mrb[71].mxu0  ;;  %3428 = vrot.lane.b32.xlu0 %v3280_v54, %s5123_s9 }
 0x27b   :  { %v6534_v58 = vadd.f32 %v2949_v60, %v2523_v1  ;;  %v3179_v50 = vpop.permute.xlu1 %3178 }
 0x27c   :  { %v6537_v21 = vpop.permute.xlu0 %3000 }
 0x27d   :  { %3430 = vrot.lane.b32.xlu1 %v3281_v51, %s5123_s9 }
 0x27e   :  { %3052 = vrot.lane.b32.xlu0 %v6503_v49, %s5122_s0 }
 0x27f   :  { %v6543_v37 = vpop.permute.xlu1 %3002 }
 0x280   :  { %7110 = vst [vmem:[#allocation28_spill] sm:$0xff] %v6543_v37  ;;  %v3181_v31 = vpop.permute.xlu0 %3180 }
 0x281   :  { %3434 = vrot.lane.b32.xlu1 %v3283_v47, %s5123_s9  ;;  %v3287_v47 = vmax.f32 %v6260_v14, %v3179_v50 }
 0x282   :  { %3432 = vrot.lane.b32.xlu0 %v3282_v27, %s5123_s9 }
 0x283   :  { %v3183_v60 = vpop.permute.xlu1 %3182 }
 0x284   :  { %v6548_v2 = vpop.permute.xlu0 %3004 }
 0x285   :  { %7111 = vst [vmem:[#allocation29_spill] sm:$0xff] %v6548_v2  ;;  %3054 = vrot.lane.b32.xlu1 %v6511_v33, %s5122_s0  ;;  %v3286_v2 = vmax.f32 %v6254_v12, %v3179_v50  ;;  %v3289_v50 = vmax.f32 %v6268_v18, %v3181_v31 }
 0x286   :  { %3232 = vrot.lane.b32.xlu0 %v6508_v45, %s5122_s0 }
 0x287   :  { %v6554_v6 = vpop.permute.xlu1 %3006 }
 0x288   :  { %7112 = vst [vmem:[#allocation30_spill] sm:$0xff] %v6554_v6  ;;  %v3185_v1 = vpop.permute.xlu0 %3184 }
 0x289   :  { %3234 = vrot.lane.b32.xlu1 %v6513_v39, %s5122_s0  ;;  %v3292_v37 = vmax.f32 %v6285_v24, %v3185_v1  ;;  %v3293_v18 = vmax.f32 %v6288_v26, %v3185_v1 }
 0x28a   :  { %3436 = vrot.lane.b32.xlu0 %v3284_v23, %s5123_s9 }
 0x28b   :  { %v3187_v54 = vpop.permute.xlu1 %3186 }
 0x28c   :  { %v6561_v51 = vpop.permute.xlu0 %3008 }
 0x28d   :  { %7113 = vst [vmem:[#allocation31_spill] sm:$0xff] %v6561_v51  ;;  %3438 = vrot.lane.b32.xlu1 %v3285_v17, %s5123_s9  ;;  %v3288_v17 = vmax.f32 %v6266_v16, %v3181_v31 }
 0x28e   :  { %3056 = vrot.lane.b32.xlu0 %v6522_v42, %s5122_s0 }
 0x28f   :  { %v6567_v27 = vpop.permute.xlu1 %3010 }
 0x290   :  { %7114 = vst [vmem:[#allocation32_spill] sm:$0xff] %v6567_v27  ;;  %v3189_v6 = vpop.permute.xlu0 %3188  ;;  %v3291_v27 = vmax.f32 %v6278_v22, %v3183_v60  ;;  %v3295_v22 = vmax.f32 %v6298_v30, %v3187_v54 }
 0x291   :  { %3442 = vrot.lane.b32.xlu1 %v3287_v47, %s5123_s9  ;;  %v3297_v26 = vmax.f32 %v6308_v34, %v3189_v6 }
 0x292   :  { %3440 = vrot.lane.b32.xlu0 %v3286_v2, %s5123_s9 }
 0x293   :  { %v3191_v10 = vpop.permute.xlu1 %3190 }
 0x294   :  { %v6572_v56 = vpop.permute.xlu0 %3012  ;;  %v3299_v30 = vmax.f32 %v6318_v38, %v3191_v10 }
 0x295   :  { %7115 = vst [vmem:[#allocation33_spill] sm:$0xff] %v6572_v56  ;;  %3058 = vrot.lane.b32.xlu1 %v6531_v57, %s5122_s0  ;;  %v3290_v56 = vmax.f32 %v6271_v20, %v3183_v60 }
 0x296   :  { %3236 = vrot.lane.b32.xlu0 %v6527_v62, %s5122_s0 }
 0x297   :  { %v6578_v14 = vpop.permute.xlu1 %3014 }
 0x298   :  { %7116 = vst [vmem:[#allocation34_spill] sm:$0xff] %v6578_v14  ;;  %v3193_v23 = vpop.permute.xlu0 %3192 }
 0x299   :  { %3238 = vrot.lane.b32.xlu1 %v6534_v58, %s5122_s0  ;;  %v3301_v34 = vmax.f32 %v6328_v55, %v3193_v23 }
 0x29a   :  { %3444 = vrot.lane.b32.xlu0 %v3288_v17, %s5123_s9 }
 0x29b   :  { %v3195_v2 = vpop.permute.xlu1 %3194 }
 0x29c   :  { %v6585_v47 = vpop.permute.xlu0 %3016  ;;  %v3303_v38 = vmax.f32 %v6338_v61, %v3195_v2 }
 0x29d   :  { %3446 = vrot.lane.b32.xlu1 %v3289_v50, %s5123_s9  ;;  %v3294_v50 = vmax.f32 %v6291_v28, %v3187_v54 }
 0x29e   :  { %3448 = vrot.lane.b32.xlu0 %v3290_v56, %s5123_s9 }
 0x29f   :  { %v6591_v14 = vpop.permute.xlu1 %3018 }
 0x2a0   :  { %v3197_v51 = vpop.permute.xlu0 %3196 }
 0x2a1   :  { %3450 = vrot.lane.b32.xlu1 %v3291_v27, %s5123_s9  ;;  %v3296_v27 = vmax.f32 %v6305_v32, %v3189_v6  ;;  %v3305_v55 = vmax.f32 %v6348_v63, %v3197_v51 }
 0x2a2   :  { %3452 = vrot.lane.b32.xlu0 %v3292_v37, %s5123_s9 }
 0x2a3   :  { %v3199_v31 = vpop.permute.xlu1 %3198 }
 0x2a4   :  { %v6597_v17 = vpop.permute.xlu0 %3020  ;;  %v3307_v61 = vmax.f32 %v6358_v5, %v3199_v31 }
 0x2a5   :  { %3454 = vrot.lane.b32.xlu1 %v3293_v18, %s5123_s9  ;;  %v3298_v18 = vmax.f32 %v6311_v36, %v3191_v10 }
 0x2a6   :  { %3456 = vrot.lane.b32.xlu0 %v3294_v50, %s5123_s9 }
 0x2a7   :  { %v6603_v60 = vpop.permute.xlu1 %3022 }
 0x2a8   :  { %v3201_v56 = vpop.permute.xlu0 %3200 }
 0x2a9   :  { %3458 = vrot.lane.b32.xlu1 %v3295_v22, %s5123_s9  ;;  %v3300_v22 = vmax.f32 %v6325_v40, %v3193_v23  ;;  %v3309_v63 = vmax.f32 %v6368_v7, %v3201_v56 }
 0x2aa   :  { %3460 = vrot.lane.b32.xlu0 %v3296_v27, %s5123_s9 }
 0x2ab   :  { %v3203_v37 = vpop.permute.xlu1 %3202 }
 0x2ac   :  { %v6609_v1 = vpop.permute.xlu0 %3024  ;;  %v3311_v5 = vmax.f32 %v6378_v13, %v3203_v37 }
 0x2ad   :  { %3462 = vrot.lane.b32.xlu1 %v3297_v26, %s5123_s9  ;;  %v3302_v26 = vmax.f32 %v6331_v59, %v3195_v2 }
 0x2ae   :  { %3464 = vrot.lane.b32.xlu0 %v3298_v18, %s5123_s9 }
 0x2af   :  { %v6615_v54 = vpop.permute.xlu1 %3026 }
 0x2b0   :  { %v3205_v50 = vpop.permute.xlu0 %3204 }
 0x2b1   :  { %3466 = vrot.lane.b32.xlu1 %v3299_v30, %s5123_s9  ;;  %v3304_v30 = vmax.f32 %v6345_v44, %v3197_v51  ;;  %v3313_v7 = vmax.f32 %v6386_v19, %v3205_v50 }
 0x2b2   :  { %3468 = vrot.lane.b32.xlu0 %v3300_v22, %s5123_s9 }
 0x2b3   :  { %v3207_v6 = vpop.permute.xlu1 %3206 }
 0x2b4   :  { %v6621_v27 = vpop.permute.xlu0 %3028  ;;  %v3315_v13 = vmax.f32 %v6394_v29, %v3207_v6 }
 0x2b5   :  { %3470 = vrot.lane.b32.xlu1 %v3301_v34, %s5123_s9  ;;  %v3306_v34 = vmax.f32 %v6351_v3, %v3199_v31 }
 0x2b6   :  { %3472 = vrot.lane.b32.xlu0 %v3302_v26, %s5123_s9 }
 0x2b7   :  { %v6627_v10 = vpop.permute.xlu1 %3030 }
 0x2b8   :  { %v3209_v18 = vpop.permute.xlu0 %3208 }
 0x2b9   :  { %3474 = vrot.lane.b32.xlu1 %v3303_v38, %s5123_s9  ;;  %v3308_v38 = vmax.f32 %v6365_v48, %v3201_v56  ;;  %v3317_v19 = vmax.f32 %v6402_v41, %v3209_v18 }
 0x2ba   :  { %3476 = vrot.lane.b32.xlu0 %v3304_v30, %s5123_s9 }
 0x2bb   :  { %v3211_v23 = vpop.permute.xlu1 %3210 }
 0x2bc   :  { %v6633_v22 = vpop.permute.xlu0 %3032  ;;  %v3319_v29 = vmax.f32 %v6410_v46, %v3211_v23  ;;  %v7125_v46 = vld [vmem:[#allocation19_spill] sm:$0xff] }
 0x2bd   :  { %3478 = vrot.lane.b32.xlu1 %v3305_v55, %s5123_s9  ;;  %v3310_v55 = vmax.f32 %v6371_v11, %v3203_v37 }
 0x2be   :  { %3480 = vrot.lane.b32.xlu0 %v3306_v34, %s5123_s9 }
 0x2bf   :  { %v6639_v2 = vpop.permute.xlu1 %3034 }
 0x2c0   :  { %7117 = vst [vmem:[#allocation35_spill] sm:$0xff] %v6639_v2  ;;  %v3213_v26 = vpop.permute.xlu0 %3212  ;;  %v7133_v2 = vld [vmem:[#allocation9_spill] sm:$0xff] }
 0x2c1   :  { %3482 = vrot.lane.b32.xlu1 %v3307_v61, %s5123_s9  ;;  %v3312_v61 = vmax.f32 %v6384_v53, %v3205_v50  ;;  %v3320_v41 = vmax.f32 %v6416_v9, %v3213_v26 }
 0x2c2   :  { %3484 = vrot.lane.b32.xlu0 %v3308_v38, %s5123_s9 }
 0x2c3   :  { %v3215_v51 = vpop.permute.xlu1 %3214 }
 0x2c4   :  { %v6645_v30 = vpop.permute.xlu0 %3036 }
 0x2c5   :  { %7118 = vst [vmem:[#allocation36_spill] sm:$0xff] %v6645_v30  ;;  %3486 = vrot.lane.b32.xlu1 %v3309_v63, %s5123_s9  ;;  %v3314_v63 = vmax.f32 %v6388_v25, %v3207_v6  ;;  %v7132_v30 = vld [vmem:[#allocation3_spill] sm:$0xff] }
 0x2c6   :  { %3488 = vrot.lane.b32.xlu0 %v3310_v55, %s5123_s9 }
 0x2c7   :  { %v6651_v31 = vpop.permute.xlu1 %3038 }
 0x2c8   :  { %7119 = vst [vmem:[#allocation37_spill] sm:$0xff] %v6651_v31  ;;  %v3217_v34 = vpop.permute.xlu0 %3216 }
 0x2c9   :  { %3490 = vrot.lane.b32.xlu1 %v3311_v5, %s5123_s9  ;;  %v3316_v5 = vmax.f32 %v6400_v35, %v3209_v18  ;;  %v3321_v18 = vmax.f32 %v6418_v52, %v3213_v26  ;;  %v6696_v52 = vld [vmem:[%s7053_s2] ss:$0 sm:$0xff] }
 0x2ca   :  { %3492 = vrot.lane.b32.xlu0 %v3312_v61, %s5123_s9 }
 0x2cb   :  { %v3219_v56 = vpop.permute.xlu1 %3218 }
 0x2cc   :  { %v6657_v38 = vpop.permute.xlu0 %3040  ;;  %v3326_v9 = vmax.f32 %v7133_v2, %v3219_v56 }
 0x2cd   :  { %7120 = vst [vmem:[#allocation38_spill] sm:$0xff] %v6657_v38  ;;  %3494 = vrot.lane.b32.xlu1 %v3313_v7, %s5123_s9  ;;  %v3318_v7 = vmax.f32 %v6404_v43, %v3211_v23  ;;  %v7126_v23 = vld [vmem:[#allocation2_spill] sm:$0xff] }
 0x2ce   :  { %3496 = vrot.lane.b32.xlu0 %v3314_v63, %s5123_s9 }
 0x2cf   :  { %v6663_v37 = vpop.permute.xlu1 %3042 }
 0x2d0   :  { %7121 = vst [vmem:[#allocation39_spill] sm:$0xff] %v6663_v37  ;;  %v3221_v55 = vpop.permute.xlu0 %3220 }
 0x2d1   :  { %3498 = vrot.lane.b32.xlu1 %v3315_v13, %s5123_s9 }
 0x2d2   :  { %3500 = vrot.lane.b32.xlu0 %v3316_v5, %s5123_s9  ;;  %v7124_v5 = vld [vmem:[#allocation5_spill] sm:$0xff] }
 0x2d3   :  { %v6669_v50 = vpop.permute.xlu1 %3222 }
 0x2d4   :  { %v6671_v61 = vpop.permute.xlu0 %3044 }
 0x2d5   :  { %7122 = vst [vmem:[#allocation40_spill] sm:$0xff] %v6671_v61  ;;  %3502 = vrot.lane.b32.xlu1 %v3317_v19, %s5123_s9  ;;  %v3322_v19 = vmax.f32 %v7124_v5, %v3215_v51 }
 0x2d6   :  { %3504 = vrot.lane.b32.xlu0 %v3318_v7, %s5123_s9  ;;  %v3096_v7 = vmax.f32 %v7126_v23, %v7125_v46  ;;  %v7130_v46 = vld [vmem:[#allocation8_spill] sm:$0xff] }
 0x2d7   :  { %v6677_v6 = vpop.permute.xlu1 %3046  ;;  %v3325_v23 = vmax.f32 %v7130_v46, %v3217_v34 }
 0x2d8   :  { %7123 = vst [vmem:[#allocation41_spill] sm:$0xff] %v6677_v6  ;;  %v6679_v63 = vpop.permute.xlu0 %3224  ;;  %v7127_v6 = vld [vmem:[#allocation6_spill] sm:$0xff] }
 0x2d9   :  { %3506 = vrot.lane.b32.xlu1 %v3319_v29, %s5123_s9  ;;  %v3323_v37 = vmax.f32 %v7127_v6, %v3215_v51 }
 0x2da   :  { %3508 = vrot.lane.b32.xlu0 %v3320_v41, %s5123_s9  ;;  %v7128_v41 = vld [vmem:[#allocation7_spill] sm:$0xff] }
 0x2db   :  { %v6685_v13 = vpop.permute.xlu1 %3226  ;;  %v3324_v38 = vmax.f32 %v7128_v41, %v3217_v34 }
 0x2dc   :  { %v3421_v61 = vpop.permute.xlu0 %3420 }
 0x2dd   :  { %3510 = vrot.lane.b32.xlu1 %v3321_v18, %s5123_s9 }
 0x2de   :  { %3512 = vrot.lane.b32.xlu0 %v3322_v19, %s5123_s9  ;;  %v7131_v19 = vld [vmem:[#allocation24_spill] sm:$0xff] }
 0x2df   :  { %v3423_v29 = vpop.permute.xlu1 %3422  ;;  %v3097_v5 = vmax.f32 %v7132_v30, %v7131_v19 }
 0x2e0   :  { %v3565_v26 = vsel %vm3564_vm0, %v3421_v61, %v3423_v29  ;;  %v6700_v18 = vpop.permute.xlu0 %3048 }
 0x2e1   :  { %v3637_v31 = vmax.f32 %v3096_v7, %v3565_v26  ;;  %7129 = vst [vmem:[#allocation19_spill] sm:$0xff] %v6700_v18  ;;  %3514 = vrot.lane.b32.xlu1 %v3323_v37, %s5123_s9  ;;  %v7134_v37 = vld [vmem:[#allocation10_spill] sm:$0xff] }
 0x2e2   :  { %3516 = vrot.lane.b32.xlu0 %v3324_v38, %s5123_s9  ;;  %v3327_v26 = vmax.f32 %v7134_v37, %v3219_v56  ;;  %v7135_v38 = vld [vmem:[#allocation11_spill] sm:$0xff] }
 0x2e3   :  { %v3680_v51 = vadd.f32 %v6696_v52, %v3637_v31  ;;  %v3427_v6 = vpop.permute.xlu1 %3426  ;;  %v3328_v18 = vmax.f32 %v7135_v38, %v3221_v55 }
 0x2e4   :  { %v3425_v29 = vpop.permute.xlu0 %3424 }
 0x2e5   :  { %v3716_v61 = vmax.f32 %v3680_v51, 0.0  ;;  %3518 = vrot.lane.b32.xlu1 %v3325_v23, %s5123_s9  ;;  %v3566_v7 = vsel %vm3564_vm0, %v3425_v29, %v3427_v6  ;;  %v7136_v51 = vld [vmem:[#allocation12_spill] sm:$0xff] }
 0x2e6   :  { %v3638_v46 = vmax.f32 %v3097_v5, %v3566_v7  ;;  %3520 = vrot.lane.b32.xlu0 %v3326_v9, %s5123_s9  ;;  %v3329_v56 = vmax.f32 %v7136_v51, %v3221_v55  ;;  %v7137_v5 = vld [vmem:[#allocation13_spill] sm:$0xff]  ;;  %v7138_v7 = vld [vmem:[#allocation23_spill] sm:$0xff] }
 0x2e7   :  { %v4280_v34 = vpack.c.bf16 %v3716_v61, %v3716_v61  ;;  %v6713_v31 = vpop.permute.xlu1 %3050  ;;  %v3330_v19 = vmax.f32 %v7137_v5, %v6669_v50  ;;  %v3098_v37 = vmax.f32 %v6234_v0, %v7138_v7  ;;  %v7142_v0 = vld [vmem:[#allocation16_spill] sm:$0xff] }
 0x2e8   :  { %v3681_v30 = vadd.f32 %v6696_v52, %v3638_v46  ;;  %v3229_v23 = vpop.permute.xlu0 %3228 }
 0x2e9   :  { %3897 = vst.msk [vmem:[%s7054_s3] sm:$0xf] %vm3896_vm1, %v4280_v34  ;;  %3522 = vrot.lane.b32.xlu1 %v3327_v26, %s5123_s9  ;;  %v7139_v34 = vld [vmem:[#allocation14_spill] sm:$0xff]  ;;  %v7140_v26 = vld [vmem:[#allocation15_spill] sm:$0xff] }
 0x2ea   :  { %v3717_v6 = vmax.f32 %v3681_v30, 0.0  ;;  %3524 = vrot.lane.b32.xlu0 %v3328_v18, %s5123_s9  ;;  %v3331_v46 = vmax.f32 %v7139_v34, %v6669_v50  ;;  %v3332_v30 = vmax.f32 %v7140_v26, %v6679_v63  ;;  %v3333_v50 = vmax.f32 %v7142_v0, %v6679_v63 }
 0x2eb   :  { %v3231_v9 = vpop.permute.xlu1 %3230 }
 0x2ec   :  { %v4281_v61 = vpack.c.bf16 %v3717_v6, %v3717_v6  ;;  %v3429_v29 = vpop.permute.xlu0 %3428 }
 0x2ed   :  { %3526 = vrot.lane.b32.xlu1 %v3329_v56, %s5123_s9 }
 0x2ee   :  { %3898 = vst.msk [vmem:[%s7054_s3 + $0x4] sm:$0xf] %vm3896_vm1, %v4281_v61  ;;  %3528 = vrot.lane.b32.xlu0 %v3330_v19, %s5123_s9  ;;  %v7143_v19 = vld [vmem:[#allocation25_spill] sm:$0xff] }
 0x2ef   :  { %v3431_v55 = vpop.permute.xlu1 %3430  ;;  %v3099_v7 = vmax.f32 %v6238_v4, %v7143_v19 }
 0x2f0   :  { %v3567_v18 = vsel %vm3564_vm0, %v3429_v29, %v3431_v55  ;;  %v6739_v56 = vpop.permute.xlu0 %3052  ;;  %v7144_v29 = vld [vmem:[#allocation17_spill] sm:$0xff] }
 0x2f1   :  { %v3639_v51 = vmax.f32 %v3098_v37, %v3567_v18  ;;  %7141 = vst [vmem:[#allocation2_spill] sm:$0xff] %v6739_v56  ;;  %3530 = vrot.lane.b32.xlu1 %v3331_v46, %s5123_s9  ;;  %v3334_v34 = vmax.f32 %v7144_v29, %v6685_v13  ;;  %v7145_v18 = vld [vmem:[#allocation18_spill] sm:$0xff]  ;;  %v7146_v56 = vld [vmem:[#allocation20_spill] sm:$0xff] }
 0x2f2   :  { %3532 = vrot.lane.b32.xlu0 %v3332_v30, %s5123_s9  ;;  %v3335_v63 = vmax.f32 %v7145_v18, %v6685_v13  ;;  %v3336_v4 = vmax.f32 %v7146_v56, %v3229_v23  ;;  %v7149_v18 = vld [vmem:[#allocation26_spill] sm:$0xff] }
 0x2f3   :  { %v3682_v6 = vadd.f32 %v6696_v52, %v3639_v51  ;;  %v3435_v61 = vpop.permute.xlu1 %3434 }
 0x2f4   :  { %v3433_v37 = vpop.permute.xlu0 %3432 }
 0x2f5   :  { %v3718_v55 = vmax.f32 %v3682_v6, 0.0  ;;  %3534 = vrot.lane.b32.xlu1 %v3333_v50, %s5123_s9  ;;  %v3568_v46 = vsel %vm3564_vm0, %v3433_v37, %v3435_v61  ;;  %v7147_v61 = vld [vmem:[#allocation21_spill] sm:$0xff] }
 0x2f6   :  { %v3640_v51 = vmax.f32 %v3099_v7, %v3568_v46  ;;  %3536 = vrot.lane.b32.xlu0 %v3334_v34, %s5123_s9  ;;  %v3337_v13 = vmax.f32 %v7147_v61, %v3229_v23  ;;  %v7148_v34 = vld [vmem:[#allocation22_spill] sm:$0xff] }
 0x2f7   :  { %v4282_v0 = vpack.c.bf16 %v3718_v55, %v3718_v55  ;;  %v6755_v30 = vpop.permute.xlu1 %3054  ;;  %v3338_v55 = vmax.f32 %v7148_v34, %v3231_v9 }
 0x2f8   :  { %v3683_v50 = vadd.f32 %v6696_v52, %v3640_v51  ;;  %v3233_v6 = vpop.permute.xlu0 %3232  ;;  %v3339_v51 = vmax.f32 %v6492_v15, %v3231_v9 }
 0x2f9   :  { %3899 = vst.msk [vmem:[%s7054_s3 + $0x8] sm:$0xf] %vm3896_vm1, %v4282_v0  ;;  %3538 = vrot.lane.b32.xlu1 %v3335_v63, %s5123_s9  ;;  %v3100_v0 = vmax.f32 %v6250_v8, %v7149_v18  ;;  %v3341_v8 = vmax.f32 %v6508_v45, %v3233_v6 }
 0x2fa   :  { %v3719_v19 = vmax.f32 %v3683_v50, 0.0  ;;  %3540 = vrot.lane.b32.xlu0 %v3336_v4, %s5123_s9  ;;  %v3340_v4 = vmax.f32 %v6503_v49, %v3233_v6 }
 0x2fb   :  { %v3235_v7 = vpop.permute.xlu1 %3234 }
 0x2fc   :  { %v4283_v37 = vpack.c.bf16 %v3719_v19, %v3719_v19  ;;  %v3437_v46 = vpop.permute.xlu0 %3436 }
 0x2fd   :  { %3542 = vrot.lane.b32.xlu1 %v3337_v13, %s5123_s9  ;;  %v7150_v13 = vld [vmem:[#allocation27_spill] sm:$0xff] }
 0x2fe   :  { %3900 = vst.msk [vmem:[%s7054_s3 + $0xc] sm:$0xf] %vm3896_vm1, %v4283_v37  ;;  %3544 = vrot.lane.b32.xlu0 %v3338_v55, %s5123_s9  ;;  %v3101_v19 = vmax.f32 %v6254_v12, %v7150_v13  ;;  %v3342_v55 = vmax.f32 %v6511_v33, %v3235_v7 }
 0x2ff   :  { %v3439_v23 = vpop.permute.xlu1 %3438 }
 0x300   :  { %v3569_v63 = vsel %vm3564_vm0, %v3437_v46, %v3439_v23  ;;  %v6778_v61 = vpop.permute.xlu0 %3056 }
 0x301   :  { %v3641_v50 = vmax.f32 %v3100_v0, %v3569_v63  ;;  %3546 = vrot.lane.b32.xlu1 %v3339_v51, %s5123_s9  ;;  %v3343_v0 = vmax.f32 %v6513_v39, %v3235_v7 }
 0x302   :  { %3548 = vrot.lane.b32.xlu0 %v3340_v4, %s5123_s9 }
 0x303   :  { %v3684_v15 = vadd.f32 %v6696_v52, %v3641_v50  ;;  %v3443_v9 = vpop.permute.xlu1 %3442 }
 0x304   :  { %v3441_v46 = vpop.permute.xlu0 %3440 }
 0x305   :  { %v3720_v37 = vmax.f32 %v3684_v15, 0.0  ;;  %3550 = vrot.lane.b32.xlu1 %v3341_v8, %s5123_s9  ;;  %v3570_v18 = vsel %vm3564_vm0, %v3441_v46, %v3443_v9  ;;  %v3102_v9 = vmax.f32 %v6266_v16, %v6537_v21  ;;  %v7151_v46 = vld [vmem:[#allocation28_spill] sm:$0xff] }
 0x306   :  { %v3642_v45 = vmax.f32 %v3101_v19, %v3570_v18  ;;  %3552 = vrot.lane.b32.xlu0 %v3342_v55, %s5123_s9  ;;  %v3103_v18 = vmax.f32 %v6271_v20, %v7151_v46 }
 0x307   :  { %v4284_v51 = vpack.c.bf16 %v3720_v37, %v3720_v37  ;;  %v6791_v6 = vpop.permute.xlu1 %3058 }
 0x308   :  { %v3685_v12 = vadd.f32 %v6696_v52, %v3642_v45  ;;  %v3237_v23 = vpop.permute.xlu0 %3236 }
 0x309   :  { %3901 = vst.msk [vmem:[%s7054_s3 + $0x10] sm:$0xf] %vm3896_vm1, %v4284_v51  ;;  %3554 = vrot.lane.b32.xlu1 %v3343_v0, %s5123_s9  ;;  %v3344_v63 = vmax.f32 %v6522_v42, %v3237_v23  ;;  %v3345_v39 = vmax.f32 %v6527_v62, %v3237_v23 }
 0x30a   :  { %v3721_v4 = vmax.f32 %v3685_v12, 0.0  ;;  %v7152_v12 = vld [vmem:[#allocation29_spill] sm:$0xff] }
 0x30b   :  { %v3239_v7 = vpop.permute.xlu1 %3238  ;;  %3556 = vrot.lane.b32.xlu0 %v3344_v63, %s5123_s9  ;;  %v3104_v23 = vmax.f32 %v6285_v24, %v7152_v12 }
 0x30c   :  { %v3346_v50 = vmax.f32 %v6531_v57, %v3239_v7  ;;  %v4285_v8 = vpack.c.bf16 %v3721_v4, %v3721_v4  ;;  %v3445_v15 = vpop.permute.xlu0 %3444  ;;  %v3347_v13 = vmax.f32 %v6534_v58, %v3239_v7 }
 0x30d   :  { %3558 = vrot.lane.b32.xlu1 %v3345_v39, %s5123_s9 }
 0x30e   :  { %3902 = vst.msk [vmem:[%s7054_s3 + $0x14] sm:$0xf] %vm3896_vm1, %v4285_v8 }
 0x30f   :  { %v3447_v62 = vpop.permute.xlu1 %3446  ;;  %3560 = vrot.lane.b32.xlu0 %v3346_v50, %s5123_s9 }
 0x310   :  { %v3571_v19 = vsel %vm3564_vm0, %v3445_v15, %v3447_v62  ;;  %v3449_v37 = vpop.permute.xlu0 %3448  ;;  %v7153_v15 = vld [vmem:[#allocation30_spill] sm:$0xff] }
 0x311   :  { %v3643_v55 = vmax.f32 %v3102_v9, %v3571_v19  ;;  %3562 = vrot.lane.b32.xlu1 %v3347_v13, %s5123_s9  ;;  %v3105_v9 = vmax.f32 %v6291_v28, %v7153_v15  ;;  %v7156_v15 = vld [vmem:[#allocation33_spill] sm:$0xff] }
 0x313   :  { %v3686_v16 = vadd.f32 %v6696_v52, %v3643_v55  ;;  %v3451_v21 = vpop.permute.xlu1 %3450 }
 0x314   :  { %v3572_v0 = vsel %vm3564_vm0, %v3449_v37, %v3451_v21  ;;  %v3453_v58 = vpop.permute.xlu0 %3452 }
 0x315   :  { %v3722_v51 = vmax.f32 %v3686_v16, 0.0  ;;  %v3644_v45 = vmax.f32 %v3103_v18, %v3572_v0  ;;  %v7154_v18 = vld [vmem:[#allocation31_spill] sm:$0xff] }
 0x316   :  { %v3106_v16 = vmax.f32 %v6305_v32, %v7154_v18 }
 0x317   :  { %v4286_v63 = vpack.c.bf16 %v3722_v51, %v3722_v51  ;;  %v3687_v4 = vadd.f32 %v6696_v52, %v3644_v45  ;;  %v3455_v39 = vpop.permute.xlu1 %3454 }
 0x318   :  { %v3573_v7 = vsel %vm3564_vm0, %v3453_v58, %v3455_v39  ;;  %v3457_v8 = vpop.permute.xlu0 %3456 }
 0x319   :  { %3903 = vst.msk [vmem:[%s7054_s3 + $0x18] sm:$0xf] %vm3896_vm1, %v4286_v63  ;;  %v3723_v20 = vmax.f32 %v3687_v4, 0.0  ;;  %v3645_v50 = vmax.f32 %v3104_v23, %v3573_v7  ;;  %v7155_v23 = vld [vmem:[#allocation32_spill] sm:$0xff] }
 0x31a   :  { %v3107_v63 = vmax.f32 %v6311_v36, %v7155_v23 }
 0x31b   :  { %v4287_v13 = vpack.c.bf16 %v3723_v20, %v3723_v20  ;;  %v3688_v24 = vadd.f32 %v6696_v52, %v3645_v50  ;;  %v3459_v62 = vpop.permute.xlu1 %3458 }
 0x31c   :  { %v3574_v19 = vsel %vm3564_vm0, %v3457_v8, %v3459_v62  ;;  %v3461_v46 = vpop.permute.xlu0 %3460 }
 0x31d   :  { %3904 = vst.msk [vmem:[%s7054_s3 + $0x1c] sm:$0xf] %vm3896_vm1, %v4287_v13  ;;  %v3724_v55 = vmax.f32 %v3688_v24, 0.0  ;;  %v3646_v37 = vmax.f32 %v3105_v9, %v3574_v19  ;;  %v3108_v9 = vmax.f32 %v6325_v40, %v7156_v15 }
 0x31f   :  { %v4288_v21 = vpack.c.bf16 %v3724_v55, %v3724_v55  ;;  %v3689_v28 = vadd.f32 %v6696_v52, %v3646_v37  ;;  %v3463_v0 = vpop.permute.xlu1 %3462 }
 0x320   :  { %v3575_v51 = vsel %vm3564_vm0, %v3461_v46, %v3463_v0  ;;  %v3465_v12 = vpop.permute.xlu0 %3464  ;;  %v7157_v46 = vld [vmem:[#allocation34_spill] sm:$0xff] }
 0x321   :  { %3905 = vst.msk [vmem:[%s7054_s3 + $0x20] sm:$0xf] %vm3896_vm1, %v4288_v21  ;;  %v3725_v45 = vmax.f32 %v3689_v28, 0.0  ;;  %v3647_v58 = vmax.f32 %v3106_v16, %v3575_v51  ;;  %v3109_v18 = vmax.f32 %v6331_v59, %v7157_v46 }
 0x323   :  { %v4289_v4 = vpack.c.bf16 %v3725_v45, %v3725_v45  ;;  %v3690_v32 = vadd.f32 %v6696_v52, %v3647_v58  ;;  %v3467_v39 = vpop.permute.xlu1 %3466  ;;  %v3110_v58 = vmax.f32 %v6345_v44, %v6585_v47 }
 0x324   :  { %v3576_v7 = vsel %vm3564_vm0, %v3465_v12, %v3467_v39  ;;  %v3469_v8 = vpop.permute.xlu0 %3468 }
 0x325   :  { %3906 = vst.msk [vmem:[%s7054_s3 + $0x24] sm:$0xf] %vm3896_vm1, %v4289_v4  ;;  %v3726_v20 = vmax.f32 %v3690_v32, 0.0  ;;  %v3648_v50 = vmax.f32 %v3107_v63, %v3576_v7  ;;  %v3111_v7 = vmax.f32 %v6351_v3, %v6591_v14 }
 0x327   :  { %v4290_v13 = vpack.c.bf16 %v3726_v20, %v3726_v20  ;;  %v3691_v36 = vadd.f32 %v6696_v52, %v3648_v50  ;;  %v3471_v24 = vpop.permute.xlu1 %3470 }
 0x328   :  { %v3577_v62 = vsel %vm3564_vm0, %v3469_v8, %v3471_v24  ;;  %v3473_v37 = vpop.permute.xlu0 %3472 }
 0x329   :  { %3907 = vst.msk [vmem:[%s7054_s3 + $0x28] sm:$0xf] %vm3896_vm1, %v4290_v13  ;;  %v3727_v19 = vmax.f32 %v3691_v36, 0.0  ;;  %v3649_v55 = vmax.f32 %v3108_v9, %v3577_v62  ;;  %v3112_v13 = vmax.f32 %v6365_v48, %v6597_v17 }
 0x32b   :  { %v4291_v16 = vpack.c.bf16 %v3727_v19, %v3727_v19  ;;  %v3692_v40 = vadd.f32 %v6696_v52, %v3649_v55  ;;  %v3475_v21 = vpop.permute.xlu1 %3474 }
 0x32c   :  { %v3578_v28 = vsel %vm3564_vm0, %v3473_v37, %v3475_v21  ;;  %v3477_v45 = vpop.permute.xlu0 %3476  ;;  %v3113_v37 = vmax.f32 %v6371_v11, %v6603_v60 }
 0x32d   :  { %3908 = vst.msk [vmem:[%s7054_s3 + $0x2c] sm:$0xf] %vm3896_vm1, %v4291_v16  ;;  %v3728_v0 = vmax.f32 %v3692_v40, 0.0  ;;  %v3650_v51 = vmax.f32 %v3109_v18, %v3578_v28  ;;  %v3114_v28 = vmax.f32 %v6384_v53, %v6609_v1 }
 0x32f   :  { %v4292_v12 = vpack.c.bf16 %v3728_v0, %v3728_v0  ;;  %v3693_v59 = vadd.f32 %v6696_v52, %v3650_v51  ;;  %v3479_v23 = vpop.permute.xlu1 %3478 }
 0x330   :  { %v3579_v63 = vsel %vm3564_vm0, %v3477_v45, %v3479_v23  ;;  %v3481_v39 = vpop.permute.xlu0 %3480 }
 0x331   :  { %3909 = vst.msk [vmem:[%s7054_s3 + $0x30] sm:$0xf] %vm3896_vm1, %v4292_v12  ;;  %v3729_v4 = vmax.f32 %v3693_v59, 0.0  ;;  %v3651_v32 = vmax.f32 %v3110_v58, %v3579_v63  ;;  %v3115_v59 = vmax.f32 %v6388_v25, %v6615_v54 }
 0x333   :  { %v4293_v20 = vpack.c.bf16 %v3729_v4, %v3729_v4  ;;  %v3694_v44 = vadd.f32 %v6696_v52, %v3651_v32  ;;  %v3483_v47 = vpop.permute.xlu1 %3482 }
 0x334   :  { %v3580_v50 = vsel %vm3564_vm0, %v3481_v39, %v3483_v47  ;;  %v3485_v9 = vpop.permute.xlu0 %3484 }
 0x335   :  { %3910 = vst.msk [vmem:[%s7054_s3 + $0x34] sm:$0xf] %vm3896_vm1, %v4293_v20  ;;  %v3730_v8 = vmax.f32 %v3694_v44, 0.0  ;;  %v3652_v15 = vmax.f32 %v3111_v7, %v3580_v50  ;;  %v3116_v7 = vmax.f32 %v6400_v35, %v6621_v27 }
 0x337   :  { %v4294_v36 = vpack.c.bf16 %v3730_v8, %v3730_v8  ;;  %v3695_v3 = vadd.f32 %v6696_v52, %v3652_v15  ;;  %v3487_v14 = vpop.permute.xlu1 %3486  ;;  %v3117_v15 = vmax.f32 %v6404_v43, %v6627_v10 }
 0x338   :  { %v3581_v24 = vsel %vm3564_vm0, %v3485_v9, %v3487_v14  ;;  %v3489_v55 = vpop.permute.xlu0 %3488 }
 0x339   :  { %3911 = vst.msk [vmem:[%s7054_s3 + $0x38] sm:$0xf] %vm3896_vm1, %v4294_v36  ;;  %v3731_v62 = vmax.f32 %v3695_v3, 0.0  ;;  %v3653_v19 = vmax.f32 %v3112_v13, %v3581_v24  ;;  %v7158_v24 = vld [vmem:[#allocation4_spill] sm:$0xff] }
 0x33b   :  { %v4295_v46 = vpack.c.bf16 %v3731_v62, %v3731_v62  ;;  %v3696_v48 = vadd.f32 %v6696_v52, %v3653_v19  ;;  %v3491_v17 = vpop.permute.xlu1 %3490  ;;  %v3118_v62 = vmax.f32 %v7158_v24, %v6633_v22 }
 0x33c   :  { %v3582_v18 = vsel %vm3564_vm0, %v3489_v55, %v3491_v17  ;;  %v3493_v21 = vpop.permute.xlu0 %3492  ;;  %v7159_v17 = vld [vmem:[#allocation35_spill] sm:$0xff] }
 0x33d   :  { %3912 = vst.msk [vmem:[%s7054_s3 + $0x3c] sm:$0xf] %vm3896_vm1, %v4295_v46  ;;  %v3732_v16 = vmax.f32 %v3696_v48, 0.0  ;;  %v3654_v40 = vmax.f32 %v3113_v37, %v3582_v18  ;;  %v7160_v18 = vld [vmem:[#allocation5_spill] sm:$0xff] }
 0x33f   :  { %v4296_v0 = vpack.c.bf16 %v3732_v16, %v3732_v16  ;;  %v3697_v11 = vadd.f32 %v6696_v52, %v3654_v40  ;;  %v3495_v60 = vpop.permute.xlu1 %3494  ;;  %v3119_v16 = vmax.f32 %v7160_v18, %v7159_v17 }
 0x340   :  { %v3583_v51 = vsel %vm3564_vm0, %v3493_v21, %v3495_v60  ;;  %v3497_v12 = vpop.permute.xlu0 %3496 }
 0x341   :  { %3913 = vst.msk [vmem:[%s7054_s3 + $0x40] sm:$0xf] %vm3896_vm1, %v4296_v0  ;;  %v3733_v45 = vmax.f32 %v3697_v11, 0.0  ;;  %v3655_v58 = vmax.f32 %v3114_v28, %v3583_v51  ;;  %v7161_v51 = vld [vmem:[#allocation36_spill] sm:$0xff] }
 0x343   :  { %v4297_v23 = vpack.c.bf16 %v3733_v45, %v3733_v45  ;;  %v3698_v53 = vadd.f32 %v6696_v52, %v3655_v58  ;;  %v3499_v1 = vpop.permute.xlu1 %3498  ;;  %v3120_v45 = vmax.f32 %v7128_v41, %v7161_v51 }
 0x344   :  { %v3584_v63 = vsel %vm3564_vm0, %v3497_v12, %v3499_v1  ;;  %v3501_v39 = vpop.permute.xlu0 %3500 }
 0x345   :  { %3914 = vst.msk [vmem:[%s7054_s3 + $0x44] sm:$0xf] %vm3896_vm1, %v4297_v23  ;;  %v3734_v4 = vmax.f32 %v3698_v53, 0.0  ;;  %v3656_v32 = vmax.f32 %v3115_v59, %v3584_v63 }
 0x347   :  { %v4298_v20 = vpack.c.bf16 %v3734_v4, %v3734_v4  ;;  %v3699_v25 = vadd.f32 %v6696_v52, %v3656_v32  ;;  %v3503_v54 = vpop.permute.xlu1 %3502  ;;  %v7162_v4 = vld [vmem:[#allocation37_spill] sm:$0xff] }
 0x348   :  { %v3585_v44 = vsel %vm3564_vm0, %v3501_v39, %v3503_v54  ;;  %v3505_v8 = vpop.permute.xlu0 %3504  ;;  %v3121_v32 = vmax.f32 %v7133_v2, %v7162_v4 }
 0x349   :  { %3915 = vst.msk [vmem:[%s7054_s3 + $0x48] sm:$0xf] %vm3896_vm1, %v4298_v20  ;;  %v3735_v47 = vmax.f32 %v3699_v25, 0.0  ;;  %v3657_v50 = vmax.f32 %v3116_v7, %v3585_v44 }
 0x34b   :  { %v4299_v9 = vpack.c.bf16 %v3735_v47, %v3735_v47  ;;  %v3700_v35 = vadd.f32 %v6696_v52, %v3657_v50  ;;  %v3507_v27 = vpop.permute.xlu1 %3506  ;;  %v7163_v47 = vld [vmem:[#allocation38_spill] sm:$0xff] }
 0x34c   :  { %v3586_v13 = vsel %vm3564_vm0, %v3505_v8, %v3507_v27  ;;  %v3509_v14 = vpop.permute.xlu0 %3508  ;;  %v3122_v50 = vmax.f32 %v7135_v38, %v7163_v47 }
 0x34d   :  { %3916 = vst.msk [vmem:[%s7054_s3 + $0x4c] sm:$0xf] %vm3896_vm1, %v4299_v9  ;;  %v3736_v36 = vmax.f32 %v3700_v35, 0.0  ;;  %v3658_v3 = vmax.f32 %v3117_v15, %v3586_v13 }
 0x34f   :  { %v4300_v19 = vpack.c.bf16 %v3736_v36, %v3736_v36  ;;  %v3701_v43 = vadd.f32 %v6696_v52, %v3658_v3  ;;  %v3511_v10 = vpop.permute.xlu1 %3510  ;;  %v7164_v36 = vld [vmem:[#allocation39_spill] sm:$0xff] }
 0x350   :  { %v3587_v55 = vsel %vm3564_vm0, %v3509_v14, %v3511_v10  ;;  %v3513_v48 = vpop.permute.xlu0 %3512  ;;  %v3123_v3 = vmax.f32 %v7137_v5, %v7164_v36 }
 0x351   :  { %3917 = vst.msk [vmem:[%s7054_s3 + $0x50] sm:$0xf] %vm3896_vm1, %v4300_v19  ;;  %v3737_v37 = vmax.f32 %v3701_v43, 0.0  ;;  %v3659_v46 = vmax.f32 %v3118_v62, %v3587_v55  ;;  %v7165_v55 = vld [vmem:[#allocation40_spill] sm:$0xff] }
 0x353   :  { %v4301_v40 = vpack.c.bf16 %v3737_v37, %v3737_v37  ;;  %v3702_v22 = vadd.f32 %v6696_v52, %v3659_v46  ;;  %v3515_v21 = vpop.permute.xlu1 %3514  ;;  %v3124_v37 = vmax.f32 %v7140_v26, %v7165_v55  ;;  %v3131_v55 = vmax.f32 %v6531_v57, %v6791_v6 }
 0x354   :  { %v3588_v28 = vsel %vm3564_vm0, %v3513_v48, %v3515_v21  ;;  %v3517_v60 = vpop.permute.xlu0 %3516 }
 0x355   :  { %3918 = vst.msk [vmem:[%s7054_s3 + $0x54] sm:$0xf] %vm3896_vm1, %v4301_v40  ;;  %v3738_v0 = vmax.f32 %v3702_v22, 0.0  ;;  %v3660_v11 = vmax.f32 %v3119_v16, %v3588_v28  ;;  %v7166_v22 = vld [vmem:[#allocation41_spill] sm:$0xff] }
 0x356   :  { %v3125_v21 = vmax.f32 %v7144_v29, %v7166_v22 }
 0x357   :  { %v4302_v58 = vpack.c.bf16 %v3738_v0, %v3738_v0  ;;  %v3703_v12 = vadd.f32 %v6696_v52, %v3660_v11  ;;  %v3519_v59 = vpop.permute.xlu1 %3518 }
 0x358   :  { %v3589_v23 = vsel %vm3564_vm0, %v3517_v60, %v3519_v59  ;;  %v3521_v63 = vpop.permute.xlu0 %3520 }
 0x359   :  { %3919 = vst.msk [vmem:[%s7054_s3 + $0x58] sm:$0xf] %vm3896_vm1, %v4302_v58  ;;  %v3739_v53 = vmax.f32 %v3703_v12, 0.0  ;;  %v3661_v1 = vmax.f32 %v3120_v45, %v3589_v23  ;;  %v7167_v58 = vld [vmem:[#allocation19_spill] sm:$0xff] }
 0x35a   :  { %v3126_v12 = vmax.f32 %v7146_v56, %v7167_v58 }
 0x35b   :  { %v4303_v39 = vpack.c.bf16 %v3739_v53, %v3739_v53  ;;  %v3704_v41 = vadd.f32 %v6696_v52, %v3661_v1  ;;  %v3523_v7 = vpop.permute.xlu1 %3522 }
 0x35c   :  { %v3590_v20 = vsel %vm3564_vm0, %v3521_v63, %v3523_v7  ;;  %v3525_v44 = vpop.permute.xlu0 %3524 }
 0x35d   :  { %3920 = vst.msk [vmem:[%s7054_s3 + $0x5c] sm:$0xf] %vm3896_vm1, %v4303_v39  ;;  %v3740_v25 = vmax.f32 %v3704_v41, 0.0  ;;  %v3662_v54 = vmax.f32 %v3121_v32, %v3590_v20  ;;  %v3127_v32 = vmax.f32 %v7148_v34, %v6713_v31 }
 0x35f   :  { %v4304_v8 = vpack.c.bf16 %v3740_v25, %v3740_v25  ;;  %v3705_v2 = vadd.f32 %v6696_v52, %v3662_v54  ;;  %v3527_v15 = vpop.permute.xlu1 %3526 }
 0x360   :  { %v3591_v9 = vsel %vm3564_vm0, %v3525_v44, %v3527_v15  ;;  %v3529_v13 = vpop.permute.xlu0 %3528  ;;  %v7168_v44 = vld [vmem:[#allocation2_spill] sm:$0xff] }
 0x361   :  { %3921 = vst.msk [vmem:[%s7054_s3 + $0x60] sm:$0xf] %vm3896_vm1, %v4304_v8  ;;  %v3741_v35 = vmax.f32 %v3705_v2, 0.0  ;;  %v3663_v27 = vmax.f32 %v3122_v50, %v3591_v9  ;;  %v3128_v47 = vmax.f32 %v6503_v49, %v7168_v44 }
 0x363   :  { %v4305_v14 = vpack.c.bf16 %v3741_v35, %v3741_v35  ;;  %v3706_v38 = vadd.f32 %v6696_v52, %v3663_v27  ;;  %v3531_v24 = vpop.permute.xlu1 %3530  ;;  %v3129_v35 = vmax.f32 %v6511_v33, %v6755_v30 }
 0x364   :  { %v3592_v62 = vsel %vm3564_vm0, %v3529_v13, %v3531_v24  ;;  %v3533_v10 = vpop.permute.xlu0 %3532  ;;  %v3130_v24 = vmax.f32 %v6522_v42, %v6778_v61 }
 0x365   :  { %3922 = vst.msk [vmem:[%s7054_s3 + $0x64] sm:$0xf] %vm3896_vm1, %v4305_v14  ;;  %v3742_v19 = vmax.f32 %v3706_v38, 0.0  ;;  %v3664_v43 = vmax.f32 %v3123_v3, %v3592_v62 }
 0x367   :  { %v4306_v46 = vpack.c.bf16 %v3742_v19, %v3742_v19  ;;  %v3707_v5 = vadd.f32 %v6696_v52, %v3664_v43  ;;  %v3535_v48 = vpop.permute.xlu1 %3534 }
 0x368   :  { %v3593_v17 = vsel %vm3564_vm0, %v3533_v10, %v3535_v48  ;;  %v3537_v40 = vpop.permute.xlu0 %3536 }
 0x369   :  { %3923 = vst.msk [vmem:[%s7054_s3 + $0x68] sm:$0xf] %vm3896_vm1, %v4306_v46  ;;  %v3743_v18 = vmax.f32 %v3707_v5, 0.0  ;;  %v3665_v16 = vmax.f32 %v3124_v37, %v3593_v17 }
 0x36b   :  { %v4307_v28 = vpack.c.bf16 %v3743_v18, %v3743_v18  ;;  %v3708_v26 = vadd.f32 %v6696_v52, %v3665_v16  ;;  %v3539_v0 = vpop.permute.xlu1 %3538 }
 0x36c   :  { %v3594_v11 = vsel %vm3564_vm0, %v3537_v40, %v3539_v0  ;;  %v3541_v45 = vpop.permute.xlu0 %3540 }
 0x36d   :  { %3924 = vst.msk [vmem:[%s7054_s3 + $0x6c] sm:$0xf] %vm3896_vm1, %v4307_v28  ;;  %v3744_v60 = vmax.f32 %v3708_v26, 0.0  ;;  %v3666_v51 = vmax.f32 %v3125_v21, %v3594_v11 }
 0x36f   :  { %v4308_v59 = vpack.c.bf16 %v3744_v60, %v3744_v60  ;;  %v3709_v29 = vadd.f32 %v6696_v52, %v3666_v51  ;;  %v3543_v23 = vpop.permute.xlu1 %3542 }
 0x370   :  { %v3595_v53 = vsel %vm3564_vm0, %v3541_v45, %v3543_v23  ;;  %v3545_v4 = vpop.permute.xlu0 %3544 }
 0x371   :  { %3925 = vst.msk [vmem:[%s7054_s3 + $0x70] sm:$0xf] %vm3896_vm1, %v4308_v59  ;;  %v3745_v1 = vmax.f32 %v3709_v29, 0.0  ;;  %v3667_v63 = vmax.f32 %v3126_v12, %v3595_v53 }
 0x373   :  { %v4309_v39 = vpack.c.bf16 %v3745_v1, %v3745_v1  ;;  %v3710_v56 = vadd.f32 %v6696_v52, %v3667_v63  ;;  %v3547_v41 = vpop.permute.xlu1 %3546 }
 0x374   :  { %v3596_v7 = vsel %vm3564_vm0, %v3545_v4, %v3547_v41  ;;  %v3549_v54 = vpop.permute.xlu0 %3548 }
 0x375   :  { %3926 = vst.msk [vmem:[%s7054_s3 + $0x74] sm:$0xf] %vm3896_vm1, %v4309_v39  ;;  %v3746_v20 = vmax.f32 %v3710_v56, 0.0  ;;  %v3668_v25 = vmax.f32 %v3127_v32, %v3596_v7 }
 0x377   :  { %v4310_v50 = vpack.c.bf16 %v3746_v20, %v3746_v20  ;;  %v3711_v31 = vadd.f32 %v6696_v52, %v3668_v25  ;;  %v3551_v34 = vpop.permute.xlu1 %3550 }
 0x378   :  { %v3597_v8 = vsel %vm3564_vm0, %v3549_v54, %v3551_v34  ;;  %v3553_v9 = vpop.permute.xlu0 %3552 }
 0x379   :  { %3927 = vst.msk [vmem:[%s7054_s3 + $0x78] sm:$0xf] %vm3896_vm1, %v4310_v50  ;;  %v3747_v2 = vmax.f32 %v3711_v31, 0.0  ;;  %v3669_v15 = vmax.f32 %v3128_v47, %v3597_v8 }
 0x37b   :  { %v4311_v27 = vpack.c.bf16 %v3747_v2, %v3747_v2  ;;  %v3712_v49 = vadd.f32 %v6696_v52, %v3669_v15  ;;  %v3555_v13 = vpop.permute.xlu1 %3554 }
 0x37c   :  { %v3598_v36 = vsel %vm3564_vm0, %v3553_v9, %v3555_v13 }
 0x37d   :  { %3928 = vst.msk [vmem:[%s7054_s3 + $0x7c] sm:$0xf] %vm3896_vm1, %v4311_v27  ;;  %v3748_v3 = vmax.f32 %v3712_v49, 0.0  ;;  %v3670_v14 = vmax.f32 %v3129_v35, %v3598_v36  ;;  %v3557_v38 = vpop.permute.xlu0 %3556 }
 0x37f   :  { %v4312_v62 = vpack.c.bf16 %v3748_v3, %v3748_v3  ;;  %v3713_v33 = vadd.f32 %v6696_v52, %v3670_v14  ;;  %v3559_v30 = vpop.permute.xlu1 %3558 }
 0x380   :  { %v3599_v19 = vsel %vm3564_vm0, %v3557_v38, %v3559_v30 }
 0x381   :  { %3929 = vst.msk [vmem:[%s7054_s3 + $0x80] sm:$0xf] %vm3896_vm1, %v4312_v62  ;;  %v3749_v43 = vmax.f32 %v3713_v33, 0.0  ;;  %v3671_v10 = vmax.f32 %v3130_v24, %v3599_v19  ;;  %v3561_v42 = vpop.permute.xlu0 %3560 }
 0x383   :  { %v4313_v37 = vpack.c.bf16 %v3749_v43, %v3749_v43  ;;  %v3714_v46 = vadd.f32 %v6696_v52, %v3671_v10  ;;  %v3563_v61 = vpop.permute.xlu1 %3562 }
 0x384   :  { %v3600_v5 = vsel %vm3564_vm0, %v3561_v42, %v3563_v61 }
 0x385   :  { %3930 = vst.msk [vmem:[%s7054_s3 + $0x84] sm:$0xf] %vm3896_vm1, %v4313_v37  ;;  %v3750_v48 = vmax.f32 %v3714_v46, 0.0  ;;  %v3672_v17 = vmax.f32 %v3131_v55, %v3600_v5 }
 0x387   :  { %v4314_v18 = vpack.c.bf16 %v3750_v48, %v3750_v48  ;;  %v3715_v16 = vadd.f32 %v6696_v52, %v3672_v17 }
 0x389   :  { %3931 = vst.msk [vmem:[%s7054_s3 + $0x88] sm:$0xf] %vm3896_vm1, %v4314_v18  ;;  %v3751_v57 = vmax.f32 %v3715_v16, 0.0 }
 0x38b   :  { %v4315_v6 = vpack.c.bf16 %v3751_v57, %v3751_v57 }
 0x38d   :  { %3932 = vst.msk [vmem:[%s7054_s3 + $0x8c] sm:$0xf] %vm3896_vm1, %v4315_v6 }

// kernel: cnn_forward.7
= control target key start
LH: loop header
LB: loop body
LE: loop exit
PB: predicated region body
PF: predicated region fallthrough
CT: control target
= control target key end

     0   :  { %vm1698_vm0 = vcmask 523264   ;;  %vm2442_vm1 = vcmask 519168   ;;  %s4336_s1 = inlined_call_operand.vmem [shape: bf16[1728,256], index: 1, kind: input, shape index: {}]   ;;  %s4337_s0 = inlined_call_operand.vmem [shape: bf16[72,1728], index: 0, kind: input, shape index: {}]   ;;  %s4338_s2 = inlined_call_operand.vmem [shape: f32[1,64], index: 2, kind: input, shape index: {}]   ;;  %s4339_s3 = inlined_call_operand.vmem [shape: bf16[72,64], index: 3, kind: output, shape index: {}]  }
   0x1   :  { %v2907_v0 = vld [vmem:[%s4336_s1 + $0x4] ss:$8 sps:$4 sm:$0xff]   ;;  %v2911_v2 = vld [vmem:[%s4336_s1] ss:$8 sps:$4 sm:$0xff]   ;;  %v2913_v4 = vld [vmem:[%s4336_s1 + $0x14] ss:$8 sps:$4 sm:$0xff]  }
   0x2   :  { %v2909_v1 = vld [vmem:[%s4336_s1 + $0x304] ss:$8 sps:$4 sm:$0xff]   ;;  %1714 = vmatprep.subr.bf16.mxu1 %v2907_v0  ;;  %v2912_v3 = vld [vmem:[%s4336_s1 + $0x300] ss:$8 sps:$4 sm:$0xff]   ;;  %v2915_v5 = vld [vmem:[%s4336_s1 + $0x314] ss:$8 sps:$4 sm:$0xff]  }
   0x3   :  { %1957 = vmatprep.subr.bf16.mxu0 %v2909_v1  ;;  %1715 = vmatpush1.bf16.msra.mxu1 %v2911_v2  ;;  %v2917_v6 = vld [vmem:[%s4336_s1 + $0x10] ss:$8 sps:$4 sm:$0xff]   ;;  %v2919_v8 = vld [vmem:[%s4336_s1 + $0x24] ss:$8 sps:$4 sm:$0xff]   ;;  %v2923_v10 = vld [vmem:[%s4336_s1 + $0x20] ss:$8 sps:$4 sm:$0xff]  }
   0x4   :  { %1958 = vmatpush1.bf16.msra.mxu0 %v2912_v3  ;;  %1716 = vmatprep.subr.bf16.mxu1 %v2913_v4  ;;  %v2918_v7 = vld [vmem:[%s4336_s1 + $0x310] ss:$8 sps:$4 sm:$0xff]   ;;  %v2921_v9 = vld [vmem:[%s4336_s1 + $0x324] ss:$8 sps:$4 sm:$0xff]   ;;  %v2924_v11 = vld [vmem:[%s4336_s1 + $0x320] ss:$8 sps:$4 sm:$0xff]  }
   0x5   :  { %1959 = vmatprep.subr.bf16.mxu0 %v2915_v5  ;;  %v2925_v12 = vld [vmem:[%s4336_s1 + $0x34] ss:$8 sps:$4 sm:$0xff]   ;;  %v2929_v14 = vld [vmem:[%s4336_s1 + $0x30] ss:$8 sps:$4 sm:$0xff]   ;;  %v2931_v16 = vld [vmem:[%s4336_s1 + $0x44] ss:$8 sps:$4 sm:$0xff]  }
   0x6   :  { %v2927_v13 = vld [vmem:[%s4336_s1 + $0x334] ss:$8 sps:$4 sm:$0xff]   ;;  %v2930_v15 = vld [vmem:[%s4336_s1 + $0x330] ss:$8 sps:$4 sm:$0xff]   ;;  %v2933_v17 = vld [vmem:[%s4336_s1 + $0x344] ss:$8 sps:$4 sm:$0xff]  }
   0x7   :  { %1717 = vmatpush1.bf16.msra.mxu1 %v2917_v6  ;;  %v2935_v18 = vld [vmem:[%s4336_s1 + $0x40] ss:$8 sps:$4 sm:$0xff]   ;;  %v2937_v20 = vld [vmem:[%s4336_s1 + $0x54] ss:$8 sps:$4 sm:$0xff]   ;;  %v2941_v22 = vld [vmem:[%s4336_s1 + $0x50] ss:$8 sps:$4 sm:$0xff]  }
   0x8   :  { %1960 = vmatpush1.bf16.msra.mxu0 %v2918_v7  ;;  %1718 = vmatprep.subr.bf16.mxu1 %v2919_v8  ;;  %v2936_v19 = vld [vmem:[%s4336_s1 + $0x340] ss:$8 sps:$4 sm:$0xff]   ;;  %v2939_v21 = vld [vmem:[%s4336_s1 + $0x354] ss:$8 sps:$4 sm:$0xff]   ;;  %v2942_v23 = vld [vmem:[%s4336_s1 + $0x350] ss:$8 sps:$4 sm:$0xff]  }
   0x9   :  { %1961 = vmatprep.subr.bf16.mxu0 %v2921_v9  ;;  %v2943_v24 = vld [vmem:[%s4336_s1 + $0x64] ss:$8 sps:$4 sm:$0xff]   ;;  %v2947_v26 = vld [vmem:[%s4336_s1 + $0x60] ss:$8 sps:$4 sm:$0xff]   ;;  %v2949_v28 = vld [vmem:[%s4336_s1 + $0x74] ss:$8 sps:$4 sm:$0xff]  }
   0xa   :  { %v2945_v25 = vld [vmem:[%s4336_s1 + $0x364] ss:$8 sps:$4 sm:$0xff]   ;;  %v2948_v27 = vld [vmem:[%s4336_s1 + $0x360] ss:$8 sps:$4 sm:$0xff]   ;;  %v2951_v29 = vld [vmem:[%s4336_s1 + $0x374] ss:$8 sps:$4 sm:$0xff]  }
   0xb   :  { %1719 = vmatpush1.bf16.msra.mxu1 %v2923_v10  ;;  %v2953_v30 = vld [vmem:[%s4336_s1 + $0x70] ss:$8 sps:$4 sm:$0xff]   ;;  %v2955_v32 = vld [vmem:[%s4336_s1 + $0x84] ss:$8 sps:$4 sm:$0xff]   ;;  %v2959_v34 = vld [vmem:[%s4336_s1 + $0x80] ss:$8 sps:$4 sm:$0xff]  }
   0xc   :  { %1962 = vmatpush1.bf16.msra.mxu0 %v2924_v11  ;;  %1720 = vmatprep.subr.bf16.mxu1 %v2925_v12  ;;  %v2954_v31 = vld [vmem:[%s4336_s1 + $0x370] ss:$8 sps:$4 sm:$0xff]   ;;  %v2957_v33 = vld [vmem:[%s4336_s1 + $0x384] ss:$8 sps:$4 sm:$0xff]   ;;  %v2960_v35 = vld [vmem:[%s4336_s1 + $0x380] ss:$8 sps:$4 sm:$0xff]  }
   0xd   :  { %1963 = vmatprep.subr.bf16.mxu0 %v2927_v13  ;;  %v2961_v36 = vld [vmem:[%s4336_s1 + $0x94] ss:$8 sps:$4 sm:$0xff]   ;;  %v2965_v38 = vld [vmem:[%s4336_s1 + $0x90] ss:$8 sps:$4 sm:$0xff]   ;;  %v2967_v40 = vld [vmem:[%s4336_s1 + $0xa4] ss:$8 sps:$4 sm:$0xff]  }
   0xe   :  { %v2963_v37 = vld [vmem:[%s4336_s1 + $0x394] ss:$8 sps:$4 sm:$0xff]   ;;  %v2966_v39 = vld [vmem:[%s4336_s1 + $0x390] ss:$8 sps:$4 sm:$0xff]   ;;  %v2969_v41 = vld [vmem:[%s4336_s1 + $0x3a4] ss:$8 sps:$4 sm:$0xff]  }
   0xf   :  { %1721 = vmatpush1.bf16.msra.mxu1 %v2929_v14  ;;  %v2971_v42 = vld [vmem:[%s4336_s1 + $0xa0] ss:$8 sps:$4 sm:$0xff]   ;;  %v2973_v44 = vld [vmem:[%s4336_s1 + $0xb4] ss:$8 sps:$4 sm:$0xff]   ;;  %v2977_v46 = vld [vmem:[%s4336_s1 + $0xb0] ss:$8 sps:$4 sm:$0xff]  }
  0x10   :  { %1964 = vmatpush1.bf16.msra.mxu0 %v2930_v15  ;;  %1722 = vmatprep.subr.bf16.mxu1 %v2931_v16  ;;  %v2972_v43 = vld [vmem:[%s4336_s1 + $0x3a0] ss:$8 sps:$4 sm:$0xff]   ;;  %v2975_v45 = vld [vmem:[%s4336_s1 + $0x3b4] ss:$8 sps:$4 sm:$0xff]   ;;  %v2978_v47 = vld [vmem:[%s4336_s1 + $0x3b0] ss:$8 sps:$4 sm:$0xff]  }
  0x11   :  { %1965 = vmatprep.subr.bf16.mxu0 %v2933_v17  ;;  %v3005_v48 = vld [vmem:[%s4337_s0 + $0x4] ss:$56 sps:$4 sm:$0xff]   ;;  %v2983_v52 = vld [vmem:[%s4336_s1 + $0xc0] ss:$8 sps:$4 sm:$0xff]   ;;  %v2989_v56 = vld [vmem:[%s4336_s1 + $0xd0] ss:$8 sps:$4 sm:$0xff]  }
  0x12   :  { %v2979_v49 = vld [vmem:[%s4336_s1 + $0xc4] ss:$8 sps:$4 sm:$0xff]   ;;  %1746 = vmatprep.mubr.bf16.mxu1 %v3005_v48  ;;  %v3011_v51 = vld [vmem:[%s4337_s0 + $0x1c] ss:$56 sps:$4 sm:$0xff]   ;;  %v2984_v53 = vld [vmem:[%s4336_s1 + $0x3c0] ss:$8 sps:$4 sm:$0xff]  }
  0x13   :  { %1723 = vmatpush1.bf16.msra.mxu1 %v2935_v18  ;;  %v2981_v50 = vld [vmem:[%s4336_s1 + $0x3c4] ss:$8 sps:$4 sm:$0xff]   ;;  %v2985_v54 = vld [vmem:[%s4336_s1 + $0xd4] ss:$8 sps:$4 sm:$0xff]   ;;  %1989 = vmatprep.mubr.bf16.mxu0 %v3011_v51  ;;  %v2990_v57 = vld [vmem:[%s4336_s1 + $0x3d0] ss:$8 sps:$4 sm:$0xff]  }
  0x14   :  { %1966 = vmatpush1.bf16.msra.mxu0 %v2936_v19  ;;  %1724 = vmatprep.subr.bf16.mxu1 %v2937_v20  ;;  %v2987_v55 = vld [vmem:[%s4336_s1 + $0x3d4] ss:$8 sps:$4 sm:$0xff]   ;;  %v2991_v58 = vld [vmem:[%s4336_s1 + $0xe4] ss:$8 sps:$4 sm:$0xff]   ;;  %v2995_v60 = vld [vmem:[%s4336_s1 + $0xe0] ss:$8 sps:$4 sm:$0xff]  }
  0x15   :  { %1967 = vmatprep.subr.bf16.mxu0 %v2939_v21  ;;  %v2993_v59 = vld [vmem:[%s4336_s1 + $0x3e4] ss:$8 sps:$4 sm:$0xff]   ;;  %v2996_v61 = vld [vmem:[%s4336_s1 + $0x3e0] ss:$8 sps:$4 sm:$0xff]   ;;  %v2997_v62 = vld [vmem:[%s4336_s1 + $0xf4] ss:$8 sps:$4 sm:$0xff]  }
  0x16   :  { %v2999_v63 = vld [vmem:[%s4336_s1 + $0x3f4] ss:$8 sps:$4 sm:$0xff]   ;;  %v3001_v0 = vld [vmem:[%s4336_s1 + $0xf0] ss:$8 sps:$4 sm:$0xff]   ;;  %v3008_v2 = vld [vmem:[%s4336_s1 + $0x104] ss:$8 sps:$4 sm:$0xff]  }
  0x17   :  { %1725 = vmatpush1.bf16.msra.mxu1 %v2941_v22  ;;  %v3002_v1 = vld [vmem:[%s4336_s1 + $0x3f0] ss:$8 sps:$4 sm:$0xff]   ;;  %v3014_v3 = vld [vmem:[%s4336_s1 + $0x404] ss:$8 sps:$4 sm:$0xff]   ;;  %v3006_v5 = vld [vmem:[%s4336_s1 + $0x100] ss:$8 sps:$4 sm:$0xff]  }
  0x18   :  { %1968 = vmatpush1.bf16.msra.mxu0 %v2942_v23  ;;  %1726 = vmatprep.subr.bf16.mxu1 %v2943_v24  ;;  %v3003_v4 = vld [vmem:[%s4337_s0] ss:$56 sps:$4 sm:$0xff]   ;;  %v3017_v8 = vld [vmem:[%s4336_s1 + $0x114] ss:$8 sps:$4 sm:$0xff]   ;;  %v3023_v13 = vld [vmem:[%s4336_s1 + $0x124] ss:$8 sps:$4 sm:$0xff]  }
  0x19   :  { %1969 = vmatprep.subr.bf16.mxu0 %v2945_v25  ;;  %v3009_v6 = vld [vmem:[%s4337_s0 + $0x18] ss:$56 sps:$4 sm:$0xff]   ;;  %v3012_v7 = vld [vmem:[%s4336_s1 + $0x400] ss:$8 sps:$4 sm:$0xff]   ;;  %v3020_v9 = vld [vmem:[%s4336_s1 + $0x414] ss:$8 sps:$4 sm:$0xff]  }
  0x1a   :  { %v3015_v10 = vld [vmem:[%s4336_s1 + $0x110] ss:$8 sps:$4 sm:$0xff]   ;;  %v3057_v12 = vld [vmem:[%s4337_s0 + $0x74] ss:$56 sps:$4 sm:$0xff]   ;;  %v3021_v16 = vld [vmem:[%s4336_s1 + $0x120] ss:$8 sps:$4 sm:$0xff]  }
  0x1b   :  { %1727 = vmatpush1.bf16.msra.mxu1 %v2947_v26  ;;  %v3018_v11 = vld [vmem:[%s4336_s1 + $0x410] ss:$8 sps:$4 sm:$0xff]   ;;  %v3026_v14 = vld [vmem:[%s4336_s1 + $0x424] ss:$8 sps:$4 sm:$0xff]   ;;  %v3024_v17 = vld [vmem:[%s4336_s1 + $0x420] ss:$8 sps:$4 sm:$0xff]  }
  0x1c   :  { %1970 = vmatpush1.bf16.msra.mxu0 %v2948_v27  ;;  %1728 = vmatprep.subr.bf16.mxu1 %v2949_v28  ;;  %v3062_v15 = vld [vmem:[%s4337_s0 + $0x8c] ss:$56 sps:$4 sm:$0xff]   ;;  %v3067_v18 = vld [vmem:[%s4337_s0 + $0x70] ss:$56 sps:$4 sm:$0xff]   ;;  %v3029_v20 = vld [vmem:[%s4336_s1 + $0x134] ss:$8 sps:$4 sm:$0xff]  }
  0x1d   :  { %1971 = vmatprep.subr.bf16.mxu0 %v2951_v29  ;;  %v3068_v19 = vld [vmem:[%s4337_s0 + $0x88] ss:$56 sps:$4 sm:$0xff]   ;;  %v3032_v21 = vld [vmem:[%s4336_s1 + $0x434] ss:$8 sps:$4 sm:$0xff]   ;;  %v3027_v22 = vld [vmem:[%s4336_s1 + $0x130] ss:$8 sps:$4 sm:$0xff]  }
  0x1e   :  { %v3030_v23 = vld [vmem:[%s4336_s1 + $0x430] ss:$8 sps:$4 sm:$0xff]   ;;  %v3075_v24 = vld [vmem:[%s4337_s0 + $0xe4] ss:$56 sps:$4 sm:$0xff]   ;;  %v3033_v28 = vld [vmem:[%s4336_s1 + $0x140] ss:$8 sps:$4 sm:$0xff]  }
  0x1f   :  { %1729 = vmatpush1.bf16.msra.mxu1 %v2953_v30  ;;  %v3035_v25 = vld [vmem:[%s4336_s1 + $0x144] ss:$8 sps:$4 sm:$0xff]   ;;  %v3080_v27 = vld [vmem:[%s4337_s0 + $0xfc] ss:$56 sps:$4 sm:$0xff]   ;;  %v3036_v29 = vld [vmem:[%s4336_s1 + $0x440] ss:$8 sps:$4 sm:$0xff]  }
  0x20   :  { %1972 = vmatpush1.bf16.msra.mxu0 %v2954_v31  ;;  %1730 = vmatprep.subr.bf16.mxu1 %v2955_v32  ;;  %v3038_v26 = vld [vmem:[%s4336_s1 + $0x444] ss:$8 sps:$4 sm:$0xff]   ;;  %v3085_v30 = vld [vmem:[%s4337_s0 + $0xe0] ss:$56 sps:$4 sm:$0xff]   ;;  %v3041_v32 = vld [vmem:[%s4336_s1 + $0x154] ss:$8 sps:$4 sm:$0xff]  }
  0x21   :  { %1973 = vmatprep.subr.bf16.mxu0 %v2957_v33  ;;  %v3086_v31 = vld [vmem:[%s4337_s0 + $0xf8] ss:$56 sps:$4 sm:$0xff]   ;;  %v3044_v33 = vld [vmem:[%s4336_s1 + $0x454] ss:$8 sps:$4 sm:$0xff]   ;;  %v3061_v51 = vld [vmem:[%s4336_s1 + $0x184] ss:$8 sps:$4 sm:$0xff]  }
  0x23   :  { %1731 = vmatpush1.bf16.msra.mxu1 %v2959_v34  ;;  %v3039_v34 = vld [vmem:[%s4336_s1 + $0x150] ss:$8 sps:$4 sm:$0xff]  }
  0x24   :  { %1974 = vmatpush1.bf16.msra.mxu0 %v2960_v35  ;;  %1732 = vmatprep.subr.bf16.mxu1 %v2961_v36  ;;  %v3042_v35 = vld [vmem:[%s4336_s1 + $0x450] ss:$8 sps:$4 sm:$0xff]   ;;  %v3093_v36 = vld [vmem:[%s4337_s0 + $0x154] ss:$56 sps:$4 sm:$0xff]  }
  0x25   :  { %1975 = vmatprep.subr.bf16.mxu0 %v2963_v37  ;;  %v3047_v37 = vld [vmem:[%s4336_s1 + $0x164] ss:$8 sps:$4 sm:$0xff]  }
  0x27   :  { %1733 = vmatpush1.bf16.msra.mxu1 %v2965_v38  ;;  %v3050_v38 = vld [vmem:[%s4336_s1 + $0x464] ss:$8 sps:$4 sm:$0xff]  }
  0x28   :  { %1976 = vmatpush1.bf16.msra.mxu0 %v2966_v39  ;;  %1734 = vmatprep.subr.bf16.mxu1 %v2967_v40  ;;  %v3098_v39 = vld [vmem:[%s4337_s0 + $0x16c] ss:$56 sps:$4 sm:$0xff]   ;;  %v3045_v40 = vld [vmem:[%s4336_s1 + $0x160] ss:$8 sps:$4 sm:$0xff]  }
  0x29   :  { %1977 = vmatprep.subr.bf16.mxu0 %v2969_v41  ;;  %v3048_v41 = vld [vmem:[%s4336_s1 + $0x460] ss:$8 sps:$4 sm:$0xff]  }
  0x2b   :  { %1735 = vmatpush1.bf16.msra.mxu1 %v2971_v42  ;;  %v3103_v42 = vld [vmem:[%s4337_s0 + $0x150] ss:$56 sps:$4 sm:$0xff]  }
  0x2c   :  { %1978 = vmatpush1.bf16.msra.mxu0 %v2972_v43  ;;  %1736 = vmatprep.subr.bf16.mxu1 %v2973_v44  ;;  %v3104_v43 = vld [vmem:[%s4337_s0 + $0x168] ss:$56 sps:$4 sm:$0xff]   ;;  %v3053_v44 = vld [vmem:[%s4336_s1 + $0x174] ss:$8 sps:$4 sm:$0xff]  }
  0x2d   :  { %1979 = vmatprep.subr.bf16.mxu0 %v2975_v45  ;;  %v3056_v45 = vld [vmem:[%s4336_s1 + $0x474] ss:$8 sps:$4 sm:$0xff]  }
  0x2f   :  { %1737 = vmatpush1.bf16.msra.mxu1 %v2977_v46  ;;  %v71_v46 = vld [vmem:[%s4337_s0 + $0x1c0] sm:$0xff] }
  0x30   :  { %1980 = vmatpush1.bf16.msra.mxu0 %v2978_v47  ;;  %1738 = vmatprep.subr.bf16.mxu1 %v2979_v49  ;;  %v3051_v47 = vld [vmem:[%s4336_s1 + $0x170] ss:$8 sps:$4 sm:$0xff]   ;;  %v2513_v48 = vcombine.high %v71_v46, %v71_v46 }
  0x31   :  { %1981 = vmatprep.subr.bf16.mxu0 %v2981_v50  ;;  %v3054_v49 = vld [vmem:[%s4336_s1 + $0x470] ss:$8 sps:$4 sm:$0xff]  }
  0x32   :  { %v74_v50 = vld [vmem:[%s4337_s0 + $0x1d8] sm:$0xff] }
  0x33   :  { %1739 = vmatpush1.bf16.msra.mxu1 %v2983_v52  ;;  %v3066_v52 = vld [vmem:[%s4336_s1 + $0x484] ss:$8 sps:$4 sm:$0xff]  }
  0x34   :  { %1982 = vmatpush1.bf16.msra.mxu0 %v2984_v53  ;;  %1740 = vmatprep.subr.bf16.mxu1 %v2985_v54  ;;  %v2519_v53 = vcombine.high %v74_v50, %v74_v50  ;;  %v2512_v54 = vcombine.low %v71_v46, %v71_v46  ;;  %v3151_v46 = vld [vmem:[%s4336_s1 + $0x230] ss:$8 sps:$4 sm:$0xff]  }
  0x35   :  { %1983 = vmatprep.subr.bf16.mxu0 %v2987_v55  ;;  %v2518_v55 = vcombine.low %v74_v50, %v74_v50  ;;  %v3203_v50 = vld [vmem:[%s4337_s0 + $0xe8] ss:$56 sps:$4 sm:$0xff]  }
  0x37   :  { %1741 = vmatpush1.bf16.msra.mxu1 %v2989_v56  ;;  %v3059_v56 = vld [vmem:[%s4336_s1 + $0x180] ss:$8 sps:$4 sm:$0xff]  }
  0x38   :  { %1984 = vmatpush1.bf16.msra.mxu0 %v2990_v57  ;;  %1742 = vmatprep.subr.bf16.mxu1 %v2991_v58  ;;  %v3064_v57 = vld [vmem:[%s4336_s1 + $0x480] ss:$8 sps:$4 sm:$0xff]   ;;  %v3071_v58 = vld [vmem:[%s4336_s1 + $0x194] ss:$8 sps:$4 sm:$0xff]  }
  0x39   :  { %1985 = vmatprep.subr.bf16.mxu0 %v2993_v59  ;;  %v3074_v59 = vld [vmem:[%s4336_s1 + $0x494] ss:$8 sps:$4 sm:$0xff]  }
  0x3b   :  { %1743 = vmatpush1.bf16.msra.mxu1 %v2995_v60  ;;  %v3129_v60 = vld [vmem:[%s4337_s0 + $0xc] ss:$56 sps:$4 sm:$0xff]  }
  0x3c   :  { %1986 = vmatpush1.bf16.msra.mxu0 %v2996_v61  ;;  %1744 = vmatprep.subr.bf16.mxu1 %v2997_v62  ;;  %v3069_v61 = vld [vmem:[%s4336_s1 + $0x190] ss:$8 sps:$4 sm:$0xff]  }
  0x3d   :  { %1987 = vmatprep.subr.bf16.mxu0 %v2999_v63  ;;  %v3072_v62 = vld [vmem:[%s4336_s1 + $0x490] ss:$8 sps:$4 sm:$0xff]   ;;  %v3135_v63 = vld [vmem:[%s4337_s0 + $0x24] ss:$56 sps:$4 sm:$0xff]  }
  0x3f   :  { %1745 = vmatpush1.bf16.msra.mxu1 %v3001_v0  ;;  %v3079_v0 = vld [vmem:[%s4336_s1 + $0x1a4] ss:$8 sps:$4 sm:$0xff]  }
  0x40   :  { %1988 = vmatpush1.bf16.msra.mxu0 %v3002_v1  ;;  %1795 = vmatprep.subr.bf16.mxu1 %v3008_v2  ;;  %v3084_v1 = vld [vmem:[%s4336_s1 + $0x4a4] ss:$8 sps:$4 sm:$0xff]   ;;  %v3077_v2 = vld [vmem:[%s4336_s1 + $0x1a0] ss:$8 sps:$4 sm:$0xff]  }
  0x41   :  { %2038 = vmatprep.subr.bf16.mxu0 %v3014_v3  ;;  %v3082_v3 = vld [vmem:[%s4336_s1 + $0x4a0] ss:$8 sps:$4 sm:$0xff]  }
  0x42   :  { %1747 = vmatmul.mubr.bf16.vlgmr.msra.gmra.mrb[0].mxu1 %v3003_v4  ;;  %v3089_v4 = vld [vmem:[%s4336_s1 + $0x1b4] ss:$8 sps:$4 sm:$0xff]  }
  0x43   :  { %1990 = vmatmul.mubr.bf16.vlgmr.msra.gmra.mrb[0].mxu0 %v3009_v6  ;;  %1796 = vmatpush1.bf16.msra.mxu1 %v3006_v5  ;;  %v3092_v5 = vld [vmem:[%s4336_s1 + $0x4b4] ss:$8 sps:$4 sm:$0xff]   ;;  %v3087_v6 = vld [vmem:[%s4336_s1 + $0x1b0] ss:$8 sps:$4 sm:$0xff]  }
  0x44   :  { %2039 = vmatpush1.bf16.msra.mxu0 %v3012_v7  ;;  %1797 = vmatprep.subr.bf16.mxu1 %v3017_v8  ;;  %v3090_v7 = vld [vmem:[%s4336_s1 + $0x4b0] ss:$8 sps:$4 sm:$0xff]   ;;  %v3097_v8 = vld [vmem:[%s4336_s1 + $0x1c4] ss:$8 sps:$4 sm:$0xff]  }
  0x45   :  { %2040 = vmatprep.subr.bf16.mxu0 %v3020_v9  ;;  %1756 = vmatprep.mubr.bf16.mxu1 %v3057_v12  ;;  %v3102_v9 = vld [vmem:[%s4336_s1 + $0x4c4] ss:$8 sps:$4 sm:$0xff]   ;;  %v3107_v12 = vld [vmem:[%s4336_s1 + $0x1d4] ss:$8 sps:$4 sm:$0xff]  }
  0x46   :  { %1999 = vmatprep.mubr.bf16.mxu0 %v3062_v15  ;;  %v3108_v15 = vld [vmem:[%s4336_s1 + $0x4d0] ss:$8 sps:$4 sm:$0xff]  }
  0x47   :  { %1798 = vmatpush1.bf16.msra.mxu1 %v3015_v10  ;;  %v3095_v10 = vld [vmem:[%s4336_s1 + $0x1c0] ss:$8 sps:$4 sm:$0xff]  }
  0x48   :  { %2041 = vmatpush1.bf16.msra.mxu0 %v3018_v11  ;;  %1799 = vmatprep.subr.bf16.mxu1 %v3023_v13  ;;  %v3100_v11 = vld [vmem:[%s4336_s1 + $0x4c0] ss:$8 sps:$4 sm:$0xff]   ;;  %v3110_v13 = vld [vmem:[%s4336_s1 + $0x4d4] ss:$8 sps:$4 sm:$0xff]  }
  0x49   :  { %2042 = vmatprep.subr.bf16.mxu0 %v3026_v14  ;;  %v3105_v14 = vld [vmem:[%s4336_s1 + $0x1d0] ss:$8 sps:$4 sm:$0xff]  }
  0x4a   :  { %1757 = vmatmul.mubr.bf16.gmra.mrb[4].mxu1 %v3067_v18  ;;  %v3112_v18 = vld [vmem:[%s4336_s1 + $0x1e0] ss:$8 sps:$4 sm:$0xff]  }
  0x4b   :  { %2000 = vmatmul.mubr.bf16.gmra.mrb[4].mxu0 %v3068_v19  ;;  %1800 = vmatpush1.bf16.msra.mxu1 %v3021_v16  ;;  %v3114_v16 = vld [vmem:[%s4336_s1 + $0x1e4] ss:$8 sps:$4 sm:$0xff]   ;;  %v3116_v19 = vld [vmem:[%s4336_s1 + $0x4e0] ss:$8 sps:$4 sm:$0xff]  }
  0x4c   :  { %2043 = vmatpush1.bf16.msra.mxu0 %v3024_v17  ;;  %1801 = vmatprep.subr.bf16.mxu1 %v3029_v20  ;;  %v3118_v17 = vld [vmem:[%s4336_s1 + $0x4e4] ss:$8 sps:$4 sm:$0xff]   ;;  %v3123_v20 = vld [vmem:[%s4336_s1 + $0x1f4] ss:$8 sps:$4 sm:$0xff]  }
  0x4d   :  { %2044 = vmatprep.subr.bf16.mxu0 %v3032_v21  ;;  %1766 = vmatprep.mubr.bf16.mxu1 %v3075_v24  ;;  %v3126_v21 = vld [vmem:[%s4336_s1 + $0x4f4] ss:$8 sps:$4 sm:$0xff]   ;;  %v3127_v24 = vld [vmem:[%s4337_s0 + $0x8] ss:$56 sps:$4 sm:$0xff]  }
  0x4e   :  { %2009 = vmatprep.mubr.bf16.mxu0 %v3080_v27  ;;  %v3130_v27 = vld [vmem:[%s4336_s1 + $0x200] ss:$8 sps:$4 sm:$0xff]  }
  0x4f   :  { %1802 = vmatpush1.bf16.msra.mxu1 %v3027_v22  ;;  %v3121_v22 = vld [vmem:[%s4336_s1 + $0x1f0] ss:$8 sps:$4 sm:$0xff]  }
  0x50   :  { %2045 = vmatpush1.bf16.msra.mxu0 %v3030_v23  ;;  %1803 = vmatprep.subr.bf16.mxu1 %v3035_v25  ;;  %v3124_v23 = vld [vmem:[%s4336_s1 + $0x4f0] ss:$8 sps:$4 sm:$0xff]   ;;  %v3132_v25 = vld [vmem:[%s4336_s1 + $0x204] ss:$8 sps:$4 sm:$0xff]  }
  0x51   :  { %2046 = vmatprep.subr.bf16.mxu0 %v3038_v26  ;;  %v3138_v26 = vld [vmem:[%s4336_s1 + $0x504] ss:$8 sps:$4 sm:$0xff]  }
  0x52   :  { %1767 = vmatmul.mubr.bf16.gmra.mrb[8].mxu1 %v3085_v30  ;;  %v3141_v30 = vld [vmem:[%s4336_s1 + $0x214] ss:$8 sps:$4 sm:$0xff]  }
  0x53   :  { %2010 = vmatmul.mubr.bf16.gmra.mrb[8].mxu0 %v3086_v31  ;;  %1804 = vmatpush1.bf16.msra.mxu1 %v3033_v28  ;;  %v3133_v28 = vld [vmem:[%s4337_s0 + $0x20] ss:$56 sps:$4 sm:$0xff]   ;;  %v3144_v31 = vld [vmem:[%s4336_s1 + $0x514] ss:$8 sps:$4 sm:$0xff]  }
  0x54   :  { %2047 = vmatpush1.bf16.msra.mxu0 %v3036_v29  ;;  %1805 = vmatprep.subr.bf16.mxu1 %v3041_v32  ;;  %v3136_v29 = vld [vmem:[%s4336_s1 + $0x500] ss:$8 sps:$4 sm:$0xff]   ;;  %v3181_v32 = vld [vmem:[%s4337_s0 + $0x7c] ss:$56 sps:$4 sm:$0xff]  }
  0x55   :  { %2048 = vmatprep.subr.bf16.mxu0 %v3044_v33  ;;  %1776 = vmatprep.mubr.bf16.mxu1 %v3093_v36  ;;  %v3183_v33 = vld [vmem:[%s4337_s0 + $0x94] ss:$56 sps:$4 sm:$0xff]  }
  0x56   :  { %2019 = vmatprep.mubr.bf16.mxu0 %v3098_v39  ;;  %v3147_v36 = vld [vmem:[%s4336_s1 + $0x224] ss:$8 sps:$4 sm:$0xff]   ;;  %v3185_v39 = vld [vmem:[%s4337_s0 + $0x78] ss:$56 sps:$4 sm:$0xff]  }
  0x57   :  { %1806 = vmatpush1.bf16.msra.mxu1 %v3039_v34  ;;  %v3139_v34 = vld [vmem:[%s4336_s1 + $0x210] ss:$8 sps:$4 sm:$0xff]  }
  0x58   :  { %2049 = vmatpush1.bf16.msra.mxu0 %v3042_v35  ;;  %1807 = vmatprep.subr.bf16.mxu1 %v3047_v37  ;;  %v3142_v35 = vld [vmem:[%s4336_s1 + $0x510] ss:$8 sps:$4 sm:$0xff]   ;;  %v3150_v37 = vld [vmem:[%s4336_s1 + $0x524] ss:$8 sps:$4 sm:$0xff]  }
  0x59   :  { %2050 = vmatprep.subr.bf16.mxu0 %v3050_v38  ;;  %v3145_v38 = vld [vmem:[%s4336_s1 + $0x220] ss:$8 sps:$4 sm:$0xff]  }
  0x5a   :  { %1777 = vmatmul.mubr.bf16.gmra.mrb[12].mxu1 %v3103_v42  ;;  %v3153_v42 = vld [vmem:[%s4336_s1 + $0x234] ss:$8 sps:$4 sm:$0xff]  }
  0x5b   :  { %2020 = vmatmul.mubr.bf16.gmra.mrb[12].mxu0 %v3104_v43  ;;  %1808 = vmatpush1.bf16.msra.mxu1 %v3045_v40  ;;  %v3189_v40 = vld [vmem:[%s4337_s0 + $0x90] ss:$56 sps:$4 sm:$0xff]   ;;  %v3156_v43 = vld [vmem:[%s4336_s1 + $0x534] ss:$8 sps:$4 sm:$0xff]  }
  0x5c   :  { %2051 = vmatpush1.bf16.msra.mxu0 %v3048_v41  ;;  %1809 = vmatprep.subr.bf16.mxu1 %v3053_v44  ;;  %v3148_v41 = vld [vmem:[%s4336_s1 + $0x520] ss:$8 sps:$4 sm:$0xff]   ;;  %v3199_v44 = vld [vmem:[%s4337_s0 + $0xec] ss:$56 sps:$4 sm:$0xff]  }
  0x5d   :  { %2052 = vmatprep.subr.bf16.mxu0 %v3056_v45  ;;  %1786 = vmatprep.mubr.bf16.mxu1 %v2513_v48  ;;  %v3201_v45 = vld [vmem:[%s4337_s0 + $0x104] ss:$56 sps:$4 sm:$0xff]  }
  0x5e   :  { %2029 = vmatprep.mubr.bf16.mxu0 %v2519_v53  ;;  %v3159_v48 = vld [vmem:[%s4336_s1 + $0x244] ss:$8 sps:$4 sm:$0xff]   ;;  %v3160_v53 = vld [vmem:[%s4336_s1 + $0x540] ss:$8 sps:$4 sm:$0xff]  }
  0x5f   :  { %1810 = vmatpush1.bf16.msra.mxu1 %v3051_v47  ;;  %v3154_v47 = vld [vmem:[%s4336_s1 + $0x530] ss:$8 sps:$4 sm:$0xff]  }
  0x60   :  { %2053 = vmatpush1.bf16.msra.mxu0 %v3054_v49  ;;  %1811 = vmatprep.subr.bf16.mxu1 %v3061_v51  ;;  %v3162_v49 = vld [vmem:[%s4336_s1 + $0x544] ss:$8 sps:$4 sm:$0xff]   ;;  %v3207_v51 = vld [vmem:[%s4337_s0 + $0x100] ss:$56 sps:$4 sm:$0xff]  }
  0x61   :  { %2054 = vmatprep.subr.bf16.mxu0 %v3066_v52  ;;  %v3157_v52 = vld [vmem:[%s4336_s1 + $0x240] ss:$8 sps:$4 sm:$0xff]  }
  0x62   :  { %1787 = vmatmul.mubr.bf16.gmra.mrb[16].mxu1 %v2512_v54  ;;  %v3165_v54 = vld [vmem:[%s4336_s1 + $0x254] ss:$8 sps:$4 sm:$0xff]  }
  0x63   :  { %2030 = vmatmul.mubr.bf16.gmra.mrb[16].mxu0 %v2518_v55  ;;  %1812 = vmatpush1.bf16.msra.mxu1 %v3059_v56  ;;  %v3168_v55 = vld [vmem:[%s4336_s1 + $0x554] ss:$8 sps:$4 sm:$0xff]  }
  0x64   :  { %2055 = vmatpush1.bf16.msra.mxu0 %v3064_v57  ;;  %1813 = vmatprep.subr.bf16.mxu1 %v3071_v58  ;;  %v3217_v56 = vld [vmem:[%s4337_s0 + $0x15c] ss:$56 sps:$4 sm:$0xff]   ;;  %v3163_v58 = vld [vmem:[%s4336_s1 + $0x250] ss:$8 sps:$4 sm:$0xff]  }
  0x65   :  { %2056 = vmatprep.subr.bf16.mxu0 %v3074_v59  ;;  %1827 = vmatprep.mubr.bf16.mxu1 %v3129_v60  ;;  %v3219_v57 = vld [vmem:[%s4337_s0 + $0x174] ss:$56 sps:$4 sm:$0xff]   ;;  %v3166_v59 = vld [vmem:[%s4336_s1 + $0x550] ss:$8 sps:$4 sm:$0xff]  }
  0x66   :  { %2070 = vmatprep.mubr.bf16.mxu0 %v3135_v63  ;;  %v3171_v60 = vld [vmem:[%s4336_s1 + $0x264] ss:$8 sps:$4 sm:$0xff]   ;;  %v3172_v63 = vld [vmem:[%s4336_s1 + $0x560] ss:$8 sps:$4 sm:$0xff]  }
  0x67   :  { %1814 = vmatpush1.bf16.msra.mxu1 %v3069_v61  ;;  %v3174_v61 = vld [vmem:[%s4336_s1 + $0x564] ss:$8 sps:$4 sm:$0xff]  }
  0x68   :  { %2057 = vmatpush1.bf16.msra.mxu0 %v3072_v62  ;;  %1815 = vmatprep.subr.bf16.mxu1 %v3079_v0  ;;  %v3169_v62 = vld [vmem:[%s4336_s1 + $0x260] ss:$8 sps:$4 sm:$0xff]   ;;  %v3221_v0 = vld [vmem:[%s4337_s0 + $0x158] ss:$56 sps:$4 sm:$0xff]  }
  0x69   :  { %2058 = vmatprep.subr.bf16.mxu0 %v3084_v1  ;;  %v3225_v1 = vld [vmem:[%s4337_s0 + $0x170] ss:$56 sps:$4 sm:$0xff]  }
  0x6b   :  { %1816 = vmatpush1.bf16.msra.mxu1 %v3077_v2  ;;  %v72_v2 = vld [vmem:[%s4337_s0 + $0x1c8] sm:$0xff] }
  0x6c   :  { %2059 = vmatpush1.bf16.msra.mxu0 %v3082_v3  ;;  %1817 = vmatprep.subr.bf16.mxu1 %v3089_v4  ;;  %v75_v3 = vld [vmem:[%s4337_s0 + $0x1e0] sm:$0xff]  ;;  %v3177_v4 = vld [vmem:[%s4336_s1 + $0x274] ss:$8 sps:$4 sm:$0xff]  }
  0x6d   :  { %2060 = vmatprep.subr.bf16.mxu0 %v3092_v5  ;;  %v3180_v5 = vld [vmem:[%s4336_s1 + $0x574] ss:$8 sps:$4 sm:$0xff]  }
  0x6f   :  { %1818 = vmatpush1.bf16.msra.mxu1 %v3087_v6  ;;  %v2515_v6 = vcombine.high %v72_v2, %v72_v2 }
  0x70   :  { %2061 = vmatpush1.bf16.msra.mxu0 %v3090_v7  ;;  %1819 = vmatprep.subr.bf16.mxu1 %v3097_v8  ;;  %v2521_v7 = vcombine.high %v75_v3, %v75_v3  ;;  %v3175_v8 = vld [vmem:[%s4336_s1 + $0x270] ss:$8 sps:$4 sm:$0xff]  }
  0x71   :  { %2062 = vmatprep.subr.bf16.mxu0 %v3102_v9  ;;  %v3178_v9 = vld [vmem:[%s4336_s1 + $0x570] ss:$8 sps:$4 sm:$0xff]  }
  0x73   :  { %1820 = vmatpush1.bf16.msra.mxu1 %v3095_v10  ;;  %v3188_v10 = vld [vmem:[%s4336_s1 + $0x284] ss:$8 sps:$4 sm:$0xff]  }
  0x74   :  { %2063 = vmatpush1.bf16.msra.mxu0 %v3100_v11  ;;  %1821 = vmatprep.subr.bf16.mxu1 %v3107_v12  ;;  %v3192_v11 = vld [vmem:[%s4336_s1 + $0x584] ss:$8 sps:$4 sm:$0xff]   ;;  %v3186_v12 = vld [vmem:[%s4336_s1 + $0x280] ss:$8 sps:$4 sm:$0xff]  }
  0x75   :  { %2064 = vmatprep.subr.bf16.mxu0 %v3110_v13  ;;  %v3190_v13 = vld [vmem:[%s4336_s1 + $0x580] ss:$8 sps:$4 sm:$0xff]  }
  0x77   :  { %1822 = vmatpush1.bf16.msra.mxu1 %v3105_v14  ;;  %v3195_v14 = vld [vmem:[%s4336_s1 + $0x294] ss:$8 sps:$4 sm:$0xff]  }
  0x78   :  { %2065 = vmatpush1.bf16.msra.mxu0 %v3108_v15  ;;  %1823 = vmatprep.subr.bf16.mxu1 %v3114_v16  ;;  %v2514_v15 = vcombine.low %v72_v2, %v72_v2  ;;  %v2520_v16 = vcombine.low %v75_v3, %v75_v3  ;;  %v3286_v2 = vld [vmem:[%s4336_s1 + $0x654] ss:$8 sps:$4 sm:$0xff]  }
  0x79   :  { %2066 = vmatprep.subr.bf16.mxu0 %v3118_v17  ;;  %v3198_v17 = vld [vmem:[%s4336_s1 + $0x594] ss:$8 sps:$4 sm:$0xff]  }
  0x7a   :  { %v3287_v3 = vld [vmem:[%s4337_s0 + $0x164] ss:$56 sps:$4 sm:$0xff]  }
  0x7b   :  { %1824 = vmatpush1.bf16.msra.mxu1 %v3112_v18  ;;  %v3253_v18 = vld [vmem:[%s4337_s0 + $0x14] ss:$56 sps:$4 sm:$0xff]  }
  0x7c   :  { %2067 = vmatpush1.bf16.msra.mxu0 %v3116_v19  ;;  %1825 = vmatprep.subr.bf16.mxu1 %v3123_v20  ;;  %v3256_v19 = vld [vmem:[%s4337_s0 + $0x2c] ss:$56 sps:$4 sm:$0xff]   ;;  %v3193_v20 = vld [vmem:[%s4336_s1 + $0x290] ss:$8 sps:$4 sm:$0xff]  }
  0x7d   :  { %2068 = vmatprep.subr.bf16.mxu0 %v3126_v21  ;;  %v3196_v21 = vld [vmem:[%s4336_s1 + $0x590] ss:$8 sps:$4 sm:$0xff]  }
  0x7f   :  { %1826 = vmatpush1.bf16.msra.mxu1 %v3121_v22  ;;  %v3206_v22 = vld [vmem:[%s4336_s1 + $0x2a4] ss:$8 sps:$4 sm:$0xff]  }
  0x80   :  { %2069 = vmatpush1.bf16.msra.mxu0 %v3124_v23  ;;  %1876 = vmatprep.subr.bf16.mxu1 %v3132_v25  ;;  %v3210_v23 = vld [vmem:[%s4336_s1 + $0x5a4] ss:$8 sps:$4 sm:$0xff]   ;;  %v3208_v25 = vld [vmem:[%s4336_s1 + $0x5a0] ss:$8 sps:$4 sm:$0xff]  }
  0x81   :  { %2119 = vmatprep.subr.bf16.mxu0 %v3138_v26  ;;  %v3213_v26 = vld [vmem:[%s4336_s1 + $0x2b4] ss:$8 sps:$4 sm:$0xff]  }
  0x82   :  { %1828 = vmatmul.mubr.bf16.vlgmr.msra.gmra.mrb[0].mxu1 %v3127_v24  ;;  %v3204_v24 = vld [vmem:[%s4336_s1 + $0x2a0] ss:$8 sps:$4 sm:$0xff]  }
  0x83   :  { %2071 = vmatmul.mubr.bf16.vlgmr.msra.gmra.mrb[0].mxu0 %v3133_v28  ;;  %1877 = vmatpush1.bf16.msra.mxu1 %v3130_v27  ;;  %v3216_v27 = vld [vmem:[%s4336_s1 + $0x5b4] ss:$8 sps:$4 sm:$0xff]   ;;  %v3211_v28 = vld [vmem:[%s4336_s1 + $0x2b0] ss:$8 sps:$4 sm:$0xff]  }
  0x84   :  { %2120 = vmatpush1.bf16.msra.mxu0 %v3136_v29  ;;  %1878 = vmatprep.subr.bf16.mxu1 %v3141_v30  ;;  %v3214_v29 = vld [vmem:[%s4336_s1 + $0x5b0] ss:$8 sps:$4 sm:$0xff]   ;;  %v3224_v30 = vld [vmem:[%s4336_s1 + $0x2c4] ss:$8 sps:$4 sm:$0xff]  }
  0x85   :  { %2121 = vmatprep.subr.bf16.mxu0 %v3144_v31  ;;  %1837 = vmatprep.mubr.bf16.mxu1 %v3181_v32  ;;  %v3228_v31 = vld [vmem:[%s4336_s1 + $0x5c4] ss:$8 sps:$4 sm:$0xff]   ;;  %v3222_v32 = vld [vmem:[%s4336_s1 + $0x2c0] ss:$8 sps:$4 sm:$0xff]  }
  0x86   :  { %2080 = vmatprep.mubr.bf16.mxu0 %v3183_v33  ;;  %v3226_v33 = vld [vmem:[%s4336_s1 + $0x5c0] ss:$8 sps:$4 sm:$0xff]  }
  0x87   :  { %1879 = vmatpush1.bf16.msra.mxu1 %v3139_v34  ;;  %v3231_v34 = vld [vmem:[%s4336_s1 + $0x2d4] ss:$8 sps:$4 sm:$0xff]  }
  0x88   :  { %2122 = vmatpush1.bf16.msra.mxu0 %v3142_v35  ;;  %1880 = vmatprep.subr.bf16.mxu1 %v3147_v36  ;;  %v3234_v35 = vld [vmem:[%s4336_s1 + $0x5d4] ss:$8 sps:$4 sm:$0xff]   ;;  %v3229_v36 = vld [vmem:[%s4336_s1 + $0x2d0] ss:$8 sps:$4 sm:$0xff]  }
  0x89   :  { %2123 = vmatprep.subr.bf16.mxu0 %v3150_v37  ;;  %v3232_v37 = vld [vmem:[%s4336_s1 + $0x5d0] ss:$8 sps:$4 sm:$0xff]  }
  0x8a   :  { %1838 = vmatmul.mubr.bf16.gmra.mrb[4].mxu1 %v3185_v39  ;;  %v3244_v39 = vld [vmem:[%s4336_s1 + $0x5e4] ss:$8 sps:$4 sm:$0xff]  }
  0x8b   :  { %2081 = vmatmul.mubr.bf16.gmra.mrb[4].mxu0 %v3189_v40  ;;  %1881 = vmatpush1.bf16.msra.mxu1 %v3145_v38  ;;  %v3240_v38 = vld [vmem:[%s4336_s1 + $0x2e4] ss:$8 sps:$4 sm:$0xff]   ;;  %v3238_v40 = vld [vmem:[%s4336_s1 + $0x2e0] ss:$8 sps:$4 sm:$0xff]  }
  0x8c   :  { %2124 = vmatpush1.bf16.msra.mxu0 %v3148_v41  ;;  %1882 = vmatprep.subr.bf16.mxu1 %v3153_v42  ;;  %v3242_v41 = vld [vmem:[%s4336_s1 + $0x5e0] ss:$8 sps:$4 sm:$0xff]   ;;  %v3247_v42 = vld [vmem:[%s4336_s1 + $0x2f4] ss:$8 sps:$4 sm:$0xff]  }
  0x8d   :  { %2125 = vmatprep.subr.bf16.mxu0 %v3156_v43  ;;  %1847 = vmatprep.mubr.bf16.mxu1 %v3199_v44  ;;  %v3250_v43 = vld [vmem:[%s4336_s1 + $0x5f4] ss:$8 sps:$4 sm:$0xff]   ;;  %v3245_v44 = vld [vmem:[%s4336_s1 + $0x2f0] ss:$8 sps:$4 sm:$0xff]  }
  0x8e   :  { %2090 = vmatprep.mubr.bf16.mxu0 %v3201_v45  ;;  %v3248_v45 = vld [vmem:[%s4336_s1 + $0x5f0] ss:$8 sps:$4 sm:$0xff]  }
  0x8f   :  { %1883 = vmatpush1.bf16.msra.mxu1 %v3151_v46  ;;  %v3259_v46 = vld [vmem:[%s4336_s1 + $0x604] ss:$8 sps:$4 sm:$0xff]  }
  0x90   :  { %2126 = vmatpush1.bf16.msra.mxu0 %v3154_v47  ;;  %1884 = vmatprep.subr.bf16.mxu1 %v3159_v48  ;;  %v3251_v47 = vld [vmem:[%s4337_s0 + $0x10] ss:$56 sps:$4 sm:$0xff]  }
  0x91   :  { %2127 = vmatprep.subr.bf16.mxu0 %v3162_v49  ;;  %v3254_v48 = vld [vmem:[%s4337_s0 + $0x28] ss:$56 sps:$4 sm:$0xff]  }
  0x92   :  { %1848 = vmatmul.mubr.bf16.gmra.mrb[8].mxu1 %v3203_v50  ;;  %v3257_v49 = vld [vmem:[%s4336_s1 + $0x600] ss:$8 sps:$4 sm:$0xff]   ;;  %v3262_v50 = vld [vmem:[%s4336_s1 + $0x614] ss:$8 sps:$4 sm:$0xff]  }
  0x93   :  { %2091 = vmatmul.mubr.bf16.gmra.mrb[8].mxu0 %v3207_v51  ;;  %1885 = vmatpush1.bf16.msra.mxu1 %v3157_v52  ;;  %v3263_v51 = vld [vmem:[%s4337_s0 + $0x84] ss:$56 sps:$4 sm:$0xff]  }
  0x94   :  { %2128 = vmatpush1.bf16.msra.mxu0 %v3160_v53  ;;  %1886 = vmatprep.subr.bf16.mxu1 %v3165_v54  ;;  %v3265_v52 = vld [vmem:[%s4337_s0 + $0x9c] ss:$56 sps:$4 sm:$0xff]   ;;  %v3260_v53 = vld [vmem:[%s4336_s1 + $0x610] ss:$8 sps:$4 sm:$0xff]   ;;  %v3271_v54 = vld [vmem:[%s4336_s1 + $0x624] ss:$8 sps:$4 sm:$0xff]  }
  0x95   :  { %2129 = vmatprep.subr.bf16.mxu0 %v3168_v55  ;;  %1857 = vmatprep.mubr.bf16.mxu1 %v3217_v56  ;;  %v3267_v55 = vld [vmem:[%s4337_s0 + $0x80] ss:$56 sps:$4 sm:$0xff]  }
  0x96   :  { %2100 = vmatprep.mubr.bf16.mxu0 %v3219_v57  ;;  %v3268_v56 = vld [vmem:[%s4337_s0 + $0x98] ss:$56 sps:$4 sm:$0xff]   ;;  %v3269_v57 = vld [vmem:[%s4336_s1 + $0x620] ss:$8 sps:$4 sm:$0xff]  }
  0x97   :  { %1887 = vmatpush1.bf16.msra.mxu1 %v3163_v58  ;;  %v3274_v58 = vld [vmem:[%s4336_s1 + $0x634] ss:$8 sps:$4 sm:$0xff]  }
  0x98   :  { %2130 = vmatpush1.bf16.msra.mxu0 %v3166_v59  ;;  %1888 = vmatprep.subr.bf16.mxu1 %v3171_v60  ;;  %v3275_v59 = vld [vmem:[%s4337_s0 + $0xf4] ss:$56 sps:$4 sm:$0xff]  }
  0x99   :  { %2131 = vmatprep.subr.bf16.mxu0 %v3174_v61  ;;  %v3277_v60 = vld [vmem:[%s4337_s0 + $0x10c] ss:$56 sps:$4 sm:$0xff]   ;;  %v3272_v61 = vld [vmem:[%s4336_s1 + $0x630] ss:$8 sps:$4 sm:$0xff]  }
  0x9a   :  { %1858 = vmatmul.mubr.bf16.gmra.mrb[12].mxu1 %v3221_v0  ;;  %v3280_v0 = vld [vmem:[%s4337_s0 + $0x108] ss:$56 sps:$4 sm:$0xff]  }
  0x9b   :  { %2101 = vmatmul.mubr.bf16.gmra.mrb[12].mxu0 %v3225_v1  ;;  %1889 = vmatpush1.bf16.msra.mxu1 %v3169_v62  ;;  %v3283_v62 = vld [vmem:[%s4336_s1 + $0x644] ss:$8 sps:$4 sm:$0xff]   ;;  %v3281_v1 = vld [vmem:[%s4336_s1 + $0x640] ss:$8 sps:$4 sm:$0xff]  }
  0x9c   :  { %2132 = vmatpush1.bf16.msra.mxu0 %v3172_v63  ;;  %1890 = vmatprep.subr.bf16.mxu1 %v3177_v4  ;;  %v3279_v63 = vld [vmem:[%s4337_s0 + $0xf0] ss:$56 sps:$4 sm:$0xff]   ;;  %v3289_v4 = vld [vmem:[%s4337_s0 + $0x17c] ss:$56 sps:$4 sm:$0xff]  }
  0x9d   :  { %2133 = vmatprep.subr.bf16.mxu0 %v3180_v5  ;;  %1867 = vmatprep.mubr.bf16.mxu1 %v2515_v6  ;;  %v3284_v5 = vld [vmem:[%s4336_s1 + $0x650] ss:$8 sps:$4 sm:$0xff]   ;;  %v3295_v6 = vld [vmem:[%s4336_s1 + $0x664] ss:$8 sps:$4 sm:$0xff]  }
  0x9e   :  { %2110 = vmatprep.mubr.bf16.mxu0 %v2521_v7  ;;  %v3291_v7 = vld [vmem:[%s4337_s0 + $0x160] ss:$56 sps:$4 sm:$0xff]  }
  0x9f   :  { %1891 = vmatpush1.bf16.msra.mxu1 %v3175_v8  ;;  %v3292_v8 = vld [vmem:[%s4337_s0 + $0x178] ss:$56 sps:$4 sm:$0xff]  }
  0xa0   :  { %2134 = vmatpush1.bf16.msra.mxu0 %v3178_v9  ;;  %1892 = vmatprep.subr.bf16.mxu1 %v3188_v10  ;;  %v73_v9 = vld [vmem:[%s4337_s0 + $0x1d0] sm:$0xff]  ;;  %v76_v10 = vld [vmem:[%s4337_s0 + $0x1e8] sm:$0xff] }
  0xa1   :  { %2135 = vmatprep.subr.bf16.mxu0 %v3192_v11  ;;  %v3293_v11 = vld [vmem:[%s4336_s1 + $0x660] ss:$8 sps:$4 sm:$0xff]  }
  0xa2   :  { %1868 = vmatmul.mubr.bf16.gmra.mrb[16].mxu1 %v2514_v15  ;;  %v3296_v15 = vld [vmem:[%s4336_s1 + $0x670] ss:$8 sps:$4 sm:$0xff]  }
  0xa3   :  { %2111 = vmatmul.mubr.bf16.gmra.mrb[16].mxu0 %v2520_v16  ;;  %1893 = vmatpush1.bf16.msra.mxu1 %v3186_v12  ;;  %v3298_v12 = vld [vmem:[%s4336_s1 + $0x674] ss:$8 sps:$4 sm:$0xff]   ;;  %v3305_v16 = vld [vmem:[%s4336_s1 + $0x684] ss:$8 sps:$4 sm:$0xff]  }
  0xa4   :  { %2136 = vmatpush1.bf16.msra.mxu0 %v3190_v13  ;;  %1894 = vmatprep.subr.bf16.mxu1 %v3195_v14  ;;  %v2517_v13 = vcombine.high %v73_v9, %v73_v9  ;;  %v2523_v14 = vcombine.high %v76_v10, %v76_v10 }
  0xa5   :  { %2137 = vmatprep.subr.bf16.mxu0 %v3198_v17  ;;  %1908 = vmatprep.mubr.bf16.mxu1 %v3253_v18  ;;  %v2516_v17 = vcombine.low %v73_v9, %v73_v9  ;;  %v2522_v18 = vcombine.low %v76_v10, %v76_v10 }
  0xa6   :  { %2151 = vmatprep.mubr.bf16.mxu0 %v3256_v19  ;;  %v3303_v19 = vld [vmem:[%s4336_s1 + $0x680] ss:$8 sps:$4 sm:$0xff]  }
  0xa7   :  { %1895 = vmatpush1.bf16.msra.mxu1 %v3193_v20  ;;  %v3308_v20 = vld [vmem:[%s4336_s1 + $0x694] ss:$8 sps:$4 sm:$0xff]  }
  0xa8   :  { %2138 = vmatpush1.bf16.msra.mxu0 %v3196_v21  ;;  %1896 = vmatprep.subr.bf16.mxu1 %v3206_v22  ;;  %v3317_v21 = vld [vmem:[%s4337_s0 + $0x34] ss:$56 sps:$4 sm:$0xff]   ;;  %v3320_v22 = vld [vmem:[%s4337_s0 + $0x184] ss:$56 sps:$4 sm:$0xff]  }
  0xa9   :  { %2139 = vmatprep.subr.bf16.mxu0 %v3210_v23  ;;  %v3306_v23 = vld [vmem:[%s4336_s1 + $0x690] ss:$8 sps:$4 sm:$0xff]  }
  0xab   :  { %1897 = vmatpush1.bf16.msra.mxu1 %v3204_v24  ;;  %v3311_v24 = vld [vmem:[%s4336_s1 + $0x6a4] ss:$8 sps:$4 sm:$0xff]  }
  0xac   :  { %2140 = vmatpush1.bf16.msra.mxu0 %v3208_v25  ;;  %1898 = vmatprep.subr.bf16.mxu1 %v3213_v26  ;;  %v3309_v25 = vld [vmem:[%s4336_s1 + $0x6a0] ss:$8 sps:$4 sm:$0xff]   ;;  %v3314_v26 = vld [vmem:[%s4336_s1 + $0x6b4] ss:$8 sps:$4 sm:$0xff]  }
  0xad   :  { %2141 = vmatprep.subr.bf16.mxu0 %v3216_v27  ;;  %v3312_v27 = vld [vmem:[%s4336_s1 + $0x6b0] ss:$8 sps:$4 sm:$0xff]  }
  0xaf   :  { %1899 = vmatpush1.bf16.msra.mxu1 %v3211_v28  ;;  %v77_v28 = vld [vmem:[%s4337_s0 + $0x1f0] sm:$0xff] }
  0xb0   :  { %2142 = vmatpush1.bf16.msra.mxu0 %v3214_v29  ;;  %1900 = vmatprep.subr.bf16.mxu1 %v3224_v30  ;;  %v3315_v29 = vld [vmem:[%s4337_s0 + $0x30] ss:$56 sps:$4 sm:$0xff]   ;;  %v3318_v30 = vld [vmem:[%s4337_s0 + $0x180] ss:$56 sps:$4 sm:$0xff]  }
  0xb1   :  { %2143 = vmatprep.subr.bf16.mxu0 %v3228_v31  ;;  %v3321_v31 = vld [vmem:[%s4337_s0 + $0xa4] ss:$56 sps:$4 sm:$0xff]  }
  0xb3   :  { %1901 = vmatpush1.bf16.msra.mxu1 %v3222_v32  ;;  %v2525_v32 = vcombine.high %v77_v28, %v77_v28 }
  0xb4   :  { %2144 = vmatpush1.bf16.msra.mxu0 %v3226_v33  ;;  %1902 = vmatprep.subr.bf16.mxu1 %v3231_v34  ;;  %v3324_v33 = vld [vmem:[%s4337_s0 + $0xa0] ss:$56 sps:$4 sm:$0xff]   ;;  %v2524_v34 = vcombine.low %v77_v28, %v77_v28 }
  0xb5   :  { %2145 = vmatprep.subr.bf16.mxu0 %v3234_v35  ;;  %v3326_v35 = vld [vmem:[%s4337_s0 + $0x114] ss:$56 sps:$4 sm:$0xff]  }
  0xb7   :  { %1903 = vmatpush1.bf16.msra.mxu1 %v3229_v36  ;;  %v3328_v36 = vld [vmem:[%s4337_s0 + $0x110] ss:$56 sps:$4 sm:$0xff]   ;;  %s3329_s0 = smov 64  }
  0xb8   :  { %2146 = vmatpush1.bf16.msra.mxu0 %v3232_v37  ;;  %1904 = vmatprep.subr.bf16.mxu1 %v3240_v38 }
  0xb9   :  { %2147 = vmatprep.subr.bf16.mxu0 %v3244_v39 }
  0xbb   :  { %1905 = vmatpush1.bf16.msra.mxu1 %v3238_v40 }
  0xbc   :  { %2148 = vmatpush1.bf16.msra.mxu0 %v3242_v41  ;;  %1906 = vmatprep.subr.bf16.mxu1 %v3247_v42 }
  0xbd   :  { %2149 = vmatprep.subr.bf16.mxu0 %v3250_v43 }
  0xbf   :  { %1907 = vmatpush1.bf16.msra.mxu1 %v3245_v44 }
  0xc0   :  { %2150 = vmatpush1.bf16.msra.mxu0 %v3248_v45  ;;  %2766 = vmatprep.subr.bf16.mxu1 %v3259_v46 }
  0xc1   :  { %2200 = vmatprep.subr.bf16.mxu0 %v3259_v46 }
  0xc2   :  { %1909 = vmatmul.mubr.bf16.vlgmr.msra.gmra.mrb[0].mxu1 %v3251_v47 }
  0xc3   :  { %2152 = vmatmul.mubr.bf16.vlgmr.msra.gmra.mrb[0].mxu0 %v3254_v48  ;;  %2778 = vmatpush1.bf16.msra.mxu1 %v3257_v49 }
  0xc4   :  { %2201 = vmatpush1.bf16.msra.mxu0 %v3257_v49  ;;  %2767 = vmatprep.subr.bf16.mxu1 %v3262_v50 }
  0xc5   :  { %2202 = vmatprep.subr.bf16.mxu0 %v3262_v50  ;;  %1918 = vmatprep.mubr.bf16.mxu1 %v3263_v51 }
  0xc6   :  { %2161 = vmatprep.mubr.bf16.mxu0 %v3265_v52 }
  0xc7   :  { %2779 = vmatpush1.bf16.msra.mxu1 %v3260_v53 }
  0xc8   :  { %2203 = vmatpush1.bf16.msra.mxu0 %v3260_v53  ;;  %2768 = vmatprep.subr.bf16.mxu1 %v3271_v54 }
  0xc9   :  { %2204 = vmatprep.subr.bf16.mxu0 %v3271_v54 }
  0xca   :  { %1919 = vmatmul.mubr.bf16.gmra.mrb[4].mxu1 %v3267_v55 }
  0xcb   :  { %2162 = vmatmul.mubr.bf16.gmra.mrb[4].mxu0 %v3268_v56  ;;  %2780 = vmatpush1.bf16.msra.mxu1 %v3269_v57 }
  0xcc   :  { %2205 = vmatpush1.bf16.msra.mxu0 %v3269_v57  ;;  %2769 = vmatprep.subr.bf16.mxu1 %v3274_v58 }
  0xcd   :  { %2206 = vmatprep.subr.bf16.mxu0 %v3274_v58  ;;  %1928 = vmatprep.mubr.bf16.mxu1 %v3275_v59 }
  0xce   :  { %2171 = vmatprep.mubr.bf16.mxu0 %v3277_v60 }
  0xcf   :  { %2781 = vmatpush1.bf16.msra.mxu1 %v3272_v61 }
  0xd0   :  { %2207 = vmatpush1.bf16.msra.mxu0 %v3272_v61  ;;  %2770 = vmatprep.subr.bf16.mxu1 %v3283_v62 }
  0xd1   :  { %2208 = vmatprep.subr.bf16.mxu0 %v3283_v62 }
  0xd2   :  { %1929 = vmatmul.mubr.bf16.gmra.mrb[8].mxu1 %v3279_v63 }
  0xd3   :  { %2172 = vmatmul.mubr.bf16.gmra.mrb[8].mxu0 %v3280_v0  ;;  %2782 = vmatpush1.bf16.msra.mxu1 %v3281_v1 }
  0xd4   :  { %2209 = vmatpush1.bf16.msra.mxu0 %v3281_v1  ;;  %2771 = vmatprep.subr.bf16.mxu1 %v3286_v2 }
  0xd5   :  { %2210 = vmatprep.subr.bf16.mxu0 %v3286_v2  ;;  %1938 = vmatprep.mubr.bf16.mxu1 %v3287_v3 }
  0xd6   :  { %2181 = vmatprep.mubr.bf16.mxu0 %v3289_v4 }
  0xd7   :  { %2783 = vmatpush1.bf16.msra.mxu1 %v3284_v5 }
  0xd8   :  { %2211 = vmatpush1.bf16.msra.mxu0 %v3284_v5  ;;  %2772 = vmatprep.subr.bf16.mxu1 %v3295_v6 }
  0xd9   :  { %2212 = vmatprep.subr.bf16.mxu0 %v3295_v6 }
  0xda   :  { %1939 = vmatmul.mubr.bf16.gmra.mrb[12].mxu1 %v3291_v7 }
  0xdb   :  { %2182 = vmatmul.mubr.bf16.gmra.mrb[12].mxu0 %v3292_v8  ;;  %2784 = vmatpush1.bf16.msra.mxu1 %v3293_v11 }
  0xdc   :  { %2213 = vmatpush1.bf16.msra.mxu0 %v3293_v11  ;;  %2773 = vmatprep.subr.bf16.mxu1 %v3298_v12 }
  0xdd   :  { %2214 = vmatprep.subr.bf16.mxu0 %v3298_v12  ;;  %1948 = vmatprep.mubr.bf16.mxu1 %v2517_v13 }
  0xde   :  { %2191 = vmatprep.mubr.bf16.mxu0 %v2523_v14 }
  0xdf   :  { %2785 = vmatpush1.bf16.msra.mxu1 %v3296_v15 }
  0xe0   :  { %2215 = vmatpush1.bf16.msra.mxu0 %v3296_v15  ;;  %2774 = vmatprep.subr.bf16.mxu1 %v3305_v16 }
  0xe1   :  { %2216 = vmatprep.subr.bf16.mxu0 %v3305_v16 }
  0xe2   :  { %1949 = vmatmul.mubr.bf16.gmra.mrb[16].mxu1 %v2516_v17 }
  0xe3   :  { %2192 = vmatmul.mubr.bf16.gmra.mrb[16].mxu0 %v2522_v18  ;;  %2786 = vmatpush1.bf16.msra.mxu1 %v3303_v19 }
  0xe4   :  { %2217 = vmatpush1.bf16.msra.mxu0 %v3303_v19  ;;  %2775 = vmatprep.subr.bf16.mxu1 %v3308_v20 }
  0xe5   :  { %2218 = vmatprep.subr.bf16.mxu0 %v3308_v20  ;;  %2742 = vmatprep.mubr.msk.bf16.mxu0 %vm1698_vm0, %v3317_v21 }
  0xe6   :  { %2745 = vmatprep.mubr.msk.bf16.mxu1 %vm1698_vm0, %v3320_v22 }
  0xe7   :  { %2787 = vmatpush1.bf16.msra.mxu1 %v3306_v23 }
  0xe8   :  { %2219 = vmatpush1.bf16.msra.mxu0 %v3306_v23  ;;  %2776 = vmatprep.subr.bf16.mxu1 %v3311_v24 }
  0xe9   :  { %2220 = vmatprep.subr.bf16.mxu0 %v3311_v24 }
  0xeb   :  { %2788 = vmatpush1.bf16.msra.mxu1 %v3309_v25 }
  0xec   :  { %2221 = vmatpush1.bf16.msra.mxu0 %v3309_v25  ;;  %2777 = vmatprep.subr.bf16.mxu1 %v3314_v26 }
  0xed   :  { %2222 = vmatprep.subr.bf16.mxu0 %v3314_v26 }
  0xef   :  { %2789 = vmatpush1.bf16.msra.mxu1 %v3312_v27 }
  0xf0   :  { %2223 = vmatpush1.bf16.msra.mxu0 %v3312_v27 }
  0xf2   :  { %2263 = vmatmul.mubr.bf16.vlgmr.msra.gmra.mrb[20].mxu1 %v3318_v30 }
  0xf3   :  { %2233 = vmatmul.mubr.bf16.vlgmr.msra.gmra.mrb[0].mxu0 %v3315_v29  ;;  %2746 = vmatprep.mubr.msk.bf16.mxu1 %vm1698_vm0, %v2525_v32 }
  0xf4   :  { %2743 = vmatprep.mubr.msk.bf16.mxu0 %vm1698_vm0, %v3321_v31 }
  0xfa   :  { %2273 = vmatmul.mubr.bf16.gmra.mrb[24].mxu1 %v2524_v34 }
  0xfb   :  { %2243 = vmatmul.mubr.bf16.gmra.mrb[4].mxu0 %v3324_v33 }
  0xfc   :  { %2744 = vmatprep.mubr.msk.bf16.mxu0 %vm1698_vm0, %v3326_v35 }
 0x103   :  { %2253 = vmatmul.mubr.bf16.gmra.mrb[8].mxu0 %v3328_v36 }
 0x195   :  { %v1910_v37 = vpop.f32.mrb[0].mxu1 }
 0x196   :  { %v1912_v38 = vpop.f32.mrb[1].mxu1 }
 0x197   :  { %v1914_v39 = vpop.f32.mrb[2].mxu1 }
 0x198   :  { %v1916_v40 = vpop.f32.mrb[3].mxu1 }
 0x19d   :  { %v1920_v41 = vpop.f32.mrb[4].mxu1 }
 0x19e   :  { %v1922_v42 = vpop.f32.mrb[5].mxu1 }
 0x19f   :  { %v1924_v43 = vpop.f32.mrb[6].mxu1 }
 0x1a0   :  { %v1926_v44 = vpop.f32.mrb[7].mxu1 }
 0x1a5   :  { %v4192_v45 = vpop.f32.mrb[8].mxu1 }
 0x1a6   :  { %v4194_v46 = vpop.f32.mrb[9].mxu1 }
 0x1a7   :  { %v4196_v47 = vpop.f32.mrb[10].mxu1 }
 0x1a8   :  { %v4198_v48 = vpop.f32.mrb[11].mxu1 }
 0x1ad   :  { %v1940_v49 = vpop.f32.mrb[12].mxu1 }
 0x1ae   :  { %v2183_v50 = vpop.f32.mrb[12].mxu0  ;;  %v1942_v52 = vpop.f32.mrb[13].mxu1 }
 0x1af   :  { %v2802_v51 = vadd.f32 %v2183_v50, %v1940_v49  ;;  %v2185_v53 = vpop.f32.mrb[13].mxu0  ;;  %v1944_v55 = vpop.f32.mrb[14].mxu1  ;;  %v4273_v49 = vld [vmem:[%s4338_s2] ss:$0 sm:$0xff] }
 0x1b0   :  { %v2804_v54 = vadd.f32 %v2185_v53, %v1942_v52  ;;  %v2187_v56 = vpop.f32.mrb[14].mxu0  ;;  %v1946_v58 = vpop.f32.mrb[15].mxu1 }
 0x1b1   :  { %v2806_v57 = vadd.f32 %v2187_v56, %v1944_v55  ;;  %v2189_v59 = vpop.f32.mrb[15].mxu0 }
 0x1b2   :  { %v2808_v60 = vadd.f32 %v2189_v59, %v1946_v58 }
 0x1b5   :  { %v1950_v61 = vpop.f32.mrb[16].mxu1 }
 0x1b6   :  { %v2193_v62 = vpop.f32.mrb[16].mxu0  ;;  %v1952_v0 = vpop.f32.mrb[17].mxu1 }
 0x1b7   :  { %v2810_v63 = vadd.f32 %v2193_v62, %v1950_v61  ;;  %v2195_v1 = vpop.f32.mrb[17].mxu0  ;;  %v1954_v3 = vpop.f32.mrb[18].mxu1 }
 0x1b8   :  { %v2812_v2 = vadd.f32 %v2195_v1, %v1952_v0  ;;  %v2197_v4 = vpop.f32.mrb[18].mxu0  ;;  %v1955_v5 = vpop.f32.mrb[19].mxu1 }
 0x1b9   :  { %v2198_v6 = vpop.f32.mrb[19].mxu0 }
 0x1c5   :  { %v2264_v8 = vpop.f32.mrb[20].mxu1 }
 0x1c6   :  { %v2234_v7 = vpop.f32.mrb[0].mxu0  ;;  %v4200_v10 = vadd.f32 %v2802_v51, %v2264_v8  ;;  %v2266_v12 = vpop.f32.mrb[21].mxu1 }
 0x1c7   :  { %v2790_v9 = vadd.f32 %v2234_v7, %v1910_v37  ;;  %v2236_v11 = vpop.f32.mrb[1].mxu0  ;;  %v4202_v14 = vadd.f32 %v2804_v54, %v2266_v12  ;;  %v2268_v16 = vpop.f32.mrb[22].mxu1 }
 0x1c8   :  { %v2791_v13 = vadd.f32 %v2236_v11, %v1912_v38  ;;  %v2238_v15 = vpop.f32.mrb[2].mxu0  ;;  %v4206_v18 = vadd.f32 %v2806_v57, %v2268_v16  ;;  %v2270_v20 = vpop.f32.mrb[23].mxu1 }
 0x1c9   :  { %v4204_v17 = vadd.f32 %v2238_v15, %v1914_v39  ;;  %v2240_v19 = vpop.f32.mrb[3].mxu0  ;;  %2290 = vrot.lane.b32.xlu0 %v2790_v9, %s3329_s0  ;;  %v4211_v22 = vadd.f32 %v2808_v60, %v2270_v20 }
 0x1ca   :  { %v4209_v21 = vadd.f32 %v2240_v19, %v1916_v40  ;;  %2335 = vrot.lane.b32.xlu1 %v2791_v13, %s3329_s0 }
 0x1cd   :  { %2302 = vrot.lane.b32.xlu0 %v4200_v10, %s3329_s0  ;;  %v2274_v24 = vpop.f32.mrb[24].mxu1 }
 0x1ce   :  { %v2244_v23 = vpop.f32.mrb[4].mxu0  ;;  %2347 = vrot.lane.b32.xlu1 %v4202_v14, %s3329_s0  ;;  %v4220_v26 = vadd.f32 %v2810_v63, %v2274_v24  ;;  %v2276_v28 = vpop.f32.mrb[25].mxu1 }
 0x1cf   :  { %v4218_v25 = vadd.f32 %v2244_v23, %v1920_v41  ;;  %v2246_v27 = vpop.f32.mrb[5].mxu0  ;;  %v4224_v30 = vadd.f32 %v2812_v2, %v2276_v28  ;;  %v2278_v32 = vpop.f32.mrb[26].mxu1 }
 0x1d0   :  { %v4222_v29 = vadd.f32 %v2246_v27, %v1922_v42  ;;  %v2248_v31 = vpop.f32.mrb[6].mxu0  ;;  %v2279_v35 = vpop.f32.mrb[27].mxu1 }
 0x1d1   :  { %v4226_v33 = vadd.f32 %v2248_v31, %v1924_v43  ;;  %v2250_v34 = vpop.f32.mrb[7].mxu0  ;;  %2292 = vrot.lane.b32.xlu0 %v4204_v17, %s3329_s0 }
 0x1d2   :  { %v4230_v36 = vadd.f32 %v2250_v34, %v1926_v44  ;;  %2304 = vrot.lane.b32.xlu1 %v4206_v18, %s3329_s0 }
 0x1d5   :  { %2337 = vrot.lane.b32.xlu0 %v4209_v21, %s3329_s0 }
 0x1d6   :  { %v2254_v37 = vpop.f32.mrb[8].mxu0  ;;  %2294 = vrot.lane.b32.xlu1 %v4218_v25, %s3329_s0 }
 0x1d7   :  { %v4239_v38 = vadd.f32 %v2254_v37, %v4192_v45  ;;  %v2256_v39 = vpop.f32.mrb[9].mxu0 }
 0x1d8   :  { %v4242_v40 = vadd.f32 %v2256_v39, %v4194_v46  ;;  %v2258_v41 = vpop.f32.mrb[10].mxu0 }
 0x1d9   :  { %v4245_v42 = vadd.f32 %v2258_v41, %v4196_v47  ;;  %v2260_v43 = vpop.f32.mrb[11].mxu0  ;;  %2306 = vrot.lane.b32.xlu0 %v4220_v26, %s3329_s0 }
 0x1da   :  { %v4250_v44 = vadd.f32 %v2260_v43, %v4198_v48  ;;  %2339 = vrot.lane.b32.xlu1 %v4222_v29, %s3329_s0 }
 0x1dd   :  { %2341 = vrot.lane.b32.xlu0 %v4230_v36, %s3329_s0 }
 0x1de   :  { %2296 = vrot.lane.b32.xlu1 %v4226_v33, %s3329_s0 }
 0x1e1   :  { %2298 = vrot.lane.b32.xlu0 %v4239_v38, %s3329_s0 }
 0x1e2   :  { %2343 = vrot.lane.b32.xlu1 %v4242_v40, %s3329_s0 }
 0x1e5   :  { %2345 = vrot.lane.b32.xlu0 %v4250_v44, %s3329_s0 }
 0x1e6   :  { %2300 = vrot.lane.b32.xlu1 %v4245_v42, %s3329_s0 }
 0x1e9   :  { %2349 = vrot.lane.b32.xlu0 %v4211_v22, %s3329_s0 }
 0x1ea   :  { %2351 = vrot.lane.b32.xlu1 %v4224_v30, %s3329_s0 }
 0x23b   :  { %v2291_v45 = vpop.permute.xlu0 %2290 }
 0x23c   :  { %v2317_v46 = vmax.f32 %v2790_v9, %v2291_v45  ;;  %v2336_v47 = vpop.permute.xlu1 %2335 }
 0x23d   :  { %v2362_v48 = vmax.f32 %v2791_v13, %v2336_v47 }
 0x23f   :  { %v2371_v50 = vmax.f32 %v2317_v46, %v2362_v48  ;;  %v2303_v51 = vpop.permute.xlu0 %2302 }
 0x240   :  { %v2323_v52 = vmax.f32 %v4200_v10, %v2303_v51  ;;  %v2348_v53 = vpop.permute.xlu1 %2347 }
 0x241   :  { %v2387_v54 = vadd.f32 %v4273_v49, %v2371_v50  ;;  %v2368_v55 = vmax.f32 %v4202_v14, %v2348_v53 }
 0x243   :  { %v2396_v56 = vmax.f32 %v2387_v54, 0.0  ;;  %v2377_v57 = vmax.f32 %v2323_v52, %v2368_v55  ;;  %v2293_v58 = vpop.permute.xlu0 %2292 }
 0x244   :  { %v2305_v59 = vpop.permute.xlu1 %2304  ;;  %v2318_v0 = vmax.f32 %v4204_v17, %v2293_v58 }
 0x245   :  { %v2757_v60 = vpack.c.bf16 %v2396_v56, %v2396_v56  ;;  %v2393_v61 = vadd.f32 %v4273_v49, %v2377_v57  ;;  %v2324_v41 = vmax.f32 %v4206_v18, %v2305_v59 }
 0x247   :  { %2443 = vst.msk [vmem:[%s4339_s3] sm:$0xf] %vm2442_vm1, %v2757_v60  ;;  %v2402_v62 = vmax.f32 %v2393_v61, 0.0  ;;  %v2338_v63 = vpop.permute.xlu0 %2337 }
 0x248   :  { %v2363_v1 = vmax.f32 %v4209_v21, %v2338_v63  ;;  %v2295_v2 = vpop.permute.xlu1 %2294 }
 0x249   :  { %v2763_v3 = vpack.c.bf16 %v2402_v62, %v2402_v62  ;;  %v2319_v8 = vmax.f32 %v4218_v25, %v2295_v2 }
 0x24a   :  { %v2372_v4 = vmax.f32 %v2318_v0, %v2363_v1 }
 0x24b   :  { %2449 = vst.msk [vmem:[%s4339_s3 + $0x18] sm:$0xf] %vm2442_vm1, %v2763_v3  ;;  %v2307_v5 = vpop.permute.xlu0 %2306 }
 0x24c   :  { %v2388_v6 = vadd.f32 %v4273_v49, %v2372_v4  ;;  %v2340_v7 = vpop.permute.xlu1 %2339 }
 0x24d   :  { %v2364_v9 = vmax.f32 %v4222_v29, %v2340_v7 }
 0x24e   :  { %v2397_v10 = vmax.f32 %v2388_v6, 0.0 }
 0x24f   :  { %v2373_v11 = vmax.f32 %v2319_v8, %v2364_v9  ;;  %v2342_v12 = vpop.permute.xlu0 %2341 }
 0x250   :  { %v2758_v13 = vpack.c.bf16 %v2397_v10, %v2397_v10  ;;  %v2365_v14 = vmax.f32 %v4230_v36, %v2342_v12  ;;  %v2297_v15 = vpop.permute.xlu1 %2296 }
 0x251   :  { %v2389_v16 = vadd.f32 %v4273_v49, %v2373_v11  ;;  %v2320_v17 = vmax.f32 %v4226_v33, %v2297_v15 }
 0x252   :  { %2444 = vst.msk [vmem:[%s4339_s3 + $0x4] sm:$0xf] %vm2442_vm1, %v2758_v13 }
 0x253   :  { %v2398_v19 = vmax.f32 %v2389_v16, 0.0  ;;  %v2374_v20 = vmax.f32 %v2320_v17, %v2365_v14  ;;  %v2299_v21 = vpop.permute.xlu0 %2298 }
 0x254   :  { %v2321_v23 = vmax.f32 %v4239_v38, %v2299_v21  ;;  %v2344_v24 = vpop.permute.xlu1 %2343 }
 0x255   :  { %v2759_v25 = vpack.c.bf16 %v2398_v19, %v2398_v19  ;;  %v2390_v27 = vadd.f32 %v4273_v49, %v2374_v20  ;;  %v2366_v28 = vmax.f32 %v4242_v40, %v2344_v24 }
 0x257   :  { %2445 = vst.msk [vmem:[%s4339_s3 + $0x8] sm:$0xf] %vm2442_vm1, %v2759_v25  ;;  %v2399_v29 = vmax.f32 %v2390_v27, 0.0  ;;  %v2375_v31 = vmax.f32 %v2321_v23, %v2366_v28  ;;  %v2346_v32 = vpop.permute.xlu0 %2345 }
 0x258   :  { %v2367_v33 = vmax.f32 %v4250_v44, %v2346_v32  ;;  %v2301_v34 = vpop.permute.xlu1 %2300  ;;  %v2325_v44 = vmax.f32 %v4220_v26, %v2307_v5 }
 0x259   :  { %v2760_v35 = vpack.c.bf16 %v2399_v29, %v2399_v29  ;;  %v2391_v36 = vadd.f32 %v4273_v49, %v2375_v31  ;;  %v2322_v37 = vmax.f32 %v4245_v42, %v2301_v34 }
 0x25b   :  { %2446 = vst.msk [vmem:[%s4339_s3 + $0xc] sm:$0xf] %vm2442_vm1, %v2760_v35  ;;  %v2400_v38 = vmax.f32 %v2391_v36, 0.0  ;;  %v2376_v39 = vmax.f32 %v2322_v37, %v2367_v33  ;;  %v2350_v40 = vpop.permute.xlu0 %2349 }
 0x25c   :  { %v2369_v43 = vmax.f32 %v4211_v22, %v2350_v40  ;;  %v2352_v45 = vpop.permute.xlu1 %2351 }
 0x25d   :  { %v2761_v46 = vpack.c.bf16 %v2400_v38, %v2400_v38  ;;  %v2392_v47 = vadd.f32 %v4273_v49, %v2376_v39  ;;  %v2370_v42 = vmax.f32 %v4224_v30, %v2352_v45 }
 0x25e   :  { %v2378_v48 = vmax.f32 %v2324_v41, %v2369_v43 }
 0x25f   :  { %2447 = vst.msk [vmem:[%s4339_s3 + $0x10] sm:$0xf] %vm2442_vm1, %v2761_v46  ;;  %v2401_v50 = vmax.f32 %v2392_v47, 0.0  ;;  %v2379_v51 = vmax.f32 %v2325_v44, %v2370_v42 }
 0x260   :  { %v2394_v18 = vadd.f32 %v4273_v49, %v2378_v48 }
 0x261   :  { %v2762_v52 = vpack.c.bf16 %v2401_v50, %v2401_v50  ;;  %v2395_v22 = vadd.f32 %v4273_v49, %v2379_v51 }
 0x262   :  { %v2403_v53 = vmax.f32 %v2394_v18, 0.0 }
 0x263   :  { %2448 = vst.msk [vmem:[%s4339_s3 + $0x14] sm:$0xf] %vm2442_vm1, %v2762_v52  ;;  %v2404_v26 = vmax.f32 %v2395_v22, 0.0 }
 0x264   :  { %v2764_v30 = vpack.c.bf16 %v2403_v53, %v2403_v53 }
 0x265   :  { %v2765_v54 = vpack.c.bf16 %v2404_v26, %v2404_v26 }
 0x266   :  { %2450 = vst.msk [vmem:[%s4339_s3 + $0x1c] sm:$0xf] %vm2442_vm1, %v2764_v30 }
 0x267   :  { %2451 = vst.msk [vmem:[%s4339_s3 + $0x20] sm:$0xf] %vm2442_vm1, %v2765_v54 }

// kernel: cnn_forward.9
= control target key start
LH: loop header
LB: loop body
LE: loop exit
PB: predicated region body
PF: predicated region fallthrough
CT: control target
= control target key end

     0   :  { %v133_v17 = vlaneseq  ;;  %v1480_v18 = vmov 1966171168   ;;  %s1927_s0 = inlined_call_operand.vmem [shape: bf16[2,864], index: 0, kind: input, shape index: {}]   ;;  %s1928_s1 = inlined_call_operand.vmem [shape: bf16[864,256], index: 1, kind: input, shape index: {}]   ;;  %s1929_s2 = inlined_call_operand.vmem [shape: f32[1,256], index: 2, kind: input, shape index: {}]   ;;  %s1930_s3 = inlined_call_operand.vmem [shape: bf16[256,2], index: 3, kind: input, shape index: {}]   ;;  %s1931_s4 = inlined_call_operand.vmem [shape: f32[1,2], index: 4, kind: input, shape index: {}]   ;;  %s1932_s5 = inlined_call_operand.hbm [shape: f32[2,2], index: 5, kind: output, shape index: {}]  }
   0x1   :  { %v1273_v0 = vld [vmem:[%s1928_s1 + $0x104] ss:$8 sps:$4 sm:$0xff]   ;;  %v1275_v1 = vld [vmem:[%s1928_s1 + $0x100] ss:$8 sps:$4 sm:$0xff]   ;;  %v1276_v2 = vld [vmem:[%s1928_s1 + $0x114] ss:$8 sps:$4 sm:$0xff]   ;;  %v146_v19 = vunpack.c.l.s4 %v1480_v18 }
   0x2   :  { %783 = vmatprep.subr.bf16.mxu0 %v1273_v0  ;;  %v1278_v3 = vld [vmem:[%s1928_s1 + $0x110] ss:$8 sps:$4 sm:$0xff]   ;;  %v1279_v4 = vld [vmem:[%s1928_s1 + $0x124] ss:$8 sps:$4 sm:$0xff]   ;;  %v1281_v5 = vld [vmem:[%s1928_s1 + $0x120] ss:$8 sps:$4 sm:$0xff]  }
   0x3   :  { %784 = vmatpush1.bf16.msra.mxu0 %v1275_v1  ;;  %v1282_v6 = vld [vmem:[%s1928_s1 + $0x134] ss:$8 sps:$4 sm:$0xff]   ;;  %v1284_v7 = vld [vmem:[%s1928_s1 + $0x130] ss:$8 sps:$4 sm:$0xff]   ;;  %v1285_v8 = vld [vmem:[%s1928_s1 + $0x144] ss:$8 sps:$4 sm:$0xff]   ;;  %v147_v25 = vunpack.c.0.s8 %v146_v19 }
   0x4   :  { %785 = vmatprep.subr.bf16.mxu0 %v1276_v2  ;;  %v1303_v9 = vld [vmem:[%s1928_s1 + $0x4] ss:$8 sps:$4 sm:$0xff]   ;;  %v1305_v10 = vld [vmem:[%s1928_s1] ss:$8 sps:$4 sm:$0xff]   ;;  %v1288_v12 = vld [vmem:[%s1928_s1 + $0x154] ss:$8 sps:$4 sm:$0xff]  }
   0x5   :  { %v1287_v11 = vld [vmem:[%s1928_s1 + $0x140] ss:$8 sps:$4 sm:$0xff]   ;;  %742 = vmatprep.subr.bf16.mxu1 %v1303_v9  ;;  %v1309_v13 = vld [vmem:[%s1928_s1 + $0x14] ss:$8 sps:$4 sm:$0xff]   ;;  %v1311_v14 = vld [vmem:[%s1928_s1 + $0x10] ss:$8 sps:$4 sm:$0xff]  }
   0x6   :  { %743 = vmatpush1.bf16.msra.mxu1 %v1305_v10  ;;  %v1290_v15 = vld [vmem:[%s1928_s1 + $0x150] ss:$8 sps:$4 sm:$0xff]   ;;  %v1315_v16 = vld [vmem:[%s1928_s1 + $0x24] ss:$8 sps:$4 sm:$0xff]   ;;  %v1317_v21 = vld [vmem:[%s1928_s1 + $0x20] ss:$8 sps:$4 sm:$0xff]  }
   0x7   :  { %786 = vmatpush1.bf16.msra.mxu0 %v1278_v3  ;;  %744 = vmatprep.subr.bf16.mxu1 %v1309_v13  ;;  %v1291_v20 = vld [vmem:[%s1928_s1 + $0x164] ss:$8 sps:$4 sm:$0xff]   ;;  %v1321_v22 = vld [vmem:[%s1928_s1 + $0x34] ss:$8 sps:$4 sm:$0xff]   ;;  %v1293_v23 = vld [vmem:[%s1928_s1 + $0x160] ss:$8 sps:$4 sm:$0xff]  }
   0x8   :  { %787 = vmatprep.subr.bf16.mxu0 %v1279_v4  ;;  %v1576_v24 = vshrl.u32 %v133_v17, 7  ;;  %v1294_v26 = vld [vmem:[%s1928_s1 + $0x174] ss:$8 sps:$4 sm:$0xff]   ;;  %v1323_v27 = vld [vmem:[%s1928_s1 + $0x30] ss:$8 sps:$4 sm:$0xff]  }
   0x9   :  { %v1327_v28 = vld [vmem:[%s1928_s1 + $0x44] ss:$8 sps:$4 sm:$0xff]   ;;  %v1296_v29 = vld [vmem:[%s1928_s1 + $0x170] ss:$8 sps:$4 sm:$0xff]   ;;  %v1329_v32 = vld [vmem:[%s1928_s1 + $0x40] ss:$8 sps:$4 sm:$0xff]  }
   0xa   :  { %745 = vmatpush1.bf16.msra.mxu1 %v1311_v14  ;;  %v1591_v30 = vsub.s32 %v147_v25, %v1576_v24  ;;  %v1297_v31 = vld [vmem:[%s1928_s1 + $0x184] ss:$8 sps:$4 sm:$0xff]   ;;  %v1333_v33 = vld [vmem:[%s1928_s1 + $0x54] ss:$8 sps:$4 sm:$0xff]   ;;  %v1299_v35 = vld [vmem:[%s1928_s1 + $0x180] ss:$8 sps:$4 sm:$0xff]  }
   0xb   :  { %788 = vmatpush1.bf16.msra.mxu0 %v1281_v5  ;;  %746 = vmatprep.subr.bf16.mxu1 %v1315_v16  ;;  %v22_v34 = vld [vmem:[%s1927_s0] sm:$0x7f]  ;;  %v1300_v37 = vld [vmem:[%s1928_s1 + $0x194] ss:$8 sps:$4 sm:$0xff]   ;;  %v1335_v38 = vld [vmem:[%s1928_s1 + $0x50] ss:$8 sps:$4 sm:$0xff]  }
   0xc   :  { %789 = vmatprep.subr.bf16.mxu0 %v1282_v6  ;;  %v151_v36 = vrot.slane %v22_v34, %v1591_v30  ;;  %v1339_v40 = vld [vmem:[%s1928_s1 + $0x64] ss:$8 sps:$4 sm:$0xff]   ;;  %v1302_v41 = vld [vmem:[%s1928_s1 + $0x190] ss:$8 sps:$4 sm:$0xff]   ;;  %v1341_v44 = vld [vmem:[%s1928_s1 + $0x60] ss:$8 sps:$4 sm:$0xff]   ;;  %v144_v60 = vcombine.high %v22_v34, %v22_v34 }
   0xd   :  { %v1306_v43 = vld [vmem:[%s1928_s1 + $0x1a4] ss:$8 sps:$4 sm:$0xff]   ;;  %v1346_v46 = vld [vmem:[%s1928_s1 + $0x74] ss:$8 sps:$4 sm:$0xff]   ;;  %v1308_v47 = vld [vmem:[%s1928_s1 + $0x1a0] ss:$8 sps:$4 sm:$0xff]  }
   0xe   :  { %747 = vmatpush1.bf16.msra.mxu1 %v1317_v21  ;;  %v159_v39 = vcombine.high %v151_v36, %v151_v36  ;;  %v1312_v48 = vld [vmem:[%s1928_s1 + $0x1b4] ss:$8 sps:$4 sm:$0xff]   ;;  %v1348_v49 = vld [vmem:[%s1928_s1 + $0x70] ss:$8 sps:$4 sm:$0xff]   ;;  %v1352_v50 = vld [vmem:[%s1928_s1 + $0x84] ss:$8 sps:$4 sm:$0xff]   ;;  %v1683_v1 = vrot.slane %v144_v60, %v1591_v30  ;;  %v167_v4 = vrot.slane %v151_v36, %v1591_v30 }
   0xf   :  { %790 = vmatpush1.bf16.msra.mxu0 %v1284_v7  ;;  %748 = vmatprep.subr.bf16.mxu1 %v1321_v22  ;;  %v1314_v51 = vld [vmem:[%s1928_s1 + $0x1b0] ss:$8 sps:$4 sm:$0xff]   ;;  %v1318_v52 = vld [vmem:[%s1928_s1 + $0x1c4] ss:$8 sps:$4 sm:$0xff]   ;;  %v1354_v53 = vld [vmem:[%s1928_s1 + $0x80] ss:$8 sps:$4 sm:$0xff]  }
  0x10   :  { %791 = vmatprep.subr.bf16.mxu0 %v1285_v8  ;;  %v181_v42 = vrot.slane %v159_v39, %v1591_v30  ;;  %v1358_v54 = vld [vmem:[%s1928_s1 + $0x94] ss:$8 sps:$4 sm:$0xff]   ;;  %v1320_v55 = vld [vmem:[%s1928_s1 + $0x1c0] ss:$8 sps:$4 sm:$0xff]   ;;  %v1360_v57 = vld [vmem:[%s1928_s1 + $0x90] ss:$8 sps:$4 sm:$0xff]   ;;  %v160_v7 = vcombine.high %v1683_v1, %v1683_v1  ;;  %v189_v10 = vcombine.high %v167_v4, %v167_v4 }
  0x11   :  { %v1324_v56 = vld [vmem:[%s1928_s1 + $0x1d4] ss:$8 sps:$4 sm:$0xff]   ;;  %v1364_v58 = vld [vmem:[%s1928_s1 + $0xa4] ss:$8 sps:$4 sm:$0xff]   ;;  %v1326_v59 = vld [vmem:[%s1928_s1 + $0x1d0] ss:$8 sps:$4 sm:$0xff]  }
  0x12   :  { %749 = vmatpush1.bf16.msra.mxu1 %v1323_v27  ;;  %v191_v45 = vcombine.high %v181_v42, %v181_v42  ;;  %774 = vmatprep.mubr.bf16.mxu1 %v181_v42  ;;  %v1330_v61 = vld [vmem:[%s1928_s1 + $0x1e4] ss:$8 sps:$4 sm:$0xff]   ;;  %v1366_v62 = vld [vmem:[%s1928_s1 + $0xa0] ss:$8 sps:$4 sm:$0xff]   ;;  %v1370_v63 = vld [vmem:[%s1928_s1 + $0xb4] ss:$8 sps:$4 sm:$0xff]   ;;  %v188_v13 = vrot.slane %v160_v7, %v1591_v30 }
  0x13   :  { %792 = vmatpush1.bf16.msra.mxu0 %v1287_v11  ;;  %750 = vmatprep.subr.bf16.mxu1 %v1327_v28  ;;  %v1332_v0 = vld [vmem:[%s1928_s1 + $0x1e0] ss:$8 sps:$4 sm:$0xff]   ;;  %v1336_v2 = vld [vmem:[%s1928_s1 + $0x1f4] ss:$8 sps:$4 sm:$0xff]   ;;  %v1372_v3 = vld [vmem:[%s1928_s1 + $0xb0] ss:$8 sps:$4 sm:$0xff]  }
  0x14   :  { %793 = vmatprep.subr.bf16.mxu0 %v1288_v12  ;;  %815 = vmatprep.mubr.bf16.mxu0 %v191_v45  ;;  %v1376_v5 = vld [vmem:[%s1928_s1 + $0xc4] ss:$8 sps:$4 sm:$0xff]   ;;  %v1338_v6 = vld [vmem:[%s1928_s1 + $0x1f0] ss:$8 sps:$4 sm:$0xff]   ;;  %v1378_v9 = vld [vmem:[%s1928_s1 + $0xc0] ss:$8 sps:$4 sm:$0xff]  }
  0x15   :  { %v1345_v8 = vld [vmem:[%s1928_s1 + $0x204] ss:$8 sps:$4 sm:$0xff]   ;;  %v1382_v11 = vld [vmem:[%s1928_s1 + $0xd4] ss:$8 sps:$4 sm:$0xff]   ;;  %v1343_v12 = vld [vmem:[%s1928_s1 + $0x200] ss:$8 sps:$4 sm:$0xff]  }
  0x16   :  { %751 = vmatpush1.bf16.msra.mxu1 %v1329_v32  ;;  %v1351_v14 = vld [vmem:[%s1928_s1 + $0x214] ss:$8 sps:$4 sm:$0xff]   ;;  %v1388_v16 = vld [vmem:[%s1928_s1 + $0xe4] ss:$8 sps:$4 sm:$0xff]   ;;  %v1349_v17 = vld [vmem:[%s1928_s1 + $0x210] ss:$8 sps:$4 sm:$0xff]  }
  0x17   :  { %794 = vmatpush1.bf16.msra.mxu0 %v1290_v15  ;;  %752 = vmatprep.subr.bf16.mxu1 %v1333_v33  ;;  %v1384_v15 = vld [vmem:[%s1928_s1 + $0xd0] ss:$8 sps:$4 sm:$0xff]   ;;  %v1357_v18 = vld [vmem:[%s1928_s1 + $0x224] ss:$8 sps:$4 sm:$0xff]   ;;  %v1390_v19 = vld [vmem:[%s1928_s1 + $0xe0] ss:$8 sps:$4 sm:$0xff]  }
  0x18   :  { %795 = vmatprep.subr.bf16.mxu0 %v1291_v20  ;;  %v1355_v20 = vld [vmem:[%s1928_s1 + $0x220] ss:$8 sps:$4 sm:$0xff]   ;;  %v1394_v21 = vld [vmem:[%s1928_s1 + $0xf4] ss:$8 sps:$4 sm:$0xff]   ;;  %v1402_v25 = vld [vmem:[%s1928_s1 + $0x304] ss:$8 sps:$4 sm:$0xff]  }
  0x19   :  { %v1363_v22 = vld [vmem:[%s1928_s1 + $0x234] ss:$8 sps:$4 sm:$0xff]   ;;  %v1369_v27 = vld [vmem:[%s1928_s1 + $0x244] ss:$8 sps:$4 sm:$0xff]   ;;  %v1400_v28 = vld [vmem:[%s1928_s1 + $0x300] ss:$8 sps:$4 sm:$0xff]  }
  0x1a   :  { %753 = vmatpush1.bf16.msra.mxu1 %v1335_v38  ;;  %v1375_v32 = vld [vmem:[%s1928_s1 + $0x254] ss:$8 sps:$4 sm:$0xff]   ;;  %v1406_v33 = vld [vmem:[%s1928_s1 + $0x310] ss:$8 sps:$4 sm:$0xff]   ;;  %v1414_v34 = vld [vmem:[%s1928_s1 + $0x324] ss:$8 sps:$4 sm:$0xff]  }
  0x1b   :  { %796 = vmatpush1.bf16.msra.mxu0 %v1293_v23  ;;  %754 = vmatprep.subr.bf16.mxu1 %v1339_v40  ;;  %v1396_v23 = vld [vmem:[%s1928_s1 + $0xf0] ss:$8 sps:$4 sm:$0xff]  }
  0x1c   :  { %797 = vmatprep.subr.bf16.mxu0 %v1294_v26  ;;  %v1361_v26 = vld [vmem:[%s1928_s1 + $0x230] ss:$8 sps:$4 sm:$0xff]  }
  0x1d   :  { %v1373_v36 = vld [vmem:[%s1928_s1 + $0x250] ss:$8 sps:$4 sm:$0xff]  }
  0x1e   :  { %755 = vmatpush1.bf16.msra.mxu1 %v1341_v44 }
  0x1f   :  { %798 = vmatpush1.bf16.msra.mxu0 %v1296_v29  ;;  %756 = vmatprep.subr.bf16.mxu1 %v1346_v46  ;;  %v1408_v29 = vld [vmem:[%s1928_s1 + $0x314] ss:$8 sps:$4 sm:$0xff]  }
  0x20   :  { %799 = vmatprep.subr.bf16.mxu0 %v1297_v31  ;;  %v1367_v31 = vld [vmem:[%s1928_s1 + $0x240] ss:$8 sps:$4 sm:$0xff]  }
  0x22   :  { %757 = vmatpush1.bf16.msra.mxu1 %v1348_v49 }
  0x23   :  { %800 = vmatpush1.bf16.msra.mxu0 %v1299_v35  ;;  %758 = vmatprep.subr.bf16.mxu1 %v1352_v50  ;;  %v1481_v35 = vmov 0  }
  0x24   :  { %801 = vmatprep.subr.bf16.mxu0 %v1300_v37 }
  0x26   :  { %759 = vmatpush1.bf16.msra.mxu1 %v1354_v53 }
  0x27   :  { %802 = vmatpush1.bf16.msra.mxu0 %v1302_v41  ;;  %760 = vmatprep.subr.bf16.mxu1 %v1358_v54 }
  0x28   :  { %803 = vmatprep.subr.bf16.mxu0 %v1306_v43 }
  0x2a   :  { %761 = vmatpush1.bf16.msra.mxu1 %v1360_v57 }
  0x2b   :  { %804 = vmatpush1.bf16.msra.mxu0 %v1308_v47  ;;  %762 = vmatprep.subr.bf16.mxu1 %v1364_v58 }
  0x2c   :  { %805 = vmatprep.subr.bf16.mxu0 %v1312_v48 }
  0x2e   :  { %763 = vmatpush1.bf16.msra.mxu1 %v1366_v62 }
  0x2f   :  { %806 = vmatpush1.bf16.msra.mxu0 %v1314_v51  ;;  %764 = vmatprep.subr.bf16.mxu1 %v1370_v63 }
  0x30   :  { %807 = vmatprep.subr.bf16.mxu0 %v1318_v52 }
  0x32   :  { %765 = vmatpush1.bf16.msra.mxu1 %v1372_v3 }
  0x33   :  { %808 = vmatpush1.bf16.msra.mxu0 %v1320_v55  ;;  %766 = vmatprep.subr.bf16.mxu1 %v1376_v5 }
  0x34   :  { %809 = vmatprep.subr.bf16.mxu0 %v1324_v56 }
  0x36   :  { %767 = vmatpush1.bf16.msra.mxu1 %v1378_v9 }
  0x37   :  { %810 = vmatpush1.bf16.msra.mxu0 %v1326_v59  ;;  %768 = vmatprep.subr.bf16.mxu1 %v1382_v11 }
  0x38   :  { %811 = vmatprep.subr.bf16.mxu0 %v1330_v61 }
  0x3a   :  { %769 = vmatpush1.bf16.msra.mxu1 %v1384_v15 }
  0x3b   :  { %812 = vmatpush1.bf16.msra.mxu0 %v1332_v0  ;;  %770 = vmatprep.subr.bf16.mxu1 %v1388_v16 }
  0x3c   :  { %813 = vmatprep.subr.bf16.mxu0 %v1336_v2 }
  0x3e   :  { %771 = vmatpush1.bf16.msra.mxu1 %v1390_v19 }
  0x3f   :  { %814 = vmatpush1.bf16.msra.mxu0 %v1338_v6  ;;  %772 = vmatprep.subr.bf16.mxu1 %v1394_v21 }
  0x40   :  { %824 = vmatprep.subr.bf16.mxu0 %v1345_v8 }
  0x42   :  { %816 = vmatmul.mubr.bf16.vlgmr.msra.gmra.mrb[0].mxu0 %v189_v10  ;;  %773 = vmatpush1.bf16.msra.mxu1 %v1396_v23 }
  0x43   :  { %825 = vmatpush1.bf16.msra.mxu0 %v1343_v12  ;;  %856 = vmatprep.mubr.bf16.mxu0 %v188_v13 }
  0x44   :  { %826 = vmatprep.subr.bf16.mxu0 %v1351_v14  ;;  %865 = vmatprep.subr.bf16.mxu1 %v1402_v25 }
  0x45   :  { %775 = vmatmul.mubr.bf16.vlgmr.msra.gmra.mrb[0].mxu1 %v167_v4 }
  0x46   :  { %866 = vmatpush1.bf16.msra.mxu1 %v1400_v28  ;;  %897 = vmatprep.mubr.bf16.mxu1 %v1481_v35 }
  0x47   :  { %827 = vmatpush1.bf16.msra.mxu0 %v1349_v17  ;;  %867 = vmatprep.subr.bf16.mxu1 %v1408_v29 }
  0x48   :  { %828 = vmatprep.subr.bf16.mxu0 %v1357_v18 }
  0x4b   :  { %829 = vmatpush1.bf16.msra.mxu0 %v1355_v20 }
  0x4c   :  { %830 = vmatprep.subr.bf16.mxu0 %v1363_v22 }
  0x4f   :  { %831 = vmatpush1.bf16.msra.mxu0 %v1361_v26 }
  0x50   :  { %832 = vmatprep.subr.bf16.mxu0 %v1369_v27 }
  0x53   :  { %833 = vmatpush1.bf16.msra.mxu0 %v1367_v31 }
  0x54   :  { %10 = vsyncpa [#allocation3], 0  ;;  %834 = vmatprep.subr.bf16.mxu0 %v1375_v32  ;;  %v1381_v37 = vld [vmem:[%s1928_s1 + $0x264] ss:$8 sps:$4 sm:$0xff]   ;;  %868 = vmatpush1.bf16.msra.mxu1 %v1406_v33  ;;  %v1412_v38 = vld [vmem:[%s1928_s1 + $0x320] ss:$8 sps:$4 sm:$0xff]   ;;  %v174_v50 = vrot.slane %v1683_v1, %v1591_v30 }
  0x55   :  { %869 = vmatprep.subr.bf16.mxu1 %v1414_v34  ;;  %v1420_v39 = vld [vmem:[%s1928_s1 + $0x334] ss:$8 sps:$4 sm:$0xff]   ;;  %v1379_v40 = vld [vmem:[%s1928_s1 + $0x260] ss:$8 sps:$4 sm:$0xff]   ;;  %v1418_v42 = vld [vmem:[%s1928_s1 + $0x330] ss:$8 sps:$4 sm:$0xff]  }
  0x56   :  { %v1387_v41 = vld [vmem:[%s1928_s1 + $0x274] ss:$8 sps:$4 sm:$0xff]   ;;  %v1426_v43 = vld [vmem:[%s1928_s1 + $0x344] ss:$8 sps:$4 sm:$0xff]   ;;  %v1385_v44 = vld [vmem:[%s1928_s1 + $0x270] ss:$8 sps:$4 sm:$0xff]   ;;  %v190_v54 = vcombine.high %v174_v50, %v174_v50 }
  0x57   :  { %835 = vmatpush1.bf16.msra.mxu0 %v1373_v36  ;;  %v1393_v45 = vld [vmem:[%s1928_s1 + $0x284] ss:$8 sps:$4 sm:$0xff]   ;;  %v1424_v46 = vld [vmem:[%s1928_s1 + $0x340] ss:$8 sps:$4 sm:$0xff]   ;;  %v1432_v47 = vld [vmem:[%s1928_s1 + $0x354] ss:$8 sps:$4 sm:$0xff]  }
  0x58   :  { %836 = vmatprep.subr.bf16.mxu0 %v1381_v37  ;;  %870 = vmatpush1.bf16.msra.mxu1 %v1412_v38  ;;  %v1391_v48 = vld [vmem:[%s1928_s1 + $0x280] ss:$8 sps:$4 sm:$0xff]   ;;  %v1399_v49 = vld [vmem:[%s1928_s1 + $0x294] ss:$8 sps:$4 sm:$0xff]   ;;  %v1430_v51 = vld [vmem:[%s1928_s1 + $0x350] ss:$8 sps:$4 sm:$0xff]  }
  0x59   :  { %871 = vmatprep.subr.bf16.mxu1 %v1420_v39  ;;  %v1397_v52 = vld [vmem:[%s1928_s1 + $0x290] ss:$8 sps:$4 sm:$0xff]   ;;  %v1405_v53 = vld [vmem:[%s1928_s1 + $0x2a4] ss:$8 sps:$4 sm:$0xff]   ;;  %vm738_vm0 = vcmask 785408   ;;  %v135_v26 = vsub.s32 0, %v1576_v24 }
  0x5a   :  { %v1403_v30 = vld [vmem:[%s1928_s1 + $0x2a0] ss:$8 sps:$4 sm:$0xff]   ;;  %v1411_v55 = vld [vmem:[%s1928_s1 + $0x2b4] ss:$8 sps:$4 sm:$0xff]   ;;  %v1409_v56 = vld [vmem:[%s1928_s1 + $0x2b0] ss:$8 sps:$4 sm:$0xff]  }
  0x5b   :  { %837 = vmatpush1.bf16.msra.mxu0 %v1379_v40  ;;  %v1417_v57 = vld [vmem:[%s1928_s1 + $0x2c4] ss:$8 sps:$4 sm:$0xff]   ;;  %v1415_v58 = vld [vmem:[%s1928_s1 + $0x2c0] ss:$8 sps:$4 sm:$0xff]   ;;  %v1423_v59 = vld [vmem:[%s1928_s1 + $0x2d4] ss:$8 sps:$4 sm:$0xff]  }
  0x5c   :  { %838 = vmatprep.subr.bf16.mxu0 %v1387_v41  ;;  %872 = vmatpush1.bf16.msra.mxu1 %v1418_v42  ;;  %v1421_v60 = vld [vmem:[%s1928_s1 + $0x2d0] ss:$8 sps:$4 sm:$0xff]   ;;  %v1429_v61 = vld [vmem:[%s1928_s1 + $0x2e4] ss:$8 sps:$4 sm:$0xff]   ;;  %v1427_v62 = vld [vmem:[%s1928_s1 + $0x2e0] ss:$8 sps:$4 sm:$0xff]  }
  0x5d   :  { %873 = vmatprep.subr.bf16.mxu1 %v1426_v43  ;;  %v1435_v63 = vld [vmem:[%s1928_s1 + $0x2f4] ss:$8 sps:$4 sm:$0xff]   ;;  %v1433_v0 = vld [vmem:[%s1928_s1 + $0x2f0] ss:$8 sps:$4 sm:$0xff]   ;;  %v1436_v1 = vld [vmem:[%s1930_s3 + $0x40] sm:$0xff]   ;;  %v139_v28 = vsub.s32 1, %v1576_v24 }
  0x5e   :  { %v1437_v2 = vld [vmem:[%s1930_s3] sm:$0xff]   ;;  %v1438_v3 = vld [vmem:[%s1930_s3 + $0x48] sm:$0xff]   ;;  %v1440_v5 = vld [vmem:[%s1930_s3 + $0x50] sm:$0xff]   ;;  %vm1085_vm1 = vcmask 9216   ;;  %s1482_s11 = smov [#allocation2]  }
  0x5f   :  { %839 = vmatpush1.bf16.msra.mxu0 %v1385_v44  ;;  %v1439_v4 = vld [vmem:[%s1930_s3 + $0x8] sm:$0xff]   ;;  %v1441_v6 = vld [vmem:[%s1930_s3 + $0x10] sm:$0xff]   ;;  %v1442_v7 = vld [vmem:[%s1930_s3 + $0x58] sm:$0xff]  }
  0x60   :  { %840 = vmatprep.subr.bf16.mxu0 %v1393_v45  ;;  %874 = vmatpush1.bf16.msra.mxu1 %v1424_v46  ;;  %v1443_v8 = vld [vmem:[%s1930_s3 + $0x18] sm:$0xff]   ;;  %v1444_v9 = vld [vmem:[%s1930_s3 + $0x60] sm:$0xff]   ;;  %v1446_v11 = vld [vmem:[%s1930_s3 + $0x68] sm:$0xff]  }
  0x61   :  { %875 = vmatprep.subr.bf16.mxu1 %v1432_v47  ;;  %v1445_v10 = vld [vmem:[%s1930_s3 + $0x20] sm:$0xff]   ;;  %v1447_v12 = vld [vmem:[%s1930_s3 + $0x28] sm:$0xff]   ;;  %v1448_v13 = vld [vmem:[%s1930_s3 + $0x70] sm:$0xff]  }
  0x62   :  { %v1449_v14 = vld [vmem:[%s1930_s3 + $0x30] sm:$0xff]   ;;  %v1450_v15 = vld [vmem:[%s1930_s3 + $0x78] sm:$0xff]   ;;  %v131_v27 = vld [vmem:[%s1929_s2] sm:$0x3] }
  0x63   :  { %841 = vmatpush1.bf16.msra.mxu0 %v1391_v48  ;;  %v1451_v16 = vld [vmem:[%s1930_s3 + $0x38] sm:$0xff]   ;;  %v136_v29 = vrot.slane %v131_v27, %v135_v26  ;;  %v140_v31 = vrot.slane %v131_v27, %v139_v28  ;;  %v1221_v47 = vld [vmem:[%s1931_s4] ss:$0 sm:$0xff]  ;;  %s1104_s4 = sshll.u32 %s1482_s11, 4  ;;  %s1105_s4 = int_to_ptr.vmem [resolvable:$true] %s1104_s4 }
  0x64   :  { %842 = vmatprep.subr.bf16.mxu0 %v1399_v49  ;;  %876 = vmatpush1.bf16.msra.mxu1 %v1430_v51  ;;  %s1456_s1 = scalar_lea.vmem %s1105_s4, 32  ;;  %p1461_p1 = scmp.lt.s32.totalorder %s1105_s4, %s1105_s4 }
  0x65   :  { %1238 = vmatprep.subr.bf16.mxu1 %v1436_v1  ;;  %p1457_p0 = scmp.ne.s32.totalorder %s1105_s4, %s1456_s1  ;;  %p1462_p2 = scmp.lt.s32.totalorder %s1456_s1, %s1456_s1 }
  0x67   :  { %843 = vmatpush1.bf16.msra.mxu0 %v1397_v52  ;;  %1220 = vmatmul.mubr.msk.bf16.vlgmr.msra.gmra.mrb[4].mxu1 %vm738_vm0, %v190_v54  ;;  %p1463_p3 = por %p1462_p2, %p1461_p1 }
  0x68   :  { %844 = vmatprep.subr.bf16.mxu0 %v1405_v53  ;;  %1239 = vmatpush3.bf16.msra.mxu1 %v1437_v2 }
  0x69   :  { %1240 = vmatprep.subr.bf16.mxu1 %v1438_v3  ;;  %p1464_p4 = pnand %p1463_p3, %p1457_p0 }
  0x6b   :  { %845 = vmatpush1.bf16.msra.mxu0 %v1403_v30 }
  0x6c   :  { %846 = vmatprep.subr.bf16.mxu0 %v1411_v55  ;;  %1241 = vmatpush3.bf16.msra.mxu1 %v1439_v4 }
  0x6d   :  { %1242 = vmatprep.subr.bf16.mxu1 %v1440_v5 }
  0x6f   :  { %847 = vmatpush1.bf16.msra.mxu0 %v1409_v56 }
  0x70   :  { %848 = vmatprep.subr.bf16.mxu0 %v1417_v57  ;;  %1243 = vmatpush3.bf16.msra.mxu1 %v1441_v6 }
  0x71   :  { %1244 = vmatprep.subr.bf16.mxu1 %v1442_v7 }
  0x73   :  { %849 = vmatpush1.bf16.msra.mxu0 %v1415_v58 }
  0x74   :  { %850 = vmatprep.subr.bf16.mxu0 %v1423_v59  ;;  %1245 = vmatpush3.bf16.msra.mxu1 %v1443_v8 }
  0x75   :  { %1246 = vmatprep.subr.bf16.mxu1 %v1444_v9 }
  0x77   :  { %851 = vmatpush1.bf16.msra.mxu0 %v1421_v60 }
  0x78   :  { %852 = vmatprep.subr.bf16.mxu0 %v1429_v61  ;;  %1247 = vmatpush3.bf16.msra.mxu1 %v1445_v10 }
  0x79   :  { %1248 = vmatprep.subr.bf16.mxu1 %v1446_v11 }
  0x7b   :  { %853 = vmatpush1.bf16.msra.mxu0 %v1427_v62 }
  0x7c   :  { %854 = vmatprep.subr.bf16.mxu0 %v1435_v63  ;;  %1249 = vmatpush3.bf16.msra.mxu1 %v1447_v12 }
  0x7d   :  { %1250 = vmatprep.subr.bf16.mxu1 %v1448_v13 }
  0x7f   :  { %855 = vmatpush1.bf16.msra.mxu0 %v1433_v0 }
  0x80   :  { %1251 = vmatpush3.bf16.msra.mxu1 %v1449_v14 }
  0x81   :  { %1252 = vmatprep.subr.bf16.mxu1 %v1450_v15 }
  0x82   :  { %857 = vmatmul.mubr.bf16.vlgmr.msra.gmra.mrb[0].mxu0 %v174_v50 }
  0x84   :  { %1253 = vmatpush3.bf16.msra.mxu1 %v1451_v16 }
 0x118   :  { %v776_v17 = vpop.f32.mrb[0].mxu1 }
 0x119   :  { %v778_v18 = vpop.f32.mrb[1].mxu1  ;;  %v777_v32 = vadd.f32 %v776_v17, %v136_v29 }
 0x11a   :  { %v780_v19 = vpop.f32.mrb[2].mxu1  ;;  %v779_v33 = vadd.f32 %v778_v18, %v140_v31 }
 0x11b   :  { %v781_v20 = vpop.f32.mrb[3].mxu1 }
 0x13a   :  { %v899_v21 = vpop.f32.mrb[4].mxu1 }
 0x13b   :  { %v901_v22 = vpop.f32.mrb[5].mxu1 }
 0x13c   :  { %v903_v23 = vpop.f32.mrb[6].mxu1 }
 0x13d   :  { %v904_v25 = vpop.f32.mrb[7].mxu1 }
 0x155   :  { %v858_v34 = vpop.f32.mrb[0].mxu0 }
 0x156   :  { %v1261_v35 = vadd.f32 %v858_v34, %v777_v32  ;;  %v860_v36 = vpop.f32.mrb[1].mxu0 }
 0x157   :  { %v1264_v37 = vadd.f32 %v860_v36, %v779_v33  ;;  %v862_v38 = vpop.f32.mrb[2].mxu0 }
 0x158   :  { %v1262_v39 = vadd.f32 %v1261_v35, %v899_v21  ;;  %v863_v40 = vpop.f32.mrb[3].mxu0 }
 0x159   :  { %v1265_v41 = vadd.f32 %v1264_v37, %v901_v22 }
 0x15a   :  { %v906_v42 = vmax.f32 %v1262_v39, 0.0 }
 0x15b   :  { %v907_v43 = vmax.f32 %v1265_v41, 0.0 }
 0x15c   :  { %v908_v45 = vpack.c.bf16 %v906_v42, %v906_v42 }
 0x15d   :  { %v909_v44 = vpack.c.bf16 %v907_v43, %v907_v43 }
 0x15f   :  { %1077 = vmatprep.mubr.bf16.mxu1 %v909_v44 }
 0x160   :  { %1078 = vmatmul.mubr.bf16.vlgmr.msra.gmra.mrb[8].mxu1 %v908_v45 }
 0x233   :  { %v1254_v46 = vpop.f32.mrb[8].mxu1 }
 0x234   :  { %v1255_v24 = vpop.f32.mrb[9].mxu1 }
 0x235   :  { %v1256_v48 = vadd.f32 %v1255_v24, %v1254_v46  ;;  %v1257_v49 = vpop.f32.mrb[10].mxu1 }
 0x236   :  { %v1258_v50 = vpop.f32.mrb[11].mxu1 }
 0x237   :  { %v1080_v51 = vadd.f32 %v1256_v48, %v1221_v47 }
 0x239   :  { %v1086_v52 = vsel %vm1085_vm1, %v1080_v51, -inf }
 0x23a   :  { %1087 = vmax.xlane.f32.xlu0 %v1086_v52 }
 0x2c7   :  { %v1088_v53 = vpop.xlane.xlu0 %1087 }
 0x2c8   :  { %v1089_v54 = vsub.f32 %v1080_v51, %v1088_v53 }
 0x2ca   :  { %v1090_v30 = vmul.f32 1.442695, %v1089_v54 }
 0x2cc   :  { %1452 = vpow2.f32 %v1090_v30 }
 0x2d6   :  { %v1453_v55 = vpop.eup %1452 }
 0x2d7   :  { %v1092_v56 = vsel %vm1085_vm1, %v1453_v55, 0.0 }
 0x2d8   :  { %1093 = vadd.xlane.f32.xlu0 %v1092_v56 }
 0x365   :  { %v1094_v57 = vpop.xlane.xlu0 %1093 }
 0x366   :  { %1454 = vrcp.f32 %v1094_v57 }
 0x370   :  { %v1455_v58 = vpop.eup %1454 }
 0x371   :  { %v1096_v59 = vmul.f32 %v1455_v58, %v1453_v55 }
 0x373   :  { %1097 = vst.msk [vmem:[#allocation2] sm:$0x3] %vm1085_vm1, %v1096_v59 }
 0x374   :  { %1467 = shalt.err (!%p1464_p4)
}
 0x375   :  { %s1468_s14 = scalar_lea.hbm %s1932_s5, 32 }
 0x376   :  { %p1469_p5 = scmp.ne.s32.totalorder %s1932_s5, %s1468_s14  ;;  %p1472_p6 = scmp.lt.u32.totalorder %s1468_s14, %s1932_s5 }
 0x378   :  { %p1474_p7 = pnand %p1472_p6, %p1469_p5 }
 0x37a   :  { %1477 = shalt.err (!%p1474_p7)
}
 0x37b   :  { %1107 = dma.vmem_to_hbm [thread:$0]  %s1105_s4, 32, %s1932_s5, [#allocation3]  }
 0x37c   :  { %1478 = dma.done.wait [#allocation3], 32  }
 0x37d   :  { %1479 = vsyncadd [#allocation3], 4294967264 }
 0x37e   :  { %1111 = vsyncpa [#allocation3], 1 }

// kernel: cnn_forward.8
= control target key start
LH: loop header
LB: loop body
LE: loop exit
PB: predicated region body
PF: predicated region fallthrough
CT: control target
= control target key end

     0   :  { %s5492_s19 = smov 64   ;;  %vm3984_vm0 = vcmask 261120   ;;  %vm4030_vm1 = vcmask 523264   ;;  %vm4066_vm2 = vcmask 781312   ;;  %vm4069_vm3 = vcmask 778240   ;;  %s7047_s1 = inlined_call_operand.vmem [shape: bf16[2304,384], index: 1, kind: input, shape index: {}]   ;;  %s7048_s0 = inlined_call_operand.vmem [shape: bf16[18,2304], index: 0, kind: input, shape index: {}]   ;;  %s7049_s2 = inlined_call_operand.vmem [shape: f32[1,96], index: 2, kind: input, shape index: {}]   ;;  %s7050_s3 = inlined_call_operand.vmem [shape: bf16[18,96], index: 3, kind: output, shape index: {}]  }
   0x1   :  { %v4866_v0 = vld [vmem:[%s7047_s1 + $0x4] ss:$12 sps:$4 sm:$0xff]   ;;  %v4870_v2 = vld [vmem:[%s7047_s1] ss:$12 sps:$4 sm:$0xff]   ;;  %v4872_v4 = vld [vmem:[%s7047_s1 + $0x1c] ss:$12 sps:$4 sm:$0xff]  }
   0x2   :  { %v4868_v1 = vld [vmem:[%s7047_s1 + $0x304] ss:$12 sps:$4 sm:$0xff]   ;;  %3075 = vmatprep.subr.bf16.mxu1 %v4866_v0  ;;  %v4871_v3 = vld [vmem:[%s7047_s1 + $0x300] ss:$12 sps:$4 sm:$0xff]   ;;  %v4874_v5 = vld [vmem:[%s7047_s1 + $0x31c] ss:$12 sps:$4 sm:$0xff]  }
   0x3   :  { %3177 = vmatprep.subr.bf16.mxu0 %v4868_v1  ;;  %3076 = vmatpush1.bf16.msra.mxu1 %v4870_v2  ;;  %v4876_v6 = vld [vmem:[%s7047_s1 + $0x18] ss:$12 sps:$4 sm:$0xff]   ;;  %v4878_v8 = vld [vmem:[%s7047_s1 + $0x34] ss:$12 sps:$4 sm:$0xff]   ;;  %v4882_v10 = vld [vmem:[%s7047_s1 + $0x30] ss:$12 sps:$4 sm:$0xff]  }
   0x4   :  { %3178 = vmatpush1.bf16.msra.mxu0 %v4871_v3  ;;  %3077 = vmatprep.subr.bf16.mxu1 %v4872_v4  ;;  %v4877_v7 = vld [vmem:[%s7047_s1 + $0x318] ss:$12 sps:$4 sm:$0xff]   ;;  %v4880_v9 = vld [vmem:[%s7047_s1 + $0x334] ss:$12 sps:$4 sm:$0xff]   ;;  %v4883_v11 = vld [vmem:[%s7047_s1 + $0x330] ss:$12 sps:$4 sm:$0xff]  }
   0x5   :  { %3179 = vmatprep.subr.bf16.mxu0 %v4874_v5  ;;  %v4884_v12 = vld [vmem:[%s7047_s1 + $0x4c] ss:$12 sps:$4 sm:$0xff]   ;;  %v4888_v14 = vld [vmem:[%s7047_s1 + $0x48] ss:$12 sps:$4 sm:$0xff]   ;;  %v4890_v16 = vld [vmem:[%s7047_s1 + $0x64] ss:$12 sps:$4 sm:$0xff]  }
   0x6   :  { %v4886_v13 = vld [vmem:[%s7047_s1 + $0x34c] ss:$12 sps:$4 sm:$0xff]   ;;  %v4889_v15 = vld [vmem:[%s7047_s1 + $0x348] ss:$12 sps:$4 sm:$0xff]   ;;  %v4892_v17 = vld [vmem:[%s7047_s1 + $0x364] ss:$12 sps:$4 sm:$0xff]  }
   0x7   :  { %3078 = vmatpush1.bf16.msra.mxu1 %v4876_v6  ;;  %v4894_v18 = vld [vmem:[%s7047_s1 + $0x60] ss:$12 sps:$4 sm:$0xff]   ;;  %v4896_v20 = vld [vmem:[%s7047_s1 + $0x7c] ss:$12 sps:$4 sm:$0xff]   ;;  %v4900_v22 = vld [vmem:[%s7047_s1 + $0x78] ss:$12 sps:$4 sm:$0xff]  }
   0x8   :  { %3180 = vmatpush1.bf16.msra.mxu0 %v4877_v7  ;;  %3079 = vmatprep.subr.bf16.mxu1 %v4878_v8  ;;  %v4895_v19 = vld [vmem:[%s7047_s1 + $0x360] ss:$12 sps:$4 sm:$0xff]   ;;  %v4898_v21 = vld [vmem:[%s7047_s1 + $0x37c] ss:$12 sps:$4 sm:$0xff]   ;;  %v4901_v23 = vld [vmem:[%s7047_s1 + $0x378] ss:$12 sps:$4 sm:$0xff]  }
   0x9   :  { %3181 = vmatprep.subr.bf16.mxu0 %v4880_v9  ;;  %v4902_v24 = vld [vmem:[%s7047_s1 + $0x94] ss:$12 sps:$4 sm:$0xff]   ;;  %v4906_v26 = vld [vmem:[%s7047_s1 + $0x90] ss:$12 sps:$4 sm:$0xff]   ;;  %v4908_v28 = vld [vmem:[%s7047_s1 + $0xac] ss:$12 sps:$4 sm:$0xff]  }
   0xa   :  { %v4904_v25 = vld [vmem:[%s7047_s1 + $0x394] ss:$12 sps:$4 sm:$0xff]   ;;  %v4907_v27 = vld [vmem:[%s7047_s1 + $0x390] ss:$12 sps:$4 sm:$0xff]   ;;  %v4910_v29 = vld [vmem:[%s7047_s1 + $0x3ac] ss:$12 sps:$4 sm:$0xff]  }
   0xb   :  { %3080 = vmatpush1.bf16.msra.mxu1 %v4882_v10  ;;  %v4912_v30 = vld [vmem:[%s7047_s1 + $0xa8] ss:$12 sps:$4 sm:$0xff]   ;;  %v4914_v32 = vld [vmem:[%s7047_s1 + $0xc4] ss:$12 sps:$4 sm:$0xff]   ;;  %v4918_v34 = vld [vmem:[%s7047_s1 + $0xc0] ss:$12 sps:$4 sm:$0xff]  }
   0xc   :  { %3182 = vmatpush1.bf16.msra.mxu0 %v4883_v11  ;;  %3081 = vmatprep.subr.bf16.mxu1 %v4884_v12  ;;  %v4913_v31 = vld [vmem:[%s7047_s1 + $0x3a8] ss:$12 sps:$4 sm:$0xff]   ;;  %v4916_v33 = vld [vmem:[%s7047_s1 + $0x3c4] ss:$12 sps:$4 sm:$0xff]   ;;  %v4919_v35 = vld [vmem:[%s7047_s1 + $0x3c0] ss:$12 sps:$4 sm:$0xff]  }
   0xd   :  { %3183 = vmatprep.subr.bf16.mxu0 %v4886_v13  ;;  %v4920_v36 = vld [vmem:[%s7047_s1 + $0xdc] ss:$12 sps:$4 sm:$0xff]   ;;  %v4924_v38 = vld [vmem:[%s7047_s1 + $0xd8] ss:$12 sps:$4 sm:$0xff]   ;;  %v4926_v40 = vld [vmem:[%s7047_s1 + $0xf4] ss:$12 sps:$4 sm:$0xff]  }
   0xe   :  { %v4922_v37 = vld [vmem:[%s7047_s1 + $0x3dc] ss:$12 sps:$4 sm:$0xff]   ;;  %v4925_v39 = vld [vmem:[%s7047_s1 + $0x3d8] ss:$12 sps:$4 sm:$0xff]   ;;  %v4928_v41 = vld [vmem:[%s7047_s1 + $0x3f4] ss:$12 sps:$4 sm:$0xff]  }
   0xf   :  { %3082 = vmatpush1.bf16.msra.mxu1 %v4888_v14  ;;  %v4930_v42 = vld [vmem:[%s7047_s1 + $0xf0] ss:$12 sps:$4 sm:$0xff]   ;;  %v4932_v44 = vld [vmem:[%s7047_s1 + $0x10c] ss:$12 sps:$4 sm:$0xff]   ;;  %v4936_v46 = vld [vmem:[%s7047_s1 + $0x108] ss:$12 sps:$4 sm:$0xff]  }
  0x10   :  { %3184 = vmatpush1.bf16.msra.mxu0 %v4889_v15  ;;  %3083 = vmatprep.subr.bf16.mxu1 %v4890_v16  ;;  %v4931_v43 = vld [vmem:[%s7047_s1 + $0x3f0] ss:$12 sps:$4 sm:$0xff]   ;;  %v4934_v45 = vld [vmem:[%s7047_s1 + $0x40c] ss:$12 sps:$4 sm:$0xff]   ;;  %v4937_v47 = vld [vmem:[%s7047_s1 + $0x408] ss:$12 sps:$4 sm:$0xff]  }
  0x11   :  { %3185 = vmatprep.subr.bf16.mxu0 %v4892_v17  ;;  %v5660_v48 = vld [vmem:[%s7048_s0 + $0x4] ss:$72 sps:$4 sm:$0xff]   ;;  %v4970_v51 = vld [vmem:[%s7048_s0 + $0x14] ss:$72 sps:$4 sm:$0xff]   ;;  %v5723_v4 = vld [vmem:[%s7048_s0] ss:$72 sps:$4 sm:$0xff]  }
  0x12   :  { %v4938_v49 = vld [vmem:[%s7047_s1 + $0x124] ss:$12 sps:$4 sm:$0xff]   ;;  %3107 = vmatprep.mubr.bf16.mxu1 %v5660_v48  ;;  %v4942_v52 = vld [vmem:[%s7047_s1 + $0x120] ss:$12 sps:$4 sm:$0xff]   ;;  %v4944_v54 = vld [vmem:[%s7047_s1 + $0x13c] ss:$12 sps:$4 sm:$0xff]   ;;  %3209 = vmatprep.mubr.bf16.mxu0 %v4970_v51 }
  0x13   :  { %3084 = vmatpush1.bf16.msra.mxu1 %v4894_v18  ;;  %v4940_v50 = vld [vmem:[%s7047_s1 + $0x424] ss:$12 sps:$4 sm:$0xff]   ;;  %v4943_v53 = vld [vmem:[%s7047_s1 + $0x420] ss:$12 sps:$4 sm:$0xff]   ;;  %v4946_v55 = vld [vmem:[%s7047_s1 + $0x43c] ss:$12 sps:$4 sm:$0xff]  }
  0x14   :  { %3186 = vmatpush1.bf16.msra.mxu0 %v4895_v19  ;;  %3085 = vmatprep.subr.bf16.mxu1 %v4896_v20  ;;  %v4948_v56 = vld [vmem:[%s7047_s1 + $0x138] ss:$12 sps:$4 sm:$0xff]   ;;  %v4950_v58 = vld [vmem:[%s7047_s1 + $0x154] ss:$12 sps:$4 sm:$0xff]   ;;  %v4954_v60 = vld [vmem:[%s7047_s1 + $0x150] ss:$12 sps:$4 sm:$0xff]  }
  0x15   :  { %3187 = vmatprep.subr.bf16.mxu0 %v4898_v21  ;;  %v4949_v57 = vld [vmem:[%s7047_s1 + $0x438] ss:$12 sps:$4 sm:$0xff]   ;;  %v4952_v59 = vld [vmem:[%s7047_s1 + $0x454] ss:$12 sps:$4 sm:$0xff]   ;;  %v4955_v61 = vld [vmem:[%s7047_s1 + $0x450] ss:$12 sps:$4 sm:$0xff]  }
  0x16   :  { %v4956_v62 = vld [vmem:[%s7047_s1 + $0x16c] ss:$12 sps:$4 sm:$0xff]   ;;  %v4960_v0 = vld [vmem:[%s7047_s1 + $0x168] ss:$12 sps:$4 sm:$0xff]   ;;  %v4967_v2 = vld [vmem:[%s7047_s1 + $0x184] ss:$12 sps:$4 sm:$0xff]  }
  0x17   :  { %3086 = vmatpush1.bf16.msra.mxu1 %v4900_v22  ;;  %v4958_v63 = vld [vmem:[%s7047_s1 + $0x46c] ss:$12 sps:$4 sm:$0xff]   ;;  %v4961_v1 = vld [vmem:[%s7047_s1 + $0x468] ss:$12 sps:$4 sm:$0xff]   ;;  %v4973_v3 = vld [vmem:[%s7047_s1 + $0x484] ss:$12 sps:$4 sm:$0xff]  }
  0x18   :  { %3188 = vmatpush1.bf16.msra.mxu0 %v4901_v23  ;;  %3087 = vmatprep.subr.bf16.mxu1 %v4902_v24  ;;  %v4965_v5 = vld [vmem:[%s7047_s1 + $0x180] ss:$12 sps:$4 sm:$0xff]   ;;  %v4968_v6 = vld [vmem:[%s7048_s0 + $0x10] ss:$72 sps:$4 sm:$0xff]   ;;  %v4976_v8 = vld [vmem:[%s7047_s1 + $0x19c] ss:$12 sps:$4 sm:$0xff]  }
  0x19   :  { %3189 = vmatprep.subr.bf16.mxu0 %v4904_v25  ;;  %v4971_v7 = vld [vmem:[%s7047_s1 + $0x480] ss:$12 sps:$4 sm:$0xff]   ;;  %v4979_v9 = vld [vmem:[%s7047_s1 + $0x49c] ss:$12 sps:$4 sm:$0xff]   ;;  %v4974_v10 = vld [vmem:[%s7047_s1 + $0x198] ss:$12 sps:$4 sm:$0xff]  }
  0x1a   :  { %v4977_v11 = vld [vmem:[%s7047_s1 + $0x498] ss:$12 sps:$4 sm:$0xff]   ;;  %v4982_v12 = vld [vmem:[%s7047_s1 + $0x1b4] ss:$12 sps:$4 sm:$0xff]   ;;  %v4980_v14 = vld [vmem:[%s7047_s1 + $0x1b0] ss:$12 sps:$4 sm:$0xff]  }
  0x1b   :  { %3088 = vmatpush1.bf16.msra.mxu1 %v4906_v26  ;;  %v4985_v13 = vld [vmem:[%s7047_s1 + $0x4b4] ss:$12 sps:$4 sm:$0xff]   ;;  %v4983_v15 = vld [vmem:[%s7047_s1 + $0x4b0] ss:$12 sps:$4 sm:$0xff]   ;;  %v4988_v16 = vld [vmem:[%s7047_s1 + $0x1cc] ss:$12 sps:$4 sm:$0xff]  }
  0x1c   :  { %3190 = vmatpush1.bf16.msra.mxu0 %v4907_v27  ;;  %3089 = vmatprep.subr.bf16.mxu1 %v4908_v28  ;;  %v4991_v17 = vld [vmem:[%s7047_s1 + $0x4cc] ss:$12 sps:$4 sm:$0xff]   ;;  %v4986_v18 = vld [vmem:[%s7047_s1 + $0x1c8] ss:$12 sps:$4 sm:$0xff]   ;;  %v4994_v20 = vld [vmem:[%s7047_s1 + $0x1e4] ss:$12 sps:$4 sm:$0xff]  }
  0x1d   :  { %3191 = vmatprep.subr.bf16.mxu0 %v4910_v29  ;;  %v4989_v19 = vld [vmem:[%s7047_s1 + $0x4c8] ss:$12 sps:$4 sm:$0xff]   ;;  %v4997_v21 = vld [vmem:[%s7047_s1 + $0x4e4] ss:$12 sps:$4 sm:$0xff]   ;;  %v4992_v22 = vld [vmem:[%s7047_s1 + $0x1e0] ss:$12 sps:$4 sm:$0xff]  }
  0x1e   :  { %v4995_v23 = vld [vmem:[%s7047_s1 + $0x4e0] ss:$12 sps:$4 sm:$0xff]   ;;  %v5000_v24 = vld [vmem:[%s7047_s1 + $0x1fc] ss:$12 sps:$4 sm:$0xff]   ;;  %v33_v26 = vld [vmem:[%s7048_s0 + $0x90] sm:$0x11] }
  0x1f   :  { %3090 = vmatpush1.bf16.msra.mxu1 %v4912_v30  ;;  %v5003_v25 = vld [vmem:[%s7047_s1 + $0x4fc] ss:$12 sps:$4 sm:$0xff]   ;;  %v4998_v27 = vld [vmem:[%s7047_s1 + $0x1f8] ss:$12 sps:$4 sm:$0xff]   ;;  %v5795_v28 = vcombine.high %v33_v26, %v33_v26  ;;  %v5797_v29 = vcombine.low %v33_v26, %v33_v26  ;;  %v5088_v26 = vld [vmem:[%s7047_s1 + $0x634] ss:$12 sps:$4 sm:$0xff]  }
  0x20   :  { %3192 = vmatpush1.bf16.msra.mxu0 %v4913_v31  ;;  %3091 = vmatprep.subr.bf16.mxu1 %v4914_v32  ;;  %v5001_v30 = vld [vmem:[%s7047_s1 + $0x4f8] ss:$12 sps:$4 sm:$0xff]   ;;  %v5006_v32 = vld [vmem:[%s7047_s1 + $0x214] ss:$12 sps:$4 sm:$0xff]  }
  0x21   :  { %3193 = vmatprep.subr.bf16.mxu0 %v4916_v33  ;;  %v35_v31 = vld [vmem:[%s7048_s0 + $0xa0] sm:$0x11] }
  0x22   :  { %v5009_v33 = vld [vmem:[%s7047_s1 + $0x514] ss:$12 sps:$4 sm:$0xff]   ;;  %v5022_v51 = vld [vmem:[%s7047_s1 + $0x258] ss:$12 sps:$4 sm:$0xff]  }
  0x23   :  { %3092 = vmatpush1.bf16.msra.mxu1 %v4918_v34  ;;  %v5811_v34 = vcombine.high %v35_v31, %v35_v31 }
  0x24   :  { %3194 = vmatpush1.bf16.msra.mxu0 %v4919_v35  ;;  %3093 = vmatprep.subr.bf16.mxu1 %v4920_v36  ;;  %v5814_v35 = vcombine.low %v35_v31, %v35_v31  ;;  %v5004_v36 = vld [vmem:[%s7047_s1 + $0x210] ss:$12 sps:$4 sm:$0xff]  }
  0x25   :  { %3195 = vmatprep.subr.bf16.mxu0 %v4922_v37  ;;  %v5007_v37 = vld [vmem:[%s7047_s1 + $0x510] ss:$12 sps:$4 sm:$0xff]  }
  0x27   :  { %3094 = vmatpush1.bf16.msra.mxu1 %v4924_v38  ;;  %v5012_v38 = vld [vmem:[%s7047_s1 + $0x22c] ss:$12 sps:$4 sm:$0xff]  }
  0x28   :  { %3196 = vmatpush1.bf16.msra.mxu0 %v4925_v39  ;;  %3095 = vmatprep.subr.bf16.mxu1 %v4926_v40  ;;  %v5015_v39 = vld [vmem:[%s7047_s1 + $0x52c] ss:$12 sps:$4 sm:$0xff]  }
  0x29   :  { %3197 = vmatprep.subr.bf16.mxu0 %v4928_v41  ;;  %v5833_v40 = vld [vmem:[%s7048_s0 + $0xc] ss:$72 sps:$4 sm:$0xff]  }
  0x2a   :  { %v5010_v41 = vld [vmem:[%s7047_s1 + $0x228] ss:$12 sps:$4 sm:$0xff]  }
  0x2b   :  { %3096 = vmatpush1.bf16.msra.mxu1 %v4930_v42  ;;  %v5073_v42 = vld [vmem:[%s7048_s0 + $0x1c] ss:$72 sps:$4 sm:$0xff]  }
  0x2c   :  { %3198 = vmatpush1.bf16.msra.mxu0 %v4931_v43  ;;  %3097 = vmatprep.subr.bf16.mxu1 %v4932_v44  ;;  %v5013_v43 = vld [vmem:[%s7047_s1 + $0x528] ss:$12 sps:$4 sm:$0xff]   ;;  %v5018_v44 = vld [vmem:[%s7047_s1 + $0x244] ss:$12 sps:$4 sm:$0xff]  }
  0x2d   :  { %3199 = vmatprep.subr.bf16.mxu0 %v4934_v45  ;;  %v5021_v45 = vld [vmem:[%s7047_s1 + $0x544] ss:$12 sps:$4 sm:$0xff]  }
  0x2f   :  { %3098 = vmatpush1.bf16.msra.mxu1 %v4936_v46  ;;  %v5016_v46 = vld [vmem:[%s7047_s1 + $0x240] ss:$12 sps:$4 sm:$0xff]  }
  0x30   :  { %3200 = vmatpush1.bf16.msra.mxu0 %v4937_v47  ;;  %3099 = vmatprep.subr.bf16.mxu1 %v4938_v49  ;;  %v5019_v47 = vld [vmem:[%s7047_s1 + $0x540] ss:$12 sps:$4 sm:$0xff]   ;;  %v5024_v49 = vld [vmem:[%s7047_s1 + $0x25c] ss:$12 sps:$4 sm:$0xff]  }
  0x31   :  { %3201 = vmatprep.subr.bf16.mxu0 %v4940_v50  ;;  %v5027_v50 = vld [vmem:[%s7047_s1 + $0x55c] ss:$12 sps:$4 sm:$0xff]  }
  0x33   :  { %3100 = vmatpush1.bf16.msra.mxu1 %v4942_v52  ;;  %v5025_v52 = vld [vmem:[%s7047_s1 + $0x558] ss:$12 sps:$4 sm:$0xff]  }
  0x34   :  { %3202 = vmatpush1.bf16.msra.mxu0 %v4943_v53  ;;  %3101 = vmatprep.subr.bf16.mxu1 %v4944_v54  ;;  %v5030_v53 = vld [vmem:[%s7047_s1 + $0x274] ss:$12 sps:$4 sm:$0xff]  }
  0x35   :  { %3203 = vmatprep.subr.bf16.mxu0 %v4946_v55  ;;  %v5033_v54 = vld [vmem:[%s7047_s1 + $0x574] ss:$12 sps:$4 sm:$0xff]   ;;  %v5028_v55 = vld [vmem:[%s7047_s1 + $0x270] ss:$12 sps:$4 sm:$0xff]  }
  0x37   :  { %3102 = vmatpush1.bf16.msra.mxu1 %v4948_v56  ;;  %v5031_v56 = vld [vmem:[%s7047_s1 + $0x570] ss:$12 sps:$4 sm:$0xff]  }
  0x38   :  { %3204 = vmatpush1.bf16.msra.mxu0 %v4949_v57  ;;  %3103 = vmatprep.subr.bf16.mxu1 %v4950_v58  ;;  %v5036_v57 = vld [vmem:[%s7047_s1 + $0x28c] ss:$12 sps:$4 sm:$0xff]  }
  0x39   :  { %3205 = vmatprep.subr.bf16.mxu0 %v4952_v59  ;;  %v5039_v58 = vld [vmem:[%s7047_s1 + $0x58c] ss:$12 sps:$4 sm:$0xff]   ;;  %v5034_v59 = vld [vmem:[%s7047_s1 + $0x288] ss:$12 sps:$4 sm:$0xff]  }
  0x3b   :  { %3104 = vmatpush1.bf16.msra.mxu1 %v4954_v60  ;;  %v5037_v60 = vld [vmem:[%s7047_s1 + $0x588] ss:$12 sps:$4 sm:$0xff]  }
  0x3c   :  { %3206 = vmatpush1.bf16.msra.mxu0 %v4955_v61  ;;  %3105 = vmatprep.subr.bf16.mxu1 %v4956_v62  ;;  %v5042_v61 = vld [vmem:[%s7047_s1 + $0x2a4] ss:$12 sps:$4 sm:$0xff]  }
  0x3d   :  { %3207 = vmatprep.subr.bf16.mxu0 %v4958_v63  ;;  %v5045_v62 = vld [vmem:[%s7047_s1 + $0x5a4] ss:$12 sps:$4 sm:$0xff]   ;;  %v5040_v63 = vld [vmem:[%s7047_s1 + $0x2a0] ss:$12 sps:$4 sm:$0xff]  }
  0x3f   :  { %3106 = vmatpush1.bf16.msra.mxu1 %v4960_v0  ;;  %v5043_v0 = vld [vmem:[%s7047_s1 + $0x5a0] ss:$12 sps:$4 sm:$0xff]  }
  0x40   :  { %3208 = vmatpush1.bf16.msra.mxu0 %v4961_v1  ;;  %3126 = vmatprep.subr.bf16.mxu1 %v4967_v2  ;;  %v5048_v1 = vld [vmem:[%s7047_s1 + $0x2bc] ss:$12 sps:$4 sm:$0xff]  }
  0x41   :  { %3228 = vmatprep.subr.bf16.mxu0 %v4973_v3  ;;  %v5051_v2 = vld [vmem:[%s7047_s1 + $0x5bc] ss:$12 sps:$4 sm:$0xff]   ;;  %v5046_v3 = vld [vmem:[%s7047_s1 + $0x2b8] ss:$12 sps:$4 sm:$0xff]  }
  0x42   :  { %3108 = vmatmul.mubr.bf16.vlgmr.msra.gmra.mrb[0].mxu1 %v5723_v4 }
  0x43   :  { %3210 = vmatmul.mubr.bf16.vlgmr.msra.gmra.mrb[0].mxu0 %v4968_v6  ;;  %3127 = vmatpush1.bf16.msra.mxu1 %v4965_v5  ;;  %v5049_v5 = vld [vmem:[%s7047_s1 + $0x5b8] ss:$12 sps:$4 sm:$0xff]   ;;  %v5056_v6 = vld [vmem:[%s7047_s1 + $0x2d4] ss:$12 sps:$4 sm:$0xff]  }
  0x44   :  { %3229 = vmatpush1.bf16.msra.mxu0 %v4971_v7  ;;  %3128 = vmatprep.subr.bf16.mxu1 %v4976_v8  ;;  %v5060_v7 = vld [vmem:[%s7047_s1 + $0x5d4] ss:$12 sps:$4 sm:$0xff]   ;;  %v5054_v8 = vld [vmem:[%s7047_s1 + $0x2d0] ss:$12 sps:$4 sm:$0xff]  }
  0x45   :  { %3230 = vmatprep.subr.bf16.mxu0 %v4979_v9  ;;  %3117 = vmatprep.mubr.bf16.mxu1 %v5795_v28  ;;  %v5058_v9 = vld [vmem:[%s7047_s1 + $0x5d0] ss:$12 sps:$4 sm:$0xff]  }
  0x46   :  { %3219 = vmatprep.mubr.bf16.mxu0 %v5811_v34 }
  0x47   :  { %3129 = vmatpush1.bf16.msra.mxu1 %v4974_v10  ;;  %v5064_v10 = vld [vmem:[%s7047_s1 + $0x2ec] ss:$12 sps:$4 sm:$0xff]  }
  0x48   :  { %3231 = vmatpush1.bf16.msra.mxu0 %v4977_v11  ;;  %3130 = vmatprep.subr.bf16.mxu1 %v4982_v12  ;;  %v5067_v11 = vld [vmem:[%s7047_s1 + $0x5ec] ss:$12 sps:$4 sm:$0xff]   ;;  %v5062_v12 = vld [vmem:[%s7047_s1 + $0x2e8] ss:$12 sps:$4 sm:$0xff]  }
  0x49   :  { %3232 = vmatprep.subr.bf16.mxu0 %v4985_v13  ;;  %v5065_v13 = vld [vmem:[%s7047_s1 + $0x5e8] ss:$12 sps:$4 sm:$0xff]  }
  0x4a   :  { %3118 = vmatmul.mubr.bf16.gmra.mrb[4].mxu1 %v5797_v29 }
  0x4b   :  { %3131 = vmatpush1.bf16.msra.mxu1 %v4980_v14  ;;  %3220 = vmatmul.mubr.bf16.gmra.mrb[4].mxu0 %v5814_v35  ;;  %v5076_v14 = vld [vmem:[%s7047_s1 + $0x604] ss:$12 sps:$4 sm:$0xff]  }
  0x4c   :  { %3233 = vmatpush1.bf16.msra.mxu0 %v4983_v15  ;;  %3132 = vmatprep.subr.bf16.mxu1 %v4988_v16  ;;  %v5948_v15 = vld [vmem:[%s7048_s0 + $0x8] ss:$72 sps:$4 sm:$0xff]   ;;  %v5071_v16 = vld [vmem:[%s7048_s0 + $0x18] ss:$72 sps:$4 sm:$0xff]  }
  0x4d   :  { %3234 = vmatprep.subr.bf16.mxu0 %v4991_v17  ;;  %3158 = vmatprep.mubr.bf16.mxu1 %v5833_v40  ;;  %v5077_v17 = vld [vmem:[%s7047_s1 + $0xc8] ss:$12 sps:$4 sm:$0xff]  }
  0x4e   :  { %3260 = vmatprep.mubr.bf16.mxu0 %v5073_v42 }
  0x4f   :  { %3133 = vmatpush1.bf16.msra.mxu1 %v4986_v18  ;;  %v5074_v18 = vld [vmem:[%s7047_s1 + $0x600] ss:$12 sps:$4 sm:$0xff]  }
  0x50   :  { %3235 = vmatpush1.bf16.msra.mxu0 %v4989_v19  ;;  %3134 = vmatprep.subr.bf16.mxu1 %v4994_v20  ;;  %v34_v19 = vld [vmem:[%s7048_s0 + $0x98] sm:$0x11]  ;;  %v5078_v20 = vld [vmem:[%s7047_s1 + $0x8] ss:$12 sps:$4 sm:$0xff]  }
  0x51   :  { %3236 = vmatprep.subr.bf16.mxu0 %v4997_v21  ;;  %v5081_v21 = vld [vmem:[%s7047_s1 + $0x61c] ss:$12 sps:$4 sm:$0xff]   ;;  %v5990_v31 = vcombine.low %v34_v19, %v34_v19 }
  0x53   :  { %3135 = vmatpush1.bf16.msra.mxu1 %v4992_v22  ;;  %v5082_v22 = vld [vmem:[%s7047_s1 + $0xe0] ss:$12 sps:$4 sm:$0xff]  }
  0x54   :  { %3237 = vmatpush1.bf16.msra.mxu0 %v4995_v23  ;;  %3136 = vmatprep.subr.bf16.mxu1 %v5000_v24  ;;  %v5971_v23 = vcombine.high %v34_v19, %v34_v19  ;;  %v5079_v24 = vld [vmem:[%s7047_s1 + $0x618] ss:$12 sps:$4 sm:$0xff]  }
  0x55   :  { %3238 = vmatprep.subr.bf16.mxu0 %v5003_v25  ;;  %v5083_v25 = vld [vmem:[%s7047_s1 + $0x20] ss:$12 sps:$4 sm:$0xff]   ;;  %v5150_v19 = vld [vmem:[%s7047_s1 + $0x2d8] ss:$12 sps:$4 sm:$0xff]  }
  0x57   :  { %3137 = vmatpush1.bf16.msra.mxu1 %v4998_v27  ;;  %v5089_v27 = vld [vmem:[%s7047_s1 + $0xf8] ss:$12 sps:$4 sm:$0xff]  }
  0x58   :  { %3239 = vmatpush1.bf16.msra.mxu0 %v5001_v30  ;;  %3138 = vmatprep.subr.bf16.mxu1 %v5006_v32  ;;  %v5086_v30 = vld [vmem:[%s7047_s1 + $0x630] ss:$12 sps:$4 sm:$0xff]   ;;  %v5090_v32 = vld [vmem:[%s7047_s1 + $0x38] ss:$12 sps:$4 sm:$0xff]  }
  0x59   :  { %3240 = vmatprep.subr.bf16.mxu0 %v5009_v33  ;;  %v5093_v33 = vld [vmem:[%s7047_s1 + $0x64c] ss:$12 sps:$4 sm:$0xff]  }
  0x5b   :  { %3139 = vmatpush1.bf16.msra.mxu1 %v5004_v36  ;;  %v5094_v36 = vld [vmem:[%s7047_s1 + $0x110] ss:$12 sps:$4 sm:$0xff]  }
  0x5c   :  { %3241 = vmatpush1.bf16.msra.mxu0 %v5007_v37  ;;  %3140 = vmatprep.subr.bf16.mxu1 %v5012_v38  ;;  %v36_v37 = vld [vmem:[%s7048_s0 + $0xa8] sm:$0x11] }
  0x5d   :  { %3242 = vmatprep.subr.bf16.mxu0 %v5015_v39  ;;  %v5091_v38 = vld [vmem:[%s7047_s1 + $0x648] ss:$12 sps:$4 sm:$0xff]   ;;  %v5095_v39 = vld [vmem:[%s7047_s1 + $0x50] ss:$12 sps:$4 sm:$0xff]   ;;  %v6013_v42 = vcombine.low %v36_v37, %v36_v37 }
  0x5f   :  { %3141 = vmatpush1.bf16.msra.mxu1 %v5010_v41  ;;  %v6011_v41 = vcombine.high %v36_v37, %v36_v37  ;;  %v5168_v37 = vld [vmem:[%s7047_s1 + $0x79c] ss:$12 sps:$4 sm:$0xff]  }
  0x60   :  { %3243 = vmatpush1.bf16.msra.mxu0 %v5013_v43  ;;  %3142 = vmatprep.subr.bf16.mxu1 %v5018_v44  ;;  %v5098_v43 = vld [vmem:[%s7047_s1 + $0x664] ss:$12 sps:$4 sm:$0xff]   ;;  %v5099_v44 = vld [vmem:[%s7047_s1 + $0x128] ss:$12 sps:$4 sm:$0xff]  }
  0x61   :  { %3244 = vmatprep.subr.bf16.mxu0 %v5021_v45  ;;  %v5096_v45 = vld [vmem:[%s7047_s1 + $0x660] ss:$12 sps:$4 sm:$0xff]  }
  0x63   :  { %3143 = vmatpush1.bf16.msra.mxu1 %v5016_v46  ;;  %v5100_v46 = vld [vmem:[%s7047_s1 + $0x68] ss:$12 sps:$4 sm:$0xff]  }
  0x64   :  { %3245 = vmatpush1.bf16.msra.mxu0 %v5019_v47  ;;  %3144 = vmatprep.subr.bf16.mxu1 %v5024_v49  ;;  %v5103_v47 = vld [vmem:[%s7047_s1 + $0x67c] ss:$12 sps:$4 sm:$0xff]   ;;  %v6039_v49 = vld [vmem:[%s7048_s0 + $0x24] ss:$72 sps:$4 sm:$0xff]  }
  0x65   :  { %3246 = vmatprep.subr.bf16.mxu0 %v5027_v50  ;;  %v5101_v50 = vld [vmem:[%s7047_s1 + $0x678] ss:$12 sps:$4 sm:$0xff]  }
  0x67   :  { %3145 = vmatpush1.bf16.msra.mxu1 %v5022_v51  ;;  %v5105_v51 = vld [vmem:[%s7047_s1 + $0x80] ss:$12 sps:$4 sm:$0xff]  }
  0x68   :  { %3247 = vmatpush1.bf16.msra.mxu0 %v5025_v52  ;;  %3146 = vmatprep.subr.bf16.mxu1 %v5030_v53  ;;  %v5108_v52 = vld [vmem:[%s7047_s1 + $0x694] ss:$12 sps:$4 sm:$0xff]   ;;  %v5109_v53 = vld [vmem:[%s7047_s1 + $0x158] ss:$12 sps:$4 sm:$0xff]  }
  0x69   :  { %3248 = vmatprep.subr.bf16.mxu0 %v5033_v54  ;;  %v5106_v54 = vld [vmem:[%s7047_s1 + $0x690] ss:$12 sps:$4 sm:$0xff]  }
  0x6b   :  { %3147 = vmatpush1.bf16.msra.mxu1 %v5028_v55  ;;  %v5110_v55 = vld [vmem:[%s7047_s1 + $0x98] ss:$12 sps:$4 sm:$0xff]  }
  0x6c   :  { %3249 = vmatpush1.bf16.msra.mxu0 %v5031_v56  ;;  %3148 = vmatprep.subr.bf16.mxu1 %v5036_v57  ;;  %v5113_v56 = vld [vmem:[%s7047_s1 + $0x6ac] ss:$12 sps:$4 sm:$0xff]   ;;  %v5114_v57 = vld [vmem:[%s7047_s1 + $0x170] ss:$12 sps:$4 sm:$0xff]  }
  0x6d   :  { %3250 = vmatprep.subr.bf16.mxu0 %v5039_v58  ;;  %v5111_v58 = vld [vmem:[%s7047_s1 + $0x6a8] ss:$12 sps:$4 sm:$0xff]  }
  0x6f   :  { %3149 = vmatpush1.bf16.msra.mxu1 %v5034_v59  ;;  %v5115_v59 = vld [vmem:[%s7047_s1 + $0xb0] ss:$12 sps:$4 sm:$0xff]  }
  0x70   :  { %3251 = vmatpush1.bf16.msra.mxu0 %v5037_v60  ;;  %3150 = vmatprep.subr.bf16.mxu1 %v5042_v61  ;;  %v5118_v60 = vld [vmem:[%s7047_s1 + $0x6c4] ss:$12 sps:$4 sm:$0xff]   ;;  %v5119_v61 = vld [vmem:[%s7047_s1 + $0x248] ss:$12 sps:$4 sm:$0xff]  }
  0x71   :  { %3252 = vmatprep.subr.bf16.mxu0 %v5045_v62  ;;  %v5116_v62 = vld [vmem:[%s7047_s1 + $0x6c0] ss:$12 sps:$4 sm:$0xff]  }
  0x73   :  { %3151 = vmatpush1.bf16.msra.mxu1 %v5040_v63  ;;  %v5120_v63 = vld [vmem:[%s7047_s1 + $0x188] ss:$12 sps:$4 sm:$0xff]  }
  0x74   :  { %3253 = vmatpush1.bf16.msra.mxu0 %v5043_v0  ;;  %3152 = vmatprep.subr.bf16.mxu1 %v5048_v1  ;;  %v5123_v0 = vld [vmem:[%s7047_s1 + $0x6dc] ss:$12 sps:$4 sm:$0xff]   ;;  %v5124_v1 = vld [vmem:[%s7047_s1 + $0x260] ss:$12 sps:$4 sm:$0xff]  }
  0x75   :  { %3254 = vmatprep.subr.bf16.mxu0 %v5051_v2  ;;  %v5121_v2 = vld [vmem:[%s7047_s1 + $0x6d8] ss:$12 sps:$4 sm:$0xff]  }
  0x77   :  { %3153 = vmatpush1.bf16.msra.mxu1 %v5046_v3  ;;  %v5125_v3 = vld [vmem:[%s7047_s1 + $0x1a0] ss:$12 sps:$4 sm:$0xff]  }
  0x78   :  { %3255 = vmatpush1.bf16.msra.mxu0 %v5049_v5  ;;  %3154 = vmatprep.subr.bf16.mxu1 %v5056_v6  ;;  %v5128_v5 = vld [vmem:[%s7047_s1 + $0x6f4] ss:$12 sps:$4 sm:$0xff]   ;;  %v5126_v6 = vld [vmem:[%s7047_s1 + $0x6f0] ss:$12 sps:$4 sm:$0xff]  }
  0x79   :  { %3256 = vmatprep.subr.bf16.mxu0 %v5060_v7  ;;  %v5130_v7 = vld [vmem:[%s7047_s1 + $0x1b8] ss:$12 sps:$4 sm:$0xff]  }
  0x7b   :  { %3155 = vmatpush1.bf16.msra.mxu1 %v5054_v8  ;;  %v5133_v8 = vld [vmem:[%s7047_s1 + $0x70c] ss:$12 sps:$4 sm:$0xff]  }
  0x7c   :  { %3257 = vmatpush1.bf16.msra.mxu0 %v5058_v9  ;;  %3156 = vmatprep.subr.bf16.mxu1 %v5064_v10  ;;  %v5131_v9 = vld [vmem:[%s7047_s1 + $0x708] ss:$12 sps:$4 sm:$0xff]   ;;  %v5135_v10 = vld [vmem:[%s7047_s1 + $0x1d0] ss:$12 sps:$4 sm:$0xff]  }
  0x7d   :  { %3258 = vmatprep.subr.bf16.mxu0 %v5067_v11  ;;  %v5138_v11 = vld [vmem:[%s7047_s1 + $0x724] ss:$12 sps:$4 sm:$0xff]  }
  0x7f   :  { %3157 = vmatpush1.bf16.msra.mxu1 %v5062_v12  ;;  %v5139_v12 = vld [vmem:[%s7047_s1 + $0x2a8] ss:$12 sps:$4 sm:$0xff]  }
  0x80   :  { %3259 = vmatpush1.bf16.msra.mxu0 %v5065_v13  ;;  %4550 = vmatprep.subr.bf16.mxu1 %v5077_v17  ;;  %v5136_v13 = vld [vmem:[%s7047_s1 + $0x720] ss:$12 sps:$4 sm:$0xff]  }
  0x81   :  { %3279 = vmatprep.subr.bf16.mxu0 %v5076_v14  ;;  %v5143_v14 = vld [vmem:[%s7047_s1 + $0x73c] ss:$12 sps:$4 sm:$0xff]   ;;  %v5145_v17 = vld [vmem:[%s7047_s1 + $0x200] ss:$12 sps:$4 sm:$0xff]  }
  0x82   :  { %3159 = vmatmul.mubr.bf16.vlgmr.msra.gmra.mrb[0].mxu1 %v5948_v15 }
  0x83   :  { %3261 = vmatmul.mubr.bf16.vlgmr.msra.gmra.mrb[0].mxu0 %v5071_v16  ;;  %4551 = vmatpush3.bf16.msra.mxu1 %v5078_v20  ;;  %v5141_v16 = vld [vmem:[%s7047_s1 + $0x738] ss:$12 sps:$4 sm:$0xff]   ;;  %v5147_v20 = vld [vmem:[%s7047_s1 + $0x750] ss:$12 sps:$4 sm:$0xff]  }
  0x84   :  { %3280 = vmatpush1.bf16.msra.mxu0 %v5074_v18  ;;  %4552 = vmatprep.subr.bf16.mxu1 %v5082_v22  ;;  %v5149_v18 = vld [vmem:[%s7047_s1 + $0x754] ss:$12 sps:$4 sm:$0xff]   ;;  %v5155_v22 = vld [vmem:[%s7047_s1 + $0x76c] ss:$12 sps:$4 sm:$0xff]  }
  0x85   :  { %3281 = vmatprep.subr.bf16.mxu0 %v5081_v21  ;;  %3168 = vmatprep.mubr.bf16.mxu1 %v5971_v23  ;;  %v5152_v21 = vld [vmem:[%s7047_s1 + $0x218] ss:$12 sps:$4 sm:$0xff]  }
  0x86   :  { %3270 = vmatprep.mubr.bf16.mxu0 %v6011_v41 }
  0x87   :  { %4553 = vmatpush3.bf16.msra.mxu1 %v5083_v25  ;;  %v5153_v25 = vld [vmem:[%s7047_s1 + $0x768] ss:$12 sps:$4 sm:$0xff]  }
  0x88   :  { %3282 = vmatpush1.bf16.msra.mxu0 %v5079_v24  ;;  %4554 = vmatprep.subr.bf16.mxu1 %v5089_v27  ;;  %v5156_v24 = vld [vmem:[%s7047_s1 + $0x2f0] ss:$12 sps:$4 sm:$0xff]  }
  0x89   :  { %3283 = vmatprep.subr.bf16.mxu0 %v5088_v26  ;;  %v5157_v26 = vld [vmem:[%s7047_s1 + $0x230] ss:$12 sps:$4 sm:$0xff]  }
  0x8a   :  { %3169 = vmatmul.mubr.bf16.gmra.mrb[4].mxu1 %v5990_v31  ;;  %v5163_v27 = vld [vmem:[%s7047_s1 + $0x784] ss:$12 sps:$4 sm:$0xff]  }
  0x8b   :  { %4555 = vmatpush3.bf16.msra.mxu1 %v5090_v32  ;;  %3566 = vmatprep.mubr.bf16.mxu1 %v5660_v48  ;;  %v5104_v48 = vld [vmem:[%s7047_s1 + $0x140] ss:$12 sps:$4 sm:$0xff]   ;;  %v5164_v32 = vld [vmem:[%s7047_s1 + $0x3c8] ss:$12 sps:$4 sm:$0xff]  }
  0x8c   :  { %3284 = vmatpush1.bf16.msra.mxu0 %v5086_v30  ;;  %4556 = vmatprep.subr.bf16.mxu1 %v5094_v36  ;;  %v6178_v30 = vld [vmem:[%s7048_s0 + $0x20] ss:$72 sps:$4 sm:$0xff]  }
  0x8d   :  { %3285 = vmatprep.subr.bf16.mxu0 %v5093_v33  ;;  %3271 = vmatmul.mubr.bf16.gmra.mrb[4].mxu0 %v6013_v42  ;;  %v5161_v33 = vld [vmem:[%s7047_s1 + $0x780] ss:$12 sps:$4 sm:$0xff]   ;;  %v5165_v36 = vld [vmem:[%s7047_s1 + $0x308] ss:$12 sps:$4 sm:$0xff]  }
  0x8e   :  { %3311 = vmatprep.mubr.bf16.mxu0 %v6039_v49 }
  0x8f   :  { %4557 = vmatpush3.bf16.msra.mxu1 %v5095_v39  ;;  %v37_v39 = vld [vmem:[%s7048_s0 + $0xb0] sm:$0x11] }
  0x90   :  { %3286 = vmatpush1.bf16.msra.mxu0 %v5091_v38  ;;  %4558 = vmatprep.subr.bf16.mxu1 %v5099_v44  ;;  %v5169_v38 = vld [vmem:[%s7047_s1 + $0x3e0] ss:$12 sps:$4 sm:$0xff]   ;;  %v6201_v44 = vcombine.high %v37_v39, %v37_v39 }
  0x91   :  { %3287 = vmatprep.subr.bf16.mxu0 %v5098_v43  ;;  %v5166_v43 = vld [vmem:[%s7047_s1 + $0x798] ss:$12 sps:$4 sm:$0xff]  }
  0x93   :  { %4559 = vmatpush3.bf16.msra.mxu1 %v5100_v46  ;;  %v5173_v46 = vld [vmem:[%s7047_s1 + $0x7b4] ss:$12 sps:$4 sm:$0xff]  }
  0x94   :  { %3288 = vmatpush1.bf16.msra.mxu0 %v5096_v45  ;;  %4560 = vmatprep.subr.bf16.mxu1 %v5104_v48  ;;  %v5170_v45 = vld [vmem:[%s7047_s1 + $0x320] ss:$12 sps:$4 sm:$0xff]   ;;  %v6219_v48 = vcombine.low %v37_v39, %v37_v39  ;;  %v5237_v39 = vld [vmem:[%s7047_s1 + $0x518] ss:$12 sps:$4 sm:$0xff]  }
  0x95   :  { %3289 = vmatprep.subr.bf16.mxu0 %v5103_v47  ;;  %v5174_v47 = vld [vmem:[%s7047_s1 + $0x3f8] ss:$12 sps:$4 sm:$0xff]  }
  0x97   :  { %4561 = vmatpush3.bf16.msra.mxu1 %v5105_v51  ;;  %v5179_v51 = vld [vmem:[%s7047_s1 + $0x410] ss:$12 sps:$4 sm:$0xff]  }
  0x98   :  { %3290 = vmatpush1.bf16.msra.mxu0 %v5101_v50  ;;  %4562 = vmatprep.subr.bf16.mxu1 %v5109_v53  ;;  %v5175_v50 = vld [vmem:[%s7047_s1 + $0x338] ss:$12 sps:$4 sm:$0xff]   ;;  %v6236_v53 = vld [vmem:[%s7048_s0 + $0x2c] ss:$72 sps:$4 sm:$0xff]  }
  0x99   :  { %3291 = vmatprep.subr.bf16.mxu0 %v5108_v52  ;;  %v5176_v52 = vld [vmem:[%s7047_s1 + $0x7c8] ss:$12 sps:$4 sm:$0xff]  }
  0x9b   :  { %4563 = vmatpush3.bf16.msra.mxu1 %v5110_v55  ;;  %v5183_v55 = vld [vmem:[%s7047_s1 + $0x7e4] ss:$12 sps:$4 sm:$0xff]  }
  0x9c   :  { %3292 = vmatpush1.bf16.msra.mxu0 %v5106_v54  ;;  %4564 = vmatprep.subr.bf16.mxu1 %v5114_v57  ;;  %v5180_v54 = vld [vmem:[%s7047_s1 + $0x350] ss:$12 sps:$4 sm:$0xff]   ;;  %v5181_v57 = vld [vmem:[%s7047_s1 + $0x7e0] ss:$12 sps:$4 sm:$0xff]  }
  0x9d   :  { %3293 = vmatprep.subr.bf16.mxu0 %v5113_v56  ;;  %v5184_v56 = vld [vmem:[%s7047_s1 + $0x428] ss:$12 sps:$4 sm:$0xff]  }
  0x9f   :  { %4565 = vmatpush3.bf16.msra.mxu1 %v5115_v59  ;;  %v5188_v59 = vld [vmem:[%s7047_s1 + $0x7fc] ss:$12 sps:$4 sm:$0xff]  }
  0xa0   :  { %3294 = vmatpush1.bf16.msra.mxu0 %v5111_v58  ;;  %4578 = vmatprep.subr.bf16.mxu1 %v5119_v61  ;;  %v5185_v58 = vld [vmem:[%s7047_s1 + $0x368] ss:$12 sps:$4 sm:$0xff]   ;;  %v5186_v61 = vld [vmem:[%s7047_s1 + $0x7f8] ss:$12 sps:$4 sm:$0xff]  }
  0xa1   :  { %3295 = vmatprep.subr.bf16.mxu0 %v5118_v60  ;;  %v5189_v60 = vld [vmem:[%s7047_s1 + $0x440] ss:$12 sps:$4 sm:$0xff]  }
  0xa2   :  { %3567 = vmatmul.mubr.bf16.vlgmr.msra.gmra.mrb[8].mxu1 %v5723_v4  ;;  %v5129_v4 = vld [vmem:[%s7047_s1 + $0x278] ss:$12 sps:$4 sm:$0xff]  }
  0xa3   :  { %4579 = vmatpush3.bf16.msra.mxu1 %v5120_v63  ;;  %3574 = vmatprep.mubr.bf16.mxu1 %v5795_v28  ;;  %v5134_v28 = vld [vmem:[%s7047_s1 + $0x290] ss:$12 sps:$4 sm:$0xff]   ;;  %v5193_v63 = vld [vmem:[%s7047_s1 + $0x814] ss:$12 sps:$4 sm:$0xff]  }
  0xa4   :  { %3296 = vmatpush1.bf16.msra.mxu0 %v5116_v62  ;;  %4580 = vmatprep.subr.bf16.mxu1 %v5124_v1  ;;  %v5190_v62 = vld [vmem:[%s7047_s1 + $0x380] ss:$12 sps:$4 sm:$0xff]   ;;  %v5191_v1 = vld [vmem:[%s7047_s1 + $0x810] ss:$12 sps:$4 sm:$0xff]  }
  0xa5   :  { %3297 = vmatprep.subr.bf16.mxu0 %v5123_v0  ;;  %v5194_v0 = vld [vmem:[%s7047_s1 + $0x458] ss:$12 sps:$4 sm:$0xff]  }
  0xa7   :  { %4581 = vmatpush3.bf16.msra.mxu1 %v5125_v3  ;;  %v5198_v3 = vld [vmem:[%s7047_s1 + $0x82c] ss:$12 sps:$4 sm:$0xff]  }
  0xa8   :  { %3298 = vmatpush1.bf16.msra.mxu0 %v5121_v2  ;;  %4582 = vmatprep.subr.bf16.mxu1 %v5129_v4  ;;  %v5195_v2 = vld [vmem:[%s7047_s1 + $0x398] ss:$12 sps:$4 sm:$0xff]   ;;  %v5196_v4 = vld [vmem:[%s7047_s1 + $0x828] ss:$12 sps:$4 sm:$0xff]  }
  0xa9   :  { %3299 = vmatprep.subr.bf16.mxu0 %v5128_v5  ;;  %v5199_v5 = vld [vmem:[%s7047_s1 + $0x470] ss:$12 sps:$4 sm:$0xff]  }
  0xaa   :  { %3575 = vmatmul.mubr.bf16.gmra.mrb[12].mxu1 %v5797_v29  ;;  %v5140_v29 = vld [vmem:[%s7047_s1 + $0x1e8] ss:$12 sps:$4 sm:$0xff]  }
  0xab   :  { %4583 = vmatpush3.bf16.msra.mxu1 %v5130_v7  ;;  %3614 = vmatprep.mubr.bf16.mxu1 %v5833_v40  ;;  %v5144_v40 = vld [vmem:[%s7047_s1 + $0x2c0] ss:$12 sps:$4 sm:$0xff]   ;;  %v5203_v7 = vld [vmem:[%s7047_s1 + $0x844] ss:$12 sps:$4 sm:$0xff]  }
  0xac   :  { %3300 = vmatpush1.bf16.msra.mxu0 %v5126_v6  ;;  %4584 = vmatprep.subr.bf16.mxu1 %v5134_v28  ;;  %v5200_v6 = vld [vmem:[%s7047_s1 + $0x3b0] ss:$12 sps:$4 sm:$0xff]   ;;  %v5201_v28 = vld [vmem:[%s7047_s1 + $0x840] ss:$12 sps:$4 sm:$0xff]  }
  0xad   :  { %3301 = vmatprep.subr.bf16.mxu0 %v5133_v8  ;;  %v5204_v8 = vld [vmem:[%s7047_s1 + $0x548] ss:$12 sps:$4 sm:$0xff]  }
  0xaf   :  { %4585 = vmatpush3.bf16.msra.mxu1 %v5135_v10  ;;  %v5208_v10 = vld [vmem:[%s7047_s1 + $0x85c] ss:$12 sps:$4 sm:$0xff]  }
  0xb0   :  { %3302 = vmatpush1.bf16.msra.mxu0 %v5131_v9  ;;  %4586 = vmatprep.subr.bf16.mxu1 %v5139_v12  ;;  %v5205_v9 = vld [vmem:[%s7047_s1 + $0x488] ss:$12 sps:$4 sm:$0xff]   ;;  %v5488_v12 = vld [vmem:[%s7048_s0 + $0x10] ss:$72 sps:$4 sm:$0xff]  }
  0xb1   :  { %3303 = vmatprep.subr.bf16.mxu0 %v5138_v11  ;;  %v5209_v11 = vld [vmem:[%s7047_s1 + $0x560] ss:$12 sps:$4 sm:$0xff]  }
  0xb3   :  { %4587 = vmatpush3.bf16.msra.mxu1 %v5140_v29  ;;  %v5210_v29 = vld [vmem:[%s7047_s1 + $0x4a0] ss:$12 sps:$4 sm:$0xff]  }
  0xb4   :  { %3304 = vmatpush1.bf16.msra.mxu0 %v5136_v13  ;;  %4588 = vmatprep.subr.bf16.mxu1 %v5144_v40  ;;  %v5206_v13 = vld [vmem:[%s7047_s1 + $0x858] ss:$12 sps:$4 sm:$0xff]  }
  0xb5   :  { %3305 = vmatprep.subr.bf16.mxu0 %v5143_v14  ;;  %v5213_v14 = vld [vmem:[%s7047_s1 + $0x874] ss:$12 sps:$4 sm:$0xff]   ;;  %v5214_v40 = vld [vmem:[%s7047_s1 + $0x578] ss:$12 sps:$4 sm:$0xff]  }
  0xb7   :  { %4589 = vmatpush3.bf16.msra.mxu1 %v5145_v17  ;;  %v5215_v17 = vld [vmem:[%s7047_s1 + $0x4b8] ss:$12 sps:$4 sm:$0xff]  }
  0xb8   :  { %3306 = vmatpush1.bf16.msra.mxu0 %v5141_v16  ;;  %4590 = vmatprep.subr.bf16.mxu1 %v5150_v19  ;;  %v5211_v16 = vld [vmem:[%s7047_s1 + $0x870] ss:$12 sps:$4 sm:$0xff]   ;;  %v5216_v19 = vld [vmem:[%s7047_s1 + $0x888] ss:$12 sps:$4 sm:$0xff]  }
  0xb9   :  { %3307 = vmatprep.subr.bf16.mxu0 %v5149_v18  ;;  %v5218_v18 = vld [vmem:[%s7047_s1 + $0x88c] ss:$12 sps:$4 sm:$0xff]  }
  0xbb   :  { %4591 = vmatpush3.bf16.msra.mxu1 %v5152_v21  ;;  %v5223_v21 = vld [vmem:[%s7047_s1 + $0x8a4] ss:$12 sps:$4 sm:$0xff]  }
  0xbc   :  { %3308 = vmatpush1.bf16.msra.mxu0 %v5147_v20  ;;  %4592 = vmatprep.subr.bf16.mxu1 %v5156_v24  ;;  %v5220_v20 = vld [vmem:[%s7047_s1 + $0x4d0] ss:$12 sps:$4 sm:$0xff]   ;;  %v5221_v24 = vld [vmem:[%s7047_s1 + $0x8a0] ss:$12 sps:$4 sm:$0xff]  }
  0xbd   :  { %3309 = vmatprep.subr.bf16.mxu0 %v5155_v22  ;;  %v5224_v22 = vld [vmem:[%s7047_s1 + $0x5a8] ss:$12 sps:$4 sm:$0xff]  }
  0xbf   :  { %4593 = vmatpush3.bf16.msra.mxu1 %v5157_v26  ;;  %v5228_v26 = vld [vmem:[%s7047_s1 + $0x8bc] ss:$12 sps:$4 sm:$0xff]  }
  0xc0   :  { %3310 = vmatpush1.bf16.msra.mxu0 %v5153_v25  ;;  %4606 = vmatprep.subr.bf16.mxu1 %v5164_v32  ;;  %v5225_v25 = vld [vmem:[%s7047_s1 + $0x4e8] ss:$12 sps:$4 sm:$0xff]   ;;  %v5226_v32 = vld [vmem:[%s7047_s1 + $0x8b8] ss:$12 sps:$4 sm:$0xff]  }
  0xc1   :  { %3330 = vmatprep.subr.bf16.mxu0 %v5163_v27  ;;  %v5229_v27 = vld [vmem:[%s7047_s1 + $0x5c0] ss:$12 sps:$4 sm:$0xff]  }
  0xc2   :  { %3615 = vmatmul.mubr.bf16.vlgmr.msra.gmra.mrb[16].mxu1 %v5948_v15  ;;  %v5171_v15 = vld [vmem:[%s7047_s1 + $0x7b0] ss:$12 sps:$4 sm:$0xff]  }
  0xc3   :  { %3312 = vmatmul.mubr.bf16.vlgmr.msra.gmra.mrb[0].mxu0 %v6178_v30  ;;  %4607 = vmatpush3.bf16.msra.mxu1 %v5165_v36  ;;  %v5234_v36 = vld [vmem:[%s7047_s1 + $0x8d4] ss:$12 sps:$4 sm:$0xff]  }
  0xc4   :  { %3331 = vmatpush1.bf16.msra.mxu0 %v5161_v33  ;;  %4608 = vmatprep.subr.bf16.mxu1 %v5169_v38  ;;  %v5230_v33 = vld [vmem:[%s7047_s1 + $0x500] ss:$12 sps:$4 sm:$0xff]   ;;  %v5232_v38 = vld [vmem:[%s7047_s1 + $0x8d0] ss:$12 sps:$4 sm:$0xff]  }
  0xc5   :  { %3332 = vmatprep.subr.bf16.mxu0 %v5168_v37  ;;  %3622 = vmatprep.mubr.bf16.mxu1 %v5971_v23  ;;  %v5178_v23 = vld [vmem:[%s7047_s1 + $0x7cc] ss:$12 sps:$4 sm:$0xff]  }
  0xc6   :  { %3321 = vmatprep.mubr.bf16.mxu0 %v6201_v44  ;;  %v5235_v37 = vld [vmem:[%s7047_s1 + $0x5d8] ss:$12 sps:$4 sm:$0xff]  }
  0xc7   :  { %4609 = vmatpush3.bf16.msra.mxu1 %v5170_v45  ;;  %v5241_v45 = vld [vmem:[%s7047_s1 + $0x5f0] ss:$12 sps:$4 sm:$0xff]  }
  0xc8   :  { %3333 = vmatpush1.bf16.msra.mxu0 %v5166_v43  ;;  %4610 = vmatprep.subr.bf16.mxu1 %v5174_v47  ;;  %v5240_v43 = vld [vmem:[%s7047_s1 + $0x8ec] ss:$12 sps:$4 sm:$0xff]   ;;  %v5242_v47 = vld [vmem:[%s7047_s1 + $0x530] ss:$12 sps:$4 sm:$0xff]  }
  0xc9   :  { %3334 = vmatprep.subr.bf16.mxu0 %v5173_v46  ;;  %v5238_v46 = vld [vmem:[%s7047_s1 + $0x8e8] ss:$12 sps:$4 sm:$0xff]  }
  0xca   :  { %3623 = vmatmul.mubr.bf16.gmra.mrb[20].mxu1 %v5990_v31  ;;  %v5487_v31 = vld [vmem:[%s7048_s0 + $0x14] ss:$72 sps:$4 sm:$0xff]  }
  0xcb   :  { %3322 = vmatmul.mubr.bf16.gmra.mrb[4].mxu0 %v6219_v48  ;;  %4611 = vmatpush3.bf16.msra.mxu1 %v5175_v50  ;;  %v5249_v50 = vld [vmem:[%s7047_s1 + $0x6c8] ss:$12 sps:$4 sm:$0xff]  }
  0xcc   :  { %3335 = vmatpush1.bf16.msra.mxu0 %v5171_v15  ;;  %4612 = vmatprep.subr.bf16.mxu1 %v5179_v51  ;;  %v5248_v15 = vld [vmem:[%s7047_s1 + $0x904] ss:$12 sps:$4 sm:$0xff]   ;;  %v38_v51 = vld [vmem:[%s7048_s0 + $0xb8] sm:$0x11] }
  0xcd   :  { %3336 = vmatprep.subr.bf16.mxu0 %v5178_v23  ;;  %3662 = vmatprep.mubr.bf16.mxu1 %v5487_v31  ;;  %v6408_v23 = vld [vmem:[%s7048_s0 + $0x28] ss:$72 sps:$4 sm:$0xff]   ;;  %v5251_v31 = vld [vmem:[%s7047_s1 + $0x918] ss:$12 sps:$4 sm:$0xff]  }
  0xce   :  { %3362 = vmatprep.mubr.bf16.mxu0 %v6236_v53 }
  0xcf   :  { %4613 = vmatpush3.bf16.msra.mxu1 %v5180_v54  ;;  %v5250_v54 = vld [vmem:[%s7047_s1 + $0x608] ss:$12 sps:$4 sm:$0xff]  }
  0xd0   :  { %3337 = vmatpush1.bf16.msra.mxu0 %v5176_v52  ;;  %4614 = vmatprep.subr.bf16.mxu1 %v5184_v56  ;;  %v5246_v52 = vld [vmem:[%s7047_s1 + $0x900] ss:$12 sps:$4 sm:$0xff]  }
  0xd1   :  { %3338 = vmatprep.subr.bf16.mxu0 %v5183_v55  ;;  %v5253_v55 = vld [vmem:[%s7047_s1 + $0x91c] ss:$12 sps:$4 sm:$0xff]   ;;  %v5254_v56 = vld [vmem:[%s7047_s1 + $0x6e0] ss:$12 sps:$4 sm:$0xff]  }
  0xd3   :  { %4615 = vmatpush3.bf16.msra.mxu1 %v5185_v58  ;;  %v5490_v58 = vld [vmem:[%s7048_s0 + $0x18] ss:$72 sps:$4 sm:$0xff]  }
  0xd4   :  { %3339 = vmatpush1.bf16.msra.mxu0 %v5181_v57  ;;  %4616 = vmatprep.subr.bf16.mxu1 %v5189_v60  ;;  %v6428_v57 = vcombine.high %v38_v51, %v38_v51  ;;  %v5258_v60 = vld [vmem:[%s7047_s1 + $0x934] ss:$12 sps:$4 sm:$0xff]  }
  0xd5   :  { %3340 = vmatprep.subr.bf16.mxu0 %v5188_v59  ;;  %v5255_v59 = vld [vmem:[%s7047_s1 + $0x620] ss:$12 sps:$4 sm:$0xff]  }
  0xd7   :  { %4617 = vmatpush3.bf16.msra.mxu1 %v5190_v62  ;;  %v5256_v62 = vld [vmem:[%s7047_s1 + $0x930] ss:$12 sps:$4 sm:$0xff]  }
  0xd8   :  { %3341 = vmatpush1.bf16.msra.mxu0 %v5186_v61  ;;  %4618 = vmatprep.subr.bf16.mxu1 %v5194_v0  ;;  %v5259_v61 = vld [vmem:[%s7047_s1 + $0x6f8] ss:$12 sps:$4 sm:$0xff]  }
  0xd9   :  { %3342 = vmatprep.subr.bf16.mxu0 %v5193_v63  ;;  %v6448_v63 = vcombine.low %v38_v51, %v38_v51  ;;  %v5260_v0 = vld [vmem:[%s7047_s1 + $0x638] ss:$12 sps:$4 sm:$0xff]  }
  0xda   :  { %v5325_v51 = vld [vmem:[%s7047_s1 + $0xa6c] ss:$12 sps:$4 sm:$0xff]  }
  0xdb   :  { %4619 = vmatpush3.bf16.msra.mxu1 %v5195_v2  ;;  %v6462_v2 = vld [vmem:[%s7048_s0 + $0x34] ss:$72 sps:$4 sm:$0xff]  }
  0xdc   :  { %3343 = vmatpush1.bf16.msra.mxu0 %v5191_v1  ;;  %4620 = vmatprep.subr.bf16.mxu1 %v5199_v5  ;;  %v5263_v1 = vld [vmem:[%s7047_s1 + $0x94c] ss:$12 sps:$4 sm:$0xff]   ;;  %v5265_v5 = vld [vmem:[%s7047_s1 + $0x650] ss:$12 sps:$4 sm:$0xff]  }
  0xdd   :  { %3344 = vmatprep.subr.bf16.mxu0 %v5198_v3  ;;  %v5261_v3 = vld [vmem:[%s7047_s1 + $0x948] ss:$12 sps:$4 sm:$0xff]  }
  0xdf   :  { %4621 = vmatpush3.bf16.msra.mxu1 %v5200_v6  ;;  %v5266_v6 = vld [vmem:[%s7047_s1 + $0x960] ss:$12 sps:$4 sm:$0xff]  }
  0xe0   :  { %3345 = vmatpush1.bf16.msra.mxu0 %v5196_v4  ;;  %4634 = vmatprep.subr.bf16.mxu1 %v5204_v8  ;;  %v5268_v4 = vld [vmem:[%s7047_s1 + $0x964] ss:$12 sps:$4 sm:$0xff]   ;;  %v5273_v8 = vld [vmem:[%s7047_s1 + $0x97c] ss:$12 sps:$4 sm:$0xff]  }
  0xe1   :  { %3346 = vmatprep.subr.bf16.mxu0 %v5203_v7  ;;  %v5270_v7 = vld [vmem:[%s7047_s1 + $0x668] ss:$12 sps:$4 sm:$0xff]  }
  0xe2   :  { %3663 = vmatmul.mubr.bf16.vlgmr.msra.gmra.mrb[24].mxu1 %v5488_v12  ;;  %v5276_v12 = vld [vmem:[%s7047_s1 + $0x990] ss:$12 sps:$4 sm:$0xff]  }
  0xe3   :  { %4635 = vmatpush3.bf16.msra.mxu1 %v5205_v9  ;;  %3670 = vmatprep.mubr.bf16.mxu1 %v5811_v34  ;;  %v5219_v34 = vld [vmem:[%s7047_s1 + $0x590] ss:$12 sps:$4 sm:$0xff]   ;;  %v5275_v9 = vld [vmem:[%s7047_s1 + $0x680] ss:$12 sps:$4 sm:$0xff]  }
  0xe4   :  { %3347 = vmatpush1.bf16.msra.mxu0 %v5201_v28  ;;  %4636 = vmatprep.subr.bf16.mxu1 %v5209_v11  ;;  %v5274_v28 = vld [vmem:[%s7047_s1 + $0x740] ss:$12 sps:$4 sm:$0xff]   ;;  %v5279_v11 = vld [vmem:[%s7047_s1 + $0x758] ss:$12 sps:$4 sm:$0xff]  }
  0xe5   :  { %3348 = vmatprep.subr.bf16.mxu0 %v5208_v10  ;;  %v5278_v10 = vld [vmem:[%s7047_s1 + $0x994] ss:$12 sps:$4 sm:$0xff]  }
  0xe7   :  { %4637 = vmatpush3.bf16.msra.mxu1 %v5210_v29  ;;  %v5283_v29 = vld [vmem:[%s7047_s1 + $0x9ac] ss:$12 sps:$4 sm:$0xff]  }
  0xe8   :  { %3349 = vmatpush1.bf16.msra.mxu0 %v5206_v13  ;;  %4638 = vmatprep.subr.bf16.mxu1 %v5214_v40  ;;  %v5280_v13 = vld [vmem:[%s7047_s1 + $0x698] ss:$12 sps:$4 sm:$0xff]   ;;  %v5281_v40 = vld [vmem:[%s7047_s1 + $0x9a8] ss:$12 sps:$4 sm:$0xff]  }
  0xe9   :  { %3350 = vmatprep.subr.bf16.mxu0 %v5213_v14  ;;  %v5284_v14 = vld [vmem:[%s7047_s1 + $0x770] ss:$12 sps:$4 sm:$0xff]  }
  0xea   :  { %3671 = vmatmul.mubr.bf16.gmra.mrb[28].mxu1 %v5814_v35  ;;  %v5489_v35 = vld [vmem:[%s7048_s0 + $0x1c] ss:$72 sps:$4 sm:$0xff]  }
  0xeb   :  { %4639 = vmatpush3.bf16.msra.mxu1 %v5215_v17  ;;  %3710 = vmatprep.mubr.bf16.mxu1 %v5489_v35  ;;  %v5288_v17 = vld [vmem:[%s7047_s1 + $0x9c4] ss:$12 sps:$4 sm:$0xff]   ;;  %v5295_v35 = vld [vmem:[%s7047_s1 + $0x7a0] ss:$12 sps:$4 sm:$0xff]  }
  0xec   :  { %3351 = vmatpush1.bf16.msra.mxu0 %v5211_v16  ;;  %4640 = vmatprep.subr.bf16.mxu1 %v5219_v34  ;;  %v5285_v16 = vld [vmem:[%s7047_s1 + $0x6b0] ss:$12 sps:$4 sm:$0xff]   ;;  %v5286_v34 = vld [vmem:[%s7047_s1 + $0x9c0] ss:$12 sps:$4 sm:$0xff]  }
  0xed   :  { %3352 = vmatprep.subr.bf16.mxu0 %v5218_v18  ;;  %v5289_v18 = vld [vmem:[%s7047_s1 + $0x848] ss:$12 sps:$4 sm:$0xff]  }
  0xef   :  { %4641 = vmatpush3.bf16.msra.mxu1 %v5220_v20  ;;  %v5293_v20 = vld [vmem:[%s7047_s1 + $0x9dc] ss:$12 sps:$4 sm:$0xff]  }
  0xf0   :  { %3353 = vmatpush1.bf16.msra.mxu0 %v5216_v19  ;;  %4642 = vmatprep.subr.bf16.mxu1 %v5224_v22  ;;  %v5290_v19 = vld [vmem:[%s7047_s1 + $0x788] ss:$12 sps:$4 sm:$0xff]   ;;  %v5291_v22 = vld [vmem:[%s7047_s1 + $0x9d8] ss:$12 sps:$4 sm:$0xff]  }
  0xf1   :  { %3354 = vmatprep.subr.bf16.mxu0 %v5223_v21  ;;  %v5294_v21 = vld [vmem:[%s7047_s1 + $0x860] ss:$12 sps:$4 sm:$0xff]  }
  0xf3   :  { %4643 = vmatpush3.bf16.msra.mxu1 %v5225_v25  ;;  %v5296_v25 = vld [vmem:[%s7047_s1 + $0x9f0] ss:$12 sps:$4 sm:$0xff]  }
  0xf4   :  { %3355 = vmatpush1.bf16.msra.mxu0 %v5221_v24  ;;  %4644 = vmatprep.subr.bf16.mxu1 %v5229_v27  ;;  %v5298_v24 = vld [vmem:[%s7047_s1 + $0x9f4] ss:$12 sps:$4 sm:$0xff]   ;;  %v5303_v27 = vld [vmem:[%s7047_s1 + $0xa0c] ss:$12 sps:$4 sm:$0xff]  }
  0xf5   :  { %3356 = vmatprep.subr.bf16.mxu0 %v5228_v26  ;;  %v5300_v26 = vld [vmem:[%s7047_s1 + $0x7b8] ss:$12 sps:$4 sm:$0xff]  }
  0xf7   :  { %4645 = vmatpush3.bf16.msra.mxu1 %v5230_v33  ;;  %v5305_v33 = vld [vmem:[%s7047_s1 + $0x7d0] ss:$12 sps:$4 sm:$0xff]  }
  0xf8   :  { %3357 = vmatpush1.bf16.msra.mxu0 %v5226_v32  ;;  %4646 = vmatprep.subr.bf16.mxu1 %v5235_v37  ;;  %v5301_v32 = vld [vmem:[%s7047_s1 + $0xa08] ss:$12 sps:$4 sm:$0xff]   ;;  %v5306_v37 = vld [vmem:[%s7047_s1 + $0xa20] ss:$12 sps:$4 sm:$0xff]  }
  0xf9   :  { %3358 = vmatprep.subr.bf16.mxu0 %v5234_v36  ;;  %v5308_v36 = vld [vmem:[%s7047_s1 + $0xa24] ss:$12 sps:$4 sm:$0xff]  }
  0xfb   :  { %4647 = vmatpush3.bf16.msra.mxu1 %v5237_v39  ;;  %v5313_v39 = vld [vmem:[%s7047_s1 + $0xa3c] ss:$12 sps:$4 sm:$0xff]  }
  0xfc   :  { %3359 = vmatpush1.bf16.msra.mxu0 %v5232_v38  ;;  %4648 = vmatprep.subr.bf16.mxu1 %v5241_v45  ;;  %v5310_v38 = vld [vmem:[%s7047_s1 + $0x7e8] ss:$12 sps:$4 sm:$0xff]   ;;  %v5315_v45 = vld [vmem:[%s7047_s1 + $0x800] ss:$12 sps:$4 sm:$0xff]  }
  0xfd   :  { %3360 = vmatprep.subr.bf16.mxu0 %v5240_v43  ;;  %v5311_v43 = vld [vmem:[%s7047_s1 + $0xa38] ss:$12 sps:$4 sm:$0xff]  }
  0xff   :  { %4649 = vmatpush3.bf16.msra.mxu1 %v5242_v47  ;;  %v5320_v47 = vld [vmem:[%s7047_s1 + $0x8d8] ss:$12 sps:$4 sm:$0xff]  }
 0x100   :  { %3361 = vmatpush1.bf16.msra.mxu0 %v5238_v46  ;;  %4662 = vmatprep.subr.bf16.mxu1 %v5249_v50  ;;  %v5319_v46 = vld [vmem:[%s7047_s1 + $0xa54] ss:$12 sps:$4 sm:$0xff]   ;;  %v5322_v50 = vld [vmem:[%s7047_s1 + $0x818] ss:$12 sps:$4 sm:$0xff]  }
 0x101   :  { %3381 = vmatprep.subr.bf16.mxu0 %v5248_v15  ;;  %v5317_v15 = vld [vmem:[%s7047_s1 + $0xa50] ss:$12 sps:$4 sm:$0xff]  }
 0x102   :  { %3711 = vmatmul.mubr.bf16.vlgmr.msra.gmra.mrb[32].mxu1 %v5490_v58  ;;  %v6631_v58 = vld [vmem:[%s7048_s0 + $0x30] ss:$72 sps:$4 sm:$0xff]  }
 0x103   :  { %3363 = vmatmul.mubr.bf16.vlgmr.msra.gmra.mrb[0].mxu0 %v6408_v23  ;;  %4663 = vmatpush3.bf16.msra.mxu1 %v5250_v54  ;;  %v5323_v54 = vld [vmem:[%s7047_s1 + $0xa68] ss:$12 sps:$4 sm:$0xff]  }
 0x104   :  { %3382 = vmatpush1.bf16.msra.mxu0 %v5246_v52  ;;  %4664 = vmatprep.subr.bf16.mxu1 %v5254_v56  ;;  %v5326_v52 = vld [vmem:[%s7047_s1 + $0x8f0] ss:$12 sps:$4 sm:$0xff]  }
 0x105   :  { %3383 = vmatprep.subr.bf16.mxu0 %v5253_v55  ;;  %3718 = vmatprep.mubr.bf16.mxu1 %v6011_v41  ;;  %v5264_v41 = vld [vmem:[%s7047_s1 + $0x710] ss:$12 sps:$4 sm:$0xff]  }
 0x106   :  { %3372 = vmatprep.mubr.bf16.mxu0 %v6428_v57  ;;  %v5327_v55 = vld [vmem:[%s7047_s1 + $0x830] ss:$12 sps:$4 sm:$0xff]  }
 0x107   :  { %4665 = vmatpush3.bf16.msra.mxu1 %v5255_v59  ;;  %v5333_v56 = vld [vmem:[%s7047_s1 + $0xa84] ss:$12 sps:$4 sm:$0xff]   ;;  %v5331_v59 = vld [vmem:[%s7047_s1 + $0xa80] ss:$12 sps:$4 sm:$0xff]  }
 0x108   :  { %3384 = vmatpush1.bf16.msra.mxu0 %v5251_v31  ;;  %4666 = vmatprep.subr.bf16.mxu1 %v5259_v61  ;;  %v5334_v31 = vld [vmem:[%s7047_s1 + $0x9c8] ss:$12 sps:$4 sm:$0xff]  }
 0x109   :  { %3385 = vmatprep.subr.bf16.mxu0 %v5258_v60  ;;  %v5335_v60 = vld [vmem:[%s7047_s1 + $0x908] ss:$12 sps:$4 sm:$0xff]  }
 0x10a   :  { %3719 = vmatmul.mubr.bf16.gmra.mrb[36].mxu1 %v6013_v42  ;;  %v5269_v42 = vld [vmem:[%s7047_s1 + $0x728] ss:$12 sps:$4 sm:$0xff]  }
 0x10b   :  { %3373 = vmatmul.mubr.bf16.gmra.mrb[4].mxu0 %v6448_v63  ;;  %4667 = vmatpush3.bf16.msra.mxu1 %v5260_v0  ;;  %v5338_v61 = vld [vmem:[%s7047_s1 + $0xa9c] ss:$12 sps:$4 sm:$0xff]   ;;  %v39_v0 = vld [vmem:[%s7048_s0 + $0xc0] sm:$0x11] }
 0x10c   :  { %3386 = vmatpush1.bf16.msra.mxu0 %v5256_v62  ;;  %4668 = vmatprep.subr.bf16.mxu1 %v5264_v41  ;;  %v5339_v62 = vld [vmem:[%s7047_s1 + $0x9e0] ss:$12 sps:$4 sm:$0xff]  }
 0x10d   :  { %3387 = vmatprep.subr.bf16.mxu0 %v5263_v1  ;;  %3758 = vmatprep.mubr.bf16.mxu1 %v6039_v49  ;;  %v5271_v49 = vld [vmem:[%s7047_s1 + $0x978] ss:$12 sps:$4 sm:$0xff]   ;;  %v5340_v41 = vld [vmem:[%s7047_s1 + $0x920] ss:$12 sps:$4 sm:$0xff]  }
 0x10e   :  { %3413 = vmatprep.mubr.bf16.mxu0 %v6462_v2  ;;  %v5336_v1 = vld [vmem:[%s7047_s1 + $0xa98] ss:$12 sps:$4 sm:$0xff]  }
 0x10f   :  { %4669 = vmatpush3.bf16.msra.mxu1 %v5265_v5  ;;  %v6659_v5 = vcombine.high %v39_v0, %v39_v0 }
 0x110   :  { %3388 = vmatpush1.bf16.msra.mxu0 %v5261_v3  ;;  %4670 = vmatprep.subr.bf16.mxu1 %v5269_v42  ;;  %v5343_v3 = vld [vmem:[%s7047_s1 + $0xab4] ss:$12 sps:$4 sm:$0xff]   ;;  %v5345_v42 = vld [vmem:[%s7047_s1 + $0x938] ss:$12 sps:$4 sm:$0xff]  }
 0x111   :  { %3389 = vmatprep.subr.bf16.mxu0 %v5268_v4  ;;  %v5341_v4 = vld [vmem:[%s7047_s1 + $0xab0] ss:$12 sps:$4 sm:$0xff]  }
 0x113   :  { %4671 = vmatpush3.bf16.msra.mxu1 %v5270_v7  ;;  %v6678_v7 = vcombine.low %v39_v0, %v39_v0 }
 0x114   :  { %3390 = vmatpush1.bf16.msra.mxu0 %v5266_v6  ;;  %4672 = vmatprep.subr.bf16.mxu1 %v5274_v28  ;;  %v5348_v6 = vld [vmem:[%s7047_s1 + $0xacc] ss:$12 sps:$4 sm:$0xff]   ;;  %v6686_v28 = vld [vmem:[%s7048_s0 + $0x3c] ss:$72 sps:$4 sm:$0xff]  }
 0x115   :  { %3391 = vmatprep.subr.bf16.mxu0 %v5273_v8  ;;  %v5346_v8 = vld [vmem:[%s7047_s1 + $0xac8] ss:$12 sps:$4 sm:$0xff]  }
 0x117   :  { %4673 = vmatpush3.bf16.msra.mxu1 %v5275_v9  ;;  %v5353_v9 = vld [vmem:[%s7047_s1 + $0xae4] ss:$12 sps:$4 sm:$0xff]  }
 0x118   :  { %3392 = vmatpush1.bf16.msra.mxu0 %v5271_v49  ;;  %4674 = vmatprep.subr.bf16.mxu1 %v5279_v11  ;;  %v5350_v49 = vld [vmem:[%s7047_s1 + $0x950] ss:$12 sps:$4 sm:$0xff]   ;;  %v5355_v11 = vld [vmem:[%s7047_s1 + $0x968] ss:$12 sps:$4 sm:$0xff]  }
 0x119   :  { %3393 = vmatprep.subr.bf16.mxu0 %v5278_v10  ;;  %v5354_v10 = vld [vmem:[%s7047_s1 + $0xa28] ss:$12 sps:$4 sm:$0xff]  }
 0x11b   :  { %4675 = vmatpush3.bf16.msra.mxu1 %v5280_v13  ;;  %v5356_v13 = vld [vmem:[%s7047_s1 + $0xaf8] ss:$12 sps:$4 sm:$0xff]  }
 0x11c   :  { %3394 = vmatpush1.bf16.msra.mxu0 %v5276_v12  ;;  %4676 = vmatprep.subr.bf16.mxu1 %v5284_v14  ;;  %v5358_v12 = vld [vmem:[%s7047_s1 + $0xafc] ss:$12 sps:$4 sm:$0xff]   ;;  %v5363_v14 = vld [vmem:[%s7047_s1 + $0xb14] ss:$12 sps:$4 sm:$0xff]  }
 0x11d   :  { %3395 = vmatprep.subr.bf16.mxu0 %v5283_v29  ;;  %v5360_v29 = vld [vmem:[%s7047_s1 + $0x980] ss:$12 sps:$4 sm:$0xff]  }
 0x11f   :  { %4677 = vmatpush3.bf16.msra.mxu1 %v5285_v16 }
 0x120   :  { %3396 = vmatpush1.bf16.msra.mxu0 %v5281_v40  ;;  %4690 = vmatprep.subr.bf16.mxu1 %v5289_v18  ;;  %v5364_v40 = vld [vmem:[%s7047_s1 + $0xa58] ss:$12 sps:$4 sm:$0xff]   ;;  %v5361_v18 = vld [vmem:[%s7047_s1 + $0xb10] ss:$12 sps:$4 sm:$0xff]  }
 0x121   :  { %3397 = vmatprep.subr.bf16.mxu0 %v5288_v17 }
 0x122   :  { %3759 = vmatmul.mubr.bf16.vlgmr.msra.gmra.mrb[40].mxu1 %v6178_v30  ;;  %v5299_v30 = vld [vmem:[%s7047_s1 + $0x878] ss:$12 sps:$4 sm:$0xff]  }
 0x123   :  { %4691 = vmatpush3.bf16.msra.mxu1 %v5290_v19  ;;  %3766 = vmatprep.mubr.bf16.mxu1 %v6201_v44  ;;  %v5304_v44 = vld [vmem:[%s7047_s1 + $0x890] ss:$12 sps:$4 sm:$0xff]   ;;  %v5365_v19 = vld [vmem:[%s7047_s1 + $0x998] ss:$12 sps:$4 sm:$0xff]  }
 0x124   :  { %3398 = vmatpush1.bf16.msra.mxu0 %v5286_v34  ;;  %4692 = vmatprep.subr.bf16.mxu1 %v5294_v21  ;;  %v5368_v21 = vld [vmem:[%s7047_s1 + $0xb2c] ss:$12 sps:$4 sm:$0xff]  }
 0x125   :  { %3399 = vmatprep.subr.bf16.mxu0 %v5293_v20 }
 0x127   :  { %4693 = vmatpush3.bf16.msra.mxu1 %v5295_v35  ;;  %v5366_v35 = vld [vmem:[%s7047_s1 + $0xb28] ss:$12 sps:$4 sm:$0xff]  }
 0x128   :  { %3400 = vmatpush1.bf16.msra.mxu0 %v5291_v22  ;;  %4694 = vmatprep.subr.bf16.mxu1 %v5299_v30  ;;  %v5369_v22 = vld [vmem:[%s7047_s1 + $0xa70] ss:$12 sps:$4 sm:$0xff]  }
 0x129   :  { %3401 = vmatprep.subr.bf16.mxu0 %v5298_v24  ;;  %v5370_v24 = vld [vmem:[%s7047_s1 + $0x9b0] ss:$12 sps:$4 sm:$0xff]  }
 0x12a   :  { %3767 = vmatmul.mubr.bf16.gmra.mrb[44].mxu1 %v6219_v48  ;;  %v5309_v48 = vld [vmem:[%s7047_s1 + $0x8a8] ss:$12 sps:$4 sm:$0xff]   ;;  %v5373_v30 = vld [vmem:[%s7047_s1 + $0xb44] ss:$12 sps:$4 sm:$0xff]  }
 0x12b   :  { %4695 = vmatpush3.bf16.msra.mxu1 %v5300_v26  ;;  %3806 = vmatprep.mubr.bf16.mxu1 %v6236_v53  ;;  %v5314_v53 = vld [vmem:[%s7047_s1 + $0x8c0] ss:$12 sps:$4 sm:$0xff]  }
 0x12c   :  { %3402 = vmatpush1.bf16.msra.mxu0 %v5296_v25  ;;  %4696 = vmatprep.subr.bf16.mxu1 %v5304_v44  ;;  %v5374_v25 = vld [vmem:[%s7047_s1 + $0xb48] ss:$12 sps:$4 sm:$0xff]  }
 0x12d   :  { %3403 = vmatprep.subr.bf16.mxu0 %v5303_v27 }
 0x12f   :  { %4697 = vmatpush3.bf16.msra.mxu1 %v5305_v33  ;;  %v5375_v33 = vld [vmem:[%s7047_s1 + $0xa88] ss:$12 sps:$4 sm:$0xff]  }
 0x130   :  { %3404 = vmatpush1.bf16.msra.mxu0 %v5301_v32  ;;  %4698 = vmatprep.subr.bf16.mxu1 %v5309_v48  ;;  %v5371_v32 = vld [vmem:[%s7047_s1 + $0xb40] ss:$12 sps:$4 sm:$0xff]   ;;  %v5378_v48 = vld [vmem:[%s7047_s1 + $0xb5c] ss:$12 sps:$4 sm:$0xff]  }
 0x131   :  { %3405 = vmatprep.subr.bf16.mxu0 %v5308_v36 }
 0x133   :  { %4699 = vmatpush3.bf16.msra.mxu1 %v5310_v38  ;;  %v5376_v38 = vld [vmem:[%s7047_s1 + $0xb58] ss:$12 sps:$4 sm:$0xff]  }
 0x134   :  { %3406 = vmatpush1.bf16.msra.mxu0 %v5306_v37  ;;  %4700 = vmatprep.subr.bf16.mxu1 %v5314_v53  ;;  %v5379_v37 = vld [vmem:[%s7047_s1 + $0xb60] ss:$12 sps:$4 sm:$0xff]  }
 0x135   :  { %3407 = vmatprep.subr.bf16.mxu0 %v5313_v39  ;;  %v5380_v39 = vld [vmem:[%s7047_s1 + $0xaa0] ss:$12 sps:$4 sm:$0xff]  }
 0x136   :  { %v5384_v53 = vld [vmem:[%s7047_s1 + $0xb74] ss:$12 sps:$4 sm:$0xff]  }
 0x137   :  { %4701 = vmatpush3.bf16.msra.mxu1 %v5315_v45  ;;  %v5382_v45 = vld [vmem:[%s7047_s1 + $0xb70] ss:$12 sps:$4 sm:$0xff]  }
 0x138   :  { %3408 = vmatpush1.bf16.msra.mxu0 %v5311_v43  ;;  %4702 = vmatprep.subr.bf16.mxu1 %v5320_v47  ;;  %v5386_v43 = vld [vmem:[%s7047_s1 + $0xb78] ss:$12 sps:$4 sm:$0xff]  }
 0x139   :  { %3409 = vmatprep.subr.bf16.mxu0 %v5319_v46  ;;  %v5387_v46 = vld [vmem:[%s7047_s1 + $0xab8] ss:$12 sps:$4 sm:$0xff]  }
 0x13a   :  { %v5390_v47 = vld [vmem:[%s7047_s1 + $0xb8c] ss:$12 sps:$4 sm:$0xff]  }
 0x13b   :  { %4703 = vmatpush3.bf16.msra.mxu1 %v5322_v50  ;;  %v5388_v50 = vld [vmem:[%s7047_s1 + $0xb88] ss:$12 sps:$4 sm:$0xff]  }
 0x13c   :  { %3410 = vmatpush1.bf16.msra.mxu0 %v5317_v15  ;;  %4704 = vmatprep.subr.bf16.mxu1 %v5326_v52  ;;  %v5391_v15 = vld [vmem:[%s7047_s1 + $0xb90] ss:$12 sps:$4 sm:$0xff]  }
 0x13d   :  { %3411 = vmatprep.subr.bf16.mxu0 %v5325_v51  ;;  %v5392_v51 = vld [vmem:[%s7047_s1 + $0xad0] ss:$12 sps:$4 sm:$0xff]  }
 0x13e   :  { %v5395_v52 = vld [vmem:[%s7047_s1 + $0xba4] ss:$12 sps:$4 sm:$0xff]  }
 0x13f   :  { %4705 = vmatpush3.bf16.msra.mxu1 %v5327_v55  ;;  %v5393_v55 = vld [vmem:[%s7047_s1 + $0xba0] ss:$12 sps:$4 sm:$0xff]  }
 0x140   :  { %3412 = vmatpush1.bf16.msra.mxu0 %v5323_v54  ;;  %4718 = vmatprep.subr.bf16.mxu1 %v5334_v31  ;;  %v5396_v54 = vld [vmem:[%s7047_s1 + $0xba8] ss:$12 sps:$4 sm:$0xff]  }
 0x141   :  { %3432 = vmatprep.subr.bf16.mxu0 %v5333_v56  ;;  %v5397_v56 = vld [vmem:[%s7047_s1 + $0xae8] ss:$12 sps:$4 sm:$0xff]  }
 0x142   :  { %3807 = vmatmul.mubr.bf16.vlgmr.msra.gmra.mrb[48].mxu1 %v6408_v23  ;;  %v5344_v23 = vld [vmem:[%s7047_s1 + $0x9f8] ss:$12 sps:$4 sm:$0xff]   ;;  %v5400_v31 = vld [vmem:[%s7047_s1 + $0xbbc] ss:$12 sps:$4 sm:$0xff]  }
 0x143   :  { %3414 = vmatmul.mubr.bf16.vlgmr.msra.gmra.mrb[0].mxu0 %v6631_v58  ;;  %4719 = vmatpush3.bf16.msra.mxu1 %v5335_v60  ;;  %v5402_v60 = vld [vmem:[%s7047_s1 + $0xb00] ss:$12 sps:$4 sm:$0xff]  }
 0x144   :  { %3433 = vmatpush1.bf16.msra.mxu0 %v5331_v59  ;;  %4720 = vmatprep.subr.bf16.mxu1 %v5339_v62  ;;  %v5398_v59 = vld [vmem:[%s7047_s1 + $0xbb8] ss:$12 sps:$4 sm:$0xff]  }
 0x145   :  { %3434 = vmatprep.subr.bf16.mxu0 %v5338_v61  ;;  %3814 = vmatprep.mubr.bf16.mxu1 %v6428_v57  ;;  %v5349_v57 = vld [vmem:[%s7047_s1 + $0xa10] ss:$12 sps:$4 sm:$0xff]   ;;  %v5405_v61 = vld [vmem:[%s7047_s1 + $0xbd4] ss:$12 sps:$4 sm:$0xff]   ;;  %v5406_v62 = vld [vmem:[%s7047_s1 + $0xbd8] ss:$12 sps:$4 sm:$0xff]  }
 0x146   :  { %3423 = vmatprep.mubr.bf16.mxu0 %v6659_v5 }
 0x147   :  { %4721 = vmatpush3.bf16.msra.mxu1 %v5340_v41 }
 0x148   :  { %3435 = vmatpush1.bf16.msra.mxu0 %v5336_v1  ;;  %4722 = vmatprep.subr.bf16.mxu1 %v5344_v23  ;;  %v5407_v23 = vld [vmem:[%s7047_s1 + $0xb18] ss:$12 sps:$4 sm:$0xff]  }
 0x149   :  { %3436 = vmatprep.subr.bf16.mxu0 %v5343_v3 }
 0x14a   :  { %3815 = vmatmul.mubr.bf16.gmra.mrb[52].mxu1 %v6448_v63  ;;  %v5351_v63 = vld [vmem:[%s7047_s1 + $0xae0] ss:$12 sps:$4 sm:$0xff]  }
 0x14b   :  { %3424 = vmatmul.mubr.bf16.gmra.mrb[4].mxu0 %v6678_v7  ;;  %4723 = vmatpush3.bf16.msra.mxu1 %v5345_v42  ;;  %v5410_v42 = vld [vmem:[%s7047_s1 + $0xbec] ss:$12 sps:$4 sm:$0xff]  }
 0x14c   :  { %3437 = vmatpush1.bf16.msra.mxu0 %v5341_v4  ;;  %4724 = vmatprep.subr.bf16.mxu1 %v5349_v57 }
 0x14d   :  { %3438 = vmatprep.subr.bf16.mxu0 %v5348_v6  ;;  %3854 = vmatprep.mubr.bf16.mxu1 %v6462_v2  ;;  %v5359_v2 = vld [vmem:[%s7047_s1 + $0xa40] ss:$12 sps:$4 sm:$0xff]   ;;  %v5411_v6 = vld [vmem:[%s7047_s1 + $0xbf0] ss:$12 sps:$4 sm:$0xff]  }
 0x14e   :  { %3464 = vmatprep.mubr.bf16.mxu0 %v6686_v28 }
 0x14f   :  { %4725 = vmatpush3.bf16.msra.mxu1 %v5350_v49  ;;  %v5419_v49 = vld [vmem:[%s7047_s1 + $0xcc8] ss:$12 sps:$4 sm:$0xff]  }
 0x150   :  { %3439 = vmatpush1.bf16.msra.mxu0 %v5346_v8  ;;  %4726 = vmatprep.subr.bf16.mxu1 %v5354_v10  ;;  %v5412_v8 = vld [vmem:[%s7047_s1 + $0xb30] ss:$12 sps:$4 sm:$0xff]   ;;  %v5413_v10 = vld [vmem:[%s7048_s0 + $0x38] ss:$72 sps:$4 sm:$0xff]  }
 0x151   :  { %3440 = vmatprep.subr.bf16.mxu0 %v5353_v9 }
 0x153   :  { %4727 = vmatpush3.bf16.msra.mxu1 %v5355_v11 }
 0x154   :  { %3441 = vmatpush1.bf16.msra.mxu0 %v5351_v63  ;;  %4728 = vmatprep.subr.bf16.mxu1 %v5359_v2  ;;  %v40_v63 = vld [vmem:[%s7048_s0 + $0xc8] sm:$0x11] }
 0x155   :  { %3442 = vmatprep.subr.bf16.mxu0 %v5358_v12  ;;  %v6725_v16 = vpop.f32.mrb[0].mxu1  ;;  %v5416_v12 = vld [vmem:[%s7047_s1 + $0xc00] ss:$12 sps:$4 sm:$0xff]   ;;  %v5420_v2 = vld [vmem:[%s7047_s1 + $0xc08] ss:$12 sps:$4 sm:$0xff]  }
 0x156   :  { %v6727_v17 = vpop.f32.mrb[1].mxu1 }
 0x157   :  { %v6732_v34 = vpop.f32.mrb[2].mxu1  ;;  %4729 = vmatpush3.bf16.msra.mxu1 %v5360_v29 }
 0x158   :  { %3443 = vmatpush1.bf16.msra.mxu0 %v5356_v13  ;;  %v6737_v20 = vpop.f32.mrb[3].mxu1  ;;  %4730 = vmatprep.subr.bf16.mxu1 %v5364_v40  ;;  %v5424_v40 = vld [vmem:[%s7047_s1 + $0xce0] ss:$12 sps:$4 sm:$0xff]  }
 0x159   :  { %3444 = vmatprep.subr.bf16.mxu0 %v5363_v14  ;;  %v5423_v14 = vld [vmem:[%s7047_s1 + $0xc1c] ss:$12 sps:$4 sm:$0xff]  }
 0x15b   :  { %4731 = vmatpush3.bf16.msra.mxu1 %v5365_v19  ;;  %v4108_v19 = vcombine.high %v40_v63, %v40_v63 }
 0x15c   :  { %3445 = vmatpush1.bf16.msra.mxu0 %v5361_v18  ;;  %4732 = vmatprep.subr.bf16.mxu1 %v5369_v22  ;;  %v5425_v22 = vld [vmem:[%s7047_s1 + $0xc20] ss:$12 sps:$4 sm:$0xff]  }
 0x15d   :  { %3446 = vmatprep.subr.bf16.mxu0 %v5368_v21  ;;  %v6757_v26 = vpop.f32.mrb[4].mxu1  ;;  %v5421_v21 = vld [vmem:[%s7047_s1 + $0xc18] ss:$12 sps:$4 sm:$0xff]  }
 0x15e   :  { %v6759_v27 = vpop.f32.mrb[5].mxu1 }
 0x15f   :  { %v3174_v44 = vpop.f32.mrb[6].mxu1  ;;  %4733 = vmatpush3.bf16.msra.mxu1 %v5370_v24  ;;  %v5431_v24 = vld [vmem:[%s7047_s1 + $0xcf8] ss:$12 sps:$4 sm:$0xff]  }
 0x160   :  { %3447 = vmatpush1.bf16.msra.mxu0 %v5366_v35  ;;  %v3175_v36 = vpop.f32.mrb[7].mxu1  ;;  %4746 = vmatprep.subr.bf16.mxu1 %v5374_v25  ;;  %v5429_v35 = vld [vmem:[%s7047_s1 + $0xc34] ss:$12 sps:$4 sm:$0xff]   ;;  %v5427_v25 = vld [vmem:[%s7047_s1 + $0xc30] ss:$12 sps:$4 sm:$0xff]  }
 0x161   :  { %3448 = vmatprep.subr.bf16.mxu0 %v5373_v30  ;;  %v4107_v30 = vcombine.low %v40_v63, %v40_v63  ;;  %v5432_v44 = vld [vmem:[%s7047_s1 + $0xc38] ss:$12 sps:$4 sm:$0xff]  }
 0x162   :  { %3855 = vmatmul.mubr.bf16.vlgmr.msra.gmra.mrb[56].mxu1 %v6631_v58  ;;  %v5401_v58 = vld [vmem:[%s7047_s1 + $0xbc0] ss:$12 sps:$4 sm:$0xff]   ;;  %v5464_v63 = vld [vmem:[%s7047_s1 + $0xcd8] ss:$12 sps:$4 sm:$0xff]  }
 0x163   :  { %4747 = vmatpush3.bf16.msra.mxu1 %v5375_v33  ;;  %3862 = vmatprep.mubr.bf16.mxu1 %v6659_v5  ;;  %v5403_v5 = vld [vmem:[%s7047_s1 + $0xbd0] ss:$12 sps:$4 sm:$0xff]   ;;  %v5460_v36 = vld [vmem:[%s7048_s0 + $0x44] ss:$72 sps:$4 sm:$0xff]  }
 0x164   :  { %3449 = vmatpush1.bf16.msra.mxu0 %v5371_v32  ;;  %4748 = vmatprep.subr.bf16.mxu1 %v5379_v37  ;;  %v5435_v32 = vld [vmem:[%s7047_s1 + $0xc4c] ss:$12 sps:$4 sm:$0xff]   ;;  %v5436_v33 = vld [vmem:[%s7047_s1 + $0xd10] ss:$12 sps:$4 sm:$0xff]  }
 0x165   :  { %3450 = vmatprep.subr.bf16.mxu0 %v5378_v48  ;;  %v5433_v48 = vld [vmem:[%s7047_s1 + $0xc48] ss:$12 sps:$4 sm:$0xff]   ;;  %v5437_v37 = vld [vmem:[%s7047_s1 + $0xc50] ss:$12 sps:$4 sm:$0xff]  }
 0x167   :  { %4749 = vmatpush3.bf16.msra.mxu1 %v5380_v39  ;;  %v5441_v39 = vld [vmem:[%s7047_s1 + $0xd28] ss:$12 sps:$4 sm:$0xff]  }
 0x168   :  { %3451 = vmatpush1.bf16.msra.mxu0 %v5376_v38  ;;  %4750 = vmatprep.subr.bf16.mxu1 %v5386_v43  ;;  %v5440_v38 = vld [vmem:[%s7047_s1 + $0xc64] ss:$12 sps:$4 sm:$0xff]   ;;  %v5442_v43 = vld [vmem:[%s7047_s1 + $0xc68] ss:$12 sps:$4 sm:$0xff]  }
 0x169   :  { %3452 = vmatprep.subr.bf16.mxu0 %v5384_v53  ;;  %v5438_v53 = vld [vmem:[%s7047_s1 + $0xc60] ss:$12 sps:$4 sm:$0xff]  }
 0x16a   :  { %3863 = vmatmul.mubr.bf16.gmra.mrb[60].mxu1 %v6678_v7  ;;  %v5408_v7 = vld [vmem:[%s7047_s1 + $0xbe8] ss:$12 sps:$4 sm:$0xff]  }
 0x16b   :  { %4751 = vmatpush3.bf16.msra.mxu1 %v5387_v46  ;;  %3902 = vmatprep.mubr.bf16.mxu1 %v6686_v28  ;;  %v5418_v28 = vld [vmem:[%s7047_s1 + $0xc04] ss:$12 sps:$4 sm:$0xff]   ;;  %v5446_v46 = vld [vmem:[%s7047_s1 + $0xd40] ss:$12 sps:$4 sm:$0xff]  }
 0x16c   :  { %3453 = vmatpush1.bf16.msra.mxu0 %v5382_v45  ;;  %4752 = vmatprep.subr.bf16.mxu1 %v5391_v15  ;;  %v5445_v45 = vld [vmem:[%s7047_s1 + $0xc7c] ss:$12 sps:$4 sm:$0xff]   ;;  %v5447_v15 = vld [vmem:[%s7047_s1 + $0xc80] ss:$12 sps:$4 sm:$0xff]  }
 0x16d   :  { %3454 = vmatprep.subr.bf16.mxu0 %v5390_v47  ;;  %v5443_v47 = vld [vmem:[%s7047_s1 + $0xc78] ss:$12 sps:$4 sm:$0xff]  }
 0x16f   :  { %4753 = vmatpush3.bf16.msra.mxu1 %v5392_v51  ;;  %v5451_v51 = vld [vmem:[%s7047_s1 + $0xd58] ss:$12 sps:$4 sm:$0xff]  }
 0x170   :  { %3455 = vmatpush1.bf16.msra.mxu0 %v5388_v50  ;;  %4754 = vmatprep.subr.bf16.mxu1 %v5396_v54  ;;  %v5450_v50 = vld [vmem:[%s7047_s1 + $0xc94] ss:$12 sps:$4 sm:$0xff]  }
 0x171   :  { %3456 = vmatprep.subr.bf16.mxu0 %v5395_v52 }
 0x173   :  { %4755 = vmatpush3.bf16.msra.mxu1 %v5397_v56 }
 0x174   :  { %3457 = vmatpush1.bf16.msra.mxu0 %v5393_v55  ;;  %4756 = vmatprep.subr.bf16.mxu1 %v5401_v58  ;;  %v5452_v58 = vld [vmem:[%s7047_s1 + $0xc98] ss:$12 sps:$4 sm:$0xff]  }
 0x175   :  { %3458 = vmatprep.subr.bf16.mxu0 %v5400_v31  ;;  %v4566_v0 = vpop.f32.mrb[8].mxu1  ;;  %v5448_v31 = vld [vmem:[%s7047_s1 + $0xc90] ss:$12 sps:$4 sm:$0xff]  }
 0x176   :  { %v4567_v1 = vpop.f32.mrb[9].mxu1 }
 0x177   :  { %v6837_v41 = vadd.f32 %v4567_v1, %v4566_v0  ;;  %v4569_v3 = vpop.f32.mrb[10].mxu1  ;;  %4757 = vmatpush3.bf16.msra.mxu1 %v5402_v60  ;;  %v5455_v60 = vld [vmem:[%s7047_s1 + $0xcac] ss:$12 sps:$4 sm:$0xff]  }
 0x178   :  { %3459 = vmatpush1.bf16.msra.mxu0 %v5398_v59  ;;  %v4570_v4 = vpop.f32.mrb[11].mxu1  ;;  %4758 = vmatprep.subr.bf16.mxu1 %v5406_v62 }
 0x179   :  { %3460 = vmatprep.subr.bf16.mxu0 %v5405_v61  ;;  %v6851_v57 = vadd.f32 %v4570_v4, %v4569_v3  ;;  %v5456_v61 = vld [vmem:[%s7047_s1 + $0xd70] ss:$12 sps:$4 sm:$0xff]   ;;  %v5453_v3 = vld [vmem:[%s7047_s1 + $0xca8] ss:$12 sps:$4 sm:$0xff]  }
 0x17b   :  { %4759 = vmatpush3.bf16.msra.mxu1 %v5407_v23  ;;  %v5463_v23 = vld [vmem:[%s7047_s1 + $0xcc4] ss:$12 sps:$4 sm:$0xff]  }
 0x17c   :  { %3461 = vmatpush1.bf16.msra.mxu0 %v5403_v5  ;;  %4760 = vmatprep.subr.bf16.mxu1 %v5411_v6  ;;  %v5457_v5 = vld [vmem:[%s7047_s1 + $0xcb0] ss:$12 sps:$4 sm:$0xff]   ;;  %v5458_v6 = vld [vmem:[%s7048_s0 + $0x40] ss:$72 sps:$4 sm:$0xff]  }
 0x17d   :  { %3462 = vmatprep.subr.bf16.mxu0 %v5410_v42  ;;  %v4572_v9 = vpop.f32.mrb[12].mxu1 }
 0x17e   :  { %v4573_v11 = vpop.f32.mrb[13].mxu1 }
 0x17f   :  { %4761 = vmatpush3.bf16.msra.mxu1 %v5412_v8  ;;  %v6877_v13 = vadd.f32 %v4573_v11, %v4572_v9  ;;  %v4575_v29 = vpop.f32.mrb[14].mxu1  ;;  %v5470_v11 = vld [vmem:[%s7047_s1 + $0xcf4] ss:$12 sps:$4 sm:$0xff]  }
 0x180   :  { %3463 = vmatpush1.bf16.msra.mxu0 %v5408_v7  ;;  %4774 = vmatprep.subr.bf16.mxu1 %v5419_v49  ;;  %v4576_v18 = vpop.f32.mrb[15].mxu1  ;;  %v5461_v7 = vld [vmem:[%s7047_s1 + $0xcc0] ss:$12 sps:$4 sm:$0xff]   ;;  %v5466_v49 = vld [vmem:[%s7047_s1 + $0xcdc] ss:$12 sps:$4 sm:$0xff]  }
 0x181   :  { %3483 = vmatprep.subr.bf16.mxu0 %v5418_v28  ;;  %v5472_v29 = vld [vmem:[%s7047_s1 + $0xd08] ss:$12 sps:$4 sm:$0xff]  }
 0x182   :  { %3903 = vmatmul.mubr.bf16.vlgmr.msra.gmra.mrb[64].mxu1 %v5413_v10  ;;  %v5480_v18 = vld [vmem:[%s7047_s1 + $0xd3c] ss:$12 sps:$4 sm:$0xff]  }
 0x183   :  { %3465 = vmatmul.mubr.bf16.vlgmr.msra.gmra.mrb[0].mxu0 %v5413_v10  ;;  %4775 = vmatpush3.bf16.msra.mxu1 %v5420_v2  ;;  %v5468_v2 = vld [vmem:[%s7047_s1 + $0xcf0] ss:$12 sps:$4 sm:$0xff]  }
 0x184   :  { %3484 = vmatpush1.bf16.msra.mxu0 %v5416_v12  ;;  %4776 = vmatprep.subr.bf16.mxu1 %v5424_v40  ;;  %v5475_v40 = vld [vmem:[%s7047_s1 + $0xd20] ss:$12 sps:$4 sm:$0xff]  }
 0x185   :  { %3485 = vmatprep.subr.bf16.mxu0 %v5423_v14  ;;  %3910 = vmatprep.mubr.bf16.mxu1 %v4108_v19  ;;  %v5477_v14 = vld [vmem:[%s7047_s1 + $0xd24] ss:$12 sps:$4 sm:$0xff]  }
 0x186   :  { %3474 = vmatprep.mubr.bf16.mxu0 %v4108_v19  ;;  %v5478_v19 = vld [vmem:[%s7047_s1 + $0xd38] ss:$12 sps:$4 sm:$0xff]  }
 0x187   :  { %4777 = vmatpush3.bf16.msra.mxu1 %v5425_v22 }
 0x188   :  { %3486 = vmatpush1.bf16.msra.mxu0 %v5421_v21  ;;  %4778 = vmatprep.subr.bf16.mxu1 %v5431_v24  ;;  %v5483_v21 = vld [vmem:[%s7047_s1 + $0xd54] ss:$12 sps:$4 sm:$0xff]  }
 0x189   :  { %3487 = vmatprep.subr.bf16.mxu0 %v5429_v35 }
 0x18a   :  { %3911 = vmatmul.mubr.bf16.gmra.mrb[68].mxu1 %v4107_v30 }
 0x18b   :  { %3475 = vmatmul.mubr.bf16.gmra.mrb[4].mxu0 %v4107_v30  ;;  %4779 = vmatpush3.bf16.msra.mxu1 %v5432_v44 }
 0x18c   :  { %3488 = vmatpush1.bf16.msra.mxu0 %v5427_v25  ;;  %4780 = vmatprep.subr.bf16.mxu1 %v5436_v33  ;;  %v5481_v25 = vld [vmem:[%s7047_s1 + $0xd50] ss:$12 sps:$4 sm:$0xff]  }
 0x18d   :  { %3489 = vmatprep.subr.bf16.mxu0 %v5435_v32  ;;  %3950 = vmatprep.mubr.bf16.mxu1 %v5460_v36  ;;  %v5486_v32 = vld [vmem:[%s7047_s1 + $0xd6c] ss:$12 sps:$4 sm:$0xff]  }
 0x18e   :  { %3515 = vmatprep.mubr.bf16.mxu0 %v5460_v36 }
 0x18f   :  { %4781 = vmatpush3.bf16.msra.mxu1 %v5437_v37  ;;  %v5484_v37 = vld [vmem:[%s7047_s1 + $0xd68] ss:$12 sps:$4 sm:$0xff]  }
 0x190   :  { %3490 = vmatpush1.bf16.msra.mxu0 %v5433_v48  ;;  %4782 = vmatprep.subr.bf16.mxu1 %v5441_v39 }
 0x191   :  { %3491 = vmatprep.subr.bf16.mxu0 %v5440_v38 }
 0x193   :  { %4783 = vmatpush3.bf16.msra.mxu1 %v5442_v43 }
 0x194   :  { %3492 = vmatpush1.bf16.msra.mxu0 %v5438_v53  ;;  %4784 = vmatprep.subr.bf16.mxu1 %v5446_v46 }
 0x195   :  { %3493 = vmatprep.subr.bf16.mxu0 %v5445_v45  ;;  %v4594_v52 = vpop.f32.mrb[16].mxu1 }
 0x196   :  { %v4595_v54 = vpop.f32.mrb[17].mxu1 }
 0x197   :  { %v4596_v55 = vadd.f32 %v4595_v54, %v4594_v52  ;;  %v4597_v56 = vpop.f32.mrb[18].mxu1  ;;  %4785 = vmatpush3.bf16.msra.mxu1 %v5447_v15 }
 0x198   :  { %3494 = vmatpush1.bf16.msra.mxu0 %v5443_v47  ;;  %v4598_v59 = vpop.f32.mrb[19].mxu1  ;;  %4786 = vmatprep.subr.bf16.mxu1 %v5451_v51 }
 0x199   :  { %3495 = vmatprep.subr.bf16.mxu0 %v5450_v50  ;;  %v3617_v62 = vadd.f32 %v4596_v55, %v6837_v41  ;;  %v4599_v0 = vadd.f32 %v4598_v59, %v4597_v56  ;;  %v41_v41 = vld [vmem:[%s7048_s0 + $0xd0] sm:$0x11] }
 0x19a   :  { %v4110_v8 = vcombine.high %v41_v41, %v41_v41  ;;  %v4109_v12 = vcombine.low %v41_v41, %v41_v41 }
 0x19b   :  { %v3620_v1 = vadd.f32 %v4599_v0, %v6851_v57  ;;  %4787 = vmatpush3.bf16.msra.mxu1 %v5452_v58 }
 0x19c   :  { %3496 = vmatpush1.bf16.msra.mxu0 %v5448_v31  ;;  %4788 = vmatprep.subr.bf16.mxu1 %v5456_v61 }
 0x19d   :  { %3497 = vmatprep.subr.bf16.mxu0 %v5455_v60  ;;  %v4600_v4 = vpop.f32.mrb[20].mxu1 }
 0x19e   :  { %v4601_v42 = vpop.f32.mrb[21].mxu1 }
 0x19f   :  { %v4602_v57 = vadd.f32 %v4601_v42, %v4600_v4  ;;  %4789 = vmatpush3.bf16.msra.mxu1 %v5457_v5  ;;  %v4603_v28 = vpop.f32.mrb[22].mxu1 }
 0x1a0   :  { %3498 = vmatpush1.bf16.msra.mxu0 %v5453_v3  ;;  %v4604_v9 = vpop.f32.mrb[23].mxu1 }
 0x1a1   :  { %3499 = vmatprep.subr.bf16.mxu0 %v5463_v23  ;;  %v3625_v10 = vadd.f32 %v4602_v57, %v6877_v13  ;;  %v5474_v13 = vld [vmem:[%s7047_s1 + $0xd0c] ss:$12 sps:$4 sm:$0xff]   ;;  %s5491_s1 = smov 32  }
 0x1a2   :  { %3951 = vmatmul.mubr.bf16.vlgmr.msra.gmra.mrb[72].mxu1 %v5458_v6 }
 0x1a3   :  { %3958 = vmatprep.mubr.bf16.mxu1 %v4110_v8 }
 0x1a4   :  { %3500 = vmatpush1.bf16.msra.mxu0 %v5461_v7 }
 0x1a5   :  { %3501 = vmatprep.subr.bf16.mxu0 %v5466_v49 }
 0x1a8   :  { %3502 = vmatpush1.bf16.msra.mxu0 %v5464_v63 }
 0x1a9   :  { %3503 = vmatprep.subr.bf16.mxu0 %v5470_v11 }
 0x1aa   :  { %3959 = vmatmul.mubr.bf16.gmra.mrb[76].mxu1 %v4109_v12 }
 0x1ac   :  { %3504 = vmatpush1.bf16.msra.mxu0 %v5468_v2 }
 0x1ad   :  { %3505 = vmatprep.subr.bf16.mxu0 %v5474_v13 }
 0x1b0   :  { %3506 = vmatpush1.bf16.msra.mxu0 %v5472_v29 }
 0x1b1   :  { %3507 = vmatprep.subr.bf16.mxu0 %v5477_v14 }
 0x1b4   :  { %3508 = vmatpush1.bf16.msra.mxu0 %v5475_v40 }
 0x1b5   :  { %3509 = vmatprep.subr.bf16.mxu0 %v5480_v18  ;;  %v4622_v22 = vpop.f32.mrb[24].mxu1 }
 0x1b6   :  { %v4623_v35 = vpop.f32.mrb[25].mxu1 }
 0x1b7   :  { %v4624_v24 = vadd.f32 %v4623_v35, %v4622_v22  ;;  %v4625_v30 = vpop.f32.mrb[26].mxu1 }
 0x1b8   :  { %3510 = vmatpush1.bf16.msra.mxu0 %v5478_v19  ;;  %v4626_v44 = vpop.f32.mrb[27].mxu1 }
 0x1b9   :  { %3511 = vmatprep.subr.bf16.mxu0 %v5483_v21  ;;  %v3665_v33 = vadd.f32 %v4624_v24, %v3617_v62  ;;  %v4627_v36 = vadd.f32 %v4626_v44, %v4625_v30 }
 0x1bb   :  { %v3668_v48 = vadd.f32 %v4627_v36, %v3620_v1 }
 0x1bc   :  { %3512 = vmatpush1.bf16.msra.mxu0 %v5481_v25 }
 0x1bd   :  { %3513 = vmatprep.subr.bf16.mxu0 %v5486_v32  ;;  %v4628_v38 = vpop.f32.mrb[28].mxu1 }
 0x1be   :  { %v4629_v39 = vpop.f32.mrb[29].mxu1 }
 0x1bf   :  { %v4630_v53 = vadd.f32 %v4629_v39, %v4628_v38  ;;  %v4631_v43 = vpop.f32.mrb[30].mxu1 }
 0x1c0   :  { %3514 = vmatpush1.bf16.msra.mxu0 %v5484_v37  ;;  %v4632_v45 = vpop.f32.mrb[31].mxu1 }
 0x1c1   :  { %v3673_v46 = vadd.f32 %v4630_v53, %v3625_v10 }
 0x1c3   :  { %3516 = vmatmul.mubr.bf16.vlgmr.msra.gmra.mrb[0].mxu0 %v5458_v6 }
 0x1c4   :  { %3525 = vmatprep.mubr.bf16.mxu0 %v4110_v8 }
 0x1cb   :  { %3526 = vmatmul.mubr.bf16.gmra.mrb[4].mxu0 %v4109_v12 }
 0x1d5   :  { %v4650_v47 = vpop.f32.mrb[32].mxu1 }
 0x1d6   :  { %v4651_v15 = vpop.f32.mrb[33].mxu1 }
 0x1d7   :  { %v4652_v50 = vadd.f32 %v4651_v15, %v4650_v47  ;;  %v4653_v51 = vpop.f32.mrb[34].mxu1 }
 0x1d8   :  { %v4654_v52 = vpop.f32.mrb[35].mxu1 }
 0x1d9   :  { %v3713_v54 = vadd.f32 %v4652_v50, %v3665_v33  ;;  %v4655_v55 = vadd.f32 %v4654_v52, %v4653_v51 }
 0x1db   :  { %v3716_v56 = vadd.f32 %v4655_v55, %v3668_v48 }
 0x1dd   :  { %v4656_v31 = vpop.f32.mrb[36].mxu1 }
 0x1de   :  { %v4657_v58 = vpop.f32.mrb[37].mxu1 }
 0x1df   :  { %v4658_v59 = vadd.f32 %v4657_v58, %v4656_v31  ;;  %v4659_v60 = vpop.f32.mrb[38].mxu1 }
 0x1e0   :  { %v4660_v61 = vpop.f32.mrb[39].mxu1 }
 0x1e1   :  { %v3721_v62 = vadd.f32 %v4658_v59, %v3673_v46 }
 0x1f5   :  { %v4678_v0 = vpop.f32.mrb[40].mxu1 }
 0x1f6   :  { %v4679_v1 = vpop.f32.mrb[41].mxu1 }
 0x1f7   :  { %v4680_v3 = vadd.f32 %v4679_v1, %v4678_v0  ;;  %v4681_v5 = vpop.f32.mrb[42].mxu1 }
 0x1f8   :  { %v4682_v23 = vpop.f32.mrb[43].mxu1 }
 0x1f9   :  { %v3761_v41 = vadd.f32 %v4680_v3, %v3713_v54  ;;  %v4683_v4 = vadd.f32 %v4682_v23, %v4681_v5 }
 0x1fb   :  { %v3764_v42 = vadd.f32 %v4683_v4, %v3716_v56 }
 0x1fd   :  { %v4684_v6 = vpop.f32.mrb[44].mxu1 }
 0x1fe   :  { %v4685_v57 = vpop.f32.mrb[45].mxu1 }
 0x1ff   :  { %v4686_v7 = vadd.f32 %v4685_v57, %v4684_v6  ;;  %v4687_v8 = vpop.f32.mrb[46].mxu1 }
 0x200   :  { %v4688_v28 = vpop.f32.mrb[47].mxu1 }
 0x201   :  { %v3769_v49 = vadd.f32 %v4686_v7, %v3721_v62 }
 0x215   :  { %v4706_v9 = vpop.f32.mrb[48].mxu1 }
 0x216   :  { %v4707_v10 = vpop.f32.mrb[49].mxu1 }
 0x217   :  { %v4708_v63 = vadd.f32 %v4707_v10, %v4706_v9  ;;  %v4709_v11 = vpop.f32.mrb[50].mxu1 }
 0x218   :  { %v4710_v12 = vpop.f32.mrb[51].mxu1 }
 0x219   :  { %v3809_v2 = vadd.f32 %v4708_v63, %v3761_v41  ;;  %v4711_v13 = vadd.f32 %v4710_v12, %v4709_v11 }
 0x21b   :  { %v3812_v29 = vadd.f32 %v4711_v13, %v3764_v42 }
 0x21d   :  { %v4712_v14 = vpop.f32.mrb[52].mxu1 }
 0x21e   :  { %v4713_v40 = vpop.f32.mrb[53].mxu1 }
 0x21f   :  { %v4714_v18 = vadd.f32 %v4713_v40, %v4712_v14  ;;  %v4715_v19 = vpop.f32.mrb[54].mxu1 }
 0x220   :  { %v4716_v21 = vpop.f32.mrb[55].mxu1 }
 0x221   :  { %v3817_v22 = vadd.f32 %v4714_v18, %v3769_v49 }
 0x235   :  { %v4734_v35 = vpop.f32.mrb[56].mxu1 }
 0x236   :  { %v4735_v24 = vpop.f32.mrb[57].mxu1 }
 0x237   :  { %v4736_v30 = vadd.f32 %v4735_v24, %v4734_v35  ;;  %v4737_v25 = vpop.f32.mrb[58].mxu1 }
 0x238   :  { %v4738_v44 = vpop.f32.mrb[59].mxu1 }
 0x239   :  { %v3857_v32 = vadd.f32 %v4736_v30, %v3809_v2  ;;  %v4739_v33 = vadd.f32 %v4738_v44, %v4737_v25 }
 0x23b   :  { %v3860_v36 = vadd.f32 %v4739_v33, %v3812_v29 }
 0x23d   :  { %v4740_v48 = vpop.f32.mrb[60].mxu1 }
 0x23e   :  { %v4741_v37 = vpop.f32.mrb[61].mxu1 }
 0x23f   :  { %v4742_v38 = vadd.f32 %v4741_v37, %v4740_v48  ;;  %v4743_v39 = vpop.f32.mrb[62].mxu1 }
 0x240   :  { %v4744_v53 = vpop.f32.mrb[63].mxu1 }
 0x241   :  { %v3865_v43 = vadd.f32 %v4742_v38, %v3817_v22  ;;  %v4543_v53 = vld [vmem:[%s7049_s2] ss:$0 sm:$0xff] }
 0x255   :  { %v4762_v45 = vpop.f32.mrb[64].mxu1 }
 0x256   :  { %v4763_v46 = vpop.f32.mrb[65].mxu1 }
 0x257   :  { %v4764_v47 = vadd.f32 %v4763_v46, %v4762_v45  ;;  %v4765_v15 = vpop.f32.mrb[66].mxu1 }
 0x258   :  { %v4766_v50 = vpop.f32.mrb[67].mxu1 }
 0x259   :  { %v3905_v51 = vadd.f32 %v4764_v47, %v3857_v32  ;;  %v4767_v52 = vadd.f32 %v4766_v50, %v4765_v15 }
 0x25b   :  { %v3908_v54 = vadd.f32 %v4767_v52, %v3860_v36 }
 0x25d   :  { %v4768_v55 = vpop.f32.mrb[68].mxu1 }
 0x25e   :  { %v4769_v56 = vpop.f32.mrb[69].mxu1 }
 0x25f   :  { %v4770_v31 = vadd.f32 %v4769_v56, %v4768_v55  ;;  %v4771_v58 = vpop.f32.mrb[70].mxu1 }
 0x260   :  { %v4772_v59 = vpop.f32.mrb[71].mxu1 }
 0x261   :  { %v3913_v60 = vadd.f32 %v4770_v31, %v3865_v43 }
 0x275   :  { %v4790_v61 = vpop.f32.mrb[72].mxu1 }
 0x276   :  { %v4791_v62 = vpop.f32.mrb[73].mxu1 }
 0x277   :  { %v4792_v0 = vadd.f32 %v4791_v62, %v4790_v61  ;;  %v4793_v1 = vpop.f32.mrb[74].mxu1 }
 0x278   :  { %v4794_v3 = vpop.f32.mrb[75].mxu1 }
 0x279   :  { %v4795_v5 = vadd.f32 %v4794_v3, %v4793_v1  ;;  %v3953_v23 = vadd.f32 %v4792_v0, %v3905_v51 }
 0x27b   :  { %v3956_v41 = vadd.f32 %v4795_v5, %v3908_v54  ;;  %3997 = vrot.lane.b32.xlu0 %v3953_v23, %s5491_s1 }
 0x27d   :  { %v4796_v4 = vpop.f32.mrb[76].mxu1 }
 0x27e   :  { %v4797_v42 = vpop.f32.mrb[77].mxu1 }
 0x27f   :  { %v4798_v6 = vadd.f32 %v4797_v42, %v4796_v4  ;;  %v4799_v57 = vpop.f32.mrb[78].mxu1  ;;  %3999 = vrot.lane.b32.xlu0 %v3956_v41, %s5491_s1 }
 0x280   :  { %v4800_v7 = vpop.f32.mrb[79].mxu1 }
 0x281   :  { %v3961_v8 = vadd.f32 %v4798_v6, %v3913_v60 }
 0x283   :  { %4001 = vrot.lane.b32.xlu1 %v3961_v8, %s5491_s1 }
 0x296   :  { %v3517_v28 = vpop.f32.mrb[0].mxu0 }
 0x297   :  { %v4802_v49 = vadd.f32 %v3517_v28, %v6725_v16  ;;  %v3519_v9 = vpop.f32.mrb[1].mxu0 }
 0x298   :  { %v4803_v10 = vadd.f32 %v3519_v9, %v6727_v17  ;;  %v3521_v63 = vpop.f32.mrb[2].mxu0 }
 0x299   :  { %v4804_v11 = vadd.f32 %v3521_v63, %v6732_v34  ;;  %v3523_v12 = vpop.f32.mrb[3].mxu0  ;;  %3972 = vrot.lane.b32.xlu1 %v4802_v49, %s5491_s1 }
 0x29a   :  { %v4805_v2 = vadd.f32 %v3523_v12, %v6737_v20  ;;  %3974 = vrot.lane.b32.xlu0 %v4803_v10, %s5491_s1 }
 0x29d   :  { %3976 = vrot.lane.b32.xlu1 %v4804_v11, %s5491_s1 }
 0x29e   :  { %v3527_v13 = vpop.f32.mrb[4].mxu0  ;;  %3978 = vrot.lane.b32.xlu0 %v4805_v2, %s5491_s1 }
 0x29f   :  { %v4806_v29 = vadd.f32 %v3527_v13, %v6757_v26  ;;  %v3529_v14 = vpop.f32.mrb[5].mxu0 }
 0x2a0   :  { %v4807_v40 = vadd.f32 %v3529_v14, %v6759_v27  ;;  %v3531_v16 = vpop.f32.mrb[6].mxu0 }
 0x2a1   :  { %v3532_v18 = vpop.f32.mrb[7].mxu0  ;;  %3980 = vrot.lane.b32.xlu1 %v4806_v29, %s5491_s1 }
 0x2a2   :  { %3982 = vrot.lane.b32.xlu0 %v4807_v40, %s5491_s1 }
 0x2ed   :  { %v3998_v17 = vpop.permute.xlu0 %3997 }
 0x2ee   :  { %v4006_v19 = vmax.f32 %v4803_v10, %v3998_v17  ;;  %v4007_v34 = vmax.f32 %v3953_v23, %v3998_v17 }
 0x2f0   :  { %4020 = vrot.lane.b32.xlu0 %v4007_v34, %s5492_s19  ;;  %4018 = vrot.lane.b32.xlu1 %v4006_v19, %s5492_s19 }
 0x2f1   :  { %v4000_v20 = vpop.permute.xlu0 %3999 }
 0x2f2   :  { %v4008_v21 = vmax.f32 %v4805_v2, %v4000_v20  ;;  %v4009_v22 = vmax.f32 %v3956_v41, %v4000_v20 }
 0x2f4   :  { %4024 = vrot.lane.b32.xlu0 %v4009_v22, %s5492_s19  ;;  %4022 = vrot.lane.b32.xlu1 %v4008_v21, %s5492_s19 }
 0x2f5   :  { %v4002_v35 = vpop.permute.xlu1 %4001 }
 0x2f6   :  { %v4010_v26 = vmax.f32 %v4807_v40, %v4002_v35  ;;  %v4011_v24 = vmax.f32 %v3961_v8, %v4002_v35 }
 0x2f8   :  { %4028 = vrot.lane.b32.xlu0 %v4011_v24, %s5492_s19  ;;  %4026 = vrot.lane.b32.xlu1 %v4010_v26, %s5492_s19 }
 0x30b   :  { %v3973_v27 = vpop.permute.xlu1 %3972 }
 0x30c   :  { %v3975_v30 = vpop.permute.xlu0 %3974 }
 0x30d   :  { %v3985_v36 = vsel %vm3984_vm0, %v3973_v27, %v3975_v30 }
 0x30e   :  { %v3991_v48 = vmax.f32 %v4802_v49, %v3985_v36 }
 0x30f   :  { %v3977_v25 = vpop.permute.xlu1 %3976 }
 0x310   :  { %v3979_v44 = vpop.permute.xlu0 %3978 }
 0x311   :  { %v3986_v39 = vsel %vm3984_vm0, %v3977_v25, %v3979_v44 }
 0x312   :  { %v3992_v46 = vmax.f32 %v4804_v11, %v3986_v39 }
 0x313   :  { %v3981_v32 = vpop.permute.xlu1 %3980 }
 0x314   :  { %v3983_v33 = vpop.permute.xlu0 %3982 }
 0x315   :  { %v3987_v51 = vsel %vm3984_vm0, %v3981_v32, %v3983_v33 }
 0x316   :  { %v3993_v56 = vmax.f32 %v4806_v29, %v3987_v51 }
 0x362   :  { %v4019_v37 = vpop.permute.xlu1 %4018  ;;  %v4021_v38 = vpop.permute.xlu0 %4020 }
 0x363   :  { %v4031_v43 = vsel %vm4030_vm1, %v4019_v37, %v4021_v38 }
 0x364   :  { %v4037_v45 = vmax.f32 %v3991_v48, %v4031_v43 }
 0x366   :  { %v4047_v47 = vadd.f32 %v4543_v53, %v4037_v45  ;;  %v4023_v15 = vpop.permute.xlu1 %4022  ;;  %v4025_v50 = vpop.permute.xlu0 %4024 }
 0x367   :  { %v4032_v52 = vsel %vm4030_vm1, %v4023_v15, %v4025_v50 }
 0x368   :  { %v4050_v54 = vmax.f32 %v4047_v47, 0.0  ;;  %v4038_v55 = vmax.f32 %v3992_v46, %v4032_v52 }
 0x36a   :  { %v4547_v31 = vpack.c.bf16 %v4050_v54, %v4050_v54  ;;  %v4048_v58 = vadd.f32 %v4543_v53, %v4038_v55  ;;  %v4027_v59 = vpop.permute.xlu1 %4026  ;;  %v4029_v60 = vpop.permute.xlu0 %4028 }
 0x36b   :  { %v4033_v61 = vsel %vm4030_vm1, %v4027_v59, %v4029_v60 }
 0x36c   :  { %4067 = vst.msk [vmem:[%s7050_s3] sm:$0xf] %vm4066_vm2, %v4547_v31  ;;  %v4051_v62 = vmax.f32 %v4048_v58, 0.0  ;;  %v4039_v0 = vmax.f32 %v3993_v56, %v4033_v61 }
 0x36e   :  { %v4548_v1 = vpack.c.bf16 %v4051_v62, %v4051_v62  ;;  %v4049_v3 = vadd.f32 %v4543_v53, %v4039_v0 }
 0x370   :  { %4068 = vst.msk [vmem:[%s7050_s3 + $0x4] sm:$0xf] %vm4066_vm2, %v4548_v1  ;;  %v4052_v5 = vmax.f32 %v4049_v3, 0.0 }
 0x372   :  { %v4549_v23 = vpack.c.bf16 %v4052_v5, %v4052_v5 }
 0x374   :  { %4070 = vst.msk [vmem:[%s7050_s3 + $0x8] sm:$0x1] %vm4069_vm3, %v4549_v23 }

</bundles_post_ra>
